<compile_context>
chip_gen: v5e
topology: v5e:2x2
jax: 0.10.0
libtpu: 0.0.40
codegen_flags: <defaults>
</compile_context>

<pallas_src>
import numpy as np
import jax
import jax.numpy as jnp
from jax import lax
from jax.experimental import pallas as pl
from jax.experimental.pallas import tpu as pltpu   # noqa: F401  (TPU backend)

INPUT_DIM = 2      # GLOBAL_INPUT_DIM / DEC_OUTPUT_DIM
EMBED = 256        # INPUT_EMBED_SIZE
ENC_H = 256        # ENC_HIDDEN_SIZE
LATENT = 32        # LATENT_DIM
GOAL_H = 64        # GOAL_HIDDEN_SIZE (2 * 32, bidirectional GRU)
DEC_OUT = 2
WDT = jnp.bfloat16  # weight storage dtype for the large matmuls

# Fixed positional ordering of the weight refs handed to the kernels.
ENC_PARAMS = ["box_embed_w", "box_embed_b",
              "enc_wih", "enc_bih", "enc_whh", "enc_bhh"]
GT_PARAMS = ["fut_h_w", "fut_h_b",
             "gt_wih_f", "gt_bih_f", "gt_whh_f", "gt_bhh_f",
             "gt_wih_b", "gt_bih_b", "gt_whh_b", "gt_bhh_b"]
P_HEAD = ["p_w1", "p_b1", "p_w2", "p_b2", "p_w3", "p_b3"]
Q_HEAD = ["q_w1", "q_b1", "q_w2", "q_b2", "q_w3", "q_b3"]
D_HEAD = ["d_w1", "d_b1", "d_w2", "d_b2", "d_w3", "d_b3"]
POSTERIOR_ORDER = ENC_PARAMS + GT_PARAMS + P_HEAD + Q_HEAD + D_HEAD   # 34 weights
PRIOR_ORDER = ENC_PARAMS + P_HEAD + D_HEAD                            # 18 weights


# ---------------------------------------------------------------------------
# In-kernel helpers (operate on loaded values unless noted).
# ---------------------------------------------------------------------------
def _bdot(x, w):
    """MXU matmul: cast lhs to the (bf16) weight dtype, accumulate in f32."""
    return jnp.dot(x.astype(w.dtype), w, preferred_element_type=jnp.float32)


def _vpu_matmul(lhs, rhs):
    """(N, Kc) @ (Kc, F) as Kc broadcast FMAs on the VPU (tiny Kc only).

    Keeps tiny-contraction work (raw 2-d coordinates, one-hot per-sample
    replication) off the MXU and in f32.  Use jnp.dot if Kc grows large."""
    acc = lhs[:, 0:1] * rhs[0:1, :]
    for k in range(1, lhs.shape[1]):
        acc = acc + lhs[:, k:k + 1] * rhs[k:k + 1, :]
    return acc


def _proj2(x, w, b):
    """Linear layer with a 2-wide contraction, on the VPU, all f32."""
    return _vpu_matmul(x, w) + b


def _gru_gates(gi, gh, h, H):
    """PyTorch GRU cell update given stacked [r|z|n] pre-activations (f32)."""
    r = jax.nn.sigmoid(gi[:, :H] + gh[:, :H])
    z = jax.nn.sigmoid(gi[:, H:2 * H] + gh[:, H:2 * H])
    n = jnp.tanh(gi[:, 2 * H:] + r * gh[:, 2 * H:])
    return (1.0 - z) * n + z * h


def _mlp3(v, w1, b1, w2, b2, w3, b3):
    h1 = jnp.maximum(_bdot(v, w1) + b1, 0.0)
    h2 = jnp.maximum(_bdot(h1, w2) + b2, 0.0)
    return _bdot(h2, w3) + b3


def _goal_decoder(hx, zmu, zlogvar, ks, sel, w1_ref, b1, w2, b2, w3, b3):
    """goal_decoder on all B*K samples at once.

    d_w1 is row-split into an h_x part (applied once per batch row) and a Z
    part; the per-sample replication of the batch-row terms uses the one-hot
    `sel` matrix on the VPU, so the (B, K, 288) enc_h_and_z tensor is never
    materialized."""
    w1h = w1_ref[0:ENC_H, :]                      # (256, 128)
    w1z = w1_ref[ENC_H:ENC_H + LATENT, :]         # (32, 128)
    zstd = jnp.exp(0.5 * zlogvar)                                   # (B, 32)
    part_b = _bdot(hx, w1h) + _bdot(zmu, w1z) + b1                  # (B, 128)
    part_s = _vpu_matmul(sel, part_b)                               # (B*K, 128)
    zstd_s = _vpu_matmul(sel, zstd)                                 # (B*K, 32)
    h1 = jnp.maximum(part_s + _bdot(ks * zstd_s, w1z), 0.0)         # (B*K, 128)
    h2 = jnp.maximum(_bdot(h1, w2) + b2, 0.0)                       # (B*K, 64)
    return _bdot(h2, w3) + b3                                       # (B*K, 2)


# ---------------------------------------------------------------------------
# Fused posterior path: encoder GRU + p_z_x + bi-GRU + q_z_xy + KLD + decoder.
# ---------------------------------------------------------------------------
def run_posterior(params, input_x, target_y, mask_hx, mask_th, k_samples):
    # TODO(synk): variable-length packing (rnn.pack_sequence) is not implemented;
    # fixed-length sequences are assumed (all rows use the full segment).
    B, T, _ = input_x.shape
    Tp = target_y.shape[1]
    K = k_samples.shape[1]
    nw = len(POSTERIOR_ORDER)

    x_flat = jnp.transpose(input_x, (1, 0, 2)).reshape(T * B, INPUT_DIM).astype(jnp.float32)
    tgt_flat = jnp.transpose(target_y, (1, 0, 2)).reshape(Tp * B, INPUT_DIM).astype(jnp.float32)
    cur = input_x[:, -1, :].astype(jnp.float32)
    ks_flat = k_samples.reshape(B * K, LATENT).astype(jnp.float32)
    sel = jnp.repeat(jnp.eye(B, dtype=jnp.float32), K, axis=0)      # (B*K, B) one-hot

    def kernel(x_ref, tgt_ref, cur_ref, mhx_ref, mth_ref, ks_ref, sel_ref, *rest):
        w = dict(zip(POSTERIOR_ORDER, rest[:nw]))
        pred_ref, kld_ref = rest[nw], rest[nw + 1]

        # ---- batched input projections (off the serial critical path) ----
        emb = jnp.maximum(_proj2(x_ref[...], w["box_embed_w"][...],
                                 w["box_embed_b"][...]), 0.0)        # (T*B, 256) f32
        gi_enc = _bdot(emb, w["enc_wih"][...]) + w["enc_bih"][...]   # (T*B, 768)

        tgt = tgt_ref[...]
        gi_f = _proj2(tgt, w["gt_wih_f"][...], w["gt_bih_f"][...])   # (Tp*B, 96) f32
        gi_b = _proj2(tgt, w["gt_wih_b"][...], w["gt_bih_b"][...])   # (Tp*B, 96) f32

        # ---- three mutually independent GRU recurrences, interleaved ----
        whh, bhh = w["enc_whh"][...], w["enc_bhh"][...]
        whf, bhf = w["gt_whh_f"][...], w["gt_bhh_f"][...]
        whb, bhb = w["gt_whh_b"][...], w["gt_bhh_b"][...]

        h = jnp.zeros((B, ENC_H), jnp.float32)
        hf = _proj2(cur_ref[...], w["fut_h_w"][...], w["fut_h_b"][...])   # (B, 32)
        hb = jnp.zeros((B, LATENT), jnp.float32)

        # TODO(synk): on v6e/v7x, enc_whh could additionally be held resident in
        # the MXU across the serial steps via pltpu.matmul_push_rhs/acc_lhs/pop.
        for t in range(max(T, Tp)):                     # static unroll, one basic block
            if t < T:
                gh = _bdot(h, whh) + bhh
                h = _gru_gates(gi_enc[t * B:(t + 1) * B, :], gh, h, ENC_H)
            if t < Tp:
                ghf = _bdot(hf, whf) + bhf
                hf = _gru_gates(gi_f[t * B:(t + 1) * B, :], ghf, hf, LATENT)
                ghb = _bdot(hb, whb) + bhb
                hb = _gru_gates(gi_b[(Tp - 1 - t) * B:(Tp - t) * B, :], ghb, hb, LATENT)

        # ---- dropout + p_z_x / q_z_xy heads ----
        h_x = h * mhx_ref[...]
        z_p = _mlp3(h_x,
                    w["p_w1"][...], w["p_b1"][...], w["p_w2"][...], w["p_b2"][...],
                    w["p_w3"][...], w["p_b3"][...])                  # (B, 64)

        mth = mth_ref[...]
        hf_d = hf * mth[:, 0:LATENT]
        hb_d = hb * mth[:, LATENT:2 * LATENT]
        qw1 = w["q_w1"]                                  # row-split -> no lane concat
        g1 = (_bdot(h_x, qw1[0:ENC_H, :])
              + _bdot(hf_d, qw1[ENC_H:ENC_H + LATENT, :])
              + _bdot(hb_d, qw1[ENC_H + LATENT:ENC_H + 2 * LATENT, :])
              + w["q_b1"][...])
        q1 = jnp.maximum(g1, 0.0)
        q2 = jnp.maximum(_bdot(q1, w["q_w2"][...]) + w["q_b2"][...], 0.0)
        z_q = _bdot(q2, w["q_w3"][...]) + w["q_b3"][...]             # (B, 64)

        zmu_p, zlv_p = z_p[:, :LATENT], z_p[:, LATENT:]
        zmu_q, zlv_q = z_q[:, :LATENT], z_q[:, LATENT:]

        # ---- KLD (scalar), computed in-kernel ----
        kld_e = 0.5 * (jnp.exp(zlv_q) / jnp.exp(zlv_p)
                       + (zmu_p - zmu_q) ** 2 / jnp.exp(zlv_p)
                       - 1.0 + (zlv_p - zlv_q))                      # (B, 32)
        kld_row = jnp.sum(kld_e, axis=-1, keepdims=True)             # (B, 1)
        kld_ref[...] = jnp.maximum(
            jnp.sum(kld_row, axis=0, keepdims=True) * (1.0 / B), 0.001)

        # ---- reparameterized sampling + goal_decoder, vectorized over B*K ----
        pred_ref[...] = _goal_decoder(
            h_x, zmu_q, zlv_q, ks_ref[...], sel_ref[...],
            w["d_w1"], w["d_b1"][...], w["d_w2"][...], w["d_b2"][...],
            w["d_w3"][...], w["d_b3"][...])

    pred_flat, kld = pl.pallas_call(
        kernel,
        out_shape=(jax.ShapeDtypeStruct((B * K, DEC_OUT), jnp.float32),
                   jax.ShapeDtypeStruct((1, 1), jnp.float32)),
    )(x_flat, tgt_flat, cur, mask_hx, mask_th, ks_flat, sel,
      *[params[k] for k in POSTERIOR_ORDER])
    return pred_flat.reshape(B, K, DEC_OUT), kld[0, 0]


# ---------------------------------------------------------------------------
# Fused prior path: encoder GRU + p_z_x + decoder (no target_y).
# ---------------------------------------------------------------------------
def run_prior(params, input_x, mask_hx, k_samples):
    B, T, _ = input_x.shape
    K = k_samples.shape[1]
    nw = len(PRIOR_ORDER)

    x_flat = jnp.transpose(input_x, (1, 0, 2)).reshape(T * B, INPUT_DIM).astype(jnp.float32)
    ks_flat = k_samples.reshape(B * K, LATENT).astype(jnp.float32)
    sel = jnp.repeat(jnp.eye(B, dtype=jnp.float32), K, axis=0)

    def kernel(x_ref, mhx_ref, ks_ref, sel_ref, *rest):
        w = dict(zip(PRIOR_ORDER, rest[:nw]))
        pred_ref = rest[nw]

        emb = jnp.maximum(_proj2(x_ref[...], w["box_embed_w"][...],
                                 w["box_embed_b"][...]), 0.0)
        gi_enc = _bdot(emb, w["enc_wih"][...]) + w["enc_bih"][...]   # (T*B, 768)

        whh, bhh = w["enc_whh"][...], w["enc_bhh"][...]
        h = jnp.zeros((B, ENC_H), jnp.float32)
        for t in range(T):                                           # static unroll
            gh = _bdot(h, whh) + bhh
            h = _gru_gates(gi_enc[t * B:(t + 1) * B, :], gh, h, ENC_H)

        h_x = h * mhx_ref[...]
        z_p = _mlp3(h_x,
                    w["p_w1"][...], w["p_b1"][...], w["p_w2"][...], w["p_b2"][...],
                    w["p_w3"][...], w["p_b3"][...])                  # (B, 64)

        pred_ref[...] = _goal_decoder(
            h_x, z_p[:, :LATENT], z_p[:, LATENT:], ks_ref[...], sel_ref[...],
            w["d_w1"], w["d_b1"][...], w["d_w2"][...], w["d_b2"][...],
            w["d_w3"][...], w["d_b3"][...])

    pred_flat = pl.pallas_call(
        kernel,
        out_shape=jax.ShapeDtypeStruct((B * K, DEC_OUT), jnp.float32),
    )(x_flat, mask_hx, ks_flat, sel, *[params[k] for k in PRIOR_ORDER])
    return pred_flat.reshape(B, K, DEC_OUT)


# ---------------------------------------------------------------------------
# Glue (dropout masks, RNG, path selection) in plain JAX.
# ---------------------------------------------------------------------------
def dropout_mask(key, shape, p, training):
    if not training:
        return jnp.ones(shape, jnp.float32)
    keep = jax.random.bernoulli(key, 1.0 - p, shape)
    return jnp.where(keep, 1.0 / (1.0 - p), 0.0).astype(jnp.float32)


def goal_estimator_forward(params, input_x, target_y=None, training=False, K=20,
                           key=jax.random.PRNGKey(42)):
    k_drop1, k_drop2, k_samp = jax.random.split(key, 3)
    B = input_x.shape[0]

    mask_hx = dropout_mask(k_drop1, (B, ENC_H), 0.25, training)
    K_samples = jax.random.normal(k_samp, (B, K, LATENT), dtype=jnp.float32)

    if target_y is not None:
        mask_th = dropout_mask(k_drop2, (B, GOAL_H), 0.25, training)
        pred_goal, kld = run_posterior(params, input_x, target_y,
                                       mask_hx, mask_th, K_samples)
    else:
        pred_goal = run_prior(params, input_x, mask_hx, K_samples)
        kld = jnp.asarray(0.0, jnp.float32)
    return pred_goal, kld


# ---------------------------------------------------------------------------
# Pure-JAX f32 reference (same math, same RNG usage) for correctness checking.
# ---------------------------------------------------------------------------
def reference_forward(params, input_x, target_y, training, K, key):
    k_drop1, k_drop2, k_samp = jax.random.split(key, 3)
    B, T, _ = input_x.shape
    p = {k: v.astype(jnp.float32) for k, v in params.items()}
    x = input_x.astype(jnp.float32)

    emb = jnp.maximum(x @ p["box_embed_w"] + p["box_embed_b"], 0.0)

    def enc_cell(h, e_t):
        gi = e_t @ p["enc_wih"] + p["enc_bih"]
        gh = h @ p["enc_whh"] + p["enc_bhh"]
        return _gru_gates(gi, gh, h, ENC_H), None

    h_x, _ = lax.scan(enc_cell, jnp.zeros((B, ENC_H), jnp.float32),
                      jnp.transpose(emb, (1, 0, 2)))
    h_x = h_x * dropout_mask(k_drop1, (B, ENC_H), 0.25, training)

    def mlp3(v, w1, b1, w2, b2, w3, b3):
        h = jnp.maximum(v @ w1 + b1, 0.0)
        h = jnp.maximum(h @ w2 + b2, 0.0)
        return h @ w3 + b3

    z_p = mlp3(h_x, p["p_w1"], p["p_b1"], p["p_w2"], p["p_b2"], p["p_w3"], p["p_b3"])
    z_mu_p, z_logvar_p = z_p[:, :LATENT], z_p[:, LATENT:]

    if target_y is not None:
        cur = x[:, -1, :]
        tgt = jnp.transpose(target_y.astype(jnp.float32), (1, 0, 2))
        h0f = cur @ p["fut_h_w"] + p["fut_h_b"]
        h0b = jnp.zeros_like(h0f)

        def fwd_cell(h, x_t):
            gi = x_t @ p["gt_wih_f"] + p["gt_bih_f"]
            gh = h @ p["gt_whh_f"] + p["gt_bhh_f"]
            return _gru_gates(gi, gh, h, LATENT), None

        def bwd_cell(h, x_t):
            gi = x_t @ p["gt_wih_b"] + p["gt_bih_b"]
            gh = h @ p["gt_whh_b"] + p["gt_bhh_b"]
            return _gru_gates(gi, gh, h, LATENT), None

        hf, _ = lax.scan(fwd_cell, h0f, tgt)
        hb, _ = lax.scan(bwd_cell, h0b, tgt[::-1])
        target_h = jnp.concatenate([hf, hb], axis=-1)
        target_h = target_h * dropout_mask(k_drop2, (B, GOAL_H), 0.25, training)
        z_q = mlp3(jnp.concatenate([h_x, target_h], axis=-1),
                   p["q_w1"], p["q_b1"], p["q_w2"], p["q_b2"], p["q_w3"], p["q_b3"])
        z_mu_q, z_logvar_q = z_q[:, :LATENT], z_q[:, LATENT:]
        Z_mu, Z_logvar = z_mu_q, z_logvar_q
        kld = 0.5 * (jnp.exp(z_logvar_q) / jnp.exp(z_logvar_p)
                     + (z_mu_p - z_mu_q) ** 2 / jnp.exp(z_logvar_p)
                     - 1.0 + (z_logvar_p - z_logvar_q))
        kld = jnp.maximum(jnp.mean(jnp.sum(kld, axis=-1)), 0.001)
    else:
        Z_mu, Z_logvar = z_mu_p, z_logvar_p
        kld = jnp.asarray(0.0, jnp.float32)

    K_samples = jax.random.normal(k_samp, (B, K, LATENT), dtype=jnp.float32)
    Z = Z_mu[:, None, :] + K_samples * jnp.exp(0.5 * Z_logvar)[:, None, :]
    enc_h_and_z = jnp.concatenate(
        [jnp.broadcast_to(h_x[:, None, :], (B, K, ENC_H)), Z], axis=-1)
    pred = mlp3(enc_h_and_z.reshape(B * K, ENC_H + LATENT),
                p["d_w1"], p["d_b1"], p["d_w2"], p["d_b2"], p["d_w3"], p["d_b3"])
    return pred.reshape(B, K, DEC_OUT), kld


# ---------------------------------------------------------------------------
# Deterministic parameter init (synthetic weights; not a checkpoint load).
# Large matmul weights in bf16 (MXU-native), K=2 projection weights and
# biases in f32 (they run on the VPU).
# ---------------------------------------------------------------------------
def init_params(key):
    keys = iter(jax.random.split(key, 20))

    def lin(k, fan_in, fan_out, scale=0.1, wdt=WDT):
        kw, kb = jax.random.split(k)
        w = (jax.random.normal(kw, (fan_in, fan_out), jnp.float32) * scale).astype(wdt)
        b = jax.random.normal(kb, (1, fan_out), jnp.float32) * scale
        return w, b

    p = {}
    p["box_embed_w"], p["box_embed_b"] = lin(next(keys), INPUT_DIM, EMBED, wdt=jnp.float32)
    p["enc_wih"], p["enc_bih"] = lin(next(keys), EMBED, 3 * ENC_H, 0.05)
    p["enc_whh"], p["enc_bhh"] = lin(next(keys), ENC_H, 3 * ENC_H, 0.05)
    p["fut_h_w"], p["fut_h_b"] = lin(next(keys), INPUT_DIM, LATENT, wdt=jnp.float32)
    p["gt_wih_f"], p["gt_bih_f"] = lin(next(keys), INPUT_DIM, 3 * LATENT, wdt=jnp.float32)
    p["gt_whh_f"], p["gt_bhh_f"] = lin(next(keys), LATENT, 3 * LATENT, 0.05)
    p["gt_wih_b"], p["gt_bih_b"] = lin(next(keys), INPUT_DIM, 3 * LATENT, wdt=jnp.float32)
    p["gt_whh_b"], p["gt_bhh_b"] = lin(next(keys), LATENT, 3 * LATENT, 0.05)
    p["p_w1"], p["p_b1"] = lin(next(keys), ENC_H, 128)
    p["p_w2"], p["p_b2"] = lin(next(keys), 128, 64)
    p["p_w3"], p["p_b3"] = lin(next(keys), 64, 2 * LATENT)
    p["q_w1"], p["q_b1"] = lin(next(keys), ENC_H + GOAL_H, 128)
    p["q_w2"], p["q_b2"] = lin(next(keys), 128, 64)
    p["q_w3"], p["q_b3"] = lin(next(keys), 64, 2 * LATENT)
    p["d_w1"], p["d_b1"] = lin(next(keys), ENC_H + LATENT, 128)
    p["d_w2"], p["d_b2"] = lin(next(keys), 128, 64)
    p["d_w3"], p["d_b3"] = lin(next(keys), 64, DEC_OUT)
    return p


if __name__ == "__main__":
    root = jax.random.PRNGKey(0)
    k_param, k_in, k_tgt, k_fwd = jax.random.split(root, 4)

    B, SEG_LEN, PRED_LEN, K = 2, 8, 6, 8
    params = init_params(k_param)
    input_x = jax.random.normal(k_in, (B, SEG_LEN, INPUT_DIM), dtype=jnp.float32)
    target_y = jax.random.normal(k_tgt, (B, PRED_LEN, INPUT_DIM), dtype=jnp.float32)

    fwd = jax.jit(goal_estimator_forward, static_argnames=("training", "K"))

    # training=False so dropout is the identity (deterministic check vs. reference).
    pred_goal, kld = fwd(params, input_x, target_y, training=False, K=K, key=k_fwd)
    pred_goal = jax.block_until_ready(pred_goal)
    kld = jax.block_until_ready(kld)

    ref_goal, ref_kld = reference_forward(params, input_x, target_y,
                                          training=False, K=K, key=k_fwd)

    assert pred_goal.shape == (B, K, DEC_OUT)
    np.testing.assert_allclose(np.asarray(pred_goal), np.asarray(ref_goal),
                               rtol=3e-2, atol=3e-2)
    np.testing.assert_allclose(float(kld), float(ref_kld), rtol=3e-2, atol=3e-2)
    assert np.all(np.isfinite(np.asarray(pred_goal)))

    # Prior-only path (target_y=None) runs through the fused prior kernel.
    pred_prior, kld0 = fwd(params, input_x, None, training=False, K=K, key=k_fwd)
    pred_prior = jax.block_until_ready(pred_prior)
    ref_prior, _ = reference_forward(params, input_x, None,
                                     training=False, K=K, key=k_fwd)
    assert pred_prior.shape == (B, K, DEC_OUT)
    np.testing.assert_allclose(np.asarray(pred_prior), np.asarray(ref_prior),
                               rtol=3e-2, atol=3e-2)
    assert np.all(np.isfinite(np.asarray(pred_prior)))
    assert float(kld0) == 0.0

    print("KERNEL_OK")
</pallas_src>

<mosaic_0001>
module attributes {stable_mosaic.version = 11 : i64} {
  func.func @kernel(%arg0: memref<16x2xf32, #tpu.memory_space<vmem>>, %arg1: memref<12x2xf32, #tpu.memory_space<vmem>>, %arg2: memref<2x2xf32, #tpu.memory_space<vmem>>, %arg3: memref<2x256xf32, #tpu.memory_space<vmem>>, %arg4: memref<2x64xf32, #tpu.memory_space<vmem>>, %arg5: memref<16x32xf32, #tpu.memory_space<vmem>>, %arg6: memref<16x2xf32, #tpu.memory_space<vmem>>, %arg7: memref<2x256xf32, #tpu.memory_space<vmem>>, %arg8: memref<1x256xf32, #tpu.memory_space<vmem>>, %arg9: memref<256x768xbf16, #tpu.memory_space<vmem>>, %arg10: memref<1x768xf32, #tpu.memory_space<vmem>>, %arg11: memref<256x768xbf16, #tpu.memory_space<vmem>>, %arg12: memref<1x768xf32, #tpu.memory_space<vmem>>, %arg13: memref<2x32xf32, #tpu.memory_space<vmem>>, %arg14: memref<1x32xf32, #tpu.memory_space<vmem>>, %arg15: memref<2x96xf32, #tpu.memory_space<vmem>>, %arg16: memref<1x96xf32, #tpu.memory_space<vmem>>, %arg17: memref<32x96xbf16, #tpu.memory_space<vmem>>, %arg18: memref<1x96xf32, #tpu.memory_space<vmem>>, %arg19: memref<2x96xf32, #tpu.memory_space<vmem>>, %arg20: memref<1x96xf32, #tpu.memory_space<vmem>>, %arg21: memref<32x96xbf16, #tpu.memory_space<vmem>>, %arg22: memref<1x96xf32, #tpu.memory_space<vmem>>, %arg23: memref<256x128xbf16, #tpu.memory_space<vmem>>, %arg24: memref<1x128xf32, #tpu.memory_space<vmem>>, %arg25: memref<128x64xbf16, #tpu.memory_space<vmem>>, %arg26: memref<1x64xf32, #tpu.memory_space<vmem>>, %arg27: memref<64x64xbf16, #tpu.memory_space<vmem>>, %arg28: memref<1x64xf32, #tpu.memory_space<vmem>>, %arg29: memref<320x128xbf16, #tpu.memory_space<vmem>>, %arg30: memref<1x128xf32, #tpu.memory_space<vmem>>, %arg31: memref<128x64xbf16, #tpu.memory_space<vmem>>, %arg32: memref<1x64xf32, #tpu.memory_space<vmem>>, %arg33: memref<64x64xbf16, #tpu.memory_space<vmem>>, %arg34: memref<1x64xf32, #tpu.memory_space<vmem>>, %arg35: memref<288x128xbf16, #tpu.memory_space<vmem>>, %arg36: memref<1x128xf32, #tpu.memory_space<vmem>>, %arg37: memref<128x64xbf16, #tpu.memory_space<vmem>>, %arg38: memref<1x64xf32, #tpu.memory_space<vmem>>, %arg39: memref<64x2xbf16, #tpu.memory_space<vmem>>, %arg40: memref<1x2xf32, #tpu.memory_space<vmem>>, %arg41: memref<16x2xf32, #tpu.memory_space<vmem>>, %arg42: memref<1x1xf32, #tpu.memory_space<vmem>>) attributes {dimension_semantics = [], scalar_prefetch = 0 : i64, scratch_operands = 0 : i64, tpu.core_type = #tpu.core_type<tc>} {
    %c0 = arith.constant 0 : index
    %c0_0 = arith.constant 0 : index
    %0 = vector.load %arg0[%c0, %c0_0] : memref<16x2xf32, #tpu.memory_space<vmem>>, vector<16x2xf32>
    %c0_1 = arith.constant 0 : index
    %c0_2 = arith.constant 0 : index
    %1 = vector.load %arg7[%c0_1, %c0_2] : memref<2x256xf32, #tpu.memory_space<vmem>>, vector<2x256xf32>
    %c0_3 = arith.constant 0 : index
    %c0_4 = arith.constant 0 : index
    %2 = vector.load %arg8[%c0_3, %c0_4] : memref<1x256xf32, #tpu.memory_space<vmem>>, vector<1x256xf32>
    %3 = vector.extract_strided_slice %0 {offsets = [0, 0], sizes = [16, 1], strides = [1, 1]} : vector<16x2xf32> to vector<16x1xf32>
    %4 = vector.extract_strided_slice %1 {offsets = [0, 0], sizes = [1, 256], strides = [1, 1]} : vector<2x256xf32> to vector<1x256xf32>
    %5 = vector.broadcast %3 : vector<16x1xf32> to vector<16x256xf32>
    %6 = vector.broadcast %4 : vector<1x256xf32> to vector<16x256xf32>
    %7 = arith.mulf %5, %6 : vector<16x256xf32>
    %8 = vector.extract_strided_slice %0 {offsets = [0, 1], sizes = [16, 1], strides = [1, 1]} : vector<16x2xf32> to vector<16x1xf32>
    %9 = vector.extract_strided_slice %1 {offsets = [1, 0], sizes = [1, 256], strides = [1, 1]} : vector<2x256xf32> to vector<1x256xf32>
    %10 = vector.broadcast %8 : vector<16x1xf32> to vector<16x256xf32>
    %11 = vector.broadcast %9 : vector<1x256xf32> to vector<16x256xf32>
    %12 = arith.mulf %10, %11 : vector<16x256xf32>
    %13 = arith.addf %7, %12 : vector<16x256xf32>
    %14 = vector.broadcast %2 : vector<1x256xf32> to vector<16x256xf32>
    %15 = arith.addf %13, %14 : vector<16x256xf32>
    %cst = arith.constant 0.000000e+00 : f32
    %16 = vector.broadcast %cst : f32 to vector<16x256xf32>
    %17 = arith.maximumf %15, %16 : vector<16x256xf32>
    %c0_5 = arith.constant 0 : index
    %c0_6 = arith.constant 0 : index
    %18 = vector.load %arg9[%c0_5, %c0_6] : memref<256x768xbf16, #tpu.memory_space<vmem>>, vector<256x768xbf16>
    %19 = arith.truncf %17 : vector<16x256xf32> to vector<16x256xbf16>
    %cst_7 = arith.constant dense<0.000000e+00> : vector<16x768xf32>
    %20 = tpu.matmul %19, %18, %cst_7 {dimension_numbers = #tpu.dot_dimension_numbers<[1], [0], [0], [1], [0, 0, 1, 1], [], []>} : vector<16x256xbf16>, vector<256x768xbf16>, vector<16x768xf32> -> vector<16x768xf32>
    %c0_8 = arith.constant 0 : index
    %c0_9 = arith.constant 0 : index
    %21 = vector.load %arg10[%c0_8, %c0_9] : memref<1x768xf32, #tpu.memory_space<vmem>>, vector<1x768xf32>
    %22 = vector.broadcast %21 : vector<1x768xf32> to vector<16x768xf32>
    %23 = arith.addf %20, %22 : vector<16x768xf32>
    %c0_10 = arith.constant 0 : index
    %c0_11 = arith.constant 0 : index
    %24 = vector.load %arg1[%c0_10, %c0_11] : memref<12x2xf32, #tpu.memory_space<vmem>>, vector<12x2xf32>
    %c0_12 = arith.constant 0 : index
    %c0_13 = arith.constant 0 : index
    %25 = vector.load %arg15[%c0_12, %c0_13] : memref<2x96xf32, #tpu.memory_space<vmem>>, vector<2x96xf32>
    %c0_14 = arith.constant 0 : index
    %c0_15 = arith.constant 0 : index
    %26 = vector.load %arg16[%c0_14, %c0_15] : memref<1x96xf32, #tpu.memory_space<vmem>>, vector<1x96xf32>
    %27 = vector.extract_strided_slice %24 {offsets = [0, 0], sizes = [12, 1], strides = [1, 1]} : vector<12x2xf32> to vector<12x1xf32>
    %28 = vector.extract_strided_slice %25 {offsets = [0, 0], sizes = [1, 96], strides = [1, 1]} : vector<2x96xf32> to vector<1x96xf32>
    %29 = vector.broadcast %27 : vector<12x1xf32> to vector<12x96xf32>
    %30 = vector.broadcast %28 : vector<1x96xf32> to vector<12x96xf32>
    %31 = arith.mulf %29, %30 : vector<12x96xf32>
    %32 = vector.extract_strided_slice %24 {offsets = [0, 1], sizes = [12, 1], strides = [1, 1]} : vector<12x2xf32> to vector<12x1xf32>
    %33 = vector.extract_strided_slice %25 {offsets = [1, 0], sizes = [1, 96], strides = [1, 1]} : vector<2x96xf32> to vector<1x96xf32>
    %34 = vector.broadcast %32 : vector<12x1xf32> to vector<12x96xf32>
    %35 = vector.broadcast %33 : vector<1x96xf32> to vector<12x96xf32>
    %36 = arith.mulf %34, %35 : vector<12x96xf32>
    %37 = arith.addf %31, %36 : vector<12x96xf32>
    %38 = vector.broadcast %26 : vector<1x96xf32> to vector<12x96xf32>
    %39 = arith.addf %37, %38 : vector<12x96xf32>
    %c0_16 = arith.constant 0 : index
    %c0_17 = arith.constant 0 : index
    %40 = vector.load %arg19[%c0_16, %c0_17] : memref<2x96xf32, #tpu.memory_space<vmem>>, vector<2x96xf32>
    %c0_18 = arith.constant 0 : index
    %c0_19 = arith.constant 0 : index
    %41 = vector.load %arg20[%c0_18, %c0_19] : memref<1x96xf32, #tpu.memory_space<vmem>>, vector<1x96xf32>
    %42 = vector.extract_strided_slice %24 {offsets = [0, 0], sizes = [12, 1], strides = [1, 1]} : vector<12x2xf32> to vector<12x1xf32>
    %43 = vector.extract_strided_slice %40 {offsets = [0, 0], sizes = [1, 96], strides = [1, 1]} : vector<2x96xf32> to vector<1x96xf32>
    %44 = vector.broadcast %42 : vector<12x1xf32> to vector<12x96xf32>
    %45 = vector.broadcast %43 : vector<1x96xf32> to vector<12x96xf32>
    %46 = arith.mulf %44, %45 : vector<12x96xf32>
    %47 = vector.extract_strided_slice %24 {offsets = [0, 1], sizes = [12, 1], strides = [1, 1]} : vector<12x2xf32> to vector<12x1xf32>
    %48 = vector.extract_strided_slice %40 {offsets = [1, 0], sizes = [1, 96], strides = [1, 1]} : vector<2x96xf32> to vector<1x96xf32>
    %49 = vector.broadcast %47 : vector<12x1xf32> to vector<12x96xf32>
    %50 = vector.broadcast %48 : vector<1x96xf32> to vector<12x96xf32>
    %51 = arith.mulf %49, %50 : vector<12x96xf32>
    %52 = arith.addf %46, %51 : vector<12x96xf32>
    %53 = vector.broadcast %41 : vector<1x96xf32> to vector<12x96xf32>
    %54 = arith.addf %52, %53 : vector<12x96xf32>
    %c0_20 = arith.constant 0 : index
    %c0_21 = arith.constant 0 : index
    %55 = vector.load %arg11[%c0_20, %c0_21] : memref<256x768xbf16, #tpu.memory_space<vmem>>, vector<256x768xbf16>
    %c0_22 = arith.constant 0 : index
    %c0_23 = arith.constant 0 : index
    %56 = vector.load %arg12[%c0_22, %c0_23] : memref<1x768xf32, #tpu.memory_space<vmem>>, vector<1x768xf32>
    %c0_24 = arith.constant 0 : index
    %c0_25 = arith.constant 0 : index
    %57 = vector.load %arg17[%c0_24, %c0_25] : memref<32x96xbf16, #tpu.memory_space<vmem>>, vector<32x96xbf16>
    %c0_26 = arith.constant 0 : index
    %c0_27 = arith.constant 0 : index
    %58 = vector.load %arg18[%c0_26, %c0_27] : memref<1x96xf32, #tpu.memory_space<vmem>>, vector<1x96xf32>
    %c0_28 = arith.constant 0 : index
    %c0_29 = arith.constant 0 : index
    %59 = vector.load %arg21[%c0_28, %c0_29] : memref<32x96xbf16, #tpu.memory_space<vmem>>, vector<32x96xbf16>
    %c0_30 = arith.constant 0 : index
    %c0_31 = arith.constant 0 : index
    %60 = vector.load %arg22[%c0_30, %c0_31] : memref<1x96xf32, #tpu.memory_space<vmem>>, vector<1x96xf32>
    %cst_32 = arith.constant 0.000000e+00 : f32
    %61 = vector.broadcast %cst_32 : f32 to vector<2x256xf32>
    %c0_33 = arith.constant 0 : index
    %c0_34 = arith.constant 0 : index
    %62 = vector.load %arg2[%c0_33, %c0_34] : memref<2x2xf32, #tpu.memory_space<vmem>>, vector<2x2xf32>
    %c0_35 = arith.constant 0 : index
    %c0_36 = arith.constant 0 : index
    %63 = vector.load %arg13[%c0_35, %c0_36] : memref<2x32xf32, #tpu.memory_space<vmem>>, vector<2x32xf32>
    %c0_37 = arith.constant 0 : index
    %c0_38 = arith.constant 0 : index
    %64 = vector.load %arg14[%c0_37, %c0_38] : memref<1x32xf32, #tpu.memory_space<vmem>>, vector<1x32xf32>
    %65 = vector.extract_strided_slice %62 {offsets = [0, 0], sizes = [2, 1], strides = [1, 1]} : vector<2x2xf32> to vector<2x1xf32>
    %66 = vector.extract_strided_slice %63 {offsets = [0, 0], sizes = [1, 32], strides = [1, 1]} : vector<2x32xf32> to vector<1x32xf32>
    %67 = vector.broadcast %65 : vector<2x1xf32> to vector<2x32xf32>
    %68 = vector.broadcast %66 : vector<1x32xf32> to vector<2x32xf32>
    %69 = arith.mulf %67, %68 : vector<2x32xf32>
    %70 = vector.extract_strided_slice %62 {offsets = [0, 1], sizes = [2, 1], strides = [1, 1]} : vector<2x2xf32> to vector<2x1xf32>
    %71 = vector.extract_strided_slice %63 {offsets = [1, 0], sizes = [1, 32], strides = [1, 1]} : vector<2x32xf32> to vector<1x32xf32>
    %72 = vector.broadcast %70 : vector<2x1xf32> to vector<2x32xf32>
    %73 = vector.broadcast %71 : vector<1x32xf32> to vector<2x32xf32>
    %74 = arith.mulf %72, %73 : vector<2x32xf32>
    %75 = arith.addf %69, %74 : vector<2x32xf32>
    %76 = vector.broadcast %64 : vector<1x32xf32> to vector<2x32xf32>
    %77 = arith.addf %75, %76 : vector<2x32xf32>
    %cst_39 = arith.constant 0.000000e+00 : f32
    %78 = vector.broadcast %cst_39 : f32 to vector<2x32xf32>
    %79 = arith.truncf %61 : vector<2x256xf32> to vector<2x256xbf16>
    %cst_40 = arith.constant dense<0.000000e+00> : vector<2x768xf32>
    %80 = tpu.matmul %79, %55, %cst_40 {dimension_numbers = #tpu.dot_dimension_numbers<[1], [0], [0], [1], [0, 0, 1, 1], [], []>} : vector<2x256xbf16>, vector<256x768xbf16>, vector<2x768xf32> -> vector<2x768xf32>
    %81 = vector.broadcast %56 : vector<1x768xf32> to vector<2x768xf32>
    %82 = arith.addf %80, %81 : vector<2x768xf32>
    %83 = vector.extract_strided_slice %23 {offsets = [0, 0], sizes = [2, 768], strides = [1, 1]} : vector<16x768xf32> to vector<2x768xf32>
    %84 = vector.extract_strided_slice %83 {offsets = [0, 0], sizes = [2, 256], strides = [1, 1]} : vector<2x768xf32> to vector<2x256xf32>
    %85 = vector.extract_strided_slice %82 {offsets = [0, 0], sizes = [2, 256], strides = [1, 1]} : vector<2x768xf32> to vector<2x256xf32>
    %86 = arith.addf %84, %85 : vector<2x256xf32>
    %87 = arith.negf %86 : vector<2x256xf32>
    %88 = math.exp %87 : vector<2x256xf32>
    %cst_41 = arith.constant 1.000000e+00 : f32
    %89 = vector.broadcast %cst_41 : f32 to vector<2x256xf32>
    %90 = arith.addf %89, %88 : vector<2x256xf32>
    %91 = arith.divf %89, %90 : vector<2x256xf32>
    %92 = vector.extract_strided_slice %83 {offsets = [0, 256], sizes = [2, 256], strides = [1, 1]} : vector<2x768xf32> to vector<2x256xf32>
    %93 = vector.extract_strided_slice %82 {offsets = [0, 256], sizes = [2, 256], strides = [1, 1]} : vector<2x768xf32> to vector<2x256xf32>
    %94 = arith.addf %92, %93 : vector<2x256xf32>
    %95 = arith.negf %94 : vector<2x256xf32>
    %96 = math.exp %95 : vector<2x256xf32>
    %cst_42 = arith.constant 1.000000e+00 : f32
    %97 = vector.broadcast %cst_42 : f32 to vector<2x256xf32>
    %98 = arith.addf %97, %96 : vector<2x256xf32>
    %99 = arith.divf %97, %98 : vector<2x256xf32>
    %100 = vector.extract_strided_slice %83 {offsets = [0, 512], sizes = [2, 256], strides = [1, 1]} : vector<2x768xf32> to vector<2x256xf32>
    %101 = vector.extract_strided_slice %82 {offsets = [0, 512], sizes = [2, 256], strides = [1, 1]} : vector<2x768xf32> to vector<2x256xf32>
    %102 = arith.mulf %91, %101 : vector<2x256xf32>
    %103 = arith.addf %100, %102 : vector<2x256xf32>
    %104 = math.tanh %103 : vector<2x256xf32>
    %cst_43 = arith.constant 1.000000e+00 : f32
    %105 = vector.broadcast %cst_43 : f32 to vector<2x256xf32>
    %106 = arith.subf %105, %99 : vector<2x256xf32>
    %107 = arith.mulf %106, %104 : vector<2x256xf32>
    %108 = arith.mulf %99, %61 : vector<2x256xf32>
    %109 = arith.addf %107, %108 : vector<2x256xf32>
    %110 = arith.truncf %77 : vector<2x32xf32> to vector<2x32xbf16>
    %cst_44 = arith.constant dense<0.000000e+00> : vector<2x96xf32>
    %111 = tpu.matmul %110, %57, %cst_44 {dimension_numbers = #tpu.dot_dimension_numbers<[1], [0], [0], [1], [0, 0, 1, 1], [], []>} : vector<2x32xbf16>, vector<32x96xbf16>, vector<2x96xf32> -> vector<2x96xf32>
    %112 = vector.broadcast %58 : vector<1x96xf32> to vector<2x96xf32>
    %113 = arith.addf %111, %112 : vector<2x96xf32>
    %114 = vector.extract_strided_slice %39 {offsets = [0, 0], sizes = [2, 96], strides = [1, 1]} : vector<12x96xf32> to vector<2x96xf32>
    %115 = vector.extract_strided_slice %114 {offsets = [0, 0], sizes = [2, 32], strides = [1, 1]} : vector<2x96xf32> to vector<2x32xf32>
    %116 = vector.extract_strided_slice %113 {offsets = [0, 0], sizes = [2, 32], strides = [1, 1]} : vector<2x96xf32> to vector<2x32xf32>
    %117 = arith.addf %115, %116 : vector<2x32xf32>
    %118 = arith.negf %117 : vector<2x32xf32>
    %119 = math.exp %118 : vector<2x32xf32>
    %cst_45 = arith.constant 1.000000e+00 : f32
    %120 = vector.broadcast %cst_45 : f32 to vector<2x32xf32>
    %121 = arith.addf %120, %119 : vector<2x32xf32>
    %122 = arith.divf %120, %121 : vector<2x32xf32>
    %123 = vector.extract_strided_slice %114 {offsets = [0, 32], sizes = [2, 32], strides = [1, 1]} : vector<2x96xf32> to vector<2x32xf32>
    %124 = vector.extract_strided_slice %113 {offsets = [0, 32], sizes = [2, 32], strides = [1, 1]} : vector<2x96xf32> to vector<2x32xf32>
    %125 = arith.addf %123, %124 : vector<2x32xf32>
    %126 = arith.negf %125 : vector<2x32xf32>
    %127 = math.exp %126 : vector<2x32xf32>
    %cst_46 = arith.constant 1.000000e+00 : f32
    %128 = vector.broadcast %cst_46 : f32 to vector<2x32xf32>
    %129 = arith.addf %128, %127 : vector<2x32xf32>
    %130 = arith.divf %128, %129 : vector<2x32xf32>
    %131 = vector.extract_strided_slice %114 {offsets = [0, 64], sizes = [2, 32], strides = [1, 1]} : vector<2x96xf32> to vector<2x32xf32>
    %132 = vector.extract_strided_slice %113 {offsets = [0, 64], sizes = [2, 32], strides = [1, 1]} : vector<2x96xf32> to vector<2x32xf32>
    %133 = arith.mulf %122, %132 : vector<2x32xf32>
    %134 = arith.addf %131, %133 : vector<2x32xf32>
    %135 = math.tanh %134 : vector<2x32xf32>
    %cst_47 = arith.constant 1.000000e+00 : f32
    %136 = vector.broadcast %cst_47 : f32 to vector<2x32xf32>
    %137 = arith.subf %136, %130 : vector<2x32xf32>
    %138 = arith.mulf %137, %135 : vector<2x32xf32>
    %139 = arith.mulf %130, %77 : vector<2x32xf32>
    %140 = arith.addf %138, %139 : vector<2x32xf32>
    %141 = arith.truncf %78 : vector<2x32xf32> to vector<2x32xbf16>
    %cst_48 = arith.constant dense<0.000000e+00> : vector<2x96xf32>
    %142 = tpu.matmul %141, %59, %cst_48 {dimension_numbers = #tpu.dot_dimension_numbers<[1], [0], [0], [1], [0, 0, 1, 1], [], []>} : vector<2x32xbf16>, vector<32x96xbf16>, vector<2x96xf32> -> vector<2x96xf32>
    %143 = vector.broadcast %60 : vector<1x96xf32> to vector<2x96xf32>
    %144 = arith.addf %142, %143 : vector<2x96xf32>
    %145 = vector.extract_strided_slice %54 {offsets = [10, 0], sizes = [2, 96], strides = [1, 1]} : vector<12x96xf32> to vector<2x96xf32>
    %146 = vector.extract_strided_slice %145 {offsets = [0, 0], sizes = [2, 32], strides = [1, 1]} : vector<2x96xf32> to vector<2x32xf32>
    %147 = vector.extract_strided_slice %144 {offsets = [0, 0], sizes = [2, 32], strides = [1, 1]} : vector<2x96xf32> to vector<2x32xf32>
    %148 = arith.addf %146, %147 : vector<2x32xf32>
    %149 = arith.negf %148 : vector<2x32xf32>
    %150 = math.exp %149 : vector<2x32xf32>
    %cst_49 = arith.constant 1.000000e+00 : f32
    %151 = vector.broadcast %cst_49 : f32 to vector<2x32xf32>
    %152 = arith.addf %151, %150 : vector<2x32xf32>
    %153 = arith.divf %151, %152 : vector<2x32xf32>
    %154 = vector.extract_strided_slice %145 {offsets = [0, 32], sizes = [2, 32], strides = [1, 1]} : vector<2x96xf32> to vector<2x32xf32>
    %155 = vector.extract_strided_slice %144 {offsets = [0, 32], sizes = [2, 32], strides = [1, 1]} : vector<2x96xf32> to vector<2x32xf32>
    %156 = arith.addf %154, %155 : vector<2x32xf32>
    %157 = arith.negf %156 : vector<2x32xf32>
    %158 = math.exp %157 : vector<2x32xf32>
    %cst_50 = arith.constant 1.000000e+00 : f32
    %159 = vector.broadcast %cst_50 : f32 to vector<2x32xf32>
    %160 = arith.addf %159, %158 : vector<2x32xf32>
    %161 = arith.divf %159, %160 : vector<2x32xf32>
    %162 = vector.extract_strided_slice %145 {offsets = [0, 64], sizes = [2, 32], strides = [1, 1]} : vector<2x96xf32> to vector<2x32xf32>
    %163 = vector.extract_strided_slice %144 {offsets = [0, 64], sizes = [2, 32], strides = [1, 1]} : vector<2x96xf32> to vector<2x32xf32>
    %164 = arith.mulf %153, %163 : vector<2x32xf32>
    %165 = arith.addf %162, %164 : vector<2x32xf32>
    %166 = math.tanh %165 : vector<2x32xf32>
    %cst_51 = arith.constant 1.000000e+00 : f32
    %167 = vector.broadcast %cst_51 : f32 to vector<2x32xf32>
    %168 = arith.subf %167, %161 : vector<2x32xf32>
    %169 = arith.mulf %168, %166 : vector<2x32xf32>
    %170 = arith.mulf %161, %78 : vector<2x32xf32>
    %171 = arith.addf %169, %170 : vector<2x32xf32>
    %172 = arith.truncf %109 : vector<2x256xf32> to vector<2x256xbf16>
    %cst_52 = arith.constant dense<0.000000e+00> : vector<2x768xf32>
    %173 = tpu.matmul %172, %55, %cst_52 {dimension_numbers = #tpu.dot_dimension_numbers<[1], [0], [0], [1], [0, 0, 1, 1], [], []>} : vector<2x256xbf16>, vector<256x768xbf16>, vector<2x768xf32> -> vector<2x768xf32>
    %174 = vector.broadcast %56 : vector<1x768xf32> to vector<2x768xf32>
    %175 = arith.addf %173, %174 : vector<2x768xf32>
    %176 = vector.extract_strided_slice %23 {offsets = [2, 0], sizes = [2, 768], strides = [1, 1]} : vector<16x768xf32> to vector<2x768xf32>
    %177 = vector.extract_strided_slice %176 {offsets = [0, 0], sizes = [2, 256], strides = [1, 1]} : vector<2x768xf32> to vector<2x256xf32>
    %178 = vector.extract_strided_slice %175 {offsets = [0, 0], sizes = [2, 256], strides = [1, 1]} : vector<2x768xf32> to vector<2x256xf32>
    %179 = arith.addf %177, %178 : vector<2x256xf32>
    %180 = arith.negf %179 : vector<2x256xf32>
    %181 = math.exp %180 : vector<2x256xf32>
    %cst_53 = arith.constant 1.000000e+00 : f32
    %182 = vector.broadcast %cst_53 : f32 to vector<2x256xf32>
    %183 = arith.addf %182, %181 : vector<2x256xf32>
    %184 = arith.divf %182, %183 : vector<2x256xf32>
    %185 = vector.extract_strided_slice %176 {offsets = [0, 256], sizes = [2, 256], strides = [1, 1]} : vector<2x768xf32> to vector<2x256xf32>
    %186 = vector.extract_strided_slice %175 {offsets = [0, 256], sizes = [2, 256], strides = [1, 1]} : vector<2x768xf32> to vector<2x256xf32>
    %187 = arith.addf %185, %186 : vector<2x256xf32>
    %188 = arith.negf %187 : vector<2x256xf32>
    %189 = math.exp %188 : vector<2x256xf32>
    %cst_54 = arith.constant 1.000000e+00 : f32
    %190 = vector.broadcast %cst_54 : f32 to vector<2x256xf32>
    %191 = arith.addf %190, %189 : vector<2x256xf32>
    %192 = arith.divf %190, %191 : vector<2x256xf32>
    %193 = vector.extract_strided_slice %176 {offsets = [0, 512], sizes = [2, 256], strides = [1, 1]} : vector<2x768xf32> to vector<2x256xf32>
    %194 = vector.extract_strided_slice %175 {offsets = [0, 512], sizes = [2, 256], strides = [1, 1]} : vector<2x768xf32> to vector<2x256xf32>
    %195 = arith.mulf %184, %194 : vector<2x256xf32>
    %196 = arith.addf %193, %195 : vector<2x256xf32>
    %197 = math.tanh %196 : vector<2x256xf32>
    %cst_55 = arith.constant 1.000000e+00 : f32
    %198 = vector.broadcast %cst_55 : f32 to vector<2x256xf32>
    %199 = arith.subf %198, %192 : vector<2x256xf32>
    %200 = arith.mulf %199, %197 : vector<2x256xf32>
    %201 = arith.mulf %192, %109 : vector<2x256xf32>
    %202 = arith.addf %200, %201 : vector<2x256xf32>
    %203 = arith.truncf %140 : vector<2x32xf32> to vector<2x32xbf16>
    %cst_56 = arith.constant dense<0.000000e+00> : vector<2x96xf32>
    %204 = tpu.matmul %203, %57, %cst_56 {dimension_numbers = #tpu.dot_dimension_numbers<[1], [0], [0], [1], [0, 0, 1, 1], [], []>} : vector<2x32xbf16>, vector<32x96xbf16>, vector<2x96xf32> -> vector<2x96xf32>
    %205 = vector.broadcast %58 : vector<1x96xf32> to vector<2x96xf32>
    %206 = arith.addf %204, %205 : vector<2x96xf32>
    %207 = vector.extract_strided_slice %39 {offsets = [2, 0], sizes = [2, 96], strides = [1, 1]} : vector<12x96xf32> to vector<2x96xf32>
    %208 = vector.extract_strided_slice %207 {offsets = [0, 0], sizes = [2, 32], strides = [1, 1]} : vector<2x96xf32> to vector<2x32xf32>
    %209 = vector.extract_strided_slice %206 {offsets = [0, 0], sizes = [2, 32], strides = [1, 1]} : vector<2x96xf32> to vector<2x32xf32>
    %210 = arith.addf %208, %209 : vector<2x32xf32>
    %211 = arith.negf %210 : vector<2x32xf32>
    %212 = math.exp %211 : vector<2x32xf32>
    %cst_57 = arith.constant 1.000000e+00 : f32
    %213 = vector.broadcast %cst_57 : f32 to vector<2x32xf32>
    %214 = arith.addf %213, %212 : vector<2x32xf32>
    %215 = arith.divf %213, %214 : vector<2x32xf32>
    %216 = vector.extract_strided_slice %207 {offsets = [0, 32], sizes = [2, 32], strides = [1, 1]} : vector<2x96xf32> to vector<2x32xf32>
    %217 = vector.extract_strided_slice %206 {offsets = [0, 32], sizes = [2, 32], strides = [1, 1]} : vector<2x96xf32> to vector<2x32xf32>
    %218 = arith.addf %216, %217 : vector<2x32xf32>
    %219 = arith.negf %218 : vector<2x32xf32>
    %220 = math.exp %219 : vector<2x32xf32>
    %cst_58 = arith.constant 1.000000e+00 : f32
    %221 = vector.broadcast %cst_58 : f32 to vector<2x32xf32>
    %222 = arith.addf %221, %220 : vector<2x32xf32>
    %223 = arith.divf %221, %222 : vector<2x32xf32>
    %224 = vector.extract_strided_slice %207 {offsets = [0, 64], sizes = [2, 32], strides = [1, 1]} : vector<2x96xf32> to vector<2x32xf32>
    %225 = vector.extract_strided_slice %206 {offsets = [0, 64], sizes = [2, 32], strides = [1, 1]} : vector<2x96xf32> to vector<2x32xf32>
    %226 = arith.mulf %215, %225 : vector<2x32xf32>
    %227 = arith.addf %224, %226 : vector<2x32xf32>
    %228 = math.tanh %227 : vector<2x32xf32>
    %cst_59 = arith.constant 1.000000e+00 : f32
    %229 = vector.broadcast %cst_59 : f32 to vector<2x32xf32>
    %230 = arith.subf %229, %223 : vector<2x32xf32>
    %231 = arith.mulf %230, %228 : vector<2x32xf32>
    %232 = arith.mulf %223, %140 : vector<2x32xf32>
    %233 = arith.addf %231, %232 : vector<2x32xf32>
    %234 = arith.truncf %171 : vector<2x32xf32> to vector<2x32xbf16>
    %cst_60 = arith.constant dense<0.000000e+00> : vector<2x96xf32>
    %235 = tpu.matmul %234, %59, %cst_60 {dimension_numbers = #tpu.dot_dimension_numbers<[1], [0], [0], [1], [0, 0, 1, 1], [], []>} : vector<2x32xbf16>, vector<32x96xbf16>, vector<2x96xf32> -> vector<2x96xf32>
    %236 = vector.broadcast %60 : vector<1x96xf32> to vector<2x96xf32>
    %237 = arith.addf %235, %236 : vector<2x96xf32>
    %238 = vector.extract_strided_slice %54 {offsets = [8, 0], sizes = [2, 96], strides = [1, 1]} : vector<12x96xf32> to vector<2x96xf32>
    %239 = vector.extract_strided_slice %238 {offsets = [0, 0], sizes = [2, 32], strides = [1, 1]} : vector<2x96xf32> to vector<2x32xf32>
    %240 = vector.extract_strided_slice %237 {offsets = [0, 0], sizes = [2, 32], strides = [1, 1]} : vector<2x96xf32> to vector<2x32xf32>
    %241 = arith.addf %239, %240 : vector<2x32xf32>
    %242 = arith.negf %241 : vector<2x32xf32>
    %243 = math.exp %242 : vector<2x32xf32>
    %cst_61 = arith.constant 1.000000e+00 : f32
    %244 = vector.broadcast %cst_61 : f32 to vector<2x32xf32>
    %245 = arith.addf %244, %243 : vector<2x32xf32>
    %246 = arith.divf %244, %245 : vector<2x32xf32>
    %247 = vector.extract_strided_slice %238 {offsets = [0, 32], sizes = [2, 32], strides = [1, 1]} : vector<2x96xf32> to vector<2x32xf32>
    %248 = vector.extract_strided_slice %237 {offsets = [0, 32], sizes = [2, 32], strides = [1, 1]} : vector<2x96xf32> to vector<2x32xf32>
    %249 = arith.addf %247, %248 : vector<2x32xf32>
    %250 = arith.negf %249 : vector<2x32xf32>
    %251 = math.exp %250 : vector<2x32xf32>
    %cst_62 = arith.constant 1.000000e+00 : f32
    %252 = vector.broadcast %cst_62 : f32 to vector<2x32xf32>
    %253 = arith.addf %252, %251 : vector<2x32xf32>
    %254 = arith.divf %252, %253 : vector<2x32xf32>
    %255 = vector.extract_strided_slice %238 {offsets = [0, 64], sizes = [2, 32], strides = [1, 1]} : vector<2x96xf32> to vector<2x32xf32>
    %256 = vector.extract_strided_slice %237 {offsets = [0, 64], sizes = [2, 32], strides = [1, 1]} : vector<2x96xf32> to vector<2x32xf32>
    %257 = arith.mulf %246, %256 : vector<2x32xf32>
    %258 = arith.addf %255, %257 : vector<2x32xf32>
    %259 = math.tanh %258 : vector<2x32xf32>
    %cst_63 = arith.constant 1.000000e+00 : f32
    %260 = vector.broadcast %cst_63 : f32 to vector<2x32xf32>
    %261 = arith.subf %260, %254 : vector<2x32xf32>
    %262 = arith.mulf %261, %259 : vector<2x32xf32>
    %263 = arith.mulf %254, %171 : vector<2x32xf32>
    %264 = arith.addf %262, %263 : vector<2x32xf32>
    %265 = arith.truncf %202 : vector<2x256xf32> to vector<2x256xbf16>
    %cst_64 = arith.constant dense<0.000000e+00> : vector<2x768xf32>
    %266 = tpu.matmul %265, %55, %cst_64 {dimension_numbers = #tpu.dot_dimension_numbers<[1], [0], [0], [1], [0, 0, 1, 1], [], []>} : vector<2x256xbf16>, vector<256x768xbf16>, vector<2x768xf32> -> vector<2x768xf32>
    %267 = vector.broadcast %56 : vector<1x768xf32> to vector<2x768xf32>
    %268 = arith.addf %266, %267 : vector<2x768xf32>
    %269 = vector.extract_strided_slice %23 {offsets = [4, 0], sizes = [2, 768], strides = [1, 1]} : vector<16x768xf32> to vector<2x768xf32>
    %270 = vector.extract_strided_slice %269 {offsets = [0, 0], sizes = [2, 256], strides = [1, 1]} : vector<2x768xf32> to vector<2x256xf32>
    %271 = vector.extract_strided_slice %268 {offsets = [0, 0], sizes = [2, 256], strides = [1, 1]} : vector<2x768xf32> to vector<2x256xf32>
    %272 = arith.addf %270, %271 : vector<2x256xf32>
    %273 = arith.negf %272 : vector<2x256xf32>
    %274 = math.exp %273 : vector<2x256xf32>
    %cst_65 = arith.constant 1.000000e+00 : f32
    %275 = vector.broadcast %cst_65 : f32 to vector<2x256xf32>
    %276 = arith.addf %275, %274 : vector<2x256xf32>
    %277 = arith.divf %275, %276 : vector<2x256xf32>
    %278 = vector.extract_strided_slice %269 {offsets = [0, 256], sizes = [2, 256], strides = [1, 1]} : vector<2x768xf32> to vector<2x256xf32>
    %279 = vector.extract_strided_slice %268 {offsets = [0, 256], sizes = [2, 256], strides = [1, 1]} : vector<2x768xf32> to vector<2x256xf32>
    %280 = arith.addf %278, %279 : vector<2x256xf32>
    %281 = arith.negf %280 : vector<2x256xf32>
    %282 = math.exp %281 : vector<2x256xf32>
    %cst_66 = arith.constant 1.000000e+00 : f32
    %283 = vector.broadcast %cst_66 : f32 to vector<2x256xf32>
    %284 = arith.addf %283, %282 : vector<2x256xf32>
    %285 = arith.divf %283, %284 : vector<2x256xf32>
    %286 = vector.extract_strided_slice %269 {offsets = [0, 512], sizes = [2, 256], strides = [1, 1]} : vector<2x768xf32> to vector<2x256xf32>
    %287 = vector.extract_strided_slice %268 {offsets = [0, 512], sizes = [2, 256], strides = [1, 1]} : vector<2x768xf32> to vector<2x256xf32>
    %288 = arith.mulf %277, %287 : vector<2x256xf32>
    %289 = arith.addf %286, %288 : vector<2x256xf32>
    %290 = math.tanh %289 : vector<2x256xf32>
    %cst_67 = arith.constant 1.000000e+00 : f32
    %291 = vector.broadcast %cst_67 : f32 to vector<2x256xf32>
    %292 = arith.subf %291, %285 : vector<2x256xf32>
    %293 = arith.mulf %292, %290 : vector<2x256xf32>
    %294 = arith.mulf %285, %202 : vector<2x256xf32>
    %295 = arith.addf %293, %294 : vector<2x256xf32>
    %296 = arith.truncf %233 : vector<2x32xf32> to vector<2x32xbf16>
    %cst_68 = arith.constant dense<0.000000e+00> : vector<2x96xf32>
    %297 = tpu.matmul %296, %57, %cst_68 {dimension_numbers = #tpu.dot_dimension_numbers<[1], [0], [0], [1], [0, 0, 1, 1], [], []>} : vector<2x32xbf16>, vector<32x96xbf16>, vector<2x96xf32> -> vector<2x96xf32>
    %298 = vector.broadcast %58 : vector<1x96xf32> to vector<2x96xf32>
    %299 = arith.addf %297, %298 : vector<2x96xf32>
    %300 = vector.extract_strided_slice %39 {offsets = [4, 0], sizes = [2, 96], strides = [1, 1]} : vector<12x96xf32> to vector<2x96xf32>
    %301 = vector.extract_strided_slice %300 {offsets = [0, 0], sizes = [2, 32], strides = [1, 1]} : vector<2x96xf32> to vector<2x32xf32>
    %302 = vector.extract_strided_slice %299 {offsets = [0, 0], sizes = [2, 32], strides = [1, 1]} : vector<2x96xf32> to vector<2x32xf32>
    %303 = arith.addf %301, %302 : vector<2x32xf32>
    %304 = arith.negf %303 : vector<2x32xf32>
    %305 = math.exp %304 : vector<2x32xf32>
    %cst_69 = arith.constant 1.000000e+00 : f32
    %306 = vector.broadcast %cst_69 : f32 to vector<2x32xf32>
    %307 = arith.addf %306, %305 : vector<2x32xf32>
    %308 = arith.divf %306, %307 : vector<2x32xf32>
    %309 = vector.extract_strided_slice %300 {offsets = [0, 32], sizes = [2, 32], strides = [1, 1]} : vector<2x96xf32> to vector<2x32xf32>
    %310 = vector.extract_strided_slice %299 {offsets = [0, 32], sizes = [2, 32], strides = [1, 1]} : vector<2x96xf32> to vector<2x32xf32>
    %311 = arith.addf %309, %310 : vector<2x32xf32>
    %312 = arith.negf %311 : vector<2x32xf32>
    %313 = math.exp %312 : vector<2x32xf32>
    %cst_70 = arith.constant 1.000000e+00 : f32
    %314 = vector.broadcast %cst_70 : f32 to vector<2x32xf32>
    %315 = arith.addf %314, %313 : vector<2x32xf32>
    %316 = arith.divf %314, %315 : vector<2x32xf32>
    %317 = vector.extract_strided_slice %300 {offsets = [0, 64], sizes = [2, 32], strides = [1, 1]} : vector<2x96xf32> to vector<2x32xf32>
    %318 = vector.extract_strided_slice %299 {offsets = [0, 64], sizes = [2, 32], strides = [1, 1]} : vector<2x96xf32> to vector<2x32xf32>
    %319 = arith.mulf %308, %318 : vector<2x32xf32>
    %320 = arith.addf %317, %319 : vector<2x32xf32>
    %321 = math.tanh %320 : vector<2x32xf32>
    %cst_71 = arith.constant 1.000000e+00 : f32
    %322 = vector.broadcast %cst_71 : f32 to vector<2x32xf32>
    %323 = arith.subf %322, %316 : vector<2x32xf32>
    %324 = arith.mulf %323, %321 : vector<2x32xf32>
    %325 = arith.mulf %316, %233 : vector<2x32xf32>
    %326 = arith.addf %324, %325 : vector<2x32xf32>
    %327 = arith.truncf %264 : vector<2x32xf32> to vector<2x32xbf16>
    %cst_72 = arith.constant dense<0.000000e+00> : vector<2x96xf32>
    %328 = tpu.matmul %327, %59, %cst_72 {dimension_numbers = #tpu.dot_dimension_numbers<[1], [0], [0], [1], [0, 0, 1, 1], [], []>} : vector<2x32xbf16>, vector<32x96xbf16>, vector<2x96xf32> -> vector<2x96xf32>
    %329 = vector.broadcast %60 : vector<1x96xf32> to vector<2x96xf32>
    %330 = arith.addf %328, %329 : vector<2x96xf32>
    %331 = vector.extract_strided_slice %54 {offsets = [6, 0], sizes = [2, 96], strides = [1, 1]} : vector<12x96xf32> to vector<2x96xf32>
    %332 = vector.extract_strided_slice %331 {offsets = [0, 0], sizes = [2, 32], strides = [1, 1]} : vector<2x96xf32> to vector<2x32xf32>
    %333 = vector.extract_strided_slice %330 {offsets = [0, 0], sizes = [2, 32], strides = [1, 1]} : vector<2x96xf32> to vector<2x32xf32>
    %334 = arith.addf %332, %333 : vector<2x32xf32>
    %335 = arith.negf %334 : vector<2x32xf32>
    %336 = math.exp %335 : vector<2x32xf32>
    %cst_73 = arith.constant 1.000000e+00 : f32
    %337 = vector.broadcast %cst_73 : f32 to vector<2x32xf32>
    %338 = arith.addf %337, %336 : vector<2x32xf32>
    %339 = arith.divf %337, %338 : vector<2x32xf32>
    %340 = vector.extract_strided_slice %331 {offsets = [0, 32], sizes = [2, 32], strides = [1, 1]} : vector<2x96xf32> to vector<2x32xf32>
    %341 = vector.extract_strided_slice %330 {offsets = [0, 32], sizes = [2, 32], strides = [1, 1]} : vector<2x96xf32> to vector<2x32xf32>
    %342 = arith.addf %340, %341 : vector<2x32xf32>
    %343 = arith.negf %342 : vector<2x32xf32>
    %344 = math.exp %343 : vector<2x32xf32>
    %cst_74 = arith.constant 1.000000e+00 : f32
    %345 = vector.broadcast %cst_74 : f32 to vector<2x32xf32>
    %346 = arith.addf %345, %344 : vector<2x32xf32>
    %347 = arith.divf %345, %346 : vector<2x32xf32>
    %348 = vector.extract_strided_slice %331 {offsets = [0, 64], sizes = [2, 32], strides = [1, 1]} : vector<2x96xf32> to vector<2x32xf32>
    %349 = vector.extract_strided_slice %330 {offsets = [0, 64], sizes = [2, 32], strides = [1, 1]} : vector<2x96xf32> to vector<2x32xf32>
    %350 = arith.mulf %339, %349 : vector<2x32xf32>
    %351 = arith.addf %348, %350 : vector<2x32xf32>
    %352 = math.tanh %351 : vector<2x32xf32>
    %cst_75 = arith.constant 1.000000e+00 : f32
    %353 = vector.broadcast %cst_75 : f32 to vector<2x32xf32>
    %354 = arith.subf %353, %347 : vector<2x32xf32>
    %355 = arith.mulf %354, %352 : vector<2x32xf32>
    %356 = arith.mulf %347, %264 : vector<2x32xf32>
    %357 = arith.addf %355, %356 : vector<2x32xf32>
    %358 = arith.truncf %295 : vector<2x256xf32> to vector<2x256xbf16>
    %cst_76 = arith.constant dense<0.000000e+00> : vector<2x768xf32>
    %359 = tpu.matmul %358, %55, %cst_76 {dimension_numbers = #tpu.dot_dimension_numbers<[1], [0], [0], [1], [0, 0, 1, 1], [], []>} : vector<2x256xbf16>, vector<256x768xbf16>, vector<2x768xf32> -> vector<2x768xf32>
    %360 = vector.broadcast %56 : vector<1x768xf32> to vector<2x768xf32>
    %361 = arith.addf %359, %360 : vector<2x768xf32>
    %362 = vector.extract_strided_slice %23 {offsets = [6, 0], sizes = [2, 768], strides = [1, 1]} : vector<16x768xf32> to vector<2x768xf32>
    %363 = vector.extract_strided_slice %362 {offsets = [0, 0], sizes = [2, 256], strides = [1, 1]} : vector<2x768xf32> to vector<2x256xf32>
    %364 = vector.extract_strided_slice %361 {offsets = [0, 0], sizes = [2, 256], strides = [1, 1]} : vector<2x768xf32> to vector<2x256xf32>
    %365 = arith.addf %363, %364 : vector<2x256xf32>
    %366 = arith.negf %365 : vector<2x256xf32>
    %367 = math.exp %366 : vector<2x256xf32>
    %cst_77 = arith.constant 1.000000e+00 : f32
    %368 = vector.broadcast %cst_77 : f32 to vector<2x256xf32>
    %369 = arith.addf %368, %367 : vector<2x256xf32>
    %370 = arith.divf %368, %369 : vector<2x256xf32>
    %371 = vector.extract_strided_slice %362 {offsets = [0, 256], sizes = [2, 256], strides = [1, 1]} : vector<2x768xf32> to vector<2x256xf32>
    %372 = vector.extract_strided_slice %361 {offsets = [0, 256], sizes = [2, 256], strides = [1, 1]} : vector<2x768xf32> to vector<2x256xf32>
    %373 = arith.addf %371, %372 : vector<2x256xf32>
    %374 = arith.negf %373 : vector<2x256xf32>
    %375 = math.exp %374 : vector<2x256xf32>
    %cst_78 = arith.constant 1.000000e+00 : f32
    %376 = vector.broadcast %cst_78 : f32 to vector<2x256xf32>
    %377 = arith.addf %376, %375 : vector<2x256xf32>
    %378 = arith.divf %376, %377 : vector<2x256xf32>
    %379 = vector.extract_strided_slice %362 {offsets = [0, 512], sizes = [2, 256], strides = [1, 1]} : vector<2x768xf32> to vector<2x256xf32>
    %380 = vector.extract_strided_slice %361 {offsets = [0, 512], sizes = [2, 256], strides = [1, 1]} : vector<2x768xf32> to vector<2x256xf32>
    %381 = arith.mulf %370, %380 : vector<2x256xf32>
    %382 = arith.addf %379, %381 : vector<2x256xf32>
    %383 = math.tanh %382 : vector<2x256xf32>
    %cst_79 = arith.constant 1.000000e+00 : f32
    %384 = vector.broadcast %cst_79 : f32 to vector<2x256xf32>
    %385 = arith.subf %384, %378 : vector<2x256xf32>
    %386 = arith.mulf %385, %383 : vector<2x256xf32>
    %387 = arith.mulf %378, %295 : vector<2x256xf32>
    %388 = arith.addf %386, %387 : vector<2x256xf32>
    %389 = arith.truncf %326 : vector<2x32xf32> to vector<2x32xbf16>
    %cst_80 = arith.constant dense<0.000000e+00> : vector<2x96xf32>
    %390 = tpu.matmul %389, %57, %cst_80 {dimension_numbers = #tpu.dot_dimension_numbers<[1], [0], [0], [1], [0, 0, 1, 1], [], []>} : vector<2x32xbf16>, vector<32x96xbf16>, vector<2x96xf32> -> vector<2x96xf32>
    %391 = vector.broadcast %58 : vector<1x96xf32> to vector<2x96xf32>
    %392 = arith.addf %390, %391 : vector<2x96xf32>
    %393 = vector.extract_strided_slice %39 {offsets = [6, 0], sizes = [2, 96], strides = [1, 1]} : vector<12x96xf32> to vector<2x96xf32>
    %394 = vector.extract_strided_slice %393 {offsets = [0, 0], sizes = [2, 32], strides = [1, 1]} : vector<2x96xf32> to vector<2x32xf32>
    %395 = vector.extract_strided_slice %392 {offsets = [0, 0], sizes = [2, 32], strides = [1, 1]} : vector<2x96xf32> to vector<2x32xf32>
    %396 = arith.addf %394, %395 : vector<2x32xf32>
    %397 = arith.negf %396 : vector<2x32xf32>
    %398 = math.exp %397 : vector<2x32xf32>
    %cst_81 = arith.constant 1.000000e+00 : f32
    %399 = vector.broadcast %cst_81 : f32 to vector<2x32xf32>
    %400 = arith.addf %399, %398 : vector<2x32xf32>
    %401 = arith.divf %399, %400 : vector<2x32xf32>
    %402 = vector.extract_strided_slice %393 {offsets = [0, 32], sizes = [2, 32], strides = [1, 1]} : vector<2x96xf32> to vector<2x32xf32>
    %403 = vector.extract_strided_slice %392 {offsets = [0, 32], sizes = [2, 32], strides = [1, 1]} : vector<2x96xf32> to vector<2x32xf32>
    %404 = arith.addf %402, %403 : vector<2x32xf32>
    %405 = arith.negf %404 : vector<2x32xf32>
    %406 = math.exp %405 : vector<2x32xf32>
    %cst_82 = arith.constant 1.000000e+00 : f32
    %407 = vector.broadcast %cst_82 : f32 to vector<2x32xf32>
    %408 = arith.addf %407, %406 : vector<2x32xf32>
    %409 = arith.divf %407, %408 : vector<2x32xf32>
    %410 = vector.extract_strided_slice %393 {offsets = [0, 64], sizes = [2, 32], strides = [1, 1]} : vector<2x96xf32> to vector<2x32xf32>
    %411 = vector.extract_strided_slice %392 {offsets = [0, 64], sizes = [2, 32], strides = [1, 1]} : vector<2x96xf32> to vector<2x32xf32>
    %412 = arith.mulf %401, %411 : vector<2x32xf32>
    %413 = arith.addf %410, %412 : vector<2x32xf32>
    %414 = math.tanh %413 : vector<2x32xf32>
    %cst_83 = arith.constant 1.000000e+00 : f32
    %415 = vector.broadcast %cst_83 : f32 to vector<2x32xf32>
    %416 = arith.subf %415, %409 : vector<2x32xf32>
    %417 = arith.mulf %416, %414 : vector<2x32xf32>
    %418 = arith.mulf %409, %326 : vector<2x32xf32>
    %419 = arith.addf %417, %418 : vector<2x32xf32>
    %420 = arith.truncf %357 : vector<2x32xf32> to vector<2x32xbf16>
    %cst_84 = arith.constant dense<0.000000e+00> : vector<2x96xf32>
    %421 = tpu.matmul %420, %59, %cst_84 {dimension_numbers = #tpu.dot_dimension_numbers<[1], [0], [0], [1], [0, 0, 1, 1], [], []>} : vector<2x32xbf16>, vector<32x96xbf16>, vector<2x96xf32> -> vector<2x96xf32>
    %422 = vector.broadcast %60 : vector<1x96xf32> to vector<2x96xf32>
    %423 = arith.addf %421, %422 : vector<2x96xf32>
    %424 = vector.extract_strided_slice %54 {offsets = [4, 0], sizes = [2, 96], strides = [1, 1]} : vector<12x96xf32> to vector<2x96xf32>
    %425 = vector.extract_strided_slice %424 {offsets = [0, 0], sizes = [2, 32], strides = [1, 1]} : vector<2x96xf32> to vector<2x32xf32>
    %426 = vector.extract_strided_slice %423 {offsets = [0, 0], sizes = [2, 32], strides = [1, 1]} : vector<2x96xf32> to vector<2x32xf32>
    %427 = arith.addf %425, %426 : vector<2x32xf32>
    %428 = arith.negf %427 : vector<2x32xf32>
    %429 = math.exp %428 : vector<2x32xf32>
    %cst_85 = arith.constant 1.000000e+00 : f32
    %430 = vector.broadcast %cst_85 : f32 to vector<2x32xf32>
    %431 = arith.addf %430, %429 : vector<2x32xf32>
    %432 = arith.divf %430, %431 : vector<2x32xf32>
    %433 = vector.extract_strided_slice %424 {offsets = [0, 32], sizes = [2, 32], strides = [1, 1]} : vector<2x96xf32> to vector<2x32xf32>
    %434 = vector.extract_strided_slice %423 {offsets = [0, 32], sizes = [2, 32], strides = [1, 1]} : vector<2x96xf32> to vector<2x32xf32>
    %435 = arith.addf %433, %434 : vector<2x32xf32>
    %436 = arith.negf %435 : vector<2x32xf32>
    %437 = math.exp %436 : vector<2x32xf32>
    %cst_86 = arith.constant 1.000000e+00 : f32
    %438 = vector.broadcast %cst_86 : f32 to vector<2x32xf32>
    %439 = arith.addf %438, %437 : vector<2x32xf32>
    %440 = arith.divf %438, %439 : vector<2x32xf32>
    %441 = vector.extract_strided_slice %424 {offsets = [0, 64], sizes = [2, 32], strides = [1, 1]} : vector<2x96xf32> to vector<2x32xf32>
    %442 = vector.extract_strided_slice %423 {offsets = [0, 64], sizes = [2, 32], strides = [1, 1]} : vector<2x96xf32> to vector<2x32xf32>
    %443 = arith.mulf %432, %442 : vector<2x32xf32>
    %444 = arith.addf %441, %443 : vector<2x32xf32>
    %445 = math.tanh %444 : vector<2x32xf32>
    %cst_87 = arith.constant 1.000000e+00 : f32
    %446 = vector.broadcast %cst_87 : f32 to vector<2x32xf32>
    %447 = arith.subf %446, %440 : vector<2x32xf32>
    %448 = arith.mulf %447, %445 : vector<2x32xf32>
    %449 = arith.mulf %440, %357 : vector<2x32xf32>
    %450 = arith.addf %448, %449 : vector<2x32xf32>
    %451 = arith.truncf %388 : vector<2x256xf32> to vector<2x256xbf16>
    %cst_88 = arith.constant dense<0.000000e+00> : vector<2x768xf32>
    %452 = tpu.matmul %451, %55, %cst_88 {dimension_numbers = #tpu.dot_dimension_numbers<[1], [0], [0], [1], [0, 0, 1, 1], [], []>} : vector<2x256xbf16>, vector<256x768xbf16>, vector<2x768xf32> -> vector<2x768xf32>
    %453 = vector.broadcast %56 : vector<1x768xf32> to vector<2x768xf32>
    %454 = arith.addf %452, %453 : vector<2x768xf32>
    %455 = vector.extract_strided_slice %23 {offsets = [8, 0], sizes = [2, 768], strides = [1, 1]} : vector<16x768xf32> to vector<2x768xf32>
    %456 = vector.extract_strided_slice %455 {offsets = [0, 0], sizes = [2, 256], strides = [1, 1]} : vector<2x768xf32> to vector<2x256xf32>
    %457 = vector.extract_strided_slice %454 {offsets = [0, 0], sizes = [2, 256], strides = [1, 1]} : vector<2x768xf32> to vector<2x256xf32>
    %458 = arith.addf %456, %457 : vector<2x256xf32>
    %459 = arith.negf %458 : vector<2x256xf32>
    %460 = math.exp %459 : vector<2x256xf32>
    %cst_89 = arith.constant 1.000000e+00 : f32
    %461 = vector.broadcast %cst_89 : f32 to vector<2x256xf32>
    %462 = arith.addf %461, %460 : vector<2x256xf32>
    %463 = arith.divf %461, %462 : vector<2x256xf32>
    %464 = vector.extract_strided_slice %455 {offsets = [0, 256], sizes = [2, 256], strides = [1, 1]} : vector<2x768xf32> to vector<2x256xf32>
    %465 = vector.extract_strided_slice %454 {offsets = [0, 256], sizes = [2, 256], strides = [1, 1]} : vector<2x768xf32> to vector<2x256xf32>
    %466 = arith.addf %464, %465 : vector<2x256xf32>
    %467 = arith.negf %466 : vector<2x256xf32>
    %468 = math.exp %467 : vector<2x256xf32>
    %cst_90 = arith.constant 1.000000e+00 : f32
    %469 = vector.broadcast %cst_90 : f32 to vector<2x256xf32>
    %470 = arith.addf %469, %468 : vector<2x256xf32>
    %471 = arith.divf %469, %470 : vector<2x256xf32>
    %472 = vector.extract_strided_slice %455 {offsets = [0, 512], sizes = [2, 256], strides = [1, 1]} : vector<2x768xf32> to vector<2x256xf32>
    %473 = vector.extract_strided_slice %454 {offsets = [0, 512], sizes = [2, 256], strides = [1, 1]} : vector<2x768xf32> to vector<2x256xf32>
    %474 = arith.mulf %463, %473 : vector<2x256xf32>
    %475 = arith.addf %472, %474 : vector<2x256xf32>
    %476 = math.tanh %475 : vector<2x256xf32>
    %cst_91 = arith.constant 1.000000e+00 : f32
    %477 = vector.broadcast %cst_91 : f32 to vector<2x256xf32>
    %478 = arith.subf %477, %471 : vector<2x256xf32>
    %479 = arith.mulf %478, %476 : vector<2x256xf32>
    %480 = arith.mulf %471, %388 : vector<2x256xf32>
    %481 = arith.addf %479, %480 : vector<2x256xf32>
    %482 = arith.truncf %419 : vector<2x32xf32> to vector<2x32xbf16>
    %cst_92 = arith.constant dense<0.000000e+00> : vector<2x96xf32>
    %483 = tpu.matmul %482, %57, %cst_92 {dimension_numbers = #tpu.dot_dimension_numbers<[1], [0], [0], [1], [0, 0, 1, 1], [], []>} : vector<2x32xbf16>, vector<32x96xbf16>, vector<2x96xf32> -> vector<2x96xf32>
    %484 = vector.broadcast %58 : vector<1x96xf32> to vector<2x96xf32>
    %485 = arith.addf %483, %484 : vector<2x96xf32>
    %486 = vector.extract_strided_slice %39 {offsets = [8, 0], sizes = [2, 96], strides = [1, 1]} : vector<12x96xf32> to vector<2x96xf32>
    %487 = vector.extract_strided_slice %486 {offsets = [0, 0], sizes = [2, 32], strides = [1, 1]} : vector<2x96xf32> to vector<2x32xf32>
    %488 = vector.extract_strided_slice %485 {offsets = [0, 0], sizes = [2, 32], strides = [1, 1]} : vector<2x96xf32> to vector<2x32xf32>
    %489 = arith.addf %487, %488 : vector<2x32xf32>
    %490 = arith.negf %489 : vector<2x32xf32>
    %491 = math.exp %490 : vector<2x32xf32>
    %cst_93 = arith.constant 1.000000e+00 : f32
    %492 = vector.broadcast %cst_93 : f32 to vector<2x32xf32>
    %493 = arith.addf %492, %491 : vector<2x32xf32>
    %494 = arith.divf %492, %493 : vector<2x32xf32>
    %495 = vector.extract_strided_slice %486 {offsets = [0, 32], sizes = [2, 32], strides = [1, 1]} : vector<2x96xf32> to vector<2x32xf32>
    %496 = vector.extract_strided_slice %485 {offsets = [0, 32], sizes = [2, 32], strides = [1, 1]} : vector<2x96xf32> to vector<2x32xf32>
    %497 = arith.addf %495, %496 : vector<2x32xf32>
    %498 = arith.negf %497 : vector<2x32xf32>
    %499 = math.exp %498 : vector<2x32xf32>
    %cst_94 = arith.constant 1.000000e+00 : f32
    %500 = vector.broadcast %cst_94 : f32 to vector<2x32xf32>
    %501 = arith.addf %500, %499 : vector<2x32xf32>
    %502 = arith.divf %500, %501 : vector<2x32xf32>
    %503 = vector.extract_strided_slice %486 {offsets = [0, 64], sizes = [2, 32], strides = [1, 1]} : vector<2x96xf32> to vector<2x32xf32>
    %504 = vector.extract_strided_slice %485 {offsets = [0, 64], sizes = [2, 32], strides = [1, 1]} : vector<2x96xf32> to vector<2x32xf32>
    %505 = arith.mulf %494, %504 : vector<2x32xf32>
    %506 = arith.addf %503, %505 : vector<2x32xf32>
    %507 = math.tanh %506 : vector<2x32xf32>
    %cst_95 = arith.constant 1.000000e+00 : f32
    %508 = vector.broadcast %cst_95 : f32 to vector<2x32xf32>
    %509 = arith.subf %508, %502 : vector<2x32xf32>
    %510 = arith.mulf %509, %507 : vector<2x32xf32>
    %511 = arith.mulf %502, %419 : vector<2x32xf32>
    %512 = arith.addf %510, %511 : vector<2x32xf32>
    %513 = arith.truncf %450 : vector<2x32xf32> to vector<2x32xbf16>
    %cst_96 = arith.constant dense<0.000000e+00> : vector<2x96xf32>
    %514 = tpu.matmul %513, %59, %cst_96 {dimension_numbers = #tpu.dot_dimension_numbers<[1], [0], [0], [1], [0, 0, 1, 1], [], []>} : vector<2x32xbf16>, vector<32x96xbf16>, vector<2x96xf32> -> vector<2x96xf32>
    %515 = vector.broadcast %60 : vector<1x96xf32> to vector<2x96xf32>
    %516 = arith.addf %514, %515 : vector<2x96xf32>
    %517 = vector.extract_strided_slice %54 {offsets = [2, 0], sizes = [2, 96], strides = [1, 1]} : vector<12x96xf32> to vector<2x96xf32>
    %518 = vector.extract_strided_slice %517 {offsets = [0, 0], sizes = [2, 32], strides = [1, 1]} : vector<2x96xf32> to vector<2x32xf32>
    %519 = vector.extract_strided_slice %516 {offsets = [0, 0], sizes = [2, 32], strides = [1, 1]} : vector<2x96xf32> to vector<2x32xf32>
    %520 = arith.addf %518, %519 : vector<2x32xf32>
    %521 = arith.negf %520 : vector<2x32xf32>
    %522 = math.exp %521 : vector<2x32xf32>
    %cst_97 = arith.constant 1.000000e+00 : f32
    %523 = vector.broadcast %cst_97 : f32 to vector<2x32xf32>
    %524 = arith.addf %523, %522 : vector<2x32xf32>
    %525 = arith.divf %523, %524 : vector<2x32xf32>
    %526 = vector.extract_strided_slice %517 {offsets = [0, 32], sizes = [2, 32], strides = [1, 1]} : vector<2x96xf32> to vector<2x32xf32>
    %527 = vector.extract_strided_slice %516 {offsets = [0, 32], sizes = [2, 32], strides = [1, 1]} : vector<2x96xf32> to vector<2x32xf32>
    %528 = arith.addf %526, %527 : vector<2x32xf32>
    %529 = arith.negf %528 : vector<2x32xf32>
    %530 = math.exp %529 : vector<2x32xf32>
    %cst_98 = arith.constant 1.000000e+00 : f32
    %531 = vector.broadcast %cst_98 : f32 to vector<2x32xf32>
    %532 = arith.addf %531, %530 : vector<2x32xf32>
    %533 = arith.divf %531, %532 : vector<2x32xf32>
    %534 = vector.extract_strided_slice %517 {offsets = [0, 64], sizes = [2, 32], strides = [1, 1]} : vector<2x96xf32> to vector<2x32xf32>
    %535 = vector.extract_strided_slice %516 {offsets = [0, 64], sizes = [2, 32], strides = [1, 1]} : vector<2x96xf32> to vector<2x32xf32>
    %536 = arith.mulf %525, %535 : vector<2x32xf32>
    %537 = arith.addf %534, %536 : vector<2x32xf32>
    %538 = math.tanh %537 : vector<2x32xf32>
    %cst_99 = arith.constant 1.000000e+00 : f32
    %539 = vector.broadcast %cst_99 : f32 to vector<2x32xf32>
    %540 = arith.subf %539, %533 : vector<2x32xf32>
    %541 = arith.mulf %540, %538 : vector<2x32xf32>
    %542 = arith.mulf %533, %450 : vector<2x32xf32>
    %543 = arith.addf %541, %542 : vector<2x32xf32>
    %544 = arith.truncf %481 : vector<2x256xf32> to vector<2x256xbf16>
    %cst_100 = arith.constant dense<0.000000e+00> : vector<2x768xf32>
    %545 = tpu.matmul %544, %55, %cst_100 {dimension_numbers = #tpu.dot_dimension_numbers<[1], [0], [0], [1], [0, 0, 1, 1], [], []>} : vector<2x256xbf16>, vector<256x768xbf16>, vector<2x768xf32> -> vector<2x768xf32>
    %546 = vector.broadcast %56 : vector<1x768xf32> to vector<2x768xf32>
    %547 = arith.addf %545, %546 : vector<2x768xf32>
    %548 = vector.extract_strided_slice %23 {offsets = [10, 0], sizes = [2, 768], strides = [1, 1]} : vector<16x768xf32> to vector<2x768xf32>
    %549 = vector.extract_strided_slice %548 {offsets = [0, 0], sizes = [2, 256], strides = [1, 1]} : vector<2x768xf32> to vector<2x256xf32>
    %550 = vector.extract_strided_slice %547 {offsets = [0, 0], sizes = [2, 256], strides = [1, 1]} : vector<2x768xf32> to vector<2x256xf32>
    %551 = arith.addf %549, %550 : vector<2x256xf32>
    %552 = arith.negf %551 : vector<2x256xf32>
    %553 = math.exp %552 : vector<2x256xf32>
    %cst_101 = arith.constant 1.000000e+00 : f32
    %554 = vector.broadcast %cst_101 : f32 to vector<2x256xf32>
    %555 = arith.addf %554, %553 : vector<2x256xf32>
    %556 = arith.divf %554, %555 : vector<2x256xf32>
    %557 = vector.extract_strided_slice %548 {offsets = [0, 256], sizes = [2, 256], strides = [1, 1]} : vector<2x768xf32> to vector<2x256xf32>
    %558 = vector.extract_strided_slice %547 {offsets = [0, 256], sizes = [2, 256], strides = [1, 1]} : vector<2x768xf32> to vector<2x256xf32>
    %559 = arith.addf %557, %558 : vector<2x256xf32>
    %560 = arith.negf %559 : vector<2x256xf32>
    %561 = math.exp %560 : vector<2x256xf32>
    %cst_102 = arith.constant 1.000000e+00 : f32
    %562 = vector.broadcast %cst_102 : f32 to vector<2x256xf32>
    %563 = arith.addf %562, %561 : vector<2x256xf32>
    %564 = arith.divf %562, %563 : vector<2x256xf32>
    %565 = vector.extract_strided_slice %548 {offsets = [0, 512], sizes = [2, 256], strides = [1, 1]} : vector<2x768xf32> to vector<2x256xf32>
    %566 = vector.extract_strided_slice %547 {offsets = [0, 512], sizes = [2, 256], strides = [1, 1]} : vector<2x768xf32> to vector<2x256xf32>
    %567 = arith.mulf %556, %566 : vector<2x256xf32>
    %568 = arith.addf %565, %567 : vector<2x256xf32>
    %569 = math.tanh %568 : vector<2x256xf32>
    %cst_103 = arith.constant 1.000000e+00 : f32
    %570 = vector.broadcast %cst_103 : f32 to vector<2x256xf32>
    %571 = arith.subf %570, %564 : vector<2x256xf32>
    %572 = arith.mulf %571, %569 : vector<2x256xf32>
    %573 = arith.mulf %564, %481 : vector<2x256xf32>
    %574 = arith.addf %572, %573 : vector<2x256xf32>
    %575 = arith.truncf %512 : vector<2x32xf32> to vector<2x32xbf16>
    %cst_104 = arith.constant dense<0.000000e+00> : vector<2x96xf32>
    %576 = tpu.matmul %575, %57, %cst_104 {dimension_numbers = #tpu.dot_dimension_numbers<[1], [0], [0], [1], [0, 0, 1, 1], [], []>} : vector<2x32xbf16>, vector<32x96xbf16>, vector<2x96xf32> -> vector<2x96xf32>
    %577 = vector.broadcast %58 : vector<1x96xf32> to vector<2x96xf32>
    %578 = arith.addf %576, %577 : vector<2x96xf32>
    %579 = vector.extract_strided_slice %39 {offsets = [10, 0], sizes = [2, 96], strides = [1, 1]} : vector<12x96xf32> to vector<2x96xf32>
    %580 = vector.extract_strided_slice %579 {offsets = [0, 0], sizes = [2, 32], strides = [1, 1]} : vector<2x96xf32> to vector<2x32xf32>
    %581 = vector.extract_strided_slice %578 {offsets = [0, 0], sizes = [2, 32], strides = [1, 1]} : vector<2x96xf32> to vector<2x32xf32>
    %582 = arith.addf %580, %581 : vector<2x32xf32>
    %583 = arith.negf %582 : vector<2x32xf32>
    %584 = math.exp %583 : vector<2x32xf32>
    %cst_105 = arith.constant 1.000000e+00 : f32
    %585 = vector.broadcast %cst_105 : f32 to vector<2x32xf32>
    %586 = arith.addf %585, %584 : vector<2x32xf32>
    %587 = arith.divf %585, %586 : vector<2x32xf32>
    %588 = vector.extract_strided_slice %579 {offsets = [0, 32], sizes = [2, 32], strides = [1, 1]} : vector<2x96xf32> to vector<2x32xf32>
    %589 = vector.extract_strided_slice %578 {offsets = [0, 32], sizes = [2, 32], strides = [1, 1]} : vector<2x96xf32> to vector<2x32xf32>
    %590 = arith.addf %588, %589 : vector<2x32xf32>
    %591 = arith.negf %590 : vector<2x32xf32>
    %592 = math.exp %591 : vector<2x32xf32>
    %cst_106 = arith.constant 1.000000e+00 : f32
    %593 = vector.broadcast %cst_106 : f32 to vector<2x32xf32>
    %594 = arith.addf %593, %592 : vector<2x32xf32>
    %595 = arith.divf %593, %594 : vector<2x32xf32>
    %596 = vector.extract_strided_slice %579 {offsets = [0, 64], sizes = [2, 32], strides = [1, 1]} : vector<2x96xf32> to vector<2x32xf32>
    %597 = vector.extract_strided_slice %578 {offsets = [0, 64], sizes = [2, 32], strides = [1, 1]} : vector<2x96xf32> to vector<2x32xf32>
    %598 = arith.mulf %587, %597 : vector<2x32xf32>
    %599 = arith.addf %596, %598 : vector<2x32xf32>
    %600 = math.tanh %599 : vector<2x32xf32>
    %cst_107 = arith.constant 1.000000e+00 : f32
    %601 = vector.broadcast %cst_107 : f32 to vector<2x32xf32>
    %602 = arith.subf %601, %595 : vector<2x32xf32>
    %603 = arith.mulf %602, %600 : vector<2x32xf32>
    %604 = arith.mulf %595, %512 : vector<2x32xf32>
    %605 = arith.addf %603, %604 : vector<2x32xf32>
    %606 = arith.truncf %543 : vector<2x32xf32> to vector<2x32xbf16>
    %cst_108 = arith.constant dense<0.000000e+00> : vector<2x96xf32>
    %607 = tpu.matmul %606, %59, %cst_108 {dimension_numbers = #tpu.dot_dimension_numbers<[1], [0], [0], [1], [0, 0, 1, 1], [], []>} : vector<2x32xbf16>, vector<32x96xbf16>, vector<2x96xf32> -> vector<2x96xf32>
    %608 = vector.broadcast %60 : vector<1x96xf32> to vector<2x96xf32>
    %609 = arith.addf %607, %608 : vector<2x96xf32>
    %610 = vector.extract_strided_slice %54 {offsets = [0, 0], sizes = [2, 96], strides = [1, 1]} : vector<12x96xf32> to vector<2x96xf32>
    %611 = vector.extract_strided_slice %610 {offsets = [0, 0], sizes = [2, 32], strides = [1, 1]} : vector<2x96xf32> to vector<2x32xf32>
    %612 = vector.extract_strided_slice %609 {offsets = [0, 0], sizes = [2, 32], strides = [1, 1]} : vector<2x96xf32> to vector<2x32xf32>
    %613 = arith.addf %611, %612 : vector<2x32xf32>
    %614 = arith.negf %613 : vector<2x32xf32>
    %615 = math.exp %614 : vector<2x32xf32>
    %cst_109 = arith.constant 1.000000e+00 : f32
    %616 = vector.broadcast %cst_109 : f32 to vector<2x32xf32>
    %617 = arith.addf %616, %615 : vector<2x32xf32>
    %618 = arith.divf %616, %617 : vector<2x32xf32>
    %619 = vector.extract_strided_slice %610 {offsets = [0, 32], sizes = [2, 32], strides = [1, 1]} : vector<2x96xf32> to vector<2x32xf32>
    %620 = vector.extract_strided_slice %609 {offsets = [0, 32], sizes = [2, 32], strides = [1, 1]} : vector<2x96xf32> to vector<2x32xf32>
    %621 = arith.addf %619, %620 : vector<2x32xf32>
    %622 = arith.negf %621 : vector<2x32xf32>
    %623 = math.exp %622 : vector<2x32xf32>
    %cst_110 = arith.constant 1.000000e+00 : f32
    %624 = vector.broadcast %cst_110 : f32 to vector<2x32xf32>
    %625 = arith.addf %624, %623 : vector<2x32xf32>
    %626 = arith.divf %624, %625 : vector<2x32xf32>
    %627 = vector.extract_strided_slice %610 {offsets = [0, 64], sizes = [2, 32], strides = [1, 1]} : vector<2x96xf32> to vector<2x32xf32>
    %628 = vector.extract_strided_slice %609 {offsets = [0, 64], sizes = [2, 32], strides = [1, 1]} : vector<2x96xf32> to vector<2x32xf32>
    %629 = arith.mulf %618, %628 : vector<2x32xf32>
    %630 = arith.addf %627, %629 : vector<2x32xf32>
    %631 = math.tanh %630 : vector<2x32xf32>
    %cst_111 = arith.constant 1.000000e+00 : f32
    %632 = vector.broadcast %cst_111 : f32 to vector<2x32xf32>
    %633 = arith.subf %632, %626 : vector<2x32xf32>
    %634 = arith.mulf %633, %631 : vector<2x32xf32>
    %635 = arith.mulf %626, %543 : vector<2x32xf32>
    %636 = arith.addf %634, %635 : vector<2x32xf32>
    %637 = arith.truncf %574 : vector<2x256xf32> to vector<2x256xbf16>
    %cst_112 = arith.constant dense<0.000000e+00> : vector<2x768xf32>
    %638 = tpu.matmul %637, %55, %cst_112 {dimension_numbers = #tpu.dot_dimension_numbers<[1], [0], [0], [1], [0, 0, 1, 1], [], []>} : vector<2x256xbf16>, vector<256x768xbf16>, vector<2x768xf32> -> vector<2x768xf32>
    %639 = vector.broadcast %56 : vector<1x768xf32> to vector<2x768xf32>
    %640 = arith.addf %638, %639 : vector<2x768xf32>
    %641 = vector.extract_strided_slice %23 {offsets = [12, 0], sizes = [2, 768], strides = [1, 1]} : vector<16x768xf32> to vector<2x768xf32>
    %642 = vector.extract_strided_slice %641 {offsets = [0, 0], sizes = [2, 256], strides = [1, 1]} : vector<2x768xf32> to vector<2x256xf32>
    %643 = vector.extract_strided_slice %640 {offsets = [0, 0], sizes = [2, 256], strides = [1, 1]} : vector<2x768xf32> to vector<2x256xf32>
    %644 = arith.addf %642, %643 : vector<2x256xf32>
    %645 = arith.negf %644 : vector<2x256xf32>
    %646 = math.exp %645 : vector<2x256xf32>
    %cst_113 = arith.constant 1.000000e+00 : f32
    %647 = vector.broadcast %cst_113 : f32 to vector<2x256xf32>
    %648 = arith.addf %647, %646 : vector<2x256xf32>
    %649 = arith.divf %647, %648 : vector<2x256xf32>
    %650 = vector.extract_strided_slice %641 {offsets = [0, 256], sizes = [2, 256], strides = [1, 1]} : vector<2x768xf32> to vector<2x256xf32>
    %651 = vector.extract_strided_slice %640 {offsets = [0, 256], sizes = [2, 256], strides = [1, 1]} : vector<2x768xf32> to vector<2x256xf32>
    %652 = arith.addf %650, %651 : vector<2x256xf32>
    %653 = arith.negf %652 : vector<2x256xf32>
    %654 = math.exp %653 : vector<2x256xf32>
    %cst_114 = arith.constant 1.000000e+00 : f32
    %655 = vector.broadcast %cst_114 : f32 to vector<2x256xf32>
    %656 = arith.addf %655, %654 : vector<2x256xf32>
    %657 = arith.divf %655, %656 : vector<2x256xf32>
    %658 = vector.extract_strided_slice %641 {offsets = [0, 512], sizes = [2, 256], strides = [1, 1]} : vector<2x768xf32> to vector<2x256xf32>
    %659 = vector.extract_strided_slice %640 {offsets = [0, 512], sizes = [2, 256], strides = [1, 1]} : vector<2x768xf32> to vector<2x256xf32>
    %660 = arith.mulf %649, %659 : vector<2x256xf32>
    %661 = arith.addf %658, %660 : vector<2x256xf32>
    %662 = math.tanh %661 : vector<2x256xf32>
    %cst_115 = arith.constant 1.000000e+00 : f32
    %663 = vector.broadcast %cst_115 : f32 to vector<2x256xf32>
    %664 = arith.subf %663, %657 : vector<2x256xf32>
    %665 = arith.mulf %664, %662 : vector<2x256xf32>
    %666 = arith.mulf %657, %574 : vector<2x256xf32>
    %667 = arith.addf %665, %666 : vector<2x256xf32>
    %668 = arith.truncf %667 : vector<2x256xf32> to vector<2x256xbf16>
    %cst_116 = arith.constant dense<0.000000e+00> : vector<2x768xf32>
    %669 = tpu.matmul %668, %55, %cst_116 {dimension_numbers = #tpu.dot_dimension_numbers<[1], [0], [0], [1], [0, 0, 1, 1], [], []>} : vector<2x256xbf16>, vector<256x768xbf16>, vector<2x768xf32> -> vector<2x768xf32>
    %670 = vector.broadcast %56 : vector<1x768xf32> to vector<2x768xf32>
    %671 = arith.addf %669, %670 : vector<2x768xf32>
    %672 = vector.extract_strided_slice %23 {offsets = [14, 0], sizes = [2, 768], strides = [1, 1]} : vector<16x768xf32> to vector<2x768xf32>
    %673 = vector.extract_strided_slice %672 {offsets = [0, 0], sizes = [2, 256], strides = [1, 1]} : vector<2x768xf32> to vector<2x256xf32>
    %674 = vector.extract_strided_slice %671 {offsets = [0, 0], sizes = [2, 256], strides = [1, 1]} : vector<2x768xf32> to vector<2x256xf32>
    %675 = arith.addf %673, %674 : vector<2x256xf32>
    %676 = arith.negf %675 : vector<2x256xf32>
    %677 = math.exp %676 : vector<2x256xf32>
    %cst_117 = arith.constant 1.000000e+00 : f32
    %678 = vector.broadcast %cst_117 : f32 to vector<2x256xf32>
    %679 = arith.addf %678, %677 : vector<2x256xf32>
    %680 = arith.divf %678, %679 : vector<2x256xf32>
    %681 = vector.extract_strided_slice %672 {offsets = [0, 256], sizes = [2, 256], strides = [1, 1]} : vector<2x768xf32> to vector<2x256xf32>
    %682 = vector.extract_strided_slice %671 {offsets = [0, 256], sizes = [2, 256], strides = [1, 1]} : vector<2x768xf32> to vector<2x256xf32>
    %683 = arith.addf %681, %682 : vector<2x256xf32>
    %684 = arith.negf %683 : vector<2x256xf32>
    %685 = math.exp %684 : vector<2x256xf32>
    %cst_118 = arith.constant 1.000000e+00 : f32
    %686 = vector.broadcast %cst_118 : f32 to vector<2x256xf32>
    %687 = arith.addf %686, %685 : vector<2x256xf32>
    %688 = arith.divf %686, %687 : vector<2x256xf32>
    %689 = vector.extract_strided_slice %672 {offsets = [0, 512], sizes = [2, 256], strides = [1, 1]} : vector<2x768xf32> to vector<2x256xf32>
    %690 = vector.extract_strided_slice %671 {offsets = [0, 512], sizes = [2, 256], strides = [1, 1]} : vector<2x768xf32> to vector<2x256xf32>
    %691 = arith.mulf %680, %690 : vector<2x256xf32>
    %692 = arith.addf %689, %691 : vector<2x256xf32>
    %693 = math.tanh %692 : vector<2x256xf32>
    %cst_119 = arith.constant 1.000000e+00 : f32
    %694 = vector.broadcast %cst_119 : f32 to vector<2x256xf32>
    %695 = arith.subf %694, %688 : vector<2x256xf32>
    %696 = arith.mulf %695, %693 : vector<2x256xf32>
    %697 = arith.mulf %688, %667 : vector<2x256xf32>
    %698 = arith.addf %696, %697 : vector<2x256xf32>
    %c0_120 = arith.constant 0 : index
    %c0_121 = arith.constant 0 : index
    %699 = vector.load %arg3[%c0_120, %c0_121] : memref<2x256xf32, #tpu.memory_space<vmem>>, vector<2x256xf32>
    %700 = arith.mulf %698, %699 : vector<2x256xf32>
    %c0_122 = arith.constant 0 : index
    %c0_123 = arith.constant 0 : index
    %701 = vector.load %arg23[%c0_122, %c0_123] : memref<256x128xbf16, #tpu.memory_space<vmem>>, vector<256x128xbf16>
    %c0_124 = arith.constant 0 : index
    %c0_125 = arith.constant 0 : index
    %702 = vector.load %arg24[%c0_124, %c0_125] : memref<1x128xf32, #tpu.memory_space<vmem>>, vector<1x128xf32>
    %c0_126 = arith.constant 0 : index
    %c0_127 = arith.constant 0 : index
    %703 = vector.load %arg25[%c0_126, %c0_127] : memref<128x64xbf16, #tpu.memory_space<vmem>>, vector<128x64xbf16>
    %c0_128 = arith.constant 0 : index
    %c0_129 = arith.constant 0 : index
    %704 = vector.load %arg26[%c0_128, %c0_129] : memref<1x64xf32, #tpu.memory_space<vmem>>, vector<1x64xf32>
    %c0_130 = arith.constant 0 : index
    %c0_131 = arith.constant 0 : index
    %705 = vector.load %arg27[%c0_130, %c0_131] : memref<64x64xbf16, #tpu.memory_space<vmem>>, vector<64x64xbf16>
    %c0_132 = arith.constant 0 : index
    %c0_133 = arith.constant 0 : index
    %706 = vector.load %arg28[%c0_132, %c0_133] : memref<1x64xf32, #tpu.memory_space<vmem>>, vector<1x64xf32>
    %707 = arith.truncf %700 : vector<2x256xf32> to vector<2x256xbf16>
    %cst_134 = arith.constant dense<0.000000e+00> : vector<2x128xf32>
    %708 = tpu.matmul %707, %701, %cst_134 {dimension_numbers = #tpu.dot_dimension_numbers<[1], [0], [0], [1], [0, 0, 1, 1], [], []>} : vector<2x256xbf16>, vector<256x128xbf16>, vector<2x128xf32> -> vector<2x128xf32>
    %709 = vector.broadcast %702 : vector<1x128xf32> to vector<2x128xf32>
    %710 = arith.addf %708, %709 : vector<2x128xf32>
    %cst_135 = arith.constant 0.000000e+00 : f32
    %711 = vector.broadcast %cst_135 : f32 to vector<2x128xf32>
    %712 = arith.maximumf %710, %711 : vector<2x128xf32>
    %713 = arith.truncf %712 : vector<2x128xf32> to vector<2x128xbf16>
    %cst_136 = arith.constant dense<0.000000e+00> : vector<2x64xf32>
    %714 = tpu.matmul %713, %703, %cst_136 {dimension_numbers = #tpu.dot_dimension_numbers<[1], [0], [0], [1], [0, 0, 1, 1], [], []>} : vector<2x128xbf16>, vector<128x64xbf16>, vector<2x64xf32> -> vector<2x64xf32>
    %715 = vector.broadcast %704 : vector<1x64xf32> to vector<2x64xf32>
    %716 = arith.addf %714, %715 : vector<2x64xf32>
    %cst_137 = arith.constant 0.000000e+00 : f32
    %717 = vector.broadcast %cst_137 : f32 to vector<2x64xf32>
    %718 = arith.maximumf %716, %717 : vector<2x64xf32>
    %719 = arith.truncf %718 : vector<2x64xf32> to vector<2x64xbf16>
    %cst_138 = arith.constant dense<0.000000e+00> : vector<2x64xf32>
    %720 = tpu.matmul %719, %705, %cst_138 {dimension_numbers = #tpu.dot_dimension_numbers<[1], [0], [0], [1], [0, 0, 1, 1], [], []>} : vector<2x64xbf16>, vector<64x64xbf16>, vector<2x64xf32> -> vector<2x64xf32>
    %721 = vector.broadcast %706 : vector<1x64xf32> to vector<2x64xf32>
    %722 = arith.addf %720, %721 : vector<2x64xf32>
    %c0_139 = arith.constant 0 : index
    %c0_140 = arith.constant 0 : index
    %723 = vector.load %arg4[%c0_139, %c0_140] : memref<2x64xf32, #tpu.memory_space<vmem>>, vector<2x64xf32>
    %724 = vector.extract_strided_slice %723 {offsets = [0, 0], sizes = [2, 32], strides = [1, 1]} : vector<2x64xf32> to vector<2x32xf32>
    %725 = arith.mulf %605, %724 : vector<2x32xf32>
    %726 = vector.extract_strided_slice %723 {offsets = [0, 32], sizes = [2, 32], strides = [1, 1]} : vector<2x64xf32> to vector<2x32xf32>
    %727 = arith.mulf %636, %726 : vector<2x32xf32>
    %c0_141 = arith.constant 0 : index
    %c0_142 = arith.constant 0 : index
    %728 = vector.load %arg29[%c0_141, %c0_142] : memref<320x128xbf16, #tpu.memory_space<vmem>>, vector<256x128xbf16>
    %729 = arith.truncf %700 : vector<2x256xf32> to vector<2x256xbf16>
    %cst_143 = arith.constant dense<0.000000e+00> : vector<2x128xf32>
    %730 = tpu.matmul %729, %728, %cst_143 {dimension_numbers = #tpu.dot_dimension_numbers<[1], [0], [0], [1], [0, 0, 1, 1], [], []>} : vector<2x256xbf16>, vector<256x128xbf16>, vector<2x128xf32> -> vector<2x128xf32>
    %c256 = arith.constant 256 : index
    %c0_144 = arith.constant 0 : index
    %731 = vector.load %arg29[%c256, %c0_144] : memref<320x128xbf16, #tpu.memory_space<vmem>>, vector<32x128xbf16>
    %732 = arith.truncf %725 : vector<2x32xf32> to vector<2x32xbf16>
    %cst_145 = arith.constant dense<0.000000e+00> : vector<2x128xf32>
    %733 = tpu.matmul %732, %731, %cst_145 {dimension_numbers = #tpu.dot_dimension_numbers<[1], [0], [0], [1], [0, 0, 1, 1], [], []>} : vector<2x32xbf16>, vector<32x128xbf16>, vector<2x128xf32> -> vector<2x128xf32>
    %734 = arith.addf %730, %733 : vector<2x128xf32>
    %c288 = arith.constant 288 : index
    %c0_146 = arith.constant 0 : index
    %735 = vector.load %arg29[%c288, %c0_146] : memref<320x128xbf16, #tpu.memory_space<vmem>>, vector<32x128xbf16>
    %736 = arith.truncf %727 : vector<2x32xf32> to vector<2x32xbf16>
    %cst_147 = arith.constant dense<0.000000e+00> : vector<2x128xf32>
    %737 = tpu.matmul %736, %735, %cst_147 {dimension_numbers = #tpu.dot_dimension_numbers<[1], [0], [0], [1], [0, 0, 1, 1], [], []>} : vector<2x32xbf16>, vector<32x128xbf16>, vector<2x128xf32> -> vector<2x128xf32>
    %738 = arith.addf %734, %737 : vector<2x128xf32>
    %c0_148 = arith.constant 0 : index
    %c0_149 = arith.constant 0 : index
    %739 = vector.load %arg30[%c0_148, %c0_149] : memref<1x128xf32, #tpu.memory_space<vmem>>, vector<1x128xf32>
    %740 = vector.broadcast %739 : vector<1x128xf32> to vector<2x128xf32>
    %741 = arith.addf %738, %740 : vector<2x128xf32>
    %cst_150 = arith.constant 0.000000e+00 : f32
    %742 = vector.broadcast %cst_150 : f32 to vector<2x128xf32>
    %743 = arith.maximumf %741, %742 : vector<2x128xf32>
    %c0_151 = arith.constant 0 : index
    %c0_152 = arith.constant 0 : index
    %744 = vector.load %arg31[%c0_151, %c0_152] : memref<128x64xbf16, #tpu.memory_space<vmem>>, vector<128x64xbf16>
    %745 = arith.truncf %743 : vector<2x128xf32> to vector<2x128xbf16>
    %cst_153 = arith.constant dense<0.000000e+00> : vector<2x64xf32>
    %746 = tpu.matmul %745, %744, %cst_153 {dimension_numbers = #tpu.dot_dimension_numbers<[1], [0], [0], [1], [0, 0, 1, 1], [], []>} : vector<2x128xbf16>, vector<128x64xbf16>, vector<2x64xf32> -> vector<2x64xf32>
    %c0_154 = arith.constant 0 : index
    %c0_155 = arith.constant 0 : index
    %747 = vector.load %arg32[%c0_154, %c0_155] : memref<1x64xf32, #tpu.memory_space<vmem>>, vector<1x64xf32>
    %748 = vector.broadcast %747 : vector<1x64xf32> to vector<2x64xf32>
    %749 = arith.addf %746, %748 : vector<2x64xf32>
    %cst_156 = arith.constant 0.000000e+00 : f32
    %750 = vector.broadcast %cst_156 : f32 to vector<2x64xf32>
    %751 = arith.maximumf %749, %750 : vector<2x64xf32>
    %c0_157 = arith.constant 0 : index
    %c0_158 = arith.constant 0 : index
    %752 = vector.load %arg33[%c0_157, %c0_158] : memref<64x64xbf16, #tpu.memory_space<vmem>>, vector<64x64xbf16>
    %753 = arith.truncf %751 : vector<2x64xf32> to vector<2x64xbf16>
    %cst_159 = arith.constant dense<0.000000e+00> : vector<2x64xf32>
    %754 = tpu.matmul %753, %752, %cst_159 {dimension_numbers = #tpu.dot_dimension_numbers<[1], [0], [0], [1], [0, 0, 1, 1], [], []>} : vector<2x64xbf16>, vector<64x64xbf16>, vector<2x64xf32> -> vector<2x64xf32>
    %c0_160 = arith.constant 0 : index
    %c0_161 = arith.constant 0 : index
    %755 = vector.load %arg34[%c0_160, %c0_161] : memref<1x64xf32, #tpu.memory_space<vmem>>, vector<1x64xf32>
    %756 = vector.broadcast %755 : vector<1x64xf32> to vector<2x64xf32>
    %757 = arith.addf %754, %756 : vector<2x64xf32>
    %758 = vector.extract_strided_slice %722 {offsets = [0, 0], sizes = [2, 32], strides = [1, 1]} : vector<2x64xf32> to vector<2x32xf32>
    %759 = vector.extract_strided_slice %722 {offsets = [0, 32], sizes = [2, 32], strides = [1, 1]} : vector<2x64xf32> to vector<2x32xf32>
    %760 = vector.extract_strided_slice %757 {offsets = [0, 0], sizes = [2, 32], strides = [1, 1]} : vector<2x64xf32> to vector<2x32xf32>
    %761 = vector.extract_strided_slice %757 {offsets = [0, 32], sizes = [2, 32], strides = [1, 1]} : vector<2x64xf32> to vector<2x32xf32>
    %762 = math.exp %761 : vector<2x32xf32>
    %763 = math.exp %759 : vector<2x32xf32>
    %764 = arith.divf %762, %763 : vector<2x32xf32>
    %765 = arith.subf %758, %760 : vector<2x32xf32>
    %766 = arith.mulf %765, %765 : vector<2x32xf32>
    %767 = math.exp %759 : vector<2x32xf32>
    %768 = arith.divf %766, %767 : vector<2x32xf32>
    %769 = arith.addf %764, %768 : vector<2x32xf32>
    %cst_162 = arith.constant 1.000000e+00 : f32
    %770 = vector.broadcast %cst_162 : f32 to vector<2x32xf32>
    %771 = arith.subf %769, %770 : vector<2x32xf32>
    %772 = arith.subf %759, %761 : vector<2x32xf32>
    %773 = arith.addf %771, %772 : vector<2x32xf32>
    %cst_163 = arith.constant 5.000000e-01 : f32
    %774 = vector.broadcast %cst_163 : f32 to vector<2x32xf32>
    %775 = arith.mulf %774, %773 : vector<2x32xf32>
    %cst_164 = arith.constant dense<0.000000e+00> : vector<2xf32>
    %776 = vector.multi_reduction <add>, %775, %cst_164 [1] : vector<2x32xf32> to vector<2xf32>
    %777 = vector.shape_cast %776 : vector<2xf32> to vector<2x1xf32>
    %cst_165 = arith.constant dense<0.000000e+00> : vector<1xf32>
    %778 = vector.multi_reduction <add>, %777, %cst_165 [0] : vector<2x1xf32> to vector<1xf32>
    %779 = vector.shape_cast %778 : vector<1xf32> to vector<1x1xf32>
    %cst_166 = arith.constant 5.000000e-01 : f32
    %780 = vector.broadcast %cst_166 : f32 to vector<1x1xf32>
    %781 = arith.mulf %779, %780 : vector<1x1xf32>
    %cst_167 = arith.constant 1.000000e-03 : f32
    %782 = vector.broadcast %cst_167 : f32 to vector<1x1xf32>
    %783 = arith.maximumf %781, %782 : vector<1x1xf32>
    %c0_168 = arith.constant 0 : index
    %c0_169 = arith.constant 0 : index
    %784 = vector.load %arg42[%c0_168, %c0_169] : memref<1x1xf32, #tpu.memory_space<vmem>>, vector<1x1xf32>
    tpu.vector_store %arg42[%c0_168, %c0_169], %783 {strides = array<i32>} : memref<1x1xf32, #tpu.memory_space<vmem>>, vector<1x1xf32>,
    %c0_170 = arith.constant 0 : index
    %c0_171 = arith.constant 0 : index
    %785 = vector.load %arg5[%c0_170, %c0_171] : memref<16x32xf32, #tpu.memory_space<vmem>>, vector<16x32xf32>
    %c0_172 = arith.constant 0 : index
    %c0_173 = arith.constant 0 : index
    %786 = vector.load %arg6[%c0_172, %c0_173] : memref<16x2xf32, #tpu.memory_space<vmem>>, vector<16x2xf32>
    %c0_174 = arith.constant 0 : index
    %c0_175 = arith.constant 0 : index
    %787 = vector.load %arg36[%c0_174, %c0_175] : memref<1x128xf32, #tpu.memory_space<vmem>>, vector<1x128xf32>
    %c0_176 = arith.constant 0 : index
    %c0_177 = arith.constant 0 : index
    %788 = vector.load %arg37[%c0_176, %c0_177] : memref<128x64xbf16, #tpu.memory_space<vmem>>, vector<128x64xbf16>
    %c0_178 = arith.constant 0 : index
    %c0_179 = arith.constant 0 : index
    %789 = vector.load %arg38[%c0_178, %c0_179] : memref<1x64xf32, #tpu.memory_space<vmem>>, vector<1x64xf32>
    %c0_180 = arith.constant 0 : index
    %c0_181 = arith.constant 0 : index
    %790 = vector.load %arg39[%c0_180, %c0_181] : memref<64x2xbf16, #tpu.memory_space<vmem>>, vector<64x2xbf16>
    %c0_182 = arith.constant 0 : index
    %c0_183 = arith.constant 0 : index
    %791 = vector.load %arg40[%c0_182, %c0_183] : memref<1x2xf32, #tpu.memory_space<vmem>>, vector<1x2xf32>
    %c0_184 = arith.constant 0 : index
    %c0_185 = arith.constant 0 : index
    %792 = vector.load %arg35[%c0_184, %c0_185] : memref<288x128xbf16, #tpu.memory_space<vmem>>, vector<256x128xbf16>
    %c256_186 = arith.constant 256 : index
    %c0_187 = arith.constant 0 : index
    %793 = vector.load %arg35[%c256_186, %c0_187] : memref<288x128xbf16, #tpu.memory_space<vmem>>, vector<32x128xbf16>
    %cst_188 = arith.constant 5.000000e-01 : f32
    %794 = vector.broadcast %cst_188 : f32 to vector<2x32xf32>
    %795 = arith.mulf %794, %761 : vector<2x32xf32>
    %796 = math.exp %795 : vector<2x32xf32>
    %797 = arith.truncf %700 : vector<2x256xf32> to vector<2x256xbf16>
    %cst_189 = arith.constant dense<0.000000e+00> : vector<2x128xf32>
    %798 = tpu.matmul %797, %792, %cst_189 {dimension_numbers = #tpu.dot_dimension_numbers<[1], [0], [0], [1], [0, 0, 1, 1], [], []>} : vector<2x256xbf16>, vector<256x128xbf16>, vector<2x128xf32> -> vector<2x128xf32>
    %799 = arith.truncf %760 : vector<2x32xf32> to vector<2x32xbf16>
    %cst_190 = arith.constant dense<0.000000e+00> : vector<2x128xf32>
    %800 = tpu.matmul %799, %793, %cst_190 {dimension_numbers = #tpu.dot_dimension_numbers<[1], [0], [0], [1], [0, 0, 1, 1], [], []>} : vector<2x32xbf16>, vector<32x128xbf16>, vector<2x128xf32> -> vector<2x128xf32>
    %801 = arith.addf %798, %800 : vector<2x128xf32>
    %802 = vector.broadcast %787 : vector<1x128xf32> to vector<2x128xf32>
    %803 = arith.addf %801, %802 : vector<2x128xf32>
    %804 = vector.extract_strided_slice %786 {offsets = [0, 0], sizes = [16, 1], strides = [1, 1]} : vector<16x2xf32> to vector<16x1xf32>
    %805 = vector.extract_strided_slice %803 {offsets = [0, 0], sizes = [1, 128], strides = [1, 1]} : vector<2x128xf32> to vector<1x128xf32>
    %806 = vector.broadcast %804 : vector<16x1xf32> to vector<16x128xf32>
    %807 = vector.broadcast %805 : vector<1x128xf32> to vector<16x128xf32>
    %808 = arith.mulf %806, %807 : vector<16x128xf32>
    %809 = vector.extract_strided_slice %786 {offsets = [0, 1], sizes = [16, 1], strides = [1, 1]} : vector<16x2xf32> to vector<16x1xf32>
    %810 = vector.extract_strided_slice %803 {offsets = [1, 0], sizes = [1, 128], strides = [1, 1]} : vector<2x128xf32> to vector<1x128xf32>
    %811 = vector.broadcast %809 : vector<16x1xf32> to vector<16x128xf32>
    %812 = vector.broadcast %810 : vector<1x128xf32> to vector<16x128xf32>
    %813 = arith.mulf %811, %812 : vector<16x128xf32>
    %814 = arith.addf %808, %813 : vector<16x128xf32>
    %815 = vector.extract_strided_slice %786 {offsets = [0, 0], sizes = [16, 1], strides = [1, 1]} : vector<16x2xf32> to vector<16x1xf32>
    %816 = vector.extract_strided_slice %796 {offsets = [0, 0], sizes = [1, 32], strides = [1, 1]} : vector<2x32xf32> to vector<1x32xf32>
    %817 = vector.broadcast %815 : vector<16x1xf32> to vector<16x32xf32>
    %818 = vector.broadcast %816 : vector<1x32xf32> to vector<16x32xf32>
    %819 = arith.mulf %817, %818 : vector<16x32xf32>
    %820 = vector.extract_strided_slice %786 {offsets = [0, 1], sizes = [16, 1], strides = [1, 1]} : vector<16x2xf32> to vector<16x1xf32>
    %821 = vector.extract_strided_slice %796 {offsets = [1, 0], sizes = [1, 32], strides = [1, 1]} : vector<2x32xf32> to vector<1x32xf32>
    %822 = vector.broadcast %820 : vector<16x1xf32> to vector<16x32xf32>
    %823 = vector.broadcast %821 : vector<1x32xf32> to vector<16x32xf32>
    %824 = arith.mulf %822, %823 : vector<16x32xf32>
    %825 = arith.addf %819, %824 : vector<16x32xf32>
    %826 = arith.mulf %785, %825 : vector<16x32xf32>
    %827 = arith.truncf %826 : vector<16x32xf32> to vector<16x32xbf16>
    %cst_191 = arith.constant dense<0.000000e+00> : vector<16x128xf32>
    %828 = tpu.matmul %827, %793, %cst_191 {dimension_numbers = #tpu.dot_dimension_numbers<[1], [0], [0], [1], [0, 0, 1, 1], [], []>} : vector<16x32xbf16>, vector<32x128xbf16>, vector<16x128xf32> -> vector<16x128xf32>
    %829 = arith.addf %814, %828 : vector<16x128xf32>
    %cst_192 = arith.constant 0.000000e+00 : f32
    %830 = vector.broadcast %cst_192 : f32 to vector<16x128xf32>
    %831 = arith.maximumf %829, %830 : vector<16x128xf32>
    %832 = arith.truncf %831 : vector<16x128xf32> to vector<16x128xbf16>
    %cst_193 = arith.constant dense<0.000000e+00> : vector<16x64xf32>
    %833 = tpu.matmul %832, %788, %cst_193 {dimension_numbers = #tpu.dot_dimension_numbers<[1], [0], [0], [1], [0, 0, 1, 1], [], []>} : vector<16x128xbf16>, vector<128x64xbf16>, vector<16x64xf32> -> vector<16x64xf32>
    %834 = vector.broadcast %789 : vector<1x64xf32> to vector<16x64xf32>
    %835 = arith.addf %833, %834 : vector<16x64xf32>
    %cst_194 = arith.constant 0.000000e+00 : f32
    %836 = vector.broadcast %cst_194 : f32 to vector<16x64xf32>
    %837 = arith.maximumf %835, %836 : vector<16x64xf32>
    %838 = arith.truncf %837 : vector<16x64xf32> to vector<16x64xbf16>
    %cst_195 = arith.constant dense<0.000000e+00> : vector<16x2xf32>
    %839 = tpu.matmul %838, %790, %cst_195 {dimension_numbers = #tpu.dot_dimension_numbers<[1], [0], [0], [1], [0, 0, 1, 1], [], []>} : vector<16x64xbf16>, vector<64x2xbf16>, vector<16x2xf32> -> vector<16x2xf32>
    %840 = vector.broadcast %791 : vector<1x2xf32> to vector<16x2xf32>
    %841 = arith.addf %839, %840 : vector<16x2xf32>
    %c0_196 = arith.constant 0 : index
    %c0_197 = arith.constant 0 : index
    %842 = vector.load %arg41[%c0_196, %c0_197] : memref<16x2xf32, #tpu.memory_space<vmem>>, vector<16x2xf32>
    tpu.vector_store %arg41[%c0_196, %c0_197], %841 {strides = array<i32>} : memref<16x2xf32, #tpu.memory_space<vmem>>, vector<16x2xf32>,
    return
  }
}

</mosaic_0001>

<bundles_post_ra>
// kernel: goal_estimator_forward.3
= control target key start
LH: loop header
LB: loop body
LE: loop exit
PB: predicated region body
PF: predicated region fallthrough
CT: control target
= control target key end

     0   :  { %s7900_s6 = smov 1   ;;  %s7901_s10 = smov 2   ;;  %s10189_s0 = inlined_call_operand.smem [shape: u32[43], index: -1, kind: input, shape index: {}] }
   0x1   :  { %s7963_s5 = sld [smem:[%s10189_s0]]   ;;  %s7902_s14 = smov 3  }
   0x2   :  { %s7968_s9 = sld [smem:[%s10189_s0 + %s7900_s6]]   ;;  %s7903_s18 = smov 4  }
   0x3   :  { %s7973_s13 = sld [smem:[%s10189_s0 + %s7901_s10]]   ;;  %s7904_s22 = smov 5  }
   0x4   :  { %s7978_s17 = sld [smem:[%s10189_s0 + %s7902_s14]]   ;;  %s7905_s26 = smov 6  }
   0x5   :  { %s7983_s21 = sld [smem:[%s10189_s0 + %s7903_s18]]   ;;  %s7906_s30 = smov 7  }
   0x6   :  { %s7988_s25 = sld [smem:[%s10189_s0 + %s7904_s22]]   ;;  %s7907_s4 = smov 8  }
   0x7   :  { %s7993_s29 = sld [smem:[%s10189_s0 + %s7905_s26]]   ;;  %s7908_s10 = smov 9  }
   0x8   :  { %s7998_s3 = sld [smem:[%s10189_s0 + %s7906_s30]]   ;;  %s7909_s15 = smov 10  }
   0x9   :  { %s8003_s8 = sld [smem:[%s10189_s0 + %s7907_s4]]   ;;  %s7910_s20 = smov 11  }
   0xa   :  { %10499 = sst [smem:[#allocation15_spill]] %s7978_s17  ;;  %s7911_s26 = smov 12  }
   0xb   :  { %10500 = sst [smem:[#allocation16_spill]] %s7983_s21  ;;  %s7912_s1 = smov 13  }
   0xc   :  { %10501 = sst [smem:[#allocation17_spill]] %s7988_s25  ;;  %s7913_s7 = smov 14  }
   0xd   :  { %10502 = sst [smem:[#allocation18_spill]] %s7993_s29  ;;  %s7915_s22 = smov 16  }
   0xe   :  { %s8008_s14 = sld [smem:[%s10189_s0 + %s7908_s10]]   ;;  %s7916_s28 = smov 17  }
   0xf   :  { %s8013_s19 = sld [smem:[%s10189_s0 + %s7909_s15]]   ;;  %s7914_s15 = smov 15  }
  0x10   :  { %s8018_s24 = sld [smem:[%s10189_s0 + %s7910_s20]]  }
  0x11   :  { %s8023_s30 = sld [smem:[%s10189_s0 + %s7911_s26]]  }
  0x12   :  { %s8028_s6 = sld [smem:[%s10189_s0 + %s7912_s1]]  }
  0x13   :  { %s8033_s12 = sld [smem:[%s10189_s0 + %s7913_s7]]   ;;  %s7917_s7 = smov 18  }
  0x14   :  { %s8038_s20 = sld [smem:[%s10189_s0 + %s7914_s15]]   ;;  %s7918_s15 = smov 19  }
  0x15   :  { %s8043_s27 = sld [smem:[%s10189_s0 + %s7915_s22]]   ;;  %s7919_s22 = smov 20  }
  0x16   :  { %s8048_s4 = sld [smem:[%s10189_s0 + %s7916_s28]]   ;;  %s7920_s28 = smov 21  }
  0x17   :  { %10503 = sst [smem:[#allocation19_spill]] %s8023_s30 }
  0x18   :  { %s8053_s25 = sld [smem:[%s10189_s0 + %s7917_s7]]   ;;  %s7921_s7 = smov 22  }
  0x19   :  { %s8058_s17 = sld [smem:[%s10189_s0 + %s7918_s15]]   ;;  %s7922_s15 = smov 23  }
  0x1a   :  { %10504 = sst [smem:[#allocation20_spill]] %s8038_s20 }
  0x1b   :  { %10505 = sst [smem:[#allocation21_spill]] %s8043_s27 }
  0x1c   :  { %s8063_s21 = sld [smem:[%s10189_s0 + %s7919_s22]]   ;;  %s7923_s22 = smov 24  }
  0x1d   :  { %s8068_s29 = sld [smem:[%s10189_s0 + %s7920_s28]]   ;;  %s7924_s28 = smov 25  }
  0x1e   :  { %10506 = sst [smem:[#allocation22_spill]] %s8053_s25 }
  0x1f   :  { %10507 = sst [smem:[#allocation23_spill]] %s8058_s17 }
  0x20   :  { %s8073_s27 = sld [smem:[%s10189_s0 + %s7921_s7]]   ;;  %s7925_s7 = smov 26  }
  0x21   :  { %s8078_s20 = sld [smem:[%s10189_s0 + %s7922_s15]]   ;;  %s7926_s15 = smov 27  }
  0x22   :  { %10508 = sst [smem:[#allocation24_spill]] %s8063_s21 }
  0x23   :  { %s8083_s21 = sld [smem:[%s10189_s0 + %s7923_s22]]   ;;  %s7927_s22 = smov 28  }
  0x24   :  { %s8088_s17 = sld [smem:[%s10189_s0 + %s7924_s28]]   ;;  %s7928_s28 = smov 29  }
  0x25   :  { %s8098_s25 = sld [smem:[%s10189_s0 + %s7926_s15]]   ;;  %s7930_s15 = smov 31  }
  0x26   :  { %10509 = sst [smem:[#allocation25_spill]] %s8073_s27 }
  0x27   :  { %s8093_s27 = sld [smem:[%s10189_s0 + %s7925_s7]]   ;;  %s7929_s7 = smov 30  }
  0x29   :  { %10510 = sst [smem:[#allocation26_spill]] %s8083_s21 }
  0x2a   :  { %10511 = sst [smem:[#allocation27_spill]] %s8088_s17 }
  0x2b   :  { %10513 = sst [smem:[#allocation29_spill]] %s8098_s25 }
  0x2c   :  { %s8103_s21 = sld [smem:[%s10189_s0 + %s7927_s22]]   ;;  %s7931_s22 = smov 32  }
  0x2d   :  { %10512 = sst [smem:[#allocation28_spill]] %s8093_s27 }
  0x2e   :  { %s8108_s17 = sld [smem:[%s10189_s0 + %s7928_s28]]   ;;  %s7932_s28 = smov 33  }
  0x2f   :  { %s8113_s27 = sld [smem:[%s10189_s0 + %s7929_s7]]   ;;  %s7933_s7 = smov 34  }
  0x30   :  { %s8118_s25 = sld [smem:[%s10189_s0 + %s7930_s15]]   ;;  %s7934_s15 = smov 35  }
  0x32   :  { %10514 = sst [smem:[#allocation30_spill]] %s8103_s21 }
  0x33   :  { %s8123_s21 = sld [smem:[%s10189_s0 + %s7931_s22]]   ;;  %s7935_s22 = smov 36  }
  0x34   :  { %10515 = sst [smem:[#allocation31_spill]] %s8108_s17 }
  0x35   :  { %10516 = sst [smem:[#allocation32_spill]] %s8113_s27 }
  0x36   :  { %10517 = sst [smem:[#allocation33_spill]] %s8118_s25 }
  0x37   :  { %s8128_s17 = sld [smem:[%s10189_s0 + %s7932_s28]]   ;;  %s7936_s28 = smov 37  }
  0x38   :  { %s8133_s27 = sld [smem:[%s10189_s0 + %s7933_s7]]   ;;  %s7937_s7 = smov 38  }
  0x39   :  { %10518 = sst [smem:[#allocation34_spill]] %s8123_s21 }
  0x3a   :  { %s8138_s25 = sld [smem:[%s10189_s0 + %s7934_s15]]   ;;  %s7938_s15 = smov 39  }
  0x3b   :  { %s8143_s21 = sld [smem:[%s10189_s0 + %s7935_s22]]   ;;  %s7939_s22 = smov 40  }
  0x3c   :  { %s8158_s30 = sld [smem:[%s10189_s0 + %s7938_s15]]  }
  0x3d   :  { %10519 = sst [smem:[#allocation35_spill]] %s8128_s17 }
  0x3e   :  { %10520 = sst [smem:[#allocation36_spill]] %s8133_s27 }
  0x3f   :  { %s8148_s17 = sld [smem:[%s10189_s0 + %s7936_s28]]   ;;  %s7940_s28 = smov 41  }
  0x40   :  { %s8153_s27 = sld [smem:[%s10189_s0 + %s7937_s7]]   ;;  %s7941_s7 = smov 42  }
  0x41   :  { %10521 = sst [smem:[#allocation37_spill]] %s8143_s21 }
  0x42   :  { %s8163_s21 = sld [smem:[%s10189_s0 + %s7939_s22]]  }
  0x45   :  { %10522 = sst [smem:[#allocation38_spill]] %s8148_s17 }
  0x46   :  { %10523 = sst [smem:[#allocation39_spill]] %s8153_s27 }
  0x47   :  { %s8168_s17 = sld [smem:[%s10189_s0 + %s7940_s28]]  }
  0x48   :  { %s8173_s27 = sld [smem:[%s10189_s0 + %s7941_s7]]  }
  0x49   :  { %91 = vsyncpa [#allocation3], 0 }
  0x4a   :  { %92 = vsyncpa [#allocation6], 0 }
  0x4b   :  { %93 = vsyncpa [#allocation9], 0 }
  0x4c   :  { %94 = vsyncpa [#allocation4], 0  ;;  %s132_s15 = sshll.u32 %s8018_s24, 4  ;;  %s7942_s16 = smov [#allocation5]   ;;  %s133_s15 = int_to_ptr.hbm [resolvable:$true] %s132_s15 }
  0x4d   :  { %s134_s18 = sshll.u32 %s7942_s16, 4  ;;  %s117_s22 = sshll.u32 %s8008_s14, 4  ;;  %s135_s18 = int_to_ptr.vmem [resolvable:$true] %s134_s18  ;;  %s118_s22 = int_to_ptr.hbm [resolvable:$true] %s117_s22 }
  0x4e   :  { %s7772_s23 = sshra.s32 %s133_s15, 4  ;;  %s7776_s0 = scalar_lea.hbm %s8018_s24, 768  ;;  %s7773_s23 = int_to_ptr.hbm [resolvable:$true] %s7772_s23 }
  0x4f   :  { %s7774_s26 = scalar_lea.hbm %s7773_s23, 768  ;;  %p7777_p1 = scmp.lt.s32.totalorder %s7773_s23, %s8018_s24 }
  0x50   :  { %p7775_p0 = scmp.ne.s32.totalorder %s7773_s23, %s7774_s26  ;;  %p7778_p2 = scmp.lt.s32.totalorder %s7776_s0, %s7774_s26 }
  0x52   :  { %p7779_p3 = por %p7778_p2, %p7777_p1 }
  0x54   :  { %p7780_p4 = pnand %p7779_p3, %p7775_p0 }
  0x56   :  { %7783 = shalt.err (!%p7780_p4)
}
  0x57   :  { %s7943_s28 = smov 384   ;;  %s7944_s1 = smov 24  }
  0x58   :  { %140 = dma.hbm_to_vmem [thread:$0]  %s133_s15, 12288, %s135_s18, [#allocation6], %s7943_s28, %s7943_s28, %s7944_s1  }
  0x59   :  { %s7945_s2 = smov [#allocation2]   ;;  %s167_s10 = sshll.u32 %s8078_s20, 4  ;;  %s8180_s10 = int_to_ptr.hbm [resolvable:$true] %s167_s10 }
  0x5a   :  { %s119_s7 = sshll.u32 %s7945_s2, 4  ;;  %s7796_s11 = sshra.s32 %s118_s22, 4  ;;  %s120_s7 = int_to_ptr.vmem [resolvable:$true] %s119_s7  ;;  %s7797_s11 = int_to_ptr.hbm [resolvable:$true] %s7796_s11 }
  0x5b   :  { %s7798_s24 = scalar_lea.hbm %s7797_s11, 768  ;;  %s7800_s16 = scalar_lea.hbm %s8008_s14, 768 }
  0x5c   :  { %p7799_p5 = scmp.ne.s32.totalorder %s7797_s11, %s7798_s24  ;;  %p7801_p6 = scmp.lt.s32.totalorder %s7797_s11, %s8008_s14 }
  0x5d   :  { %p7802_p7 = scmp.lt.s32.totalorder %s7800_s16, %s7798_s24 }
  0x5f   :  { %p7803_p8 = por %p7802_p7, %p7801_p6 }
  0x61   :  { %p7804_p9 = pnand %p7803_p8, %p7799_p5 }
  0x63   :  { %7807 = shalt.err (!%p7804_p9)
}
  0x64   :  { %125 = dma.hbm_to_vmem [thread:$0]  %s118_s22, 12288, %s120_s7, [#allocation3], %s7943_s28, %s7943_s28, %s7944_s1  }
  0x65   :  { %s7946_s15 = smov [#allocation7]   ;;  %s202_s23 = sshll.u32 %s8138_s25, 4  ;;  %s203_s23 = int_to_ptr.hbm [resolvable:$true] %s202_s23 }
  0x66   :  { %s169_s18 = sshll.u32 %s7946_s15, 4  ;;  %s7820_s26 = sshra.s32 %s8180_s10, 4  ;;  %s170_s18 = int_to_ptr.vmem [resolvable:$true] %s169_s18  ;;  %s7821_s26 = int_to_ptr.hbm [resolvable:$true] %s7820_s26 }
  0x67   :  { %s7822_s0 = scalar_lea.hbm %s7821_s26, 128  ;;  %s7824_s2 = scalar_lea.hbm %s8078_s20, 128 }
  0x68   :  { %p7823_p10 = scmp.ne.s32.totalorder %s7821_s26, %s7822_s0  ;;  %p7825_p11 = scmp.lt.s32.totalorder %s7821_s26, %s8078_s20 }
  0x69   :  { %p7826_p12 = scmp.lt.s32.totalorder %s7824_s2, %s7822_s0 }
  0x6b   :  { %p7827_p13 = por %p7826_p12, %p7825_p11 }
  0x6d   :  { %p7828_p0 = pnand %p7827_p13, %p7823_p10 }
  0x6f   :  { %7831 = shalt.err (!%p7828_p0)
}
  0x70   :  { %s7947_s14 = smov 64   ;;  %s7948_s22 = smov 4  }
  0x71   :  { %175 = dma.hbm_to_vmem [thread:$0]  %s8180_s10, 2048, %s170_s18, [#allocation6], %s7947_s14, %s7947_s14, %s7948_s22  }
  0x72   :  { %s7949_s28 = smov [#allocation8]   ;;  %s7844_s7 = sshra.s32 %s203_s23, 4  ;;  %s7845_s7 = int_to_ptr.hbm [resolvable:$true] %s7844_s7 }
  0x73   :  { %s204_s1 = sshll.u32 %s7949_s28, 4  ;;  %s7846_s11 = scalar_lea.hbm %s7845_s7, 144  ;;  %s205_s1 = int_to_ptr.vmem [resolvable:$true] %s204_s1 }
  0x74   :  { %p7847_p1 = scmp.ne.s32.totalorder %s7845_s7, %s7846_s11  ;;  %s7848_s20 = scalar_lea.hbm %s8138_s25, 144 }
  0x75   :  { %p7849_p2 = scmp.lt.s32.totalorder %s7845_s7, %s8138_s25  ;;  %p7850_p3 = scmp.lt.s32.totalorder %s7848_s20, %s7846_s11 }
  0x77   :  { %p7851_p4 = por %p7850_p3, %p7849_p2 }
  0x79   :  { %p7852_p5 = pnand %p7851_p4, %p7847_p1 }
  0x7b   :  { %7855 = shalt.err (!%p7852_p5)
}
  0x7c   :  { %210 = dma.hbm_to_vmem [thread:$0]  %s203_s23, 2304, %s205_s1, [#allocation9], %s7947_s14, %s7947_s14, %s7948_s22  }
  0x7d   :  { %7892 = dma.done.wait [#allocation3], 12288  }
  0x7e   :  { %7893 = vsyncadd [#allocation3], 4294955008 }
  0x7f   :  { %7894 = dma.done.wait [#allocation6], 14336  }
  0x80   :  { %7895 = vsyncadd [#allocation6], 4294952960 }
  0x81   :  { %7896 = dma.done.wait [#allocation9], 2304  }
  0x82   :  { %7897 = vsyncadd [#allocation9], 4294964992  ;;  %v10202_v0 = vmov 1   ;;  %v10203_v1 = vmov 0   ;;  %v238_v2 = vld [vmem:[%s7963_s5] sm:$0xff]  ;;  %v239_v14 = vld [vmem:[%s7963_s5 + $0x8] sm:$0xff] }
  0x83   :  { %7493 = vset.pattern.permute.xlu1 %v10202_v0  ;;  %7492 = vset.pattern.permute.xlu0 %v10203_v1  ;;  %v1215_v3 = vld [vmem:[%s7973_s13] sm:$0x3]  ;;  %v6114_v4 = vld [vmem:[#allocation2 + $0x150] sm:$0xf]  ;;  %v7196_v5 = vld [vmem:[#allocation2 + $0x164] sm:$0xf0] }
  0x84   :  { %7494 = vset.pattern.permute.xlu2 %v10203_v1  ;;  %264 = vperm.xlu1 %7493, %v238_v2   ;;  %v6115_v6 = vor.u32 %v7196_v5, %v6114_v4  ;;  %v6306_v7 = vld [vmem:[#allocation2 + $0x2d0] sm:$0xf]  ;;  %v7244_v8 = vld [vmem:[#allocation2 + $0x2e4] sm:$0xf0]  ;;  %v7193_v9 = vld [vmem:[#allocation2 + $0x154] sm:$0xf] }
  0x85   :  { %244 = vperm.xlu0 %7492, %v238_v2   ;;  %1220 = vperm.xlu2 %7494, %v1215_v3   ;;  %v6307_v10 = vor.u32 %v7244_v8, %v6306_v7  ;;  %v6116_v11 = vld [vmem:[#allocation2 + $0x168] sm:$0xf0]  ;;  %v7241_v12 = vld [vmem:[#allocation2 + $0x2d4] sm:$0xf]  ;;  %v6090_v17 = vld [vmem:[#allocation2 + $0x120] sm:$0xf] }
  0x86   :  { %v6308_v13 = vld [vmem:[#allocation2 + $0x2e8] sm:$0xf0]  ;;  %890 = vmatpush.bf16.msra.mxu0 %v6115_v6  ;;  %v6119_v15 = vor.u32 %v7193_v9, %v6116_v11  ;;  %v7190_v18 = vld [vmem:[#allocation2 + $0x134] sm:$0xf0]  ;;  %v6282_v19 = vld [vmem:[#allocation2 + $0x2a0] sm:$0xf] }
  0x87   :  { %v6311_v16 = vor.u32 %v7241_v12, %v6308_v13  ;;  %904 = vmatpush.bf16.msra.mxu1 %v6307_v10  ;;  %v6091_v20 = vor.u32 %v7190_v18, %v6090_v17  ;;  %v7238_v21 = vld [vmem:[#allocation2 + $0x2b4] sm:$0xf0]  ;;  %v7187_v22 = vld [vmem:[#allocation2 + $0x124] sm:$0xf]  ;;  %v6092_v23 = vld [vmem:[#allocation2 + $0x138] sm:$0xf0] }
  0x88   :  { %918 = vmatpush.bf16.msra.mxu2 %v6119_v15  ;;  %v6283_v24 = vor.u32 %v7238_v21, %v6282_v19  ;;  %v7235_v25 = vld [vmem:[#allocation2 + $0x2a4] sm:$0xf]  ;;  %v6284_v26 = vld [vmem:[#allocation2 + $0x2b8] sm:$0xf0]  ;;  %v6066_v27 = vld [vmem:[#allocation2 + $0xf0] sm:$0xf]  ;;  %v6095_v28 = vor.u32 %v7187_v22, %v6092_v23 }
  0x89   :  { %932 = vmatpush.bf16.msra.mxu3 %v6311_v16  ;;  %v7184_v29 = vld [vmem:[#allocation2 + $0x104] sm:$0xf0]  ;;  %v6258_v30 = vld [vmem:[#allocation2 + $0x270] sm:$0xf]  ;;  %v6287_v32 = vor.u32 %v7235_v25, %v6284_v26  ;;  %v7181_v34 = vld [vmem:[#allocation2 + $0xf4] sm:$0xf] }
  0x8a   :  { %v7232_v31 = vld [vmem:[#allocation2 + $0x284] sm:$0xf0]  ;;  %891 = vmatpush.bf16.msra.mxu0 %v6091_v20  ;;  %v6067_v33 = vor.u32 %v7184_v29, %v6066_v27  ;;  %v6068_v35 = vld [vmem:[#allocation2 + $0x108] sm:$0xf0]  ;;  %v7229_v36 = vld [vmem:[#allocation2 + $0x274] sm:$0xf] }
  0x8b   :  { %v6260_v37 = vld [vmem:[#allocation2 + $0x288] sm:$0xf0]  ;;  %v6042_v38 = vld [vmem:[#allocation2 + $0xc0] sm:$0xf]  ;;  %v7178_v39 = vld [vmem:[#allocation2 + $0xd4] sm:$0xf0]  ;;  %905 = vmatpush.bf16.msra.mxu1 %v6283_v24  ;;  %v6259_v40 = vor.u32 %v7232_v31, %v6258_v30  ;;  %v6071_v41 = vor.u32 %v7181_v34, %v6068_v35 }
  0x8c   :  { %268 = vperm.xlu1 %7493, %v239_v14   ;;  %919 = vmatpush.bf16.msra.mxu2 %v6095_v28  ;;  %v6234_v42 = vld [vmem:[#allocation2 + $0x240] sm:$0xf]  ;;  %v7226_v43 = vld [vmem:[#allocation2 + $0x254] sm:$0xf0]  ;;  %v6263_v44 = vor.u32 %v7229_v36, %v6260_v37  ;;  %v6043_v45 = vor.u32 %v7178_v39, %v6042_v38  ;;  %v7175_v46 = vld [vmem:[#allocation2 + $0xc4] sm:$0xf] }
  0x8d   :  { %249 = vperm.xlu0 %7492, %v239_v14   ;;  %7495 = vset.pattern.permute.xlu2 %v10202_v0  ;;  %v6044_v47 = vld [vmem:[#allocation2 + $0xd8] sm:$0xf0]  ;;  %v7223_v48 = vld [vmem:[#allocation2 + $0x244] sm:$0xf]  ;;  %v6018_v50 = vld [vmem:[#allocation2 + $0x90] sm:$0xf]  ;;  %v6235_v53 = vor.u32 %v7226_v43, %v6234_v42 }
  0x8e   :  { %1226 = vperm.xlu2 %7495, %v1215_v3   ;;  %933 = vmatpush.bf16.msra.mxu3 %v6287_v32  ;;  %v6236_v49 = vld [vmem:[#allocation2 + $0x258] sm:$0xf0]  ;;  %v7172_v51 = vld [vmem:[#allocation2 + $0xa4] sm:$0xf0]  ;;  %v6047_v54 = vor.u32 %v7175_v46, %v6044_v47  ;;  %v6210_v55 = vld [vmem:[#allocation2 + $0x210] sm:$0xf] }
  0x8f   :  { %892 = vmatpush.bf16.msra.mxu0 %v6067_v33  ;;  %v1058_v52 = vld [vmem:[%s7968_s9] sm:$0xff]  ;;  %906 = vmatpush.bf16.msra.mxu1 %v6259_v40  ;;  %v7220_v56 = vld [vmem:[#allocation2 + $0x224] sm:$0xf0]  ;;  %v6239_v57 = vor.u32 %v7223_v48, %v6236_v49  ;;  %v6019_v58 = vor.u32 %v7172_v51, %v6018_v50  ;;  %v7169_v59 = vld [vmem:[#allocation2 + $0x94] sm:$0xf]  ;;  %vm1995_vm0 = vcmask 261120  }
  0x90   :  { %920 = vmatpush.bf16.msra.mxu2 %v6071_v41  ;;  %v6020_v60 = vld [vmem:[#allocation2 + $0xa8] sm:$0xf0]  ;;  %v7217_v61 = vld [vmem:[#allocation2 + $0x214] sm:$0xf]  ;;  %v5994_v63 = vld [vmem:[#allocation2 + $0x60] sm:$0xf]  ;;  %v6211_v3 = vor.u32 %v7220_v56, %v6210_v55 }
  0x91   :  { %v6212_v62 = vld [vmem:[#allocation2 + $0x228] sm:$0xf0]  ;;  %v7166_v2 = vld [vmem:[#allocation2 + $0x74] sm:$0xf0]  ;;  %v6023_v4 = vor.u32 %v7169_v59, %v6020_v60  ;;  %v6186_v5 = vld [vmem:[#allocation2 + $0x1e0] sm:$0xf] }
  0x92   :  { %934 = vmatpush.bf16.msra.mxu3 %v6263_v44  ;;  %v7214_v6 = vld [vmem:[#allocation2 + $0x1f4] sm:$0xf0]  ;;  %v6215_v7 = vor.u32 %v7217_v61, %v6212_v62  ;;  %v5995_v8 = vor.u32 %v7166_v2, %v5994_v63  ;;  %v7163_v9 = vld [vmem:[#allocation2 + $0x64] sm:$0xf]  ;;  %v5996_v10 = vld [vmem:[#allocation2 + $0x78] sm:$0xf0] }
  0x93   :  { %893 = vmatpush.bf16.msra.mxu0 %v6043_v45  ;;  %907 = vmatpush.bf16.msra.mxu1 %v6235_v53  ;;  %v7211_v11 = vld [vmem:[#allocation2 + $0x1e4] sm:$0xf]  ;;  %v6188_v12 = vld [vmem:[#allocation2 + $0x1f8] sm:$0xf0]  ;;  %v5970_v13 = vld [vmem:[#allocation2 + $0x30] sm:$0xf]  ;;  %v6187_v15 = vor.u32 %v7214_v6, %v6186_v5  ;;  %v5999_v17 = vor.u32 %v7163_v9, %v5996_v10 }
  0x94   :  { %7496 = vset.pattern.permute.xlu1 %v10203_v1  ;;  %921 = vmatpush.bf16.msra.mxu2 %v6047_v54  ;;  %v7160_v14 = vld [vmem:[#allocation2 + $0x44] sm:$0xf0]  ;;  %v6162_v16 = vld [vmem:[#allocation2 + $0x1b0] sm:$0xf]  ;;  %v7157_v19 = vld [vmem:[#allocation2 + $0x34] sm:$0xf]  ;;  %v6191_v21 = vor.u32 %v7211_v11, %v6188_v12 }
  0x95   :  { %1064 = vperm.xlu0 %7492, %v1058_v52   ;;  %v7208_v18 = vld [vmem:[#allocation2 + $0x1c4] sm:$0xf0]  ;;  %v5972_v20 = vld [vmem:[#allocation2 + $0x48] sm:$0xf0]  ;;  %v5971_v22 = vor.u32 %v7160_v14, %v5970_v13  ;;  %v7205_v23 = vld [vmem:[#allocation2 + $0x1b4] sm:$0xf] }
  0x96   :  { %1076 = vperm.xlu2 %7495, %v1058_v52   ;;  %935 = vmatpush.bf16.msra.mxu3 %v6239_v57  ;;  %v6164_v24 = vld [vmem:[#allocation2 + $0x1c8] sm:$0xf0]  ;;  %v5946_v25 = vld [vmem:[#allocation2] sm:$0xf]  ;;  %v7154_v26 = vld [vmem:[#allocation2 + $0x14] sm:$0xf0]  ;;  %v6163_v29 = vor.u32 %v7208_v18, %v6162_v16  ;;  %v5975_v34 = vor.u32 %v7157_v19, %v5972_v20 }
  0x97   :  { %894 = vmatpush.bf16.msra.mxu0 %v6019_v58  ;;  %908 = vmatpush.bf16.msra.mxu1 %v6211_v3  ;;  %v6138_v27 = vld [vmem:[#allocation2 + $0x180] sm:$0xf]  ;;  %v7202_v28 = vld [vmem:[#allocation2 + $0x194] sm:$0xf0]  ;;  %v7151_v30 = vld [vmem:[#allocation2 + $0x4] sm:$0xf]  ;;  %v6167_v38 = vor.u32 %v7205_v23, %v6164_v24  ;;  %v5947_v39 = vor.u32 %v7154_v26, %v5946_v25 }
  0x98   :  { %922 = vmatpush.bf16.msra.mxu2 %v6023_v4  ;;  %v5948_v31 = vld [vmem:[#allocation2 + $0x18] sm:$0xf0]  ;;  %v6122_v32 = vld [vmem:[#allocation2 + $0x158] sm:$0xf]  ;;  %v7197_v33 = vld [vmem:[#allocation2 + $0x16c] sm:$0xf0]  ;;  %v6139_v47 = vor.u32 %v7202_v28, %v6138_v27 }
  0x99   :  { %v7199_v35 = vld [vmem:[#allocation2 + $0x184] sm:$0xf]  ;;  %v6140_v36 = vld [vmem:[#allocation2 + $0x198] sm:$0xf0]  ;;  %v6314_v37 = vld [vmem:[#allocation2 + $0x2d8] sm:$0xf]  ;;  %v6123_v43 = vor.u32 %v7197_v33, %v6122_v32  ;;  %v5951_v51 = vor.u32 %v7151_v30, %v5948_v31 }
  0x9a   :  { %936 = vmatpush.bf16.msra.mxu3 %v6215_v7  ;;  %v7245_v40 = vld [vmem:[#allocation2 + $0x2ec] sm:$0xf0]  ;;  %v7194_v41 = vld [vmem:[#allocation2 + $0x15c] sm:$0xf]  ;;  %v6124_v42 = vld [vmem:[#allocation2 + $0x170] sm:$0xf0]  ;;  %v6143_v55 = vor.u32 %v7199_v35, %v6140_v36 }
  0x9b   :  { %895 = vmatpush.bf16.msra.mxu0 %v5995_v8  ;;  %909 = vmatpush.bf16.msra.mxu1 %v6187_v15  ;;  %v7242_v44 = vld [vmem:[#allocation2 + $0x2dc] sm:$0xf]  ;;  %v6316_v45 = vld [vmem:[#allocation2 + $0x2f0] sm:$0xf0]  ;;  %v6098_v46 = vld [vmem:[#allocation2 + $0x128] sm:$0xf]  ;;  %v6315_v52 = vor.u32 %v7245_v40, %v6314_v37  ;;  %v6127_v56 = vor.u32 %v7194_v41, %v6124_v42 }
  0x9c   :  { %923 = vmatpush.bf16.msra.mxu2 %v5999_v17  ;;  %v7191_v48 = vld [vmem:[#allocation2 + $0x13c] sm:$0xf0]  ;;  %v6290_v49 = vld [vmem:[#allocation2 + $0x2a8] sm:$0xf]  ;;  %v7188_v53 = vld [vmem:[#allocation2 + $0x12c] sm:$0xf]  ;;  %v6319_v61 = vor.u32 %v7242_v44, %v6316_v45 }
  0x9d   :  { %7497 = vset.pattern.permute.xlu0 %v10202_v0  ;;  %v7239_v50 = vld [vmem:[#allocation2 + $0x2bc] sm:$0xf0]  ;;  %v6100_v54 = vld [vmem:[#allocation2 + $0x140] sm:$0xf0]  ;;  %v7236_v57 = vld [vmem:[#allocation2 + $0x2ac] sm:$0xf]  ;;  %v6099_v62 = vor.u32 %v7191_v48, %v6098_v46 }
  0x9e   :  { %7498 = vset.pattern.permute.xlu2 %v10203_v1  ;;  %937 = vmatpush.bf16.msra.mxu3 %v6191_v21  ;;  %v6292_v58 = vld [vmem:[#allocation2 + $0x2c0] sm:$0xf0]  ;;  %v6074_v59 = vld [vmem:[#allocation2 + $0xf8] sm:$0xf]  ;;  %v7185_v60 = vld [vmem:[#allocation2 + $0x10c] sm:$0xf0]  ;;  %v6291_v63 = vor.u32 %v7239_v50, %v6290_v49  ;;  %v6103_v2 = vor.u32 %v7188_v53, %v6100_v54 }
  0x9f   :  { %896 = vmatpush.bf16.msra.mxu0 %v5971_v22  ;;  %910 = vmatpush.bf16.msra.mxu1 %v6163_v29  ;;  %v6266_v3 = vld [vmem:[#allocation2 + $0x278] sm:$0xf]  ;;  %v7233_v4 = vld [vmem:[#allocation2 + $0x28c] sm:$0xf0]  ;;  %v6295_v5 = vor.u32 %v7236_v57, %v6292_v58  ;;  %v6075_v6 = vor.u32 %v7185_v60, %v6074_v59  ;;  %v7182_v7 = vld [vmem:[#allocation2 + $0xfc] sm:$0xf] }
  0xa0   :  { %924 = vmatpush.bf16.msra.mxu2 %v5975_v34  ;;  %v6076_v8 = vld [vmem:[#allocation2 + $0x110] sm:$0xf0]  ;;  %v7230_v9 = vld [vmem:[#allocation2 + $0x27c] sm:$0xf]  ;;  %v6267_v11 = vor.u32 %v7233_v4, %v6266_v3  ;;  %v6050_v14 = vld [vmem:[#allocation2 + $0xc8] sm:$0xf] }
  0xa1   :  { %v6268_v10 = vld [vmem:[#allocation2 + $0x290] sm:$0xf0]  ;;  %v6079_v12 = vor.u32 %v7182_v7, %v6076_v8  ;;  %v7179_v15 = vld [vmem:[#allocation2 + $0xdc] sm:$0xf0]  ;;  %v6242_v17 = vld [vmem:[#allocation2 + $0x248] sm:$0xf] }
  0xa2   :  { %938 = vmatpush.bf16.msra.mxu3 %v6167_v38  ;;  %v6271_v13 = vor.u32 %v7230_v9, %v6268_v10  ;;  %v6051_v16 = vor.u32 %v7179_v15, %v6050_v14  ;;  %v7227_v18 = vld [vmem:[#allocation2 + $0x25c] sm:$0xf0]  ;;  %v7176_v19 = vld [vmem:[#allocation2 + $0xcc] sm:$0xf]  ;;  %v6052_v21 = vld [vmem:[#allocation2 + $0xe0] sm:$0xf0] }
  0xa3   :  { %897 = vmatpush.bf16.msra.mxu0 %v5947_v39  ;;  %911 = vmatpush.bf16.msra.mxu1 %v6139_v47  ;;  %v6243_v20 = vor.u32 %v7227_v18, %v6242_v17  ;;  %v7224_v22 = vld [vmem:[#allocation2 + $0x24c] sm:$0xf]  ;;  %v6055_v23 = vor.u32 %v7176_v19, %v6052_v21  ;;  %v6244_v24 = vld [vmem:[#allocation2 + $0x260] sm:$0xf0]  ;;  %v6026_v26 = vld [vmem:[#allocation2 + $0x98] sm:$0xf] }
  0xa4   :  { %925 = vmatpush.bf16.msra.mxu2 %v5951_v51  ;;  %v6247_v25 = vor.u32 %v7224_v22, %v6244_v24  ;;  %v7173_v27 = vld [vmem:[#allocation2 + $0xac] sm:$0xf0]  ;;  %v6218_v28 = vld [vmem:[#allocation2 + $0x218] sm:$0xf]  ;;  %v7170_v31 = vld [vmem:[#allocation2 + $0x9c] sm:$0xf] }
  0xa5   :  { %v6027_v29 = vor.u32 %v7173_v27, %v6026_v26  ;;  %v7221_v30 = vld [vmem:[#allocation2 + $0x22c] sm:$0xf0]  ;;  %v6028_v32 = vld [vmem:[#allocation2 + $0xb0] sm:$0xf0]  ;;  %v7218_v35 = vld [vmem:[#allocation2 + $0x21c] sm:$0xf] }
  0xa6   :  { %939 = vmatpush.bf16.msra.mxu3 %v6143_v55  ;;  %v6219_v33 = vor.u32 %v7221_v30, %v6218_v28  ;;  %v6031_v34 = vor.u32 %v7170_v31, %v6028_v32  ;;  %v6220_v36 = vld [vmem:[#allocation2 + $0x230] sm:$0xf0]  ;;  %v6002_v38 = vld [vmem:[#allocation2 + $0x68] sm:$0xf]  ;;  %v7167_v39 = vld [vmem:[#allocation2 + $0x7c] sm:$0xf0] }
  0xa7   :  { %946 = vmatpush.bf16.msrb.mxu0 %v6123_v43  ;;  %960 = vmatpush.bf16.msrb.mxu1 %v6315_v52  ;;  %v6223_v37 = vor.u32 %v7218_v35, %v6220_v36  ;;  %v6194_v40 = vld [vmem:[#allocation2 + $0x1e8] sm:$0xf]  ;;  %v7215_v41 = vld [vmem:[#allocation2 + $0x1fc] sm:$0xf0]  ;;  %v6003_v42 = vor.u32 %v7167_v39, %v6002_v38  ;;  %v7164_v44 = vld [vmem:[#allocation2 + $0x6c] sm:$0xf] }
  0xa8   :  { %974 = vmatpush.bf16.msrb.mxu2 %v6127_v56  ;;  %v6195_v43 = vor.u32 %v7215_v41, %v6194_v40  ;;  %v6004_v45 = vld [vmem:[#allocation2 + $0x80] sm:$0xf0]  ;;  %v7212_v46 = vld [vmem:[#allocation2 + $0x1ec] sm:$0xf]  ;;  %v5978_v50 = vld [vmem:[#allocation2 + $0x38] sm:$0xf] }
  0xa9   :  { %v6007_v47 = vor.u32 %v7164_v44, %v6004_v45  ;;  %v6196_v48 = vld [vmem:[#allocation2 + $0x200] sm:$0xf0]  ;;  %v7161_v51 = vld [vmem:[#allocation2 + $0x4c] sm:$0xf0]  ;;  %v6170_v52 = vld [vmem:[#allocation2 + $0x1b8] sm:$0xf] }
  0xaa   :  { %988 = vmatpush.bf16.msrb.mxu3 %v6319_v61  ;;  %v6199_v49 = vor.u32 %v7212_v46, %v6196_v48  ;;  %v5979_v53 = vor.u32 %v7161_v51, %v5978_v50  ;;  %v7209_v54 = vld [vmem:[#allocation2 + $0x1cc] sm:$0xf0]  ;;  %v7158_v55 = vld [vmem:[#allocation2 + $0x3c] sm:$0xf]  ;;  %v5980_v56 = vld [vmem:[#allocation2 + $0x50] sm:$0xf0] }
  0xab   :  { %947 = vmatpush.bf16.msrb.mxu0 %v6099_v62  ;;  %961 = vmatpush.bf16.msrb.mxu1 %v6291_v63  ;;  %v6171_v57 = vor.u32 %v7209_v54, %v6170_v52  ;;  %v5983_v58 = vor.u32 %v7158_v55, %v5980_v56  ;;  %v7206_v59 = vld [vmem:[#allocation2 + $0x1bc] sm:$0xf]  ;;  %v6172_v60 = vld [vmem:[#allocation2 + $0x1d0] sm:$0xf0]  ;;  %v5954_v62 = vld [vmem:[#allocation2 + $0x8] sm:$0xf] }
  0xac   :  { %975 = vmatpush.bf16.msrb.mxu2 %v6103_v2  ;;  %v6175_v61 = vor.u32 %v7206_v59, %v6172_v60  ;;  %v7155_v63 = vld [vmem:[#allocation2 + $0x1c] sm:$0xf0]  ;;  %v6146_v2 = vld [vmem:[#allocation2 + $0x188] sm:$0xf]  ;;  %v5956_v7 = vld [vmem:[#allocation2 + $0x20] sm:$0xf0] }
  0xad   :  { %v7203_v3 = vld [vmem:[#allocation2 + $0x19c] sm:$0xf0]  ;;  %v5955_v4 = vor.u32 %v7155_v63, %v5954_v62  ;;  %v7200_v8 = vld [vmem:[#allocation2 + $0x18c] sm:$0xf]  ;;  %v6148_v9 = vld [vmem:[#allocation2 + $0x1a0] sm:$0xf0] }
  0xae   :  { %989 = vmatpush.bf16.msrb.mxu3 %v6295_v5  ;;  %v6147_v5 = vor.u32 %v7203_v3, %v6146_v2  ;;  %v241_v27 = vld [vmem:[%s8003_s8] sm:$0x3]  ;;  %v6322_v46 = vld [vmem:[#allocation2 + $0x2e0] sm:$0xf]  ;;  %v7195_v48 = vld [vmem:[#allocation2 + $0x164] sm:$0xf] }
  0xaf   :  { %948 = vmatpush.bf16.msrb.mxu0 %v6075_v6  ;;  %962 = vmatpush.bf16.msrb.mxu1 %v6267_v11  ;;  %v7152_v6 = vld [vmem:[#allocation2 + $0xc] sm:$0xf]  ;;  %v6151_v11 = vor.u32 %v7200_v8, %v6148_v9  ;;  %v286_v28 = vperm.slane %v241_v27, 0  ;;  %v7198_v45 = vld [vmem:[#allocation2 + $0x174] sm:$0xf0]  ;;  %s10649_s5 = sld [smem:[#allocation19_spill]] }
  0xb0   :  { %976 = vmatpush.bf16.msrb.mxu2 %v6079_v12  ;;  %v5959_v10 = vor.u32 %v7152_v6, %v5956_v7  ;;  %v240_v12 = vld [vmem:[%s7998_s3] sm:$0xf]  ;;  %v7243_v50 = vld [vmem:[#allocation2 + $0x2e4] sm:$0xf]  ;;  %v6324_v55 = vld [vmem:[#allocation2 + $0x2f8] sm:$0xf0] }
  0xb1   :  { %v272_v14 = vperm.slane %v240_v12, 3  ;;  %v253_v15 = vperm.slane %v240_v12, 0  ;;  %v6106_v60 = vld [vmem:[#allocation2 + $0x130] sm:$0xf]  ;;  %v6327_v63 = vor.u32 %v7243_v50, %v6324_v55  ;;  %v7240_v3 = vld [vmem:[#allocation2 + $0x2c4] sm:$0xf0] }
  0xb2   :  { %990 = vmatpush.bf16.msrb.mxu3 %v6271_v13  ;;  %v271_v13 = vperm.slane %v240_v12, 1  ;;  %v6298_v2 = vld [vmem:[#allocation2 + $0x2b0] sm:$0xf]  ;;  %v7237_v6 = vld [vmem:[#allocation2 + $0x2b4] sm:$0xf]  ;;  %s10674_s13 = sld [smem:[#allocation25_spill]] }
  0xb3   :  { %949 = vmatpush.bf16.msrb.mxu0 %v6051_v16  ;;  %963 = vmatpush.bf16.msrb.mxu1 %v6243_v20  ;;  %v254_v16 = vperm.slane %v240_v12, 2  ;;  %v276_v18 = vperm.slane %v272_v14, 1  ;;  %v257_v19 = vperm.slane %v253_v15, 0  ;;  %v6300_v7 = vld [vmem:[#allocation2 + $0x2c8] sm:$0xf0]  ;;  %v6299_v9 = vor.u32 %v7240_v3, %v6298_v2  ;;  %s10688_s25 = sld [smem:[#allocation23_spill]] }
  0xb4   :  { %977 = vmatpush.bf16.msrb.mxu2 %v6055_v23  ;;  %v275_v17 = vperm.slane %v271_v13, 1  ;;  %v6303_v13 = vor.u32 %v7237_v6, %v6300_v7  ;;  %v6274_v14 = vld [vmem:[#allocation2 + $0x280] sm:$0xf]  ;;  %v7234_v15 = vld [vmem:[#allocation2 + $0x294] sm:$0xf0]  ;;  %s10703_s3 = sld [smem:[#allocation24_spill]] }
  0xb5   :  { %v258_v20 = vperm.slane %v254_v16, 0  ;;  %v7183_v16 = vld [vmem:[#allocation2 + $0x104] sm:$0xf]  ;;  %v6202_v50 = vld [vmem:[#allocation2 + $0x1f0] sm:$0xf]  ;;  %s10707_s8 = sld [smem:[#allocation20_spill]] }
  0xb6   :  { %991 = vmatpush.bf16.msrb.mxu3 %v6247_v25  ;;  %v6204_v55 = vld [vmem:[#allocation2 + $0x208] sm:$0xf0]  ;;  %v6178_v2 = vld [vmem:[#allocation2 + $0x1c0] sm:$0xf]  ;;  %v7210_v3 = vld [vmem:[#allocation2 + $0x1d4] sm:$0xf0] }
  0xb7   :  { %950 = vmatpush.bf16.msrb.mxu0 %v6027_v29  ;;  %964 = vmatpush.bf16.msrb.mxu1 %v6219_v33  ;;  %v287_v29 = vperm.slane %v241_v27, 1  ;;  %v7228_v27 = vld [vmem:[#allocation2 + $0x264] sm:$0xf0]  ;;  %v7207_v6 = vld [vmem:[#allocation2 + $0x1c4] sm:$0xf]  ;;  %s11168_s10 = sld [smem:[#allocation31_spill]] }
  0xb8   :  { %978 = vmatpush.bf16.msrb.mxu2 %v6031_v34  ;;  %v6180_v7 = vld [vmem:[#allocation2 + $0x1d8] sm:$0xf0]  ;;  %s11169_s24 = sld [smem:[#allocation15_spill]] }
  0xb9   :  { %s11170_s16 = sld [smem:[#allocation27_spill]] }
  0xba   :  { %992 = vmatpush.bf16.msrb.mxu3 %v6223_v37  ;;  %s11171_s15 = sld [smem:[#allocation26_spill]] }
  0xbb   :  { %951 = vmatpush.bf16.msrb.mxu0 %v6003_v42  ;;  %965 = vmatpush.bf16.msrb.mxu1 %v6195_v43  ;;  %v6130_v42 = vld [vmem:[#allocation2 + $0x160] sm:$0xf]  ;;  %s11172_s18 = sld [smem:[#allocation29_spill]] }
  0xbc   :  { %979 = vmatpush.bf16.msrb.mxu2 %v6007_v47  ;;  %v7246_v47 = vld [vmem:[#allocation2 + $0x2f4] sm:$0xf0]  ;;  %s11173_s23 = sld [smem:[#allocation28_spill]] }
  0xbd   :  { %v6323_v59 = vor.u32 %v7246_v47, %v6322_v46  ;;  %v6010_v46 = vld [vmem:[#allocation2 + $0x70] sm:$0xf]  ;;  %v7168_v47 = vld [vmem:[#allocation2 + $0x84] sm:$0xf0]  ;;  %s11174_s26 = sld [smem:[#allocation33_spill]] }
  0xbe   :  { %993 = vmatpush.bf16.msrb.mxu3 %v6199_v49  ;;  %v6132_v49 = vld [vmem:[#allocation2 + $0x178] sm:$0xf0]  ;;  %s11175_s0 = sld [smem:[#allocation30_spill]] }
  0xbf   :  { %952 = vmatpush.bf16.msrb.mxu0 %v5979_v53  ;;  %966 = vmatpush.bf16.msrb.mxu1 %v6171_v57  ;;  %v6135_v62 = vor.u32 %v7195_v48, %v6132_v49  ;;  %s11176_s2 = sld [smem:[#allocation32_spill]] }
  0xc0   :  { %980 = vmatpush.bf16.msrb.mxu2 %v5983_v58  ;;  %v6131_v58 = vor.u32 %v7198_v45, %v6130_v42  ;;  %v7219_v42 = vld [vmem:[#allocation2 + $0x224] sm:$0xf]  ;;  %s11178_s22 = sld [smem:[#allocation34_spill]] }
  0xc1   :  { %s11179_s28 = sld [smem:[#allocation36_spill]] }
  0xc2   :  { %994 = vmatpush.bf16.msrb.mxu3 %v6175_v61  ;;  %v7192_v61 = vld [vmem:[#allocation2 + $0x144] sm:$0xf0]  ;;  %s11180_s1 = sld [smem:[#allocation17_spill]] }
  0xc3   :  { %953 = vmatpush.bf16.msrb.mxu0 %v5955_v4  ;;  %967 = vmatpush.bf16.msrb.mxu1 %v6147_v5  ;;  %v7189_v4 = vld [vmem:[#allocation2 + $0x134] sm:$0xf]  ;;  %v6108_v5 = vld [vmem:[#allocation2 + $0x148] sm:$0xf0]  ;;  %v6107_v8 = vor.u32 %v7192_v61, %v6106_v60  ;;  %v5986_v60 = vld [vmem:[#allocation2 + $0x40] sm:$0xf] }
  0xc4   :  { %981 = vmatpush.bf16.msrb.mxu2 %v5959_v10  ;;  %v6082_v10 = vld [vmem:[#allocation2 + $0x100] sm:$0xf]  ;;  %v6111_v12 = vor.u32 %v7189_v4, %v6108_v5  ;;  %v7162_v61 = vld [vmem:[#allocation2 + $0x54] sm:$0xf0]  ;;  %v7159_v4 = vld [vmem:[#allocation2 + $0x44] sm:$0xf] }
  0xc5   :  { %v5988_v5 = vld [vmem:[#allocation2 + $0x58] sm:$0xf0]  ;;  %s11181_s7 = sld [smem:[#allocation38_spill]] }
  0xc6   :  { %995 = vmatpush.bf16.msrb.mxu3 %v6151_v11  ;;  %v7186_v11 = vld [vmem:[#allocation2 + $0x114] sm:$0xf0]  ;;  %s11182_s11 = sld [smem:[#allocation37_spill]] }
  0xc7   :  { %s11183_s20 = sld [smem:[#allocation39_spill]] }
  0xf6   :  { %v265_v21 = vpop.permute.xlu1 %264 }
  0xf7   :  { %v245_v22 = vpop.permute.xlu0 %244  ;;  %v277_v23 = vmul.f32 %v275_v17, %v265_v21  ;;  %v278_v24 = vmul.f32 %v276_v18, %v265_v21  ;;  %v6275_v21 = vor.u32 %v7234_v15, %v6274_v14  ;;  %v5991_v14 = vor.u32 %v7159_v4, %v5988_v5  ;;  %v7319_v4 = vld [vmem:[#allocation5 + $0x244] sm:$0xf]  ;;  %v6620_v5 = vld [vmem:[#allocation5 + $0x258] sm:$0xf0] }
  0xf8   :  { %v259_v25 = vmul.f32 %v257_v19, %v245_v22  ;;  %v260_v26 = vmul.f32 %v258_v20, %v245_v22  ;;  %v6058_v22 = vld [vmem:[#allocation2 + $0xd0] sm:$0xf]  ;;  %v6183_v15 = vor.u32 %v7207_v6, %v6180_v7 }
  0xfa   :  { %v281_v30 = vadd.f32 %v277_v23, %v259_v25  ;;  %v282_v31 = vadd.f32 %v278_v24, %v260_v26  ;;  %v7180_v23 = vld [vmem:[#allocation2 + $0xe4] sm:$0xf0]  ;;  %v6250_v26 = vld [vmem:[#allocation2 + $0x250] sm:$0xf] }
  0xfc   :  { %v290_v38 = vadd.f32 %v286_v28, %v281_v30  ;;  %v291_v39 = vadd.f32 %v287_v29, %v282_v31  ;;  %v7225_v30 = vld [vmem:[#allocation2 + $0x254] sm:$0xf]  ;;  %v6252_v31 = vld [vmem:[#allocation2 + $0x268] sm:$0xf0] }
  0xfe   :  { %v269_v32 = vpop.permute.xlu1 %268  ;;  %v294_v51 = vmax.f32 %v290_v38, 0.0  ;;  %v295_v52 = vmax.f32 %v291_v39, 0.0  ;;  %v6226_v38 = vld [vmem:[#allocation2 + $0x220] sm:$0xf]  ;;  %v7222_v39 = vld [vmem:[#allocation2 + $0x234] sm:$0xf0] }
  0xff   :  { %v250_v33 = vpop.permute.xlu0 %249  ;;  %v279_v34 = vmul.f32 %v275_v17, %v269_v32  ;;  %v280_v35 = vmul.f32 %v276_v18, %v269_v32  ;;  %v6084_v17 = vld [vmem:[#allocation2 + $0x118] sm:$0xf0]  ;;  %v7231_v18 = vld [vmem:[#allocation2 + $0x284] sm:$0xf]  ;;  %v6059_v32 = vor.u32 %v7180_v23, %v6058_v22  ;;  %v6227_v45 = vor.u32 %v7222_v39, %v6226_v38  ;;  %v6690_v22 = vld [vmem:[#allocation5 + $0x2d0] sm:$0xf] }
 0x100   :  { %v261_v36 = vmul.f32 %v257_v19, %v250_v33  ;;  %v262_v37 = vmul.f32 %v258_v20, %v250_v33  ;;  %v6276_v19 = vld [vmem:[#allocation2 + $0x298] sm:$0xf0]  ;;  %v6083_v20 = vor.u32 %v7186_v11, %v6082_v10  ;;  %v6087_v24 = vor.u32 %v7183_v16, %v6084_v17  ;;  %v7156_v11 = vld [vmem:[#allocation2 + $0x24] sm:$0xf0]  ;;  %v7153_v16 = vld [vmem:[#allocation2 + $0x14] sm:$0xf] }
 0x101   :  { %v6279_v25 = vor.u32 %v7231_v18, %v6276_v19  ;;  %v6251_v33 = vor.u32 %v7228_v27, %v6250_v26  ;;  %v6179_v10 = vor.u32 %v7210_v3, %v6178_v2  ;;  %v5964_v17 = vld [vmem:[#allocation2 + $0x28] sm:$0xf0]  ;;  %v7201_v18 = vld [vmem:[#allocation2 + $0x194] sm:$0xf]  ;;  %v7340_v23 = vld [vmem:[#allocation5 + $0x2e4] sm:$0xf0] }
 0x102   :  { %v283_v40 = vadd.f32 %v279_v34, %v261_v36  ;;  %v284_v41 = vadd.f32 %v280_v35, %v262_v37  ;;  %v6034_v34 = vld [vmem:[#allocation2 + $0xa0] sm:$0xf]  ;;  %v7174_v35 = vld [vmem:[#allocation2 + $0xb4] sm:$0xf0]  ;;  %v6255_v37 = vor.u32 %v7225_v30, %v6252_v31  ;;  %v6156_v19 = vld [vmem:[#allocation2 + $0x1a8] sm:$0xf0]  ;;  %v5967_v30 = vor.u32 %v7153_v16, %v5964_v17 }
 0x103   :  { %v6500_v27 = vld [vmem:[#allocation5 + $0x168] sm:$0xf0]  ;;  %v6159_v31 = vor.u32 %v7201_v18, %v6156_v19  ;;  %v6666_v38 = vld [vmem:[#allocation5 + $0x2a0] sm:$0xf]  ;;  %v7334_v39 = vld [vmem:[#allocation5 + $0x2b4] sm:$0xf0] }
 0x104   :  { %v292_v43 = vadd.f32 %v286_v28, %v283_v40  ;;  %v293_v44 = vadd.f32 %v287_v29, %v284_v41  ;;  %v7177_v28 = vld [vmem:[#allocation2 + $0xd4] sm:$0xf]  ;;  %v6060_v29 = vld [vmem:[#allocation2 + $0xe8] sm:$0xf0]  ;;  %v7171_v40 = vld [vmem:[#allocation2 + $0xa4] sm:$0xf] }
 0x105   :  { %v6063_v36 = vor.u32 %v7177_v28, %v6060_v29  ;;  %v6036_v41 = vld [vmem:[#allocation2 + $0xb8] sm:$0xf0]  ;;  %v7337_v28 = vld [vmem:[#allocation5 + $0x2d4] sm:$0xf]  ;;  %v6692_v29 = vld [vmem:[#allocation5 + $0x2e8] sm:$0xf0] }
 0x106   :  { %v296_v53 = vmax.f32 %v292_v43, 0.0  ;;  %v297_v54 = vmax.f32 %v293_v44, 0.0  ;;  %v6228_v43 = vld [vmem:[#allocation2 + $0x238] sm:$0xf0]  ;;  %v6035_v44 = vor.u32 %v7174_v35, %v6034_v34  ;;  %v6039_v48 = vor.u32 %v7171_v40, %v6036_v41  ;;  %v6474_v34 = vld [vmem:[#allocation5 + $0x120] sm:$0xf] }
 0x107   :  { %v6231_v49 = vor.u32 %v7219_v42, %v6228_v43  ;;  %v7286_v35 = vld [vmem:[#allocation5 + $0x134] sm:$0xf0]  ;;  %v7283_v40 = vld [vmem:[#allocation5 + $0x124] sm:$0xf]  ;;  %v6476_v41 = vld [vmem:[#allocation5 + $0x138] sm:$0xf0] }
 0x108   :  { %v8208_v56 = vpack.c.bf16 %v296_v53, %v294_v51  ;;  %v8210_v57 = vpack.c.bf16 %v297_v54, %v295_v52  ;;  %v7216_v51 = vld [vmem:[#allocation2 + $0x204] sm:$0xf0]  ;;  %v7165_v52 = vld [vmem:[#allocation2 + $0x74] sm:$0xf]  ;;  %v6012_v53 = vld [vmem:[#allocation2 + $0x88] sm:$0xf0] }
 0x109   :  { %v7213_v54 = vld [vmem:[#allocation2 + $0x1f4] sm:$0xf]  ;;  %v7331_v42 = vld [vmem:[#allocation5 + $0x2a4] sm:$0xf]  ;;  %v6668_v43 = vld [vmem:[#allocation5 + $0x2b8] sm:$0xf0] }
 0x10a   :  { %898 = vmatmul.bf16.vlgmr.msra.gmra.mxu0 %v8208_v56  ;;  %912 = vmatmul.bf16.vlgmr.msra.gmra.mxu1 %v8210_v57  ;;  %v7271_v2 = vld [vmem:[#allocation5 + $0xc4] sm:$0xf]  ;;  %v6428_v3 = vld [vmem:[#allocation5 + $0xd8] sm:$0xf0]  ;;  %v7313_v16 = vld [vmem:[#allocation5 + $0x214] sm:$0xf] }
 0x10b   :  { %926 = vmatmul.bf16.vlgmr.msra.gmra.mxu2 %v8208_v56  ;;  %940 = vmatmul.bf16.vlgmr.msra.gmra.mxu3 %v8210_v57  ;;  %v6596_v17 = vld [vmem:[#allocation5 + $0x228] sm:$0xf0] }
 0x10c   :  { %1002 = vmatpush.bf16.msra.mxu0 %v6131_v58  ;;  %1016 = vmatpush.bf16.msra.mxu1 %v6323_v59  ;;  %v6011_v58 = vor.u32 %v7168_v47, %v6010_v46  ;;  %v6203_v59 = vor.u32 %v7216_v51, %v6202_v50  ;;  %v6450_v46 = vld [vmem:[#allocation5 + $0xf0] sm:$0xf]  ;;  %v7280_v47 = vld [vmem:[#allocation5 + $0x104] sm:$0xf0] }
 0x10d   :  { %1030 = vmatpush.bf16.msra.mxu2 %v6135_v62  ;;  %1044 = vmatpush.bf16.msra.mxu3 %v6327_v63  ;;  %v6015_v62 = vor.u32 %v7165_v52, %v6012_v53  ;;  %v6207_v63 = vor.u32 %v7213_v54, %v6204_v55  ;;  %v6642_v50 = vld [vmem:[#allocation5 + $0x270] sm:$0xf]  ;;  %v7328_v51 = vld [vmem:[#allocation5 + $0x284] sm:$0xf0]  ;;  %v7277_v52 = vld [vmem:[#allocation5 + $0xf4] sm:$0xf] }
 0x10e   :  { %v6452_v53 = vld [vmem:[#allocation5 + $0x108] sm:$0xf0]  ;;  %v7325_v54 = vld [vmem:[#allocation5 + $0x274] sm:$0xf] }
 0x10f   :  { %v6644_v55 = vld [vmem:[#allocation5 + $0x288] sm:$0xf0] }
 0x110   :  { %1003 = vmatpush.bf16.msra.mxu0 %v6107_v8  ;;  %1017 = vmatpush.bf16.msra.mxu1 %v6299_v9  ;;  %v5962_v8 = vld [vmem:[#allocation2 + $0x10] sm:$0xf]  ;;  %v5987_v9 = vor.u32 %v7162_v61, %v5986_v60  ;;  %v6426_v60 = vld [vmem:[#allocation5 + $0xc0] sm:$0xf]  ;;  %v7274_v61 = vld [vmem:[#allocation5 + $0xd4] sm:$0xf0] }
 0x111   :  { %1031 = vmatpush.bf16.msra.mxu2 %v6111_v12  ;;  %1045 = vmatpush.bf16.msra.mxu3 %v6303_v13  ;;  %v6154_v12 = vld [vmem:[#allocation2 + $0x190] sm:$0xf]  ;;  %v7204_v13 = vld [vmem:[#allocation2 + $0x1a4] sm:$0xf0]  ;;  %v8258_v6 = vor.u32 %v7274_v61, %v6426_v60  ;;  %v7298_v61 = vld [vmem:[#allocation5 + $0x194] sm:$0xf0] }
 0x112   :  { %v6155_v26 = vor.u32 %v7204_v13, %v6154_v12  ;;  %v6594_v12 = vld [vmem:[#allocation5 + $0x210] sm:$0xf]  ;;  %v7316_v13 = vld [vmem:[#allocation5 + $0x224] sm:$0xf0] }
 0x113   :  { %10536 = vst [vmem:[#allocation52_spill] sm:$0xff] %v8258_v6  ;;  %v8272_v19 = vor.u32 %v7316_v13, %v6594_v12 }
 0x114   :  { %1004 = vmatpush.bf16.msra.mxu0 %v6083_v20  ;;  %1018 = vmatpush.bf16.msra.mxu1 %v6275_v21  ;;  %v6498_v20 = vld [vmem:[#allocation5 + $0x150] sm:$0xf]  ;;  %v7292_v21 = vld [vmem:[#allocation5 + $0x164] sm:$0xf0] }
 0x115   :  { %1032 = vmatpush.bf16.msra.mxu2 %v6087_v24  ;;  %1046 = vmatpush.bf16.msra.mxu3 %v6279_v25  ;;  %v7289_v24 = vld [vmem:[#allocation5 + $0x154] sm:$0xf]  ;;  %v5963_v25 = vor.u32 %v7156_v11, %v5962_v8  ;;  %v6402_v8 = vld [vmem:[#allocation5 + $0x90] sm:$0xf]  ;;  %v8266_v11 = vor.u32 %v7319_v4, %v6620_v5  ;;  %10541 = vst [vmem:[#allocation57_spill] sm:$0xff] %v8272_v19 }
 0x116   :  { %v6698_v4 = vld [vmem:[#allocation5 + $0x2d8] sm:$0xf]  ;;  %v7341_v5 = vld [vmem:[#allocation5 + $0x2ec] sm:$0xf0] }
 0x117   :  { %10539 = vst [vmem:[#allocation55_spill] sm:$0xff] %v8266_v11 }
 0x118   :  { %1005 = vmatpush.bf16.msra.mxu0 %v6059_v32  ;;  %1019 = vmatpush.bf16.msra.mxu1 %v6251_v33  ;;  %v8220_v32 = vor.u32 %v7292_v21, %v6498_v20  ;;  %v8222_v33 = vor.u32 %v7340_v23, %v6690_v22  ;;  %v6378_v20 = vld [vmem:[#allocation5 + $0x60] sm:$0xf]  ;;  %v7262_v21 = vld [vmem:[#allocation5 + $0x74] sm:$0xf0]  ;;  %v8278_v23 = vor.u32 %v7313_v16, %v6596_v17 }
 0x119   :  { %1033 = vmatpush.bf16.msra.mxu2 %v6063_v36  ;;  %1047 = vmatpush.bf16.msra.mxu3 %v6255_v37  ;;  %v8224_v36 = vor.u32 %v7289_v24, %v6500_v27  ;;  %v8226_v37 = vor.u32 %v7337_v28, %v6692_v29  ;;  %v6570_v24 = vld [vmem:[#allocation5 + $0x1e0] sm:$0xf]  ;;  %v6380_v27 = vld [vmem:[#allocation5 + $0x78] sm:$0xf0]  ;;  %v7307_v28 = vld [vmem:[#allocation5 + $0x1e4] sm:$0xf] }
 0x11a   :  { %954 = vmatmul.bf16.vlgmr.msrb.gmra.mxu0 %v8208_v56  ;;  %968 = vmatmul.bf16.vlgmr.msrb.gmra.mxu1 %v8210_v57  ;;  %10524 = vst [vmem:[#allocation40_spill] sm:$0xff] %v8220_v32  ;;  %v6572_v29 = vld [vmem:[#allocation5 + $0x1f8] sm:$0xf0] }
 0x11b   :  { %982 = vmatmul.bf16.vlgmr.msrb.gmra.mxu2 %v8208_v56  ;;  %996 = vmatmul.bf16.vlgmr.msrb.gmra.mxu3 %v8210_v57  ;;  %10525 = vst [vmem:[#allocation41_spill] sm:$0xff] %v8222_v33 }
 0x11c   :  { %1006 = vmatpush.bf16.msra.mxu0 %v6035_v44  ;;  %1020 = vmatpush.bf16.msra.mxu1 %v6227_v45  ;;  %10526 = vst [vmem:[#allocation42_spill] sm:$0xff] %v8224_v36  ;;  %v8230_v44 = vor.u32 %v7286_v35, %v6474_v34  ;;  %v8232_v45 = vor.u32 %v7334_v39, %v6666_v38  ;;  %v6354_v34 = vld [vmem:[#allocation5 + $0x30] sm:$0xf]  ;;  %v7256_v35 = vld [vmem:[#allocation5 + $0x44] sm:$0xf0] }
 0x11d   :  { %1034 = vmatpush.bf16.msra.mxu2 %v6039_v48  ;;  %1048 = vmatpush.bf16.msra.mxu3 %v6231_v49  ;;  %10527 = vst [vmem:[#allocation43_spill] sm:$0xff] %v8226_v37  ;;  %v8236_v48 = vor.u32 %v7283_v40, %v6476_v41  ;;  %v8238_v49 = vor.u32 %v7331_v42, %v6668_v43  ;;  %v6546_v40 = vld [vmem:[#allocation5 + $0x1b0] sm:$0xf]  ;;  %v7304_v41 = vld [vmem:[#allocation5 + $0x1c4] sm:$0xf0] }
 0x11e   :  { %10528 = vst [vmem:[#allocation44_spill] sm:$0xff] %v8230_v44  ;;  %v8290_v39 = vor.u32 %v7307_v28, %v6572_v29  ;;  %v7253_v42 = vld [vmem:[#allocation5 + $0x34] sm:$0xf]  ;;  %v6356_v43 = vld [vmem:[#allocation5 + $0x48] sm:$0xf0] }
 0x11f   :  { %10529 = vst [vmem:[#allocation45_spill] sm:$0xff] %v8232_v45  ;;  %v6674_v29 = vld [vmem:[#allocation5 + $0x2a8] sm:$0xf] }
 0x120   :  { %1007 = vmatpush.bf16.msra.mxu0 %v6011_v58  ;;  %1021 = vmatpush.bf16.msra.mxu1 %v6203_v59  ;;  %10530 = vst [vmem:[#allocation46_spill] sm:$0xff] %v8236_v48  ;;  %v8246_v58 = vor.u32 %v7280_v47, %v6450_v46  ;;  %v8248_v59 = vor.u32 %v7328_v51, %v6642_v50  ;;  %v7301_v46 = vld [vmem:[#allocation5 + $0x1b4] sm:$0xf]  ;;  %v6548_v47 = vld [vmem:[#allocation5 + $0x1c8] sm:$0xf0] }
 0x121   :  { %1035 = vmatpush.bf16.msra.mxu2 %v6015_v62  ;;  %1049 = vmatpush.bf16.msra.mxu3 %v6207_v63  ;;  %10531 = vst [vmem:[#allocation47_spill] sm:$0xff] %v8238_v49  ;;  %v8252_v62 = vor.u32 %v7277_v52, %v6452_v53  ;;  %v8254_v63 = vor.u32 %v7325_v54, %v6644_v55  ;;  %v6330_v52 = vld [vmem:[#allocation5] sm:$0xf]  ;;  %v7250_v53 = vld [vmem:[#allocation5 + $0x14] sm:$0xf0] }
 0x122   :  { %10532 = vst [vmem:[#allocation48_spill] sm:$0xff] %v8246_v58  ;;  %v8294_v50 = vor.u32 %v7256_v35, %v6354_v34  ;;  %v8296_v51 = vor.u32 %v7304_v41, %v6546_v40  ;;  %v6522_v54 = vld [vmem:[#allocation5 + $0x180] sm:$0xf]  ;;  %v8300_v55 = vor.u32 %v7253_v42, %v6356_v43  ;;  %v8302_v60 = vor.u32 %v7301_v46, %v6548_v47  ;;  %v7284_v40 = vld [vmem:[#allocation5 + $0x12c] sm:$0xf] }
 0x123   :  { %10533 = vst [vmem:[#allocation49_spill] sm:$0xff] %v8248_v59  ;;  %v8306_v12 = vor.u32 %v7250_v53, %v6330_v52  ;;  %v8308_v13 = vor.u32 %v7298_v61, %v6522_v54  ;;  %v7335_v34 = vld [vmem:[#allocation5 + $0x2bc] sm:$0xf0]  ;;  %v6484_v41 = vld [vmem:[#allocation5 + $0x140] sm:$0xf0] }
 0x124   :  { %1008 = vmatpush.bf16.msra.mxu0 %v5987_v9  ;;  %1022 = vmatpush.bf16.msra.mxu1 %v6179_v10  ;;  %10534 = vst [vmem:[#allocation50_spill] sm:$0xff] %v8252_v62  ;;  %v7268_v9 = vld [vmem:[#allocation5 + $0xa4] sm:$0xf0]  ;;  %v8264_v10 = vor.u32 %v7271_v2, %v6428_v3  ;;  %v6506_v2 = vld [vmem:[#allocation5 + $0x158] sm:$0xf]  ;;  %v8332_v47 = vor.u32 %v7335_v34, %v6674_v29 }
 0x125   :  { %1036 = vmatpush.bf16.msra.mxu2 %v5991_v14  ;;  %1050 = vmatpush.bf16.msra.mxu3 %v6183_v15  ;;  %10535 = vst [vmem:[#allocation51_spill] sm:$0xff] %v8254_v63  ;;  %v7265_v14 = vld [vmem:[#allocation5 + $0x94] sm:$0xf]  ;;  %v6404_v15 = vld [vmem:[#allocation5 + $0xa8] sm:$0xf0]  ;;  %v8270_v18 = vor.u32 %v7268_v9, %v6402_v8  ;;  %v8336_v54 = vor.u32 %v7284_v40, %v6484_v41 }
 0x126   :  { %10538 = vst [vmem:[#allocation54_spill] sm:$0xff] %v8264_v10  ;;  %v8276_v22 = vor.u32 %v7265_v14, %v6404_v15  ;;  %v7293_v3 = vld [vmem:[#allocation5 + $0x16c] sm:$0xf0]  ;;  %v7290_v8 = vld [vmem:[#allocation5 + $0x15c] sm:$0xf] }
 0x127   :  { %10540 = vst [vmem:[#allocation56_spill] sm:$0xff] %v8270_v18  ;;  %v6508_v9 = vld [vmem:[#allocation5 + $0x170] sm:$0xf0]  ;;  %v7295_v14 = vld [vmem:[#allocation5 + $0x184] sm:$0xf]  ;;  %v8314_v17 = vor.u32 %v7293_v3, %v6506_v2 }
 0x128   :  { %1009 = vmatpush.bf16.msra.mxu0 %v5963_v25  ;;  %1023 = vmatpush.bf16.msra.mxu1 %v6155_v26  ;;  %10542 = vst [vmem:[#allocation58_spill] sm:$0xff] %v8276_v22  ;;  %v7310_v25 = vld [vmem:[#allocation5 + $0x1f4] sm:$0xf0]  ;;  %v7259_v26 = vld [vmem:[#allocation5 + $0x64] sm:$0xf] }
 0x129   :  { %1037 = vmatpush.bf16.msra.mxu2 %v5967_v30  ;;  %1051 = vmatpush.bf16.msra.mxu3 %v6159_v31  ;;  %10543 = vst [vmem:[#allocation59_spill] sm:$0xff] %v8278_v23  ;;  %v8282_v30 = vor.u32 %v7262_v21, %v6378_v20  ;;  %v8284_v31 = vor.u32 %v7310_v25, %v6570_v24  ;;  %v6524_v15 = vld [vmem:[#allocation5 + $0x198] sm:$0xf0]  ;;  %v6700_v21 = vld [vmem:[#allocation5 + $0x2f0] sm:$0xf0] }
 0x12a   :  { %v8288_v38 = vor.u32 %v7259_v26, %v6380_v27  ;;  %10547 = vst [vmem:[#allocation63_spill] sm:$0xff] %v8290_v39  ;;  %v7338_v20 = vld [vmem:[#allocation5 + $0x2dc] sm:$0xf]  ;;  %v8316_v24 = vor.u32 %v7341_v5, %v6698_v4  ;;  %v8318_v25 = vor.u32 %v7290_v8, %v6508_v9  ;;  %v6482_v26 = vld [vmem:[#allocation5 + $0x128] sm:$0xf]  ;;  %v8320_v28 = vor.u32 %v7295_v14, %v6524_v15 }
 0x12b   :  { %1010 = vmatmul.bf16.vlgmr.msra.gmra.mxu0 %v8208_v56  ;;  %1024 = vmatmul.bf16.vlgmr.msra.gmra.mxu1 %v8210_v57  ;;  %10544 = vst [vmem:[#allocation60_spill] sm:$0xff] %v8282_v30  ;;  %v7287_v27 = vld [vmem:[#allocation5 + $0x13c] sm:$0xf0]  ;;  %v8324_v35 = vor.u32 %v7338_v20, %v6700_v21  ;;  %v7332_v43 = vld [vmem:[#allocation5 + $0x2ac] sm:$0xf] }
 0x12c   :  { %1729 = vmatpush.bf16.msrb.mxu0 %v8220_v32  ;;  %1742 = vmatpush.bf16.msrb.mxu1 %v8222_v33  ;;  %10545 = vst [vmem:[#allocation61_spill] sm:$0xff] %v8284_v31  ;;  %v8328_v42 = vor.u32 %v7287_v27, %v6482_v26  ;;  %v6676_v46 = vld [vmem:[#allocation5 + $0x2c0] sm:$0xf0]  ;;  %v6458_v52 = vld [vmem:[#allocation5 + $0xf8] sm:$0xf] }
 0x12d   :  { %1755 = vmatpush.bf16.msrb.mxu2 %v8224_v36  ;;  %1768 = vmatpush.bf16.msrb.mxu3 %v8226_v37  ;;  %10546 = vst [vmem:[#allocation62_spill] sm:$0xff] %v8288_v38  ;;  %v7281_v53 = vld [vmem:[#allocation5 + $0x10c] sm:$0xf0]  ;;  %v6650_v61 = vld [vmem:[#allocation5 + $0x278] sm:$0xf] }
 0x12e   :  { %1038 = vmatmul.bf16.vlgmr.msra.gmra.mxu2 %v8208_v56  ;;  %1052 = vmatmul.bf16.vlgmr.msra.gmra.mxu3 %v8210_v57  ;;  %v6618_v56 = vld [vmem:[#allocation5 + $0x240] sm:$0xf]  ;;  %v7322_v57 = vld [vmem:[#allocation5 + $0x254] sm:$0xf0]  ;;  %10548 = vst [vmem:[#allocation64_spill] sm:$0xff] %v8294_v50  ;;  %v8344_v4 = vor.u32 %v7281_v53, %v6458_v52 }
 0x12f   :  { %v8260_v7 = vor.u32 %v7322_v57, %v6618_v56  ;;  %10549 = vst [vmem:[#allocation65_spill] sm:$0xff] %v8296_v51  ;;  %v7247_v56 = vld [vmem:[#allocation5 + $0x4] sm:$0xf]  ;;  %v6332_v57 = vld [vmem:[#allocation5 + $0x18] sm:$0xf0] }
 0x130   :  { %1730 = vmatpush.bf16.msrb.mxu0 %v8230_v44  ;;  %1743 = vmatpush.bf16.msrb.mxu1 %v8232_v45  ;;  %10550 = vst [vmem:[#allocation66_spill] sm:$0xff] %v8300_v55  ;;  %v8312_v16 = vor.u32 %v7247_v56, %v6332_v57  ;;  %v7329_v56 = vld [vmem:[#allocation5 + $0x28c] sm:$0xf0]  ;;  %v8340_v57 = vor.u32 %v7332_v43, %v6676_v46  ;;  %v7278_v2 = vld [vmem:[#allocation5 + $0xfc] sm:$0xf] }
 0x131   :  { %1756 = vmatpush.bf16.msrb.mxu2 %v8236_v48  ;;  %1769 = vmatpush.bf16.msrb.mxu3 %v8238_v49  ;;  %10537 = vst [vmem:[#allocation53_spill] sm:$0xff] %v8260_v7  ;;  %v6460_v3 = vld [vmem:[#allocation5 + $0x110] sm:$0xf0]  ;;  %v7326_v5 = vld [vmem:[#allocation5 + $0x27c] sm:$0xf]  ;;  %v8348_v9 = vor.u32 %v7329_v56, %v6650_v61 }
 0x132   :  { %10551 = vst [vmem:[#allocation67_spill] sm:$0xff] %v8302_v60  ;;  %v6652_v8 = vld [vmem:[#allocation5 + $0x290] sm:$0xf0]  ;;  %v6434_v14 = vld [vmem:[#allocation5 + $0xc8] sm:$0xf]  ;;  %v8351_v20 = vor.u32 %v7278_v2, %v6460_v3 }
 0x133   :  { %10552 = vst [vmem:[#allocation68_spill] sm:$0xff] %v8306_v12  ;;  %v7275_v15 = vld [vmem:[#allocation5 + $0xdc] sm:$0xf0]  ;;  %v6626_v21 = vld [vmem:[#allocation5 + $0x248] sm:$0xf]  ;;  %v8354_v27 = vor.u32 %v7326_v5, %v6652_v8 }
 0x134   :  { %1731 = vmatpush.bf16.msrb.mxu0 %v8246_v58  ;;  %1744 = vmatpush.bf16.msrb.mxu1 %v8248_v59  ;;  %10553 = vst [vmem:[#allocation69_spill] sm:$0xff] %v8308_v13  ;;  %v7323_v26 = vld [vmem:[#allocation5 + $0x25c] sm:$0xf0]  ;;  %v7272_v29 = vld [vmem:[#allocation5 + $0xcc] sm:$0xf]  ;;  %v8357_v40 = vor.u32 %v7275_v15, %v6434_v14 }
 0x135   :  { %1757 = vmatpush.bf16.msrb.mxu2 %v8252_v62  ;;  %1770 = vmatpush.bf16.msrb.mxu3 %v8254_v63  ;;  %10554 = vst [vmem:[#allocation70_spill] sm:$0xff] %v8312_v16  ;;  %v6436_v34 = vld [vmem:[#allocation5 + $0xe0] sm:$0xf0]  ;;  %v7320_v41 = vld [vmem:[#allocation5 + $0x24c] sm:$0xf]  ;;  %v8360_v46 = vor.u32 %v7323_v26, %v6626_v21 }
 0x136   :  { %10555 = vst [vmem:[#allocation71_spill] sm:$0xff] %v8314_v17  ;;  %v6628_v43 = vld [vmem:[#allocation5 + $0x260] sm:$0xf0]  ;;  %v6410_v52 = vld [vmem:[#allocation5 + $0x98] sm:$0xf]  ;;  %v8363_v61 = vor.u32 %v7272_v29, %v6436_v34 }
 0x137   :  { %10556 = vst [vmem:[#allocation72_spill] sm:$0xff] %v8316_v24  ;;  %v7269_v53 = vld [vmem:[#allocation5 + $0xac] sm:$0xf0]  ;;  %v6602_v56 = vld [vmem:[#allocation5 + $0x218] sm:$0xf]  ;;  %v8366_v3 = vor.u32 %v7320_v41, %v6628_v43 }
 0x138   :  { %1732 = vmatpush.bf16.msrb.mxu0 %v8258_v6  ;;  %1745 = vmatpush.bf16.msrb.mxu1 %v8260_v7  ;;  %10557 = vst [vmem:[#allocation73_spill] sm:$0xff] %v8318_v25  ;;  %v7317_v2 = vld [vmem:[#allocation5 + $0x22c] sm:$0xf0]  ;;  %v7266_v5 = vld [vmem:[#allocation5 + $0x9c] sm:$0xf]  ;;  %v8369_v14 = vor.u32 %v7269_v53, %v6410_v52 }
 0x139   :  { %1758 = vmatpush.bf16.msrb.mxu2 %v8264_v10  ;;  %1771 = vmatpush.bf16.msrb.mxu3 %v8266_v11  ;;  %10558 = vst [vmem:[#allocation74_spill] sm:$0xff] %v8320_v28  ;;  %v6412_v8 = vld [vmem:[#allocation5 + $0xb0] sm:$0xf0]  ;;  %v7314_v15 = vld [vmem:[#allocation5 + $0x21c] sm:$0xf]  ;;  %v8372_v26 = vor.u32 %v7317_v2, %v6602_v56 }
 0x13a   :  { %10559 = vst [vmem:[#allocation75_spill] sm:$0xff] %v8324_v35  ;;  %v6604_v21 = vld [vmem:[#allocation5 + $0x230] sm:$0xf0]  ;;  %v6386_v29 = vld [vmem:[#allocation5 + $0x68] sm:$0xf]  ;;  %v8375_v0 = vor.u32 %v7266_v5, %v6412_v8 }
 0x13b   :  { %10560 = vst [vmem:[#allocation76_spill] sm:$0xff] %v8328_v42  ;;  %v7263_v34 = vld [vmem:[#allocation5 + $0x7c] sm:$0xf0]  ;;  %v6578_v41 = vld [vmem:[#allocation5 + $0x1e8] sm:$0xf] }
 0x13c   :  { %1733 = vmatpush.bf16.msrb.mxu0 %v8270_v18  ;;  %1746 = vmatpush.bf16.msrb.mxu1 %v8272_v19  ;;  %10561 = vst [vmem:[#allocation77_spill] sm:$0xff] %v8332_v47  ;;  %v7311_v43 = vld [vmem:[#allocation5 + $0x1fc] sm:$0xf0]  ;;  %v7260_v52 = vld [vmem:[#allocation5 + $0x6c] sm:$0xf] }
 0x13d   :  { %1759 = vmatpush.bf16.msrb.mxu2 %v8276_v22  ;;  %1772 = vmatpush.bf16.msrb.mxu3 %v8278_v23  ;;  %10562 = vst [vmem:[#allocation78_spill] sm:$0xff] %v8336_v54  ;;  %v6388_v53 = vld [vmem:[#allocation5 + $0x80] sm:$0xf0]  ;;  %v7308_v56 = vld [vmem:[#allocation5 + $0x1ec] sm:$0xf] }
 0x13e   :  { %10563 = vst [vmem:[#allocation79_spill] sm:$0xff] %v8340_v57  ;;  %v6580_v2 = vld [vmem:[#allocation5 + $0x200] sm:$0xf0]  ;;  %v6362_v5 = vld [vmem:[#allocation5 + $0x38] sm:$0xf] }
 0x13f   :  { %10564 = vst [vmem:[#allocation80_spill] sm:$0xff] %v8344_v4  ;;  %v7257_v8 = vld [vmem:[#allocation5 + $0x4c] sm:$0xf0] }
 0x140   :  { %1734 = vmatpush.bf16.msrb.mxu0 %v8282_v30  ;;  %1747 = vmatpush.bf16.msrb.mxu1 %v8284_v31  ;;  %10565 = vst [vmem:[#allocation81_spill] sm:$0xff] %v8348_v9 }
 0x141   :  { %1760 = vmatpush.bf16.msrb.mxu2 %v8288_v38  ;;  %1773 = vmatpush.bf16.msrb.mxu3 %v8290_v39  ;;  %10566 = vst [vmem:[#allocation82_spill] sm:$0xff] %v8351_v20 }
 0x142   :  { %10567 = vst [vmem:[#allocation83_spill] sm:$0xff] %v8354_v27 }
 0x143   :  { %10568 = vst [vmem:[#allocation84_spill] sm:$0xff] %v8357_v40 }
 0x144   :  { %1735 = vmatpush.bf16.msrb.mxu0 %v8294_v50  ;;  %1748 = vmatpush.bf16.msrb.mxu1 %v8296_v51  ;;  %10569 = vst [vmem:[#allocation85_spill] sm:$0xff] %v8360_v46 }
 0x145   :  { %1761 = vmatpush.bf16.msrb.mxu2 %v8300_v55  ;;  %1774 = vmatpush.bf16.msrb.mxu3 %v8302_v60  ;;  %10570 = vst [vmem:[#allocation86_spill] sm:$0xff] %v8363_v61 }
 0x146   :  { %10571 = vst [vmem:[#allocation87_spill] sm:$0xff] %v8366_v3 }
 0x147   :  { %10572 = vst [vmem:[#allocation88_spill] sm:$0xff] %v8369_v14 }
 0x148   :  { %1736 = vmatpush.bf16.msrb.mxu0 %v8306_v12  ;;  %1749 = vmatpush.bf16.msrb.mxu1 %v8308_v13  ;;  %10573 = vst [vmem:[#allocation89_spill] sm:$0xff] %v8372_v26 }
 0x149   :  { %1762 = vmatpush.bf16.msrb.mxu2 %v8312_v16  ;;  %1775 = vmatpush.bf16.msrb.mxu3 %v8320_v28  ;;  %10574 = vst [vmem:[#allocation90_spill] sm:$0xff] %v8375_v0 }
 0x14b   :  { %1737 = vmatmul.bf16.vlgmr.msrb.gmra.mxu0 %v10203_v1  ;;  %1750 = vmatmul.bf16.vlgmr.msrb.gmra.mxu1 %v10203_v1 }
 0x14c   :  { %1781 = vmatpush.bf16.msra.mxu0 %v8314_v17  ;;  %1794 = vmatpush.bf16.msra.mxu1 %v8316_v24 }
 0x14d   :  { %1807 = vmatpush.bf16.msra.mxu2 %v8318_v25  ;;  %1820 = vmatpush.bf16.msra.mxu3 %v8324_v35 }
 0x14e   :  { %1763 = vmatmul.bf16.vlgmr.msrb.gmra.mxu2 %v10203_v1  ;;  %1776 = vmatmul.bf16.vlgmr.msrb.gmra.mxu3 %v10203_v1  ;;  %v8378_v1 = vor.u32 %v7314_v15, %v6604_v21  ;;  %v6554_v15 = vld [vmem:[#allocation5 + $0x1b8] sm:$0xf]  ;;  %v7305_v21 = vld [vmem:[#allocation5 + $0x1cc] sm:$0xf0] }
 0x150   :  { %1782 = vmatpush.bf16.msra.mxu0 %v8328_v42  ;;  %1795 = vmatpush.bf16.msra.mxu1 %v8332_v47  ;;  %10575 = vst [vmem:[#allocation91_spill] sm:$0xff] %v8378_v1 }
 0x151   :  { %1808 = vmatpush.bf16.msra.mxu2 %v8336_v54  ;;  %1821 = vmatpush.bf16.msra.mxu3 %v8340_v57  ;;  %v7291_v57 = vld [vmem:[#allocation5 + $0x164] sm:$0xf] }
 0x154   :  { %1783 = vmatpush.bf16.msra.mxu0 %v8344_v4  ;;  %1796 = vmatpush.bf16.msra.mxu1 %v8348_v9  ;;  %v7294_v9 = vld [vmem:[#allocation5 + $0x174] sm:$0xf0]  ;;  %v6532_v4 = vld [vmem:[#allocation5 + $0x1a0] sm:$0xf0] }
 0x155   :  { %1809 = vmatpush.bf16.msra.mxu2 %v8351_v20  ;;  %1822 = vmatpush.bf16.msra.mxu3 %v8354_v27  ;;  %v8381_v27 = vor.u32 %v7263_v34, %v6386_v29  ;;  %v7254_v29 = vld [vmem:[#allocation5 + $0x3c] sm:$0xf]  ;;  %v6364_v34 = vld [vmem:[#allocation5 + $0x50] sm:$0xf0]  ;;  %v7248_v20 = vld [vmem:[#allocation5 + $0xc] sm:$0xf] }
 0x157   :  { %10576 = vst [vmem:[#allocation92_spill] sm:$0xff] %v8381_v27 }
 0x158   :  { %1784 = vmatpush.bf16.msra.mxu0 %v8357_v40  ;;  %1797 = vmatpush.bf16.msra.mxu1 %v8360_v46  ;;  %v8384_v46 = vor.u32 %v7311_v43, %v6578_v41  ;;  %v6556_v41 = vld [vmem:[#allocation5 + $0x1d0] sm:$0xf0]  ;;  %v6338_v43 = vld [vmem:[#allocation5 + $0x8] sm:$0xf]  ;;  %v7251_v40 = vld [vmem:[#allocation5 + $0x1c] sm:$0xf0] }
 0x159   :  { %1810 = vmatpush.bf16.msra.mxu2 %v8363_v61  ;;  %1823 = vmatpush.bf16.msra.mxu3 %v8366_v3  ;;  %v8387_v61 = vor.u32 %v7260_v52, %v6388_v53  ;;  %v8390_v3 = vor.u32 %v7308_v56, %v6580_v2  ;;  %v8396_v52 = vor.u32 %v7305_v21, %v6554_v15  ;;  %v6530_v53 = vld [vmem:[#allocation5 + $0x188] sm:$0xf]  ;;  %v6340_v2 = vld [vmem:[#allocation5 + $0x20] sm:$0xf0]  ;;  %v6516_v21 = vld [vmem:[#allocation5 + $0x178] sm:$0xf0] }
 0x15a   :  { %10577 = vst [vmem:[#allocation93_spill] sm:$0xff] %v8384_v46  ;;  %v8399_v56 = vor.u32 %v7254_v29, %v6364_v34  ;;  %v8405_v15 = vor.u32 %v7251_v40, %v6338_v43  ;;  %v8418_v40 = vor.u32 %v7291_v57, %v6516_v21 }
 0x15b   :  { %10578 = vst [vmem:[#allocation94_spill] sm:$0xff] %v8387_v61 }
 0x15c   :  { %1785 = vmatpush.bf16.msra.mxu0 %v8369_v14  ;;  %1798 = vmatpush.bf16.msra.mxu1 %v8372_v26  ;;  %10579 = vst [vmem:[#allocation95_spill] sm:$0xff] %v8390_v3  ;;  %v7302_v14 = vld [vmem:[#allocation5 + $0x1bc] sm:$0xf]  ;;  %v8393_v26 = vor.u32 %v7257_v8, %v6362_v5  ;;  %v6706_v8 = vld [vmem:[#allocation5 + $0x2e0] sm:$0xf] }
 0x15d   :  { %1811 = vmatpush.bf16.msra.mxu2 %v8375_v0  ;;  %1824 = vmatpush.bf16.msra.mxu3 %v8378_v1  ;;  %10581 = vst [vmem:[#allocation97_spill] sm:$0xff] %v8396_v52  ;;  %v7299_v0 = vld [vmem:[#allocation5 + $0x19c] sm:$0xf0]  ;;  %v8402_v5 = vor.u32 %v7302_v14, %v6556_v41  ;;  %v8413_v14 = vor.u32 %v7248_v20, %v6340_v2  ;;  %v7333_v20 = vld [vmem:[#allocation5 + $0x2b4] sm:$0xf] }
 0x15e   :  { %10580 = vst [vmem:[#allocation96_spill] sm:$0xff] %v8393_v26  ;;  %v6514_v1 = vld [vmem:[#allocation5 + $0x160] sm:$0xf]  ;;  %v8408_v29 = vor.u32 %v7299_v0, %v6530_v53  ;;  %v6682_v0 = vld [vmem:[#allocation5 + $0x2b0] sm:$0xf] }
 0x15f   :  { %10582 = vst [vmem:[#allocation98_spill] sm:$0xff] %v8399_v56  ;;  %v8410_v34 = vor.u32 %v7294_v9, %v6514_v1  ;;  %v7336_v9 = vld [vmem:[#allocation5 + $0x2c4] sm:$0xf0]  ;;  %v7285_v53 = vld [vmem:[#allocation5 + $0x134] sm:$0xf] }
 0x160   :  { %1786 = vmatpush.bf16.msra.mxu0 %v8381_v27  ;;  %1799 = vmatpush.bf16.msra.mxu1 %v8384_v46  ;;  %10583 = vst [vmem:[#allocation99_spill] sm:$0xff] %v8402_v5  ;;  %v7342_v27 = vld [vmem:[#allocation5 + $0x2f4] sm:$0xf0]  ;;  %v7296_v46 = vld [vmem:[#allocation5 + $0x18c] sm:$0xf] }
 0x161   :  { %1812 = vmatpush.bf16.msra.mxu2 %v8387_v61  ;;  %1825 = vmatpush.bf16.msra.mxu3 %v8390_v3  ;;  %10584 = vst [vmem:[#allocation100_spill] sm:$0xff] %v8405_v15  ;;  %v7339_v61 = vld [vmem:[#allocation5 + $0x2e4] sm:$0xf]  ;;  %v6708_v3 = vld [vmem:[#allocation5 + $0x2f8] sm:$0xf0]  ;;  %v8415_v41 = vor.u32 %v7342_v27, %v6706_v8  ;;  %v8420_v43 = vor.u32 %v7296_v46, %v6532_v4  ;;  %v10595_v8 = vmov 0  }
 0x162   :  { %10585 = vst [vmem:[#allocation101_spill] sm:$0xff] %v8408_v29  ;;  %v8423_v1 = vor.u32 %v7339_v61, %v6708_v3  ;;  %v6684_v27 = vld [vmem:[#allocation5 + $0x2c8] sm:$0xf0]  ;;  %v8433_v4 = vor.u32 %v7336_v9, %v6682_v0  ;;  %v6466_v61 = vld [vmem:[#allocation5 + $0x100] sm:$0xf] }
 0x163   :  { %10586 = vst [vmem:[#allocation102_spill] sm:$0xff] %v8410_v34  ;;  %v7282_v3 = vld [vmem:[#allocation5 + $0x114] sm:$0xf0]  ;;  %v6658_v2 = vld [vmem:[#allocation5 + $0x280] sm:$0xf]  ;;  %v8439_v21 = vor.u32 %v7333_v20, %v6684_v27 }
 0x164   :  { %1787 = vmatpush.bf16.msra.mxu0 %v8393_v26  ;;  %1800 = vmatpush.bf16.msra.mxu1 %v8396_v52  ;;  %10587 = vst [vmem:[#allocation103_spill] sm:$0xff] %v8413_v14  ;;  %v6490_v26 = vld [vmem:[#allocation5 + $0x130] sm:$0xf]  ;;  %v7288_v52 = vld [vmem:[#allocation5 + $0x144] sm:$0xf0] }
 0x165   :  { %1813 = vmatpush.bf16.msra.mxu2 %v8399_v56  ;;  %10588 = vst [vmem:[#allocation104_spill] sm:$0xff] %v8415_v41  ;;  %1826 = vmatpush.bf16.msra.mxu3 %v8402_v5  ;;  %v6492_v56 = vld [vmem:[#allocation5 + $0x148] sm:$0xf0]  ;;  %v8429_v57 = vor.u32 %v7288_v52, %v6490_v26  ;;  %v7279_v26 = vld [vmem:[#allocation5 + $0x104] sm:$0xf] }
 0x166   :  { %10589 = vst [vmem:[#allocation105_spill] sm:$0xff] %v8418_v40  ;;  %v8435_v46 = vor.u32 %v7285_v53, %v6492_v56  ;;  %v6468_v52 = vld [vmem:[#allocation5 + $0x118] sm:$0xf0]  ;;  %v7327_v0 = vld [vmem:[#allocation5 + $0x284] sm:$0xf]  ;;  %v8445_v56 = vor.u32 %v7282_v3, %v6466_v61 }
 0x167   :  { %10590 = vst [vmem:[#allocation106_spill] sm:$0xff] %v8420_v43  ;;  %v6660_v9 = vld [vmem:[#allocation5 + $0x298] sm:$0xf0]  ;;  %v8451_v20 = vor.u32 %v7279_v26, %v6468_v52  ;;  %v6442_v27 = vld [vmem:[#allocation5 + $0xd0] sm:$0xf] }
 0x168   :  { %1788 = vmatpush.bf16.msra.mxu0 %v8405_v15  ;;  %10591 = vst [vmem:[#allocation107_spill] sm:$0xff] %v8423_v1  ;;  %1801 = vmatpush.bf16.msra.mxu1 %v8408_v29  ;;  %v7321_v61 = vld [vmem:[#allocation5 + $0x254] sm:$0xf]  ;;  %v6636_v3 = vld [vmem:[#allocation5 + $0x268] sm:$0xf0] }
 0x169   :  { %1814 = vmatpush.bf16.msra.mxu2 %v8413_v14  ;;  %10592 = vst [vmem:[#allocation108_spill] sm:$0xff] %v8429_v57  ;;  %1827 = vmatpush.bf16.msra.mxu3 %v8420_v43  ;;  %v7324_v43 = vld [vmem:[#allocation5 + $0x264] sm:$0xf0]  ;;  %v7273_v14 = vld [vmem:[#allocation5 + $0xd4] sm:$0xf] }
 0x16a   :  { %10593 = vst [vmem:[#allocation109_spill] sm:$0xff] %v8433_v4  ;;  %v6418_v26 = vld [vmem:[#allocation5 + $0xa0] sm:$0xf]  ;;  %v7270_v52 = vld [vmem:[#allocation5 + $0xb4] sm:$0xf0] }
 0x16b   :  { %10594 = vst [vmem:[#allocation110_spill] sm:$0xff] %v8435_v46  ;;  %1789 = vmatmul.bf16.vlgmr.msra.gmra.mxu0 %v10595_v8  ;;  %1802 = vmatmul.bf16.vlgmr.msra.gmra.mxu1 %v10595_v8 }
 0x16c   :  { %1833 = vmatpush.bf16.msrb.mxu0 %v8410_v34  ;;  %1846 = vmatpush.bf16.msrb.mxu1 %v8415_v41  ;;  %10596 = vst [vmem:[#allocation111_spill] sm:$0xff] %v8439_v21  ;;  %v7330_v41 = vld [vmem:[#allocation5 + $0x294] sm:$0xf0]  ;;  %v8454_v34 = vor.u32 %v7327_v0, %v6660_v9  ;;  %v6610_v0 = vld [vmem:[#allocation5 + $0x220] sm:$0xf]  ;;  %v8466_v9 = vor.u32 %v7321_v61, %v6636_v3 }
 0x16d   :  { %1859 = vmatpush.bf16.msrb.mxu2 %v8418_v40  ;;  %1872 = vmatpush.bf16.msrb.mxu3 %v8423_v1  ;;  %10597 = vst [vmem:[#allocation112_spill] sm:$0xff] %v8445_v56  ;;  %v8449_v53 = vor.u32 %v7330_v41, %v6658_v2  ;;  %v7276_v1 = vld [vmem:[#allocation5 + $0xe4] sm:$0xf0]  ;;  %v6634_v40 = vld [vmem:[#allocation5 + $0x250] sm:$0xf] }
 0x16e   :  { %1815 = vmatmul.bf16.vlgmr.msra.gmra.mxu2 %v10595_v8  ;;  %1828 = vmatmul.bf16.vlgmr.msra.gmra.mxu3 %v10595_v8  ;;  %10599 = vst [vmem:[#allocation114_spill] sm:$0xff] %v8451_v20  ;;  %v8461_v41 = vor.u32 %v7324_v43, %v6634_v40  ;;  %v6394_v43 = vld [vmem:[#allocation5 + $0x70] sm:$0xf] }
 0x16f   :  { %10598 = vst [vmem:[#allocation113_spill] sm:$0xff] %v8449_v53  ;;  %v6586_v61 = vld [vmem:[#allocation5 + $0x1f0] sm:$0xf] }
 0x170   :  { %1834 = vmatpush.bf16.msrb.mxu0 %v8429_v57  ;;  %1847 = vmatpush.bf16.msrb.mxu1 %v8433_v4  ;;  %10600 = vst [vmem:[#allocation115_spill] sm:$0xff] %v8454_v34  ;;  %v6444_v57 = vld [vmem:[#allocation5 + $0xe8] sm:$0xf0]  ;;  %v8457_v4 = vor.u32 %v7276_v1, %v6442_v27  ;;  %v7315_v1 = vld [vmem:[#allocation5 + $0x224] sm:$0xf] }
 0x171   :  { %1860 = vmatpush.bf16.msrb.mxu2 %v8435_v46  ;;  %1873 = vmatpush.bf16.msrb.mxu3 %v8439_v21  ;;  %10602 = vst [vmem:[#allocation117_spill] sm:$0xff] %v8461_v41  ;;  %v8463_v2 = vor.u32 %v7273_v14, %v6444_v57  ;;  %v7318_v21 = vld [vmem:[#allocation5 + $0x234] sm:$0xf0]  ;;  %v7267_v46 = vld [vmem:[#allocation5 + $0xa4] sm:$0xf] }
 0x172   :  { %10601 = vst [vmem:[#allocation116_spill] sm:$0xff] %v8457_v4  ;;  %v6612_v27 = vld [vmem:[#allocation5 + $0x238] sm:$0xf0]  ;;  %v8473_v14 = vor.u32 %v7318_v21, %v6610_v0  ;;  %v7264_v57 = vld [vmem:[#allocation5 + $0x84] sm:$0xf0] }
 0x173   :  { %10603 = vst [vmem:[#allocation118_spill] sm:$0xff] %v8463_v2  ;;  %v8478_v3 = vor.u32 %v7315_v1, %v6612_v27  ;;  %v7258_v0 = vld [vmem:[#allocation5 + $0x54] sm:$0xf0]  ;;  %v6562_v1 = vld [vmem:[#allocation5 + $0x1c0] sm:$0xf] }
 0x174   :  { %1835 = vmatpush.bf16.msrb.mxu0 %v8445_v56  ;;  %1848 = vmatpush.bf16.msrb.mxu1 %v8449_v53  ;;  %10604 = vst [vmem:[#allocation119_spill] sm:$0xff] %v8466_v9  ;;  %v6420_v56 = vld [vmem:[#allocation5 + $0xb8] sm:$0xf0]  ;;  %v8469_v53 = vor.u32 %v7270_v52, %v6418_v26  ;;  %v7309_v26 = vld [vmem:[#allocation5 + $0x1f4] sm:$0xf] }
 0x175   :  { %1861 = vmatpush.bf16.msrb.mxu2 %v8451_v20  ;;  %1874 = vmatpush.bf16.msrb.mxu3 %v8454_v34  ;;  %10606 = vst [vmem:[#allocation121_spill] sm:$0xff] %v8473_v14  ;;  %v8475_v40 = vor.u32 %v7267_v46, %v6420_v56  ;;  %v7312_v34 = vld [vmem:[#allocation5 + $0x204] sm:$0xf0]  ;;  %v7261_v20 = vld [vmem:[#allocation5 + $0x74] sm:$0xf] }
 0x176   :  { %10605 = vst [vmem:[#allocation120_spill] sm:$0xff] %v8469_v53  ;;  %v6588_v52 = vld [vmem:[#allocation5 + $0x208] sm:$0xf0]  ;;  %v8485_v46 = vor.u32 %v7312_v34, %v6586_v61  ;;  %v6370_v56 = vld [vmem:[#allocation5 + $0x40] sm:$0xf] }
 0x177   :  { %10607 = vst [vmem:[#allocation122_spill] sm:$0xff] %v8475_v40  ;;  %v8490_v27 = vor.u32 %v7309_v26, %v6588_v52  ;;  %v7252_v61 = vld [vmem:[#allocation5 + $0x24] sm:$0xf0]  ;;  %v6538_v26 = vld [vmem:[#allocation5 + $0x190] sm:$0xf]  ;;  %v1221_v52 = vpop.permute.xlu2 %1220 }
 0x178   :  { %1836 = vmatpush.bf16.msrb.mxu0 %v8457_v4  ;;  %1849 = vmatpush.bf16.msrb.mxu1 %v8461_v41  ;;  %10608 = vst [vmem:[#allocation123_spill] sm:$0xff] %v8478_v3  ;;  %v6396_v4 = vld [vmem:[#allocation5 + $0x88] sm:$0xf0]  ;;  %v8481_v41 = vor.u32 %v7264_v57, %v6394_v43  ;;  %v7303_v43 = vld [vmem:[#allocation5 + $0x1c4] sm:$0xf] }
 0x179   :  { %1862 = vmatpush.bf16.msrb.mxu2 %v8463_v2  ;;  %1875 = vmatpush.bf16.msrb.mxu3 %v8466_v9  ;;  %10610 = vst [vmem:[#allocation125_spill] sm:$0xff] %v8485_v46  ;;  %v8487_v21 = vor.u32 %v7261_v20, %v6396_v4  ;;  %v7306_v9 = vld [vmem:[#allocation5 + $0x1d4] sm:$0xf0]  ;;  %v7255_v2 = vld [vmem:[#allocation5 + $0x44] sm:$0xf] }
 0x17a   :  { %10609 = vst [vmem:[#allocation124_spill] sm:$0xff] %v8481_v41  ;;  %v6564_v57 = vld [vmem:[#allocation5 + $0x1d8] sm:$0xf0]  ;;  %v8497_v34 = vor.u32 %v7306_v9, %v6562_v1  ;;  %v6346_v20 = vld [vmem:[#allocation5 + $0x10] sm:$0xf] }
 0x17b   :  { %10611 = vst [vmem:[#allocation126_spill] sm:$0xff] %v8487_v21  ;;  %v6540_v9 = vld [vmem:[#allocation5 + $0x1a8] sm:$0xf0] }
 0x17c   :  { %1837 = vmatpush.bf16.msrb.mxu0 %v8469_v53  ;;  %1850 = vmatpush.bf16.msrb.mxu1 %v8473_v14  ;;  %10612 = vst [vmem:[#allocation127_spill] sm:$0xff] %v8490_v27  ;;  %v6372_v53 = vld [vmem:[#allocation5 + $0x58] sm:$0xf0]  ;;  %v8493_v14 = vor.u32 %v7258_v0, %v6370_v56  ;;  %v7300_v56 = vld [vmem:[#allocation5 + $0x1a4] sm:$0xf0] }
 0x17d   :  { %1863 = vmatpush.bf16.msrb.mxu2 %v8475_v40  ;;  %1876 = vmatpush.bf16.msrb.mxu3 %v8478_v3  ;;  %10614 = vst [vmem:[#allocation129_spill] sm:$0xff] %v8497_v34  ;;  %v8499_v4 = vor.u32 %v7255_v2, %v6372_v53  ;;  %v8502_v3 = vor.u32 %v7303_v43, %v6564_v57  ;;  %v7249_v0 = vld [vmem:[#allocation5 + $0x14] sm:$0xf]  ;;  %v1216_v43 = vld [vmem:[%s8028_s6] sm:$0x3]  ;;  %s7952_s6 = smov 32  }
 0x17e   :  { %10613 = vst [vmem:[#allocation128_spill] sm:$0xff] %v8493_v14  ;;  %v8505_v53 = vor.u32 %v7252_v61, %v6346_v20  ;;  %v8509_v2 = vor.u32 %v7300_v56, %v6538_v26  ;;  %v8525_v20 = vld [vmem:[%s8013_s19] sm:$0x3f]  ;;  %v1223_v61 = vperm.slane %v1216_v43, 0  ;;  %s10713_s19 = sld [smem:[#allocation21_spill]] }
 0x17f   :  { %10615 = vst [vmem:[#allocation130_spill] sm:$0xff] %v8499_v4  ;;  %v8538_v26 = vld [vmem:[%s8068_s29] sm:$0xff]  ;;  %v1227_v56 = vpop.permute.xlu2 %1226 }
 0x180   :  { %1838 = vmatpush.bf16.msrb.mxu0 %v8481_v41  ;;  %1851 = vmatpush.bf16.msrb.mxu1 %v8485_v46  ;;  %10616 = vst [vmem:[#allocation131_spill] sm:$0xff] %v8502_v3  ;;  %v6348_v46 = vld [vmem:[#allocation5 + $0x28] sm:$0xf0] }
 0x181   :  { %1864 = vmatpush.bf16.msrb.mxu2 %v8487_v21  ;;  %1877 = vmatpush.bf16.msrb.mxu3 %v8490_v27  ;;  %v7297_v21 = vld [vmem:[#allocation5 + $0x194] sm:$0xf]  ;;  %10617 = vst [vmem:[#allocation132_spill] sm:$0xff] %v8505_v53  ;;  %v8511_v1 = vor.u32 %v7249_v0, %v6348_v46  ;;  %v8518_v27 = vld [vmem:[%s8048_s4 + $0x8] sm:$0xff]  ;;  %v8532_v46 = vld [vmem:[%s8048_s4] sm:$0xff]  ;;  %v1224_v0 = vmul.f32 %v1223_v61, %v1221_v52 }
 0x182   :  { %v8515_v57 = vor.u32 %v7297_v21, %v6540_v9  ;;  %10621 = vst [vmem:[#allocation136_spill] sm:$0xff] %v8525_v20  ;;  %v10300_v21 = vperm.slane %v8525_v20, 0 }
 0x183   :  { %10618 = vst [vmem:[#allocation133_spill] sm:$0xff] %v8511_v1 }
 0x184   :  { %1839 = vmatpush.bf16.msrb.mxu0 %v8493_v14  ;;  %1852 = vmatpush.bf16.msrb.mxu1 %v8497_v34  ;;  %10619 = vst [vmem:[#allocation134_spill] sm:$0xff] %v8515_v57  ;;  %v8521_v14 = vld [vmem:[%s8068_s29 + $0x8] sm:$0xff]  ;;  %v1229_v34 = vperm.slane %v1216_v43, 1 }
 0x185   :  { %1865 = vmatpush.bf16.msrb.mxu2 %v8499_v4  ;;  %1878 = vmatpush.bf16.msrb.mxu3 %v8502_v3  ;;  %10620 = vst [vmem:[#allocation135_spill] sm:$0xff] %v8521_v14 }
 0x186   :  { %10622 = vst [vmem:[#allocation137_spill] sm:$0xff] %v8538_v26  ;;  %v1230_v9 = vmul.f32 %v1229_v34, %v1227_v56  ;;  %v7500_v34 = vld [vmem:[%s8033_s12] ss:$0 sm:$0xff]  ;;  %v10302_v56 = vperm.slane %v8525_v20, 1  ;;  %s7953_s12 = smov 96  }
 0x187   :  { %v899_v43 = vpop.f32.mrf.mxu0 }
 0x188   :  { %1840 = vmatpush.bf16.msrb.mxu0 %v8505_v53  ;;  %1853 = vmatpush.bf16.msrb.mxu1 %v8509_v2  ;;  %v1231_v52 = vadd.f32 %v1230_v9, %v1224_v0 }
 0x189   :  { %1866 = vmatpush.bf16.msrb.mxu2 %v8511_v1  ;;  %1879 = vmatpush.bf16.msrb.mxu3 %v8515_v57  ;;  %v913_v57 = vpop.f32.mrf.mxu1 }
 0x18b   :  { %1841 = vmatmul.bf16.vlgmr.msrb.gmra.mxu0 %v10595_v8  ;;  %1854 = vmatmul.bf16.vlgmr.msrb.gmra.mxu1 %v10595_v8 }
 0x18c   :  { %2005 = vmatpush.bf16.msra.mxu0 %v8518_v27  ;;  %2079 = vmatpush.bf16.msra.mxu1 %v8521_v14  ;;  %v900_v14 = vadd.f32 %v899_v43, %v10300_v21  ;;  %v8559_v43 = vadd.f32 %v7500_v34, %v1231_v52 }
 0x18d   :  { %1867 = vmatmul.bf16.vlgmr.msrb.gmra.mxu2 %v10595_v8  ;;  %1880 = vmatmul.bf16.vlgmr.msrb.gmra.mxu3 %v10595_v8 }
 0x18e   :  { %2129 = vmatpush.bf16.msra.mxu2 %v8220_v32  ;;  %2142 = vmatpush.bf16.msra.mxu3 %v8222_v33  ;;  %v8552_v61 = vadd.f32 %v913_v57, %v900_v14  ;;  %10624 = vst [vmem:[#allocation139_spill] sm:$0xff] %v8559_v43  ;;  %v927_v21 = vpop.f32.mrf.mxu2  ;;  %v1979_v34 = vpack.c.bf16 %v8559_v43, %v8559_v43  ;;  %v10638_v43 = vld [vmem:[#allocation81_spill] sm:$0xff] }
 0x18f   :  { %v928_v14 = vadd.f32 %v927_v21, %v10302_v56  ;;  %v8564_v57 = vpop.f32.mrf.mxu0  ;;  %v10303_v21 = vperm.slane %v8525_v20, 2 }
 0x190   :  { %2006 = vmatpush.bf16.msra.mxu0 %v8532_v46  ;;  %2080 = vmatpush.bf16.msra.mxu1 %v8538_v26  ;;  %10623 = vst [vmem:[#allocation138_spill] sm:$0xff] %v8552_v61  ;;  %v941_v26 = vpop.f32.mrf.mxu3 }
 0x191   :  { %10625 = vst [vmem:[#allocation140_spill] sm:$0xff] %v8564_v57  ;;  %v8566_v0 = vpop.f32.mrf.mxu1  ;;  %v8570_v9 = vadd.f32 %v941_v26, %v928_v14 }
 0x192   :  { %2130 = vmatpush.bf16.msra.mxu2 %v8230_v44  ;;  %2143 = vmatpush.bf16.msra.mxu3 %v8232_v45  ;;  %10626 = vst [vmem:[#allocation141_spill] sm:$0xff] %v8566_v0 }
 0x193   :  { %10627 = vst [vmem:[#allocation142_spill] sm:$0xff] %v8570_v9 }
 0x194   :  { %2155 = vmatpush.bf16.msrb.mxu0 %v8224_v36  ;;  %2168 = vmatpush.bf16.msrb.mxu1 %v8226_v37 }
 0x196   :  { %2131 = vmatpush.bf16.msra.mxu2 %v8246_v58  ;;  %2144 = vmatpush.bf16.msra.mxu3 %v8248_v59  ;;  %v8581_v26 = vpop.f32.mrf.mxu2 }
 0x197   :  { %10628 = vst [vmem:[#allocation143_spill] sm:$0xff] %v8581_v26  ;;  %v955_v14 = vpop.f32.mrf.mxu0  ;;  %v1059_v26 = vld [vmem:[%s7968_s9 + $0x8] sm:$0xf]  ;;  %s10673_s9 = sld [smem:[#allocation22_spill]] }
 0x198   :  { %2156 = vmatpush.bf16.msrb.mxu0 %v8236_v48  ;;  %2169 = vmatpush.bf16.msrb.mxu1 %v8238_v49  ;;  %v8583_v52 = vpop.f32.mrf.mxu3 }
 0x199   :  { %10629 = vst [vmem:[#allocation144_spill] sm:$0xff] %v8583_v52  ;;  %v969_v56 = vpop.f32.mrf.mxu1  ;;  %v10304_v52 = vperm.slane %v8525_v20, 3  ;;  %1069 = vperm.xlu1 %7496, %v1059_v26   ;;  %1080 = vperm.xlu0 %7497, %v1059_v26  }
 0x19a   :  { %2132 = vmatpush.bf16.msra.mxu2 %v8258_v6  ;;  %2145 = vmatpush.bf16.msra.mxu3 %v8260_v7 }
 0x19b   :  { %6724 = vmatmul.msk.bf16.vlgmr.msra.gmra.mxu0 %vm1995_vm0, %v1979_v34  ;;  %2081 = vmatmul.bf16.vlgmr.msra.gmra.mxu1 %v10595_v8  ;;  %v956_v34 = vadd.f32 %v955_v14, %v10303_v21 }
 0x19c   :  { %2157 = vmatpush.bf16.msrb.mxu0 %v8252_v62  ;;  %2170 = vmatpush.bf16.msrb.mxu1 %v8254_v63 }
 0x19d   :  { %v8591_v8 = vadd.f32 %v969_v56, %v956_v34 }
 0x19e   :  { %2133 = vmatpush.bf16.msra.mxu2 %v8270_v18  ;;  %2146 = vmatpush.bf16.msra.mxu3 %v8272_v19  ;;  %v983_v0 = vpop.f32.mrf.mxu2 }
 0x19f   :  { %10630 = vst [vmem:[#allocation145_spill] sm:$0xff] %v8591_v8  ;;  %v984_v56 = vadd.f32 %v983_v0, %v10304_v52  ;;  %v8603_v14 = vpop.f32.mrf.mxu0 }
 0x1a0   :  { %2158 = vmatpush.bf16.msrb.mxu0 %v8264_v10  ;;  %2171 = vmatpush.bf16.msrb.mxu1 %v8266_v11  ;;  %v997_v57 = vpop.f32.mrf.mxu3  ;;  %10631 = vst [vmem:[#allocation146_spill] sm:$0xff] %v8603_v14  ;;  %v10637_v14 = vld [vmem:[#allocation79_spill] sm:$0xff] }
 0x1a1   :  { %v8606_v34 = vadd.f32 %v997_v57, %v984_v56  ;;  %v8608_v21 = vpop.f32.mrf.mxu1  ;;  %v10314_v57 = vperm.slane %v8525_v20, 4 }
 0x1a2   :  { %2134 = vmatpush.bf16.msra.mxu2 %v8282_v30  ;;  %2147 = vmatpush.bf16.msra.mxu3 %v8284_v31  ;;  %10633 = vst [vmem:[#allocation148_spill] sm:$0xff] %v8608_v21  ;;  %v10636_v21 = vld [vmem:[#allocation80_spill] sm:$0xff] }
 0x1a3   :  { %10632 = vst [vmem:[#allocation147_spill] sm:$0xff] %v8606_v34 }
 0x1a4   :  { %2159 = vmatpush.bf16.msrb.mxu0 %v8276_v22  ;;  %2172 = vmatpush.bf16.msrb.mxu1 %v8278_v23 }
 0x1a6   :  { %2135 = vmatpush.bf16.msra.mxu2 %v8294_v50  ;;  %2148 = vmatpush.bf16.msra.mxu3 %v8296_v51  ;;  %v8617_v0 = vpop.f32.mrf.mxu2 }
 0x1a7   :  { %10634 = vst [vmem:[#allocation149_spill] sm:$0xff] %v8617_v0 }
 0x1a8   :  { %2160 = vmatpush.bf16.msrb.mxu0 %v8288_v38  ;;  %2173 = vmatpush.bf16.msrb.mxu1 %v8290_v39  ;;  %v8624_v26 = vpop.f32.mrf.mxu3  ;;  %v1011_v56 = vpop.f32.mrf.mxu0 }
 0x1a9   :  { %10635 = vst [vmem:[#allocation150_spill] sm:$0xff] %v8624_v26  ;;  %v1012_v52 = vadd.f32 %v1011_v56, %v10314_v57  ;;  %v1025_v0 = vpop.f32.mrf.mxu1  ;;  %v10639_v26 = vld [vmem:[#allocation82_spill] sm:$0xff]  ;;  %v10642_v57 = vld [vmem:[#allocation85_spill] sm:$0xff] }
 0x1aa   :  { %2136 = vmatpush.bf16.msra.mxu2 %v8306_v12  ;;  %2149 = vmatpush.bf16.msra.mxu3 %v8308_v13 }
 0x1ac   :  { %2161 = vmatpush.bf16.msrb.mxu0 %v8300_v55  ;;  %2174 = vmatpush.bf16.msrb.mxu1 %v8302_v60 }
 0x1ae   :  { %2181 = vmatpush.bf16.msrb.mxu2 %v8314_v17  ;;  %2194 = vmatpush.bf16.msrb.mxu3 %v8316_v24 }
 0x1b0   :  { %2162 = vmatpush.bf16.msrb.mxu0 %v8312_v16  ;;  %2175 = vmatpush.bf16.msrb.mxu1 %v8320_v28  ;;  %v10640_v28 = vld [vmem:[#allocation84_spill] sm:$0xff] }
 0x1b1   :  { %v1039_v56 = vpop.f32.mrf.mxu2 }
 0x1b2   :  { %2182 = vmatpush.bf16.msrb.mxu2 %v8328_v42  ;;  %2195 = vmatpush.bf16.msrb.mxu3 %v8332_v47  ;;  %v10641_v47 = vld [vmem:[#allocation83_spill] sm:$0xff] }
 0x1b4   :  { %2207 = vmatpush.bf16.msra.mxu0 %v8318_v25  ;;  %2220 = vmatpush.bf16.msra.mxu1 %v8324_v35  ;;  %v8632_v25 = vadd.f32 %v1025_v0, %v1012_v52  ;;  %v10319_v35 = vperm.slane %v8525_v20, 5  ;;  %v10644_v0 = vld [vmem:[#allocation88_spill] sm:$0xff]  ;;  %v10651_v20 = vld [vmem:[#allocation93_spill] sm:$0xff] }
 0x1b6   :  { %2183 = vmatpush.bf16.msrb.mxu2 %v10636_v21  ;;  %2196 = vmatpush.bf16.msrb.mxu3 %v10638_v43  ;;  %v1053_v21 = vpop.f32.mrf.mxu3  ;;  %v10645_v43 = vld [vmem:[#allocation87_spill] sm:$0xff] }
 0x1b8   :  { %2208 = vmatpush.bf16.msra.mxu0 %v8336_v54  ;;  %2221 = vmatpush.bf16.msra.mxu1 %v10637_v14  ;;  %v1040_v54 = vadd.f32 %v1039_v56, %v10319_v35  ;;  %v10643_v14 = vld [vmem:[#allocation86_spill] sm:$0xff]  ;;  %v10653_v35 = vld [vmem:[#allocation96_spill] sm:$0xff] }
 0x1b9   :  { %v10652_v56 = vld [vmem:[#allocation94_spill] sm:$0xff] }
 0x1ba   :  { %2184 = vmatpush.bf16.msrb.mxu2 %v10640_v28  ;;  %2197 = vmatpush.bf16.msrb.mxu3 %v10642_v57  ;;  %v8643_v52 = vadd.f32 %v1053_v21, %v1040_v54  ;;  %v10647_v28 = vld [vmem:[#allocation90_spill] sm:$0xff]  ;;  %v10650_v57 = vld [vmem:[#allocation91_spill] sm:$0xff]  ;;  %v10655_v21 = vld [vmem:[#allocation97_spill] sm:$0xff] }
 0x1bb   :  { %v10654_v54 = vld [vmem:[#allocation95_spill] sm:$0xff] }
 0x1bc   :  { %2209 = vmatpush.bf16.msra.mxu0 %v10639_v26  ;;  %2222 = vmatpush.bf16.msra.mxu1 %v10641_v47  ;;  %v10646_v26 = vld [vmem:[#allocation89_spill] sm:$0xff]  ;;  %v10648_v47 = vld [vmem:[#allocation92_spill] sm:$0xff] }
 0x1be   :  { %2185 = vmatpush.bf16.msrb.mxu2 %v10644_v0  ;;  %2198 = vmatpush.bf16.msrb.mxu3 %v10646_v26 }
 0x1c0   :  { %2210 = vmatpush.bf16.msra.mxu0 %v10643_v14  ;;  %2223 = vmatpush.bf16.msra.mxu1 %v10645_v43  ;;  %v8656_v14 = vpop.f32.mrf.mxu0  ;;  %v10657_v43 = vld [vmem:[#allocation98_spill] sm:$0xff] }
 0x1c1   :  { %10656 = vst [vmem:[#allocation151_spill] sm:$0xff] %v8656_v14  ;;  %v8671_v14 = vpop.f32.mrf.mxu3 }
 0x1c2   :  { %2186 = vmatpush.bf16.msrb.mxu2 %v10648_v47  ;;  %2199 = vmatpush.bf16.msrb.mxu3 %v10651_v20  ;;  %v8667_v20 = vld [vmem:[%s10649_s5] sm:$0x3f]  ;;  %10662 = vst [vmem:[#allocation154_spill] sm:$0xff] %v8671_v14  ;;  %s7954_s5 = smov [#allocation10]  }
 0x1c4   :  { %2211 = vmatpush.bf16.msra.mxu0 %v10647_v28  ;;  %2224 = vmatpush.bf16.msra.mxu1 %v10650_v57  ;;  %v8661_v28 = vpop.f32.mrf.mxu1  ;;  %v10659_v57 = vld [vmem:[#allocation103_spill] sm:$0xff] }
 0x1c5   :  { %10658 = vst [vmem:[#allocation152_spill] sm:$0xff] %v8661_v28 }
 0x1c6   :  { %2187 = vmatpush.bf16.msrb.mxu2 %v10653_v35  ;;  %2200 = vmatpush.bf16.msrb.mxu3 %v10655_v21 }
 0x1c8   :  { %2212 = vmatpush.bf16.msra.mxu0 %v10652_v56  ;;  %2225 = vmatpush.bf16.msra.mxu1 %v10654_v54  ;;  %v10660_v56 = vld [vmem:[#allocation106_spill] sm:$0xff]  ;;  %v8669_v54 = vpop.f32.mrf.mxu2  ;;  %v1738_v21 = vpop.f32.mrf.mxu0 }
 0x1c9   :  { %10661 = vst [vmem:[#allocation153_spill] sm:$0xff] %v8669_v54 }
 0x1ca   :  { %2188 = vmatpush.bf16.msrb.mxu2 %v8405_v15  ;;  %2201 = vmatpush.bf16.msrb.mxu3 %v8408_v29 }
 0x1cc   :  { %2213 = vmatpush.bf16.msra.mxu0 %v10657_v43  ;;  %2226 = vmatpush.bf16.msra.mxu1 %v8402_v5  ;;  %v8674_v43 = vperm.slane %v8667_v20, 0  ;;  %v1751_v15 = vpop.f32.mrf.mxu1 }
 0x1ce   :  { %10663 = vst [vmem:[#allocation155_spill] sm:$0xff] %v8674_v43  ;;  %v1739_v5 = vadd.f32 %v1738_v21, %v8674_v43 }
 0x1d0   :  { %2214 = vmatpush.bf16.msra.mxu0 %v10659_v57  ;;  %2227 = vmatpush.bf16.msra.mxu1 %v10660_v56  ;;  %v1740_v35 = vpop.f32.mrf.mxu0  ;;  %v1752_v29 = vadd.f32 %v1751_v15, %v1739_v5  ;;  %v8678_v57 = vperm.slane %v8667_v20, 1 }
 0x1d1   :  { %v1764_v28 = vpop.f32.mrf.mxu2  ;;  %v1777_v56 = vpop.f32.mrf.mxu3  ;;  %v8684_v35 = vperm.slane %v8667_v20, 2 }
 0x1d2   :  { %10664 = vst [vmem:[#allocation156_spill] sm:$0xff] %v8678_v57  ;;  %v1885_v47 = vadd.f32 %v1752_v29, %v8552_v61  ;;  %v1765_v54 = vadd.f32 %v1764_v28, %v8678_v57  ;;  %v8688_v28 = vperm.slane %v8667_v20, 3 }
 0x1d3   :  { %10665 = vst [vmem:[#allocation157_spill] sm:$0xff] %v8684_v35 }
 0x1d4   :  { %v1753_v26 = vpop.f32.mrf.mxu1  ;;  %v6712_v14 = vmul.f32 -1.442695, %v1885_v47  ;;  %v1778_v16 = vadd.f32 %v1777_v56, %v1765_v54  ;;  %10666 = vst [vmem:[#allocation158_spill] sm:$0xff] %v8688_v28 }
 0x1d6   :  { %7514 = vpow2.f32 %v6712_v14  ;;  %v1886_v24 = vadd.f32 %v1778_v16, %v8570_v9 }
 0x1d8   :  { %v6713_v21 = vmul.f32 -1.442695, %v1886_v24 }
 0x1d9   :  { %v1766_v0 = vpop.f32.mrf.mxu2  ;;  %v1779_v60 = vpop.f32.mrf.mxu3 }
 0x1da   :  { %7516 = vpow2.f32 %v6713_v21 }
 0x1dc   :  { %v7515_v43 = vpop.eup %7514 }
 0x1dd   :  { %v1893_v5 = vadd.f32 1.0, %v7515_v43 }
 0x1df   :  { %7518 = vrcp.f32 %v1893_v5  ;;  %vm1900_vm2 = vweird.f32 %v1893_v5 }
 0x1e0   :  { %v7517_v60 = vpop.eup %7516 }
 0x1e1   :  { %v8691_v14 = vadd.f32 1.0, %v7517_v60 }
 0x1e3   :  { %vm1915_vm5 = vweird.f32 %v8691_v14 }
 0x1e5   :  { %v7519_v21 = vpop.eup %7518 }
 0x1e6   :  { %vm1901_vm1 = vweird.f32 %v7519_v21 }
 0x1e7   :  { %vm1902_vm3 = vmor %vm1900_vm2, %vm1901_vm1 }
 0x1e8   :  { %v1790_v15 = vpop.f32.mrf.mxu0  ;;  %v1803_v29 = vpop.f32.mrf.mxu1 }
 0x1e9   :  { %v1791_v26 = vadd.f32 %v1790_v15, %v8684_v35 }
 0x1eb   :  { %v1804_v61 = vadd.f32 %v1803_v29, %v1791_v26  ;;  %v1896_v29 = vmul.f32 %v7519_v21, %v1893_v5 }
 0x1ed   :  { %v1925_v47 = vadd.f32 %v1804_v61, %v8591_v8  ;;  %v1897_v8 = vsub.f32 1.0, %v1896_v29 }
 0x1ef   :  { %v6714_v16 = vmul.f32 -1.442695, %v1925_v47 }
 0x1f0   :  { %v1792_v43 = vpop.f32.mrf.mxu0  ;;  %v1805_v54 = vpop.f32.mrf.mxu1 }
 0x1f1   :  { %v1816_v24 = vpop.f32.mrf.mxu2  ;;  %v1829_v56 = vpop.f32.mrf.mxu3  ;;  %7520 = vpow2.f32 %v6714_v16 }
 0x1f2   :  { %v1817_v0 = vadd.f32 %v1816_v24, %v8688_v28  ;;  %7522 = vrcp.f32 %v8691_v14  ;;  %v1898_v24 = vmul.f32 %v7519_v21, %v1897_v8  ;;  %v1904_v8 = vand.u32 2147483647, %v1893_v5 }
 0x1f4   :  { %v1830_v15 = vadd.f32 %v1829_v56, %v1817_v0  ;;  %vm1905_vm4 = vcmp.eq.f32.partialorder %v1904_v8, 8.507059e+37  ;;  %v1921_v8 = vand.u32 2147483648, %v8691_v14 }
 0x1f6   :  { %v1926_v26 = vadd.f32 %v1830_v15, %v8606_v34  ;;  %v1899_v15 = vadd.f32 %v7519_v21, %v1898_v24  ;;  %v1922_v39 = vor.u32 1.1754944e-38, %v1921_v8 }
 0x1f7   :  { %v7521_v9 = vpop.eup %7520 }
 0x1f8   :  { %v6715_v35 = vmul.f32 -1.442695, %v1926_v26  ;;  %v1933_v47 = vadd.f32 1.0, %v7521_v9  ;;  %v8696_v57 = vpop.eup %7522  ;;  %v1906_v26 = vand.u32 2147483648, %v1893_v5  ;;  %v1903_v34 = vsel %vm1902_vm3, %v7519_v21, %v1899_v15 }
 0x1f9   :  { %v1818_v61 = vpop.f32.mrf.mxu2  ;;  %v1831_v60 = vpop.f32.mrf.mxu3  ;;  %v1911_v16 = vmul.f32 %v8696_v57, %v8691_v14  ;;  %vm1916_vm6 = vweird.f32 %v8696_v57 }
 0x1fa   :  { %7524 = vpow2.f32 %v6715_v35  ;;  %v8704_v35 = vperm.slane %v8667_v20, 4  ;;  %v1907_v13 = vor.u32 1.1754944e-38, %v1906_v26  ;;  %vm1940_vm8 = vweird.f32 %v1933_v47  ;;  %vm8721_vm9 = vmor %vm1915_vm5, %vm1916_vm6 }
 0x1fb   :  { %7526 = vrcp.f32 %v1933_v47  ;;  %v1912_v9 = vsub.f32 1.0, %v1911_v16 }
 0x1fc   :  { %10667 = vst [vmem:[#allocation159_spill] sm:$0xff] %v8704_v35  ;;  %v1908_v5 = vsel %vm1905_vm4, %v1907_v13, %v1903_v34 }
 0x200   :  { %v7525_v0 = vpop.eup %7524 }
 0x201   :  { %v8700_v56 = vadd.f32 1.0, %v7525_v0  ;;  %v7527_v43 = vpop.eup %7526  ;;  %v1913_v0 = vmul.f32 %v8696_v57, %v1912_v9  ;;  %v1946_v9 = vand.u32 2147483648, %v1933_v47 }
 0x202   :  { %v1936_v54 = vmul.f32 %v7527_v43, %v1933_v47  ;;  %vm1941_vm7 = vweird.f32 %v7527_v43 }
 0x203   :  { %7528 = vrcp.f32 %v8700_v56  ;;  %v1914_v15 = vadd.f32 %v8696_v57, %v1913_v0  ;;  %vm8726_vm10 = vmor %vm1940_vm8, %vm1941_vm7  ;;  %vm1955_vm14 = vweird.f32 %v8700_v56 }
 0x204   :  { %v1937_v29 = vsub.f32 1.0, %v1936_v54  ;;  %v8715_v54 = vperm.slane %v8667_v20, 5  ;;  %v1961_v20 = vand.u32 2147483648, %v8700_v56 }
 0x206   :  { %v1938_v61 = vmul.f32 %v7527_v43, %v1937_v29  ;;  %10668 = vst [vmem:[#allocation160_spill] sm:$0xff] %v8715_v54 }
 0x208   :  { %v1842_v60 = vpop.f32.mrf.mxu0  ;;  %v1855_v42 = vpop.f32.mrf.mxu1  ;;  %v1939_v21 = vadd.f32 %v7527_v43, %v1938_v61 }
 0x209   :  { %v1843_v28 = vadd.f32 %v1842_v60, %v8704_v35  ;;  %v8708_v55 = vpop.eup %7528  ;;  %v1944_v60 = vand.u32 2147483647, %v1933_v47 }
 0x20a   :  { %v1951_v24 = vmul.f32 %v8708_v55, %v8700_v56  ;;  %v1943_v47 = vsel %vm8726_vm10, %v7527_v43, %v1939_v21  ;;  %vm1956_vm13 = vweird.f32 %v8708_v55 }
 0x20b   :  { %v1856_v16 = vadd.f32 %v1855_v42, %v1843_v28  ;;  %v1919_v42 = vand.u32 2147483647, %v8691_v14  ;;  %v1918_v14 = vsel %vm8721_vm9, %v8696_v57, %v1914_v15  ;;  %vm1945_vm11 = vcmp.eq.f32.partialorder %v1944_v60, 8.507059e+37  ;;  %v7503_v15 = vld [vmem:[%s10673_s9] ss:$0 sm:$0xff]  ;;  %vm8744_vm15 = vmor %vm1955_vm14, %vm1956_vm13 }
 0x20c   :  { %v1952_v26 = vsub.f32 1.0, %v1951_v24  ;;  %v1959_v57 = vand.u32 2147483647, %v8700_v56  ;;  %v7504_v60 = vld [vmem:[%s10674_s13] ss:$0 sm:$0xff] }
 0x20d   :  { %v1965_v29 = vmul.f32 %v1908_v5, %v1856_v16  ;;  %v1947_v5 = vor.u32 1.1754944e-38, %v1946_v9  ;;  %vm1920_vm12 = vcmp.eq.f32.partialorder %v1919_v42, 8.507059e+37 }
 0x20e   :  { %v1953_v34 = vmul.f32 %v8708_v55, %v1952_v26  ;;  %v1923_v21 = vsel %vm1920_vm12, %v1922_v39, %v1918_v14  ;;  %vm1960_vm1 = vcmp.eq.f32.partialorder %v1959_v57, 8.507059e+37  ;;  %v10677_v57 = vld [vmem:[#allocation102_spill] sm:$0xff] }
 0x20f   :  { %v1967_v28 = vadd.f32 %v1965_v29, %v8632_v25  ;;  %v1948_v43 = vsel %vm1945_vm11, %v1947_v5, %v1943_v47 }
 0x210   :  { %v1868_v61 = vpop.f32.mrf.mxu2  ;;  %v1844_v24 = vpop.f32.mrf.mxu0  ;;  %v1954_v29 = vadd.f32 %v8708_v55, %v1953_v34  ;;  %v1971_v9 = vsub.f32 1.0, %v1948_v43  ;;  %v1962_v34 = vor.u32 1.1754944e-38, %v1961_v20  ;;  %v1975_v47 = vmul.f32 0.0, %v1948_v43 }
 0x211   :  { %v1869_v0 = vadd.f32 %v1868_v61, %v8715_v54  ;;  %v1881_v16 = vpop.f32.mrf.mxu3  ;;  %7530 = vtanh.f32 %v1967_v28  ;;  %v1857_v35 = vpop.f32.mrf.mxu1 }
 0x212   :  { %v1958_v39 = vsel %vm8744_vm15, %v8708_v55, %v1954_v29 }
 0x213   :  { %v1882_v26 = vadd.f32 %v1881_v16, %v1869_v0  ;;  %v1963_v5 = vsel %vm1960_vm1, %v1962_v34, %v1958_v39  ;;  %v10680_v39 = vld [vmem:[#allocation110_spill] sm:$0xff]  ;;  %v10682_v34 = vld [vmem:[#allocation107_spill] sm:$0xff] }
 0x215   :  { %v1966_v61 = vmul.f32 %v1923_v21, %v1882_v26  ;;  %v1972_v21 = vsub.f32 1.0, %v1963_v5 }
 0x217   :  { %v1968_v8 = vadd.f32 %v1966_v61, %v8643_v52  ;;  %v7531_v13 = vpop.eup %7530  ;;  %v1976_v61 = vmul.f32 0.0, %v1963_v5  ;;  %v10689_v5 = vld [vmem:[#allocation118_spill] sm:$0xff] }
 0x218   :  { %v1870_v42 = vpop.f32.mrf.mxu2  ;;  %v1973_v28 = vmul.f32 %v7531_v13, %v1971_v9  ;;  %v2008_v56 = vpop.f32.mrf.mxu0  ;;  %v10679_v13 = vld [vmem:[#allocation108_spill] sm:$0xff] }
 0x219   :  { %7532 = vtanh.f32 %v1968_v8  ;;  %v8753_v0 = vadd.f32 %v7503_v15, %v2008_v56  ;;  %v2082_v24 = vpop.f32.mrf.mxu1  ;;  %v1883_v16 = vpop.f32.mrf.mxu3  ;;  %v10678_v15 = vld [vmem:[#allocation105_spill] sm:$0xff]  ;;  %v10681_v42 = vld [vmem:[#allocation104_spill] sm:$0xff] }
 0x21a   :  { %v8755_v14 = vadd.f32 %v1975_v47, %v1973_v28  ;;  %v8757_v26 = vadd.f32 %v7504_v60, %v2082_v24  ;;  %v10683_v28 = vld [vmem:[#allocation112_spill] sm:$0xff]  ;;  %v10684_v47 = vld [vmem:[#allocation114_spill] sm:$0xff]  ;;  %v10685_v56 = vld [vmem:[#allocation109_spill] sm:$0xff] }
 0x21b   :  { %2033 = vrot.lane.b32.xlu1 %v8753_v0, %s7947_s14  ;;  %v10686_v24 = vld [vmem:[#allocation111_spill] sm:$0xff]  ;;  %v10687_v16 = vld [vmem:[#allocation116_spill] sm:$0xff] }
 0x21c   :  { %v2127_v55 = vpack.c.bf16 %v8755_v14, %v8755_v14  ;;  %v10358_v43 = vrot.slane %v8757_v26, 6 }
 0x21e   :  { %2109 = vrot.lane.b32.xlu2 %v10358_v43, %s7947_s14  ;;  %2137 = vmatmul.bf16.vlgmr.msra.gmra.mxu2 %v2127_v55  ;;  %v10696_v43 = vld [vmem:[#allocation126_spill] sm:$0xff] }
 0x21f   :  { %v7533_v29 = vpop.eup %7532  ;;  %2163 = vmatmul.bf16.vlgmr.msrb.gmra.mxu0 %v2127_v55  ;;  %2233 = vmatpush.bf16.msra.mxu2 %v10677_v57 }
 0x220   :  { %v1974_v20 = vmul.f32 %v7533_v29, %v1972_v21  ;;  %2259 = vmatpush.bf16.msrb.mxu0 %v10678_v15  ;;  %v2010_v35 = vpop.f32.mrf.mxu0  ;;  %v10690_v21 = vld [vmem:[#allocation113_spill] sm:$0xff]  ;;  %v10691_v29 = vld [vmem:[#allocation115_spill] sm:$0xff]  ;;  %v8798_v15 = vpop.permute.xlu1 %1069 }
 0x221   :  { %v2084_v8 = vpop.f32.mrf.mxu1  ;;  %v10694_v35 = vld [vmem:[#allocation117_spill] sm:$0xff]  ;;  %10700 = vst [vmem:[#allocation113_spill] sm:$0xff] %v8798_v15 }
 0x222   :  { %v8769_v9 = vadd.f32 %v1976_v61, %v1974_v20  ;;  %v8785_v20 = vpop.permute.xlu0 %1064  ;;  %v10693_v61 = vld [vmem:[#allocation120_spill] sm:$0xff]  ;;  %v10695_v8 = vld [vmem:[#allocation119_spill] sm:$0xff] }
 0x223   :  { %2234 = vmatpush.bf16.msra.mxu2 %v10679_v13  ;;  %10692 = vst [vmem:[#allocation104_spill] sm:$0xff] %v8785_v20 }
 0x224   :  { %v2128_v60 = vpack.c.bf16 %v8769_v9, %v8769_v9  ;;  %2260 = vmatpush.bf16.msrb.mxu0 %v10680_v39  ;;  %v10699_v39 = vld [vmem:[#allocation123_spill] sm:$0xff] }
 0x226   :  { %2150 = vmatmul.bf16.vlgmr.msra.gmra.mxu3 %v2128_v60  ;;  %2176 = vmatmul.bf16.vlgmr.msrb.gmra.mxu1 %v2128_v60 }
 0x227   :  { %2246 = vmatpush.bf16.msra.mxu3 %v10681_v42  ;;  %2272 = vmatpush.bf16.msrb.mxu1 %v10682_v34  ;;  %v10705_v34 = vld [vmem:[#allocation127_spill] sm:$0xff] }
 0x228   :  { %2235 = vmatpush.bf16.msra.mxu2 %v10683_v28  ;;  %2261 = vmatpush.bf16.msrb.mxu0 %v10684_v47  ;;  %v10698_v47 = vld [vmem:[#allocation121_spill] sm:$0xff] }
 0x22b   :  { %2247 = vmatpush.bf16.msra.mxu3 %v10685_v56  ;;  %2273 = vmatpush.bf16.msrb.mxu1 %v10686_v24  ;;  %v10704_v24 = vld [vmem:[#allocation125_spill] sm:$0xff] }
 0x22c   :  { %2236 = vmatpush.bf16.msra.mxu2 %v10687_v16  ;;  %2262 = vmatpush.bf16.msrb.mxu0 %v10689_v5  ;;  %v8794_v5 = vld [vmem:[%s10688_s25] sm:$0x3] }
 0x22d   :  { %10697 = vst [vmem:[#allocation109_spill] sm:$0xff] %v8794_v5 }
 0x22e   :  { %2189 = vmatmul.bf16.vlgmr.msrb.gmra.mxu2 %v2127_v55 }
 0x22f   :  { %2248 = vmatpush.bf16.msra.mxu3 %v10690_v21  ;;  %2274 = vmatpush.bf16.msrb.mxu1 %v10691_v29  ;;  %v10701_v29 = vld [vmem:[#allocation128_spill] sm:$0xff] }
 0x230   :  { %2215 = vmatmul.bf16.vlgmr.msra.gmra.mxu0 %v2127_v55  ;;  %2237 = vmatpush.bf16.msra.mxu2 %v10693_v61 }
 0x231   :  { %2263 = vmatpush.bf16.msrb.mxu0 %v8475_v40  ;;  %v8802_v40 = vpop.permute.xlu0 %1080 }
 0x232   :  { %10702 = vst [vmem:[#allocation117_spill] sm:$0xff] %v8802_v40 }
 0x233   :  { %2249 = vmatpush.bf16.msra.mxu3 %v10694_v35  ;;  %2275 = vmatpush.bf16.msrb.mxu1 %v10695_v8  ;;  %v10364_v8 = vperm.slane %v8794_v5, 1 }
 0x234   :  { %2238 = vmatpush.bf16.msra.mxu2 %v8481_v41 }
 0x235   :  { %2264 = vmatpush.bf16.msrb.mxu0 %v10696_v43  ;;  %v10363_v43 = vperm.slane %v8794_v5, 0  ;;  %v10721_v5 = vld [vmem:[#allocation70_spill] sm:$0xff] }
 0x236   :  { %2202 = vmatmul.bf16.vlgmr.msrb.gmra.mxu3 %v2128_v60  ;;  %2228 = vmatmul.bf16.vlgmr.msra.gmra.mxu1 %v2128_v60 }
 0x237   :  { %2250 = vmatpush.bf16.msra.mxu3 %v10698_v47  ;;  %2276 = vmatpush.bf16.msrb.mxu1 %v10699_v39  ;;  %v1097_v39 = vmul.f32 %v10363_v43, %v8798_v15  ;;  %v7502_v43 = vld [vmem:[%s10703_s3] ss:$0 sm:$0xff] }
 0x238   :  { %2239 = vmatpush.bf16.msra.mxu2 %v10701_v29  ;;  %v1100_v29 = vmul.f32 %v10364_v8, %v8802_v40  ;;  %v10708_v8 = vld [vmem:[#allocation134_spill] sm:$0xff]  ;;  %v10718_v15 = vld [vmem:[#allocation76_spill] sm:$0xff] }
 0x239   :  { %2265 = vmatpush.bf16.msrb.mxu0 %v8499_v4  ;;  %v10706_v4 = vld [vmem:[#allocation129_spill] sm:$0xff] }
 0x23b   :  { %2251 = vmatpush.bf16.msra.mxu3 %v10704_v24  ;;  %2277 = vmatpush.bf16.msrb.mxu1 %v10705_v34  ;;  %v1102_v34 = vadd.f32 %v1100_v29, %v1097_v39  ;;  %v10711_v39 = vld [vmem:[#allocation137_spill] sm:$0xff]  ;;  %v8848_v29 = vpop.permute.xlu2 %1076 }
 0x23c   :  { %2240 = vmatpush.bf16.msra.mxu2 %v8505_v53  ;;  %10714 = vst [vmem:[#allocation125_spill] sm:$0xff] %v8848_v29 }
 0x23d   :  { %2266 = vmatpush.bf16.msrb.mxu0 %v8511_v1  ;;  %v8825_v40 = vadd.f32 %v7502_v43, %v1102_v34  ;;  %v8840_v43 = vld [vmem:[%s10707_s8] sm:$0x3]  ;;  %v10730_v1 = vld [vmem:[#allocation89_spill] sm:$0xff] }
 0x23e   :  { %10712 = vst [vmem:[#allocation121_spill] sm:$0xff] %v8840_v43 }
 0x23f   :  { %2252 = vmatpush.bf16.msra.mxu3 %v10706_v4  ;;  %2278 = vmatpush.bf16.msrb.mxu1 %v8502_v3 }
 0x240   :  { %2416 = vmatpush.bf16.msrb.mxu2 %v8518_v27  ;;  %2267 = vmatmul.bf16.vlgmr.msrb.gmra.mxu0 %v2127_v55  ;;  %v10709_v27 = vld [vmem:[#allocation135_spill] sm:$0xff] }
 0x241   :  { %2538 = vmatpush.bf16.msra.mxu0 %v8220_v32  ;;  %2241 = vmatmul.bf16.vlgmr.msra.gmra.mxu2 %v2127_v55 }
 0x243   :  { %2253 = vmatpush.bf16.msra.mxu3 %v8509_v2  ;;  %2279 = vmatpush.bf16.msrb.mxu1 %v10708_v8 }
 0x244   :  { %2417 = vmatpush.bf16.msrb.mxu2 %v8532_v46  ;;  %v10710_v46 = vrot.slane %v8757_v26, 6  ;;  %v10366_v26 = vperm.slane %v8840_v43, 1 }
 0x245   :  { %2539 = vmatpush.bf16.msra.mxu0 %v8230_v44 }
 0x246   :  { %2254 = vmatmul.bf16.vlgmr.msra.gmra.mxu3 %v2128_v60  ;;  %2280 = vmatmul.bf16.vlgmr.msrb.gmra.mxu1 %v2128_v60  ;;  %v2089_v55 = vadd.f32 %v10710_v46, %v8825_v40  ;;  %v10367_v60 = vperm.slane %v8840_v43, 0  ;;  %v10716_v43 = vld [vmem:[#allocation66_spill] sm:$0xff] }
 0x247   :  { %2551 = vmatpush.bf16.msra.mxu1 %v8222_v33  ;;  %2481 = vmatpush.bf16.msrb.mxu3 %v10709_v27  ;;  %v1084_v27 = vmul.f32 %v10366_v26, %v8848_v29 }
 0x248   :  { %2564 = vmatpush.bf16.msra.mxu2 %v8224_v36  ;;  %v6734_v34 = vmul.f32 -1.442695, %v2089_v55  ;;  %v1073_v46 = vmul.f32 %v10367_v60, %v8785_v20  ;;  %v10720_v20 = vld [vmem:[#allocation67_spill] sm:$0xff] }
 0x249   :  { %2540 = vmatpush.bf16.msra.mxu0 %v8246_v58  ;;  %v10728_v58 = vld [vmem:[#allocation85_spill] sm:$0xff] }
 0x24a   :  { %7534 = vpow2.f32 %v6734_v34  ;;  %v1086_v34 = vadd.f32 %v1084_v27, %v1073_v46  ;;  %v10715_v46 = vld [vmem:[#allocation63_spill] sm:$0xff] }
 0x24b   :  { %2552 = vmatpush.bf16.msra.mxu1 %v8232_v45  ;;  %2482 = vmatpush.bf16.msrb.mxu3 %v10711_v39  ;;  %v7501_v39 = vld [vmem:[%s10713_s19] ss:$0 sm:$0xff] }
 0x24c   :  { %2565 = vmatpush.bf16.msra.mxu2 %v8236_v48  ;;  %v8868_v60 = vadd.f32 %v7501_v39, %v1086_v34  ;;  %v10719_v34 = vld [vmem:[#allocation72_spill] sm:$0xff] }
 0x24d   :  { %2541 = vmatpush.bf16.msra.mxu0 %v8258_v6  ;;  %v10727_v6 = vld [vmem:[#allocation88_spill] sm:$0xff] }
 0x24e   :  { %v2012_v27 = vadd.f32 %v8753_v0, %v8868_v60  ;;  %v10723_v0 = vld [vmem:[#allocation77_spill] sm:$0xff] }
 0x24f   :  { %2577 = vmatpush.bf16.msra.mxu3 %v8226_v37  ;;  %2553 = vmatpush.bf16.msra.mxu1 %v8248_v59  ;;  %v10742_v59 = vld [vmem:[#allocation138_spill] sm:$0xff] }
 0x250   :  { %2566 = vmatpush.bf16.msra.mxu2 %v8252_v62  ;;  %v7535_v55 = vpop.eup %7534  ;;  %v6725_v39 = vmul.f32 -1.442695, %v2012_v27 }
 0x251   :  { %2542 = vmatpush.bf16.msra.mxu0 %v8270_v18  ;;  %v2093_v26 = vadd.f32 1.0, %v7535_v55  ;;  %v10717_v55 = vld [vmem:[#allocation69_spill] sm:$0xff] }
 0x252   :  { %v10726_v18 = vld [vmem:[#allocation81_spill] sm:$0xff] }
 0x253   :  { %2578 = vmatpush.bf16.msra.mxu3 %v8238_v49  ;;  %2554 = vmatpush.bf16.msra.mxu1 %v8260_v7  ;;  %7536 = vrcp.f32 %v2093_v26  ;;  %vm2099_vm2 = vweird.f32 %v2093_v26 }
 0x254   :  { %2567 = vmatpush.bf16.msra.mxu2 %v8264_v10  ;;  %7538 = vpow2.f32 %v6725_v39  ;;  %v10729_v39 = vld [vmem:[#allocation92_spill] sm:$0xff] }
 0x255   :  { %2543 = vmatpush.bf16.msra.mxu0 %v8282_v30  ;;  %v10725_v30 = vld [vmem:[#allocation84_spill] sm:$0xff] }
 0x257   :  { %2579 = vmatpush.bf16.msra.mxu3 %v8254_v63  ;;  %2555 = vmatpush.bf16.msra.mxu1 %v8272_v19 }
 0x258   :  { %2568 = vmatpush.bf16.msra.mxu2 %v8276_v22 }
 0x259   :  { %2544 = vmatpush.bf16.msra.mxu0 %v8294_v50  ;;  %v7537_v29 = vpop.eup %7536 }
 0x25a   :  { %v2095_v50 = vmul.f32 %v7537_v29, %v2093_v26  ;;  %vm2100_vm3 = vweird.f32 %v7537_v29 }
 0x25b   :  { %2580 = vmatpush.bf16.msra.mxu3 %v8266_v11  ;;  %2556 = vmatpush.bf16.msra.mxu1 %v8284_v31  ;;  %vm2101_vm4 = vmor %vm2099_vm2, %vm2100_vm3 }
 0x25c   :  { %2569 = vmatpush.bf16.msra.mxu2 %v8288_v38  ;;  %v2096_v27 = vsub.f32 1.0, %v2095_v50 }
 0x25d   :  { %2545 = vmatpush.bf16.msra.mxu0 %v8306_v12  ;;  %v10724_v12 = vld [vmem:[#allocation74_spill] sm:$0xff] }
 0x25e   :  { %v2097_v32 = vmul.f32 %v7537_v29, %v2096_v27  ;;  %v10733_v27 = vld [vmem:[#allocation100_spill] sm:$0xff] }
 0x25f   :  { %2581 = vmatpush.bf16.msra.mxu3 %v8278_v23  ;;  %2557 = vmatpush.bf16.msra.mxu1 %v8296_v51 }
 0x260   :  { %2570 = vmatpush.bf16.msra.mxu2 %v10716_v43 }
 0x261   :  { %2590 = vmatpush.bf16.msrb.mxu0 %v8314_v17  ;;  %v10722_v17 = vld [vmem:[#allocation80_spill] sm:$0xff] }
 0x263   :  { %2582 = vmatpush.bf16.msra.mxu3 %v10715_v46  ;;  %2558 = vmatpush.bf16.msra.mxu1 %v10717_v55 }
 0x264   :  { %2571 = vmatpush.bf16.msra.mxu2 %v10721_v5 }
 0x265   :  { %2591 = vmatpush.bf16.msrb.mxu0 %v10718_v15  ;;  %v7539_v15 = vpop.eup %7538 }
 0x266   :  { %v2016_v44 = vadd.f32 1.0, %v7539_v15 }
 0x267   :  { %2603 = vmatpush.bf16.msrb.mxu1 %v10719_v34  ;;  %2583 = vmatpush.bf16.msra.mxu3 %v10720_v20  ;;  %v10732_v34 = vld [vmem:[#allocation93_spill] sm:$0xff] }
 0x268   :  { %7540 = vrcp.f32 %v2016_v44  ;;  %vm2022_vm7 = vweird.f32 %v2016_v44 }
 0x269   :  { %2592 = vmatpush.bf16.msrb.mxu0 %v10722_v17  ;;  %v2105_v17 = vand.u32 2147483648, %v2093_v26 }
 0x26b   :  { %2604 = vmatpush.bf16.msrb.mxu1 %v10723_v0  ;;  %2584 = vmatpush.bf16.msra.mxu3 %v10724_v12  ;;  %v2098_v0 = vadd.f32 %v7537_v29, %v2097_v32  ;;  %v2106_v50 = vor.u32 1.1754944e-38, %v2105_v17 }
 0x26d   :  { %2593 = vmatpush.bf16.msrb.mxu0 %v10725_v30  ;;  %v2103_v30 = vand.u32 2147483647, %v2093_v26  ;;  %v10736_v26 = vld [vmem:[#allocation101_spill] sm:$0xff] }
 0x26e   :  { %v7541_v15 = vpop.eup %7540 }
 0x26f   :  { %2605 = vmatpush.bf16.msrb.mxu1 %v10726_v18  ;;  %v10731_v18 = vld [vmem:[#allocation96_spill] sm:$0xff]  ;;  %vm2104_vm5 = vcmp.eq.f32.partialorder %v2103_v30, 8.507059e+37  ;;  %v2018_v32 = vmul.f32 %v7541_v15, %v2016_v44  ;;  %vm2023_vm6 = vweird.f32 %v7541_v15  ;;  %v2028_v30 = vand.u32 2147483648, %v2016_v44 }
 0x270   :  { %vm2024_vm8 = vmor %vm2022_vm7, %vm2023_vm6 }
 0x271   :  { %2594 = vmatpush.bf16.msrb.mxu0 %v10727_v6  ;;  %v2102_v6 = vsel %vm2101_vm4, %v7537_v29, %v2098_v0  ;;  %v2019_v17 = vsub.f32 1.0, %v2018_v32  ;;  %v2026_v29 = vand.u32 2147483647, %v2016_v44  ;;  %v10739_v32 = vld [vmem:[#allocation156_spill] sm:$0xff] }
 0x272   :  { %v8894_v55 = vsel %vm2104_vm5, %v2106_v50, %v2102_v6  ;;  %v2029_v6 = vor.u32 1.1754944e-38, %v2028_v30  ;;  %v10740_v30 = vld [vmem:[#allocation155_spill] sm:$0xff] }
 0x273   :  { %2606 = vmatpush.bf16.msrb.mxu1 %v10728_v58  ;;  %10734 = vst [vmem:[#allocation129_spill] sm:$0xff] %v8894_v55  ;;  %vm2027_vm9 = vcmp.eq.f32.partialorder %v2026_v29, 8.507059e+37 }
 0x275   :  { %2595 = vmatpush.bf16.msrb.mxu0 %v10729_v39  ;;  %v10735_v39 = vld [vmem:[#allocation97_spill] sm:$0xff] }
 0x277   :  { %2607 = vmatpush.bf16.msrb.mxu1 %v10730_v1 }
 0x278   :  { %v2110_v58 = vpop.permute.xlu2 %2109 }
 0x279   :  { %2596 = vmatpush.bf16.msrb.mxu0 %v10731_v18  ;;  %v2112_v1 = vmul.f32 %v2110_v58, %v8894_v55  ;;  %v2020_v18 = vmul.f32 %v7541_v15, %v2019_v17 }
 0x27b   :  { %2608 = vmatpush.bf16.msrb.mxu1 %v10732_v34  ;;  %2114 = vrot.lane.b32.xlu2 %v2112_v1, %s7947_s14  ;;  %v2021_v34 = vadd.f32 %v7541_v15, %v2020_v18  ;;  %v10738_v1 = vld [vmem:[#allocation139_spill] sm:$0xff] }
 0x27d   :  { %2597 = vmatpush.bf16.msrb.mxu0 %v10733_v27  ;;  %v2025_v0 = vsel %vm2024_vm8, %v7541_v15, %v2021_v34 }
 0x27e   :  { %v8900_v27 = vsel %vm2027_vm9, %v2029_v6, %v2025_v0  ;;  %v10741_v0 = vld [vmem:[#allocation142_spill] sm:$0xff] }
 0x27f   :  { %2609 = vmatpush.bf16.msrb.mxu1 %v10735_v39  ;;  %10737 = vst [vmem:[#allocation135_spill] sm:$0xff] %v8900_v27 }
 0x283   :  { %2610 = vmatpush.bf16.msrb.mxu1 %v10736_v26 }
 0x28d   :  { %v2034_v50 = vpop.permute.xlu1 %2033 }
 0x28e   :  { %v2036_v58 = vmul.f32 %v2034_v50, %v8900_v27 }
 0x290   :  { %2038 = vrot.lane.b32.xlu1 %v2036_v58, %s7947_s14 }
 0x298   :  { %2050 = vrot.lane.b32.xlu1 %v10738_v1, %s7952_s6 }
 0x29c   :  { %v2164_v18 = vpop.f32.mrf.mxu0 }
 0x29d   :  { %v2165_v17 = vadd.f32 %v2164_v18, %v10739_v32 }
 0x2a1   :  { %v2138_v26 = vpop.f32.mrf.mxu2 }
 0x2a2   :  { %v2139_v29 = vadd.f32 %v2138_v26, %v10740_v30 }
 0x2a3   :  { %v2177_v44 = vpop.f32.mrf.mxu1 }
 0x2a4   :  { %v2178_v39 = vadd.f32 %v2177_v44, %v2165_v17  ;;  %v2166_v34 = vpop.f32.mrf.mxu0  ;;  %v10743_v17 = vld [vmem:[#allocation158_spill] sm:$0xff] }
 0x2a6   :  { %v2288_v15 = vrot.slane %v2178_v39, 6 }
 0x2a8   :  { %v2292_v6 = vadd.f32 %v2288_v15, %v10741_v0 }
 0x2a9   :  { %v2151_v51 = vpop.f32.mrf.mxu3  ;;  %v2140_v58 = vpop.f32.mrf.mxu2 }
 0x2aa   :  { %v6736_v50 = vmul.f32 -1.442695, %v2292_v6  ;;  %v2152_v31 = vadd.f32 %v2151_v51, %v2139_v29 }
 0x2ab   :  { %v2179_v19 = vpop.f32.mrf.mxu1 }
 0x2ac   :  { %7542 = vpow2.f32 %v6736_v50  ;;  %v2287_v7 = vrot.slane %v2152_v31, 6  ;;  %v10744_v19 = vld [vmem:[#allocation157_spill] sm:$0xff]  ;;  %v10745_v31 = vld [vmem:[#allocation147_spill] sm:$0xff] }
 0x2ad   :  { %v2216_v1 = vpop.f32.mrf.mxu0 }
 0x2ae   :  { %v2291_v45 = vadd.f32 %v2287_v7, %v10742_v59  ;;  %v2217_v39 = vadd.f32 %v2216_v1, %v10743_v17 }
 0x2b0   :  { %v6735_v18 = vmul.f32 -1.442695, %v2291_v45 }
 0x2b1   :  { %v2153_v32 = vpop.f32.mrf.mxu3  ;;  %v2190_v26 = vpop.f32.mrf.mxu2 }
 0x2b2   :  { %v7543_v33 = vpop.eup %7542  ;;  %7544 = vpow2.f32 %v6735_v18  ;;  %v2191_v50 = vadd.f32 %v2190_v26, %v10744_v19 }
 0x2b3   :  { %v2300_v44 = vadd.f32 1.0, %v7543_v33  ;;  %v2229_v34 = vpop.f32.mrf.mxu1 }
 0x2b4   :  { %v2230_v15 = vadd.f32 %v2229_v34, %v2217_v39  ;;  %v10746_v34 = vld [vmem:[#allocation145_spill] sm:$0xff] }
 0x2b5   :  { %7546 = vrcp.f32 %v2300_v44  ;;  %v2218_v6 = vpop.f32.mrf.mxu0  ;;  %vm2321_vm11 = vweird.f32 %v2300_v44 }
 0x2b6   :  { %v2334_v51 = vrot.slane %v2230_v15, 6 }
 0x2b8   :  { %v7545_v29 = vpop.eup %7544  ;;  %v2338_v58 = vadd.f32 %v2334_v51, %v10745_v31  ;;  %v2327_v51 = vand.u32 2147483648, %v2300_v44 }
 0x2b9   :  { %v2299_v0 = vadd.f32 1.0, %v7545_v29  ;;  %v2203_v7 = vpop.f32.mrf.mxu3  ;;  %v2192_v18 = vpop.f32.mrf.mxu2 }
 0x2ba   :  { %v6738_v45 = vmul.f32 -1.442695, %v2338_v58  ;;  %v2204_v32 = vadd.f32 %v2203_v7, %v2191_v50 }
 0x2bb   :  { %v7547_v8 = vpop.eup %7546  ;;  %7548 = vrcp.f32 %v2299_v0  ;;  %v2231_v1 = vpop.f32.mrf.mxu1  ;;  %v2312_v59 = vand.u32 2147483648, %v2299_v0  ;;  %vm2306_vm15 = vweird.f32 %v2299_v0 }
 0x2bc   :  { %7550 = vpow2.f32 %v6738_v45  ;;  %v2333_v33 = vrot.slane %v2204_v32, 6  ;;  %v2317_v17 = vmul.f32 %v7547_v8, %v2300_v44  ;;  %vm2322_vm10 = vweird.f32 %v7547_v8 }
 0x2bd   :  { %v2268_v39 = vpop.f32.mrf.mxu0  ;;  %v2325_v1 = vand.u32 2147483647, %v2300_v44  ;;  %vm2323_vm12 = vmor %vm2321_vm11, %vm2322_vm10 }
 0x2be   :  { %v2337_v6 = vadd.f32 %v2333_v33, %v10746_v34  ;;  %v2318_v15 = vsub.f32 1.0, %v2317_v17  ;;  %v2269_v50 = vadd.f32 %v2268_v39, %v8715_v54  ;;  %v10747_v39 = vld [vmem:[#allocation159_spill] sm:$0xff] }
 0x2bf   :  { %vm2326_vm13 = vcmp.eq.f32.partialorder %v2325_v1, 8.507059e+37  ;;  %v2313_v1 = vor.u32 1.1754944e-38, %v2312_v59 }
 0x2c0   :  { %v6737_v3 = vmul.f32 -1.442695, %v2337_v6  ;;  %v2319_v27 = vmul.f32 %v7547_v8, %v2318_v15 }
 0x2c1   :  { %v7549_v26 = vpop.eup %7548  ;;  %v2205_v19 = vpop.f32.mrf.mxu3 }
 0x2c2   :  { %v7551_v29 = vpop.eup %7550  ;;  %7552 = vpow2.f32 %v6737_v3  ;;  %v2320_v58 = vadd.f32 %v7547_v8, %v2319_v27  ;;  %v2302_v7 = vmul.f32 %v7549_v26, %v2299_v0  ;;  %v2328_v19 = vor.u32 1.1754944e-38, %v2327_v51 }
 0x2c3   :  { %v2346_v18 = vadd.f32 1.0, %v7551_v29  ;;  %v2281_v32 = vpop.f32.mrf.mxu1  ;;  %vm2307_vm14 = vweird.f32 %v7549_v26 }
 0x2c4   :  { %v2242_v45 = vpop.f32.mrf.mxu2  ;;  %v2282_v31 = vadd.f32 %v2281_v32, %v2269_v50  ;;  %v2303_v17 = vsub.f32 1.0, %v2302_v7  ;;  %v2324_v33 = vsel %vm2323_vm12, %v7547_v8, %v2320_v58  ;;  %v2310_v50 = vand.u32 2147483647, %v2299_v0  ;;  %vm2308_vm1 = vmor %vm2306_vm15, %vm2307_vm14 }
 0x2c5   :  { %7554 = vrcp.f32 %v2346_v18  ;;  %v2270_v6 = vpop.f32.mrf.mxu0  ;;  %v2243_v27 = vadd.f32 %v2242_v45, %v10747_v39  ;;  %v2329_v54 = vsel %vm2326_vm13, %v2328_v19, %v2324_v33  ;;  %v2371_v0 = vand.u32 2147483647, %v2346_v18 }
 0x2c6   :  { %v2380_v15 = vrot.slane %v2282_v31, 6  ;;  %v2304_v34 = vmul.f32 %v7549_v26, %v2303_v17  ;;  %vm2311_vm2 = vcmp.eq.f32.partialorder %v2310_v50, 8.507059e+37  ;;  %v2373_v6 = vand.u32 2147483648, %v2346_v18 }
 0x2c7   :  { %vm2367_vm4 = vweird.f32 %v2346_v18  ;;  %vm2372_vm6 = vcmp.eq.f32.partialorder %v2371_v0, 8.507059e+37  ;;  %v2396_v50 = vrot.slane %v8769_v9, 6 }
 0x2c8   :  { %v7553_v3 = vpop.eup %7552  ;;  %v2305_v29 = vadd.f32 %v7549_v26, %v2304_v34  ;;  %v2384_v55 = vmul.f32 %v2380_v15, %v2329_v54 }
 0x2c9   :  { %v2345_v30 = vadd.f32 1.0, %v7553_v3  ;;  %v2255_v44 = vpop.f32.mrf.mxu3 }
 0x2ca   :  { %v2256_v7 = vadd.f32 %v2255_v44, %v2243_v27  ;;  %v2309_v51 = vsel %vm2308_vm1, %v7549_v26, %v2305_v29  ;;  %v2386_v17 = vadd.f32 %v2384_v55, %v8643_v52  ;;  %v2374_v29 = vor.u32 1.1754944e-38, %v2373_v6 }
 0x2cb   :  { %v7555_v8 = vpop.eup %7554  ;;  %7556 = vrcp.f32 %v2345_v30  ;;  %v2283_v58 = vpop.f32.mrf.mxu1  ;;  %v2314_v33 = vsel %vm2311_vm2, %v2313_v1, %v2309_v51  ;;  %vm2352_vm8 = vweird.f32 %v2345_v30 }
 0x2cc   :  { %v2244_v31 = vpop.f32.mrf.mxu2  ;;  %v2363_v32 = vmul.f32 %v7555_v8, %v2346_v18  ;;  %v2379_v45 = vrot.slane %v2256_v7, 6  ;;  %vm2368_vm3 = vweird.f32 %v7555_v8  ;;  %7558 = vtanh.f32 %v2386_v17 }
 0x2cd   :  { %vm2369_vm5 = vmor %vm2367_vm4, %vm2368_vm3  ;;  %v2358_v7 = vand.u32 2147483648, %v2345_v30 }
 0x2ce   :  { %v2364_v34 = vsub.f32 1.0, %v2363_v32  ;;  %v2383_v54 = vmul.f32 %v2379_v45, %v2314_v33  ;;  %v2356_v32 = vand.u32 2147483647, %v2345_v30 }
 0x2d0   :  { %v2365_v19 = vmul.f32 %v7555_v8, %v2364_v34  ;;  %v2385_v59 = vadd.f32 %v2383_v54, %v8632_v25  ;;  %vm2357_vm10 = vcmp.eq.f32.partialorder %v2356_v32, 8.507059e+37  ;;  %v8972_v32 = vld [vmem:[%s8048_s4] sm:$0xff] }
 0x2d1   :  { %v7557_v15 = vpop.eup %7556  ;;  %v2257_v3 = vpop.f32.mrf.mxu3 }
 0x2d2   :  { %v2348_v26 = vmul.f32 %v7557_v15, %v2345_v30  ;;  %v2366_v27 = vadd.f32 %v7555_v8, %v2365_v19  ;;  %vm2353_vm7 = vweird.f32 %v7557_v15  ;;  %v7559_v17 = vpop.eup %7558  ;;  %7560 = vtanh.f32 %v2385_v59 }
 0x2d3   :  { %vm2354_vm9 = vmor %vm2352_vm8, %vm2353_vm7  ;;  %v2395_v19 = vrot.slane %v8755_v14, 6 }
 0x2d4   :  { %v2349_v55 = vsub.f32 1.0, %v2348_v26  ;;  %v2370_v44 = vsel %vm2369_vm5, %v7555_v8, %v2366_v27  ;;  %v2359_v8 = vor.u32 1.1754944e-38, %v2358_v7  ;;  %v8959_v7 = vld [vmem:[%s8068_s29] sm:$0xff] }
 0x2d5   :  { %v2375_v51 = vsel %vm2372_vm6, %v2374_v29, %v2370_v44  ;;  %v2115_v1 = vpop.permute.xlu2 %2114  ;;  %v8953_v44 = vld [vmem:[%s8068_s29 + $0x8] sm:$0xff] }
 0x2d6   :  { %v2350_v31 = vmul.f32 %v7557_v15, %v2349_v55  ;;  %v2390_v58 = vsub.f32 1.0, %v2375_v51  ;;  %v2117_v18 = vadd.f32 %v2115_v1, %v8825_v40  ;;  %v2400_v34 = vmul.f32 %v2396_v50, %v2375_v51  ;;  %v10748_v50 = vld [vmem:[#allocation128_spill] sm:$0xff] }
 0x2d8   :  { %v2392_v45 = vmul.f32 %v7559_v17, %v2390_v58  ;;  %v2351_v33 = vadd.f32 %v7557_v15, %v2350_v31  ;;  %7562 = vtanh.f32 %v2117_v18  ;;  %v7561_v26 = vpop.eup %7560  ;;  %v8966_v58 = vld [vmem:[%s8048_s4 + $0x8] sm:$0xff] }
 0x2d9   :  { %v10749_v17 = vld [vmem:[#allocation129_spill] sm:$0xff] }
 0x2da   :  { %v8920_v6 = vadd.f32 %v2400_v34, %v2392_v45  ;;  %v2355_v9 = vsel %vm2354_vm9, %v7557_v15, %v2351_v33  ;;  %v2119_v18 = vsub.f32 1.0, %v10749_v17  ;;  %v2125_v34 = vmul.f32 0.0, %v10749_v17 }
 0x2db   :  { %v2360_v54 = vsel %vm2357_vm10, %v2359_v8, %v2355_v9 }
 0x2dc   :  { %v2531_v0 = vpack.c.bf16 %v8920_v6, %v8920_v6  ;;  %v2389_v3 = vsub.f32 1.0, %v2360_v54  ;;  %v2399_v29 = vmul.f32 %v2395_v19, %v2360_v54 }
 0x2de   :  { %v8925_v27 = vrot.slane %v2531_v0, 1  ;;  %v2391_v30 = vmul.f32 %v7561_v26, %v2389_v3  ;;  %v7563_v59 = vpop.eup %7562  ;;  %v10751_v3 = vld [vmem:[#allocation155_spill] sm:$0xff] }
 0x2df   :  { %2121 = vrot.lane.b32.xlu2 %v7563_v59, %s7953_s12 }
 0x2e0   :  { %v8927_v55 = vadd.f32 %v2399_v29, %v2391_v30  ;;  %2559 = vmatmul.bf16.vlgmr.msra.gmra.mxu1 %v8925_v27 }
 0x2e1   :  { %2655 = vmatpush.bf16.msra.mxu1 %v10681_v42 }
 0x2e2   :  { %v2530_v14 = vpack.c.bf16 %v8927_v55, %v8927_v55 }
 0x2e4   :  { %v8934_v15 = vrot.slane %v2530_v14, 1  ;;  %v10752_v14 = vld [vmem:[#allocation138_spill] sm:$0xff] }
 0x2e5   :  { %2656 = vmatpush.bf16.msra.mxu1 %v10685_v56 }
 0x2e6   :  { %2546 = vmatmul.bf16.vlgmr.msra.gmra.mxu0 %v8934_v15 }
 0x2e7   :  { %2642 = vmatpush.bf16.msra.mxu0 %v10677_v57 }
 0x2e9   :  { %2657 = vmatpush.bf16.msra.mxu1 %v10690_v21 }
 0x2eb   :  { %2643 = vmatpush.bf16.msra.mxu0 %v10679_v13 }
 0x2ed   :  { %2658 = vmatpush.bf16.msra.mxu1 %v10694_v35 }
 0x2ef   :  { %2644 = vmatpush.bf16.msra.mxu0 %v10683_v28 }
 0x2f0   :  { %2611 = vmatmul.bf16.vlgmr.msrb.gmra.mxu1 %v8925_v27 }
 0x2f1   :  { %2659 = vmatpush.bf16.msra.mxu1 %v10698_v47 }
 0x2f3   :  { %2645 = vmatpush.bf16.msra.mxu0 %v10687_v16 }
 0x2f5   :  { %2660 = vmatpush.bf16.msra.mxu1 %v10704_v24 }
 0x2f6   :  { %2598 = vmatmul.bf16.vlgmr.msrb.gmra.mxu0 %v8934_v15 }
 0x2f7   :  { %2646 = vmatpush.bf16.msra.mxu0 %v10693_v61 }
 0x2f9   :  { %2661 = vmatpush.bf16.msra.mxu1 %v10706_v4 }
 0x2fb   :  { %2647 = vmatpush.bf16.msra.mxu0 %v8481_v41 }
 0x2fd   :  { %2662 = vmatpush.bf16.msra.mxu1 %v8509_v2 }
 0x2ff   :  { %2648 = vmatpush.bf16.msra.mxu0 %v10748_v50 }
 0x300   :  { %2663 = vmatmul.bf16.vlgmr.msra.gmra.mxu1 %v8925_v27 }
 0x301   :  { %2890 = vmatpush.bf16.msrb.mxu1 %v8953_v44 }
 0x302   :  { %v2039_v51 = vpop.permute.xlu1 %2038 }
 0x303   :  { %2649 = vmatpush.bf16.msra.mxu0 %v8505_v53  ;;  %v2041_v31 = vadd.f32 %v2039_v51, %v8868_v60 }
 0x305   :  { %2891 = vmatpush.bf16.msrb.mxu1 %v8959_v7  ;;  %7564 = vtanh.f32 %v2041_v31 }
 0x306   :  { %2650 = vmatmul.bf16.vlgmr.msra.gmra.mxu0 %v8934_v15 }
 0x307   :  { %2826 = vmatpush.bf16.msrb.mxu0 %v8966_v58 }
 0x309   :  { %2988 = vmatpush.bf16.msra.mxu1 %v8226_v37 }
 0x30b   :  { %2827 = vmatpush.bf16.msrb.mxu0 %v8972_v32  ;;  %v7565_v1 = vpop.eup %7564 }
 0x30c   :  { %2045 = vrot.lane.b32.xlu0 %v7565_v1, %s7953_s12 }
 0x30d   :  { %2989 = vmatpush.bf16.msra.mxu1 %v8238_v49 }
 0x30f   :  { %2975 = vmatpush.bf16.msra.mxu0 %v8224_v36 }
 0x311   :  { %2990 = vmatpush.bf16.msra.mxu1 %v8254_v63 }
 0x313   :  { %2976 = vmatpush.bf16.msra.mxu0 %v8236_v48 }
 0x315   :  { %2991 = vmatpush.bf16.msra.mxu1 %v8266_v11 }
 0x317   :  { %2977 = vmatpush.bf16.msra.mxu0 %v8252_v62 }
 0x319   :  { %2992 = vmatpush.bf16.msra.mxu1 %v8278_v23 }
 0x31b   :  { %2978 = vmatpush.bf16.msra.mxu0 %v8264_v10 }
 0x31d   :  { %2993 = vmatpush.bf16.msra.mxu1 %v10715_v46 }
 0x31f   :  { %2979 = vmatpush.bf16.msra.mxu0 %v8276_v22 }
 0x321   :  { %2994 = vmatpush.bf16.msra.mxu1 %v10720_v20  ;;  %v10754_v20 = vld [vmem:[#allocation145_spill] sm:$0xff] }
 0x323   :  { %2980 = vmatpush.bf16.msra.mxu0 %v8288_v38 }
 0x325   :  { %2995 = vmatpush.bf16.msra.mxu1 %v10724_v12 }
 0x327   :  { %2981 = vmatpush.bf16.msra.mxu0 %v10716_v43 }
 0x32b   :  { %2982 = vmatpush.bf16.msra.mxu0 %v10721_v5 }
 0x339   :  { %v2122_v45 = vpop.permute.xlu2 %2121 }
 0x33a   :  { %v2124_v33 = vmul.f32 %v2122_v45, %v2119_v18 }
 0x33c   :  { %v8992_v8 = vadd.f32 %v2125_v34, %v2124_v33  ;;  %v10753_v34 = vld [vmem:[#allocation157_spill] sm:$0xff] }
 0x33e   :  { %10750 = vst [vmem:[#allocation137_spill] sm:$0xff] %v8992_v8  ;;  %v2467_v9 = vpack.c.bf16 %v8992_v8, %v8992_v8 }
 0x340   :  { %v2469_v54 = vrot.slane %v2467_v9, 1 }
 0x342   :  { %2470 = vrot.lane.b32.xlu1 %v2469_v54, %s7953_s12 }
 0x35d   :  { %v2560_v19 = vpop.f32.mrf.mxu1 }
 0x363   :  { %v2547_v0 = vpop.f32.mrf.mxu0 }
 0x364   :  { %v2548_v26 = vadd.f32 %v2547_v0, %v10751_v3 }
 0x365   :  { %v2562_v30 = vpop.f32.mrf.mxu1 }
 0x366   :  { %v2561_v29 = vadd.f32 %v2560_v19, %v2548_v26 }
 0x368   :  { %v2696_v59 = vrot.slane %v2561_v29, 4  ;;  %v2051_v29 = vpop.permute.xlu1 %2050 }
 0x36a   :  { %v2700_v51 = vadd.f32 %v2696_v59, %v10752_v14 }
 0x36b   :  { %v2549_v31 = vpop.f32.mrf.mxu0 }
 0x36c   :  { %v6743_v1 = vmul.f32 -1.442695, %v2700_v51  ;;  %v10755_v51 = vld [vmem:[#allocation135_spill] sm:$0xff] }
 0x36d   :  { %v2612_v17 = vpop.f32.mrf.mxu1  ;;  %v2043_v31 = vsub.f32 1.0, %v10755_v51  ;;  %v2053_v3 = vmul.f32 %v2051_v29, %v10755_v51 }
 0x36e   :  { %7566 = vpow2.f32 %v6743_v1 }
 0x373   :  { %v2599_v18 = vpop.f32.mrf.mxu0 }
 0x374   :  { %v7567_v45 = vpop.eup %7566  ;;  %v2600_v33 = vadd.f32 %v2599_v18, %v10753_v34 }
 0x375   :  { %v2708_v9 = vadd.f32 1.0, %v7567_v45  ;;  %v2614_v8 = vpop.f32.mrf.mxu1 }
 0x376   :  { %v2613_v54 = vadd.f32 %v2612_v17, %v2600_v33 }
 0x377   :  { %7568 = vrcp.f32 %v2708_v9  ;;  %vm2715_vm12 = vweird.f32 %v2708_v9 }
 0x378   :  { %v2742_v12 = vrot.slane %v2613_v54, 4 }
 0x37a   :  { %v2746_v0 = vadd.f32 %v2742_v12, %v10754_v20  ;;  %v2721_v12 = vand.u32 2147483648, %v2708_v9 }
 0x37b   :  { %v2601_v30 = vpop.f32.mrf.mxu0 }
 0x37c   :  { %v6745_v19 = vmul.f32 -1.442695, %v2746_v0 }
 0x37d   :  { %v7569_v26 = vpop.eup %7568  ;;  %v2664_v59 = vpop.f32.mrf.mxu1 }
 0x37e   :  { %7570 = vpow2.f32 %v6745_v19  ;;  %v2711_v1 = vmul.f32 %v7569_v26, %v2708_v9  ;;  %v2046_v14 = vpop.permute.xlu0 %2045  ;;  %vm2716_vm11 = vweird.f32 %v7569_v26  ;;  %v2719_v19 = vand.u32 2147483647, %v2708_v9 }
 0x37f   :  { %v2048_v18 = vmul.f32 %v2046_v14, %v2043_v31  ;;  %vm2717_vm13 = vmor %vm2715_vm12, %vm2716_vm11 }
 0x380   :  { %v2712_v45 = vsub.f32 1.0, %v2711_v1  ;;  %vm2720_vm14 = vcmp.eq.f32.partialorder %v2719_v19, 8.507059e+37 }
 0x381   :  { %v9003_v8 = vadd.f32 %v2053_v3, %v2048_v18  ;;  %v2722_v3 = vor.u32 1.1754944e-38, %v2721_v12 }
 0x382   :  { %v2713_v17 = vmul.f32 %v7569_v26, %v2712_v45 }
 0x383   :  { %v2651_v33 = vpop.f32.mrf.mxu0  ;;  %v2403_v20 = vpack.c.bf16 %v9003_v8, %v9003_v8 }
 0x384   :  { %v7571_v54 = vpop.eup %7570  ;;  %v2652_v0 = vadd.f32 %v2651_v33, %v10747_v39  ;;  %v2714_v30 = vadd.f32 %v7569_v26, %v2713_v17 }
 0x385   :  { %v2754_v34 = vadd.f32 1.0, %v7571_v54  ;;  %v2666_v29 = vpop.f32.mrf.mxu1  ;;  %2405 = vrot.lane.b32.xlu0 %v2403_v20, %s7953_s12 }
 0x386   :  { %v2665_v14 = vadd.f32 %v2664_v59, %v2652_v0  ;;  %v2718_v51 = vsel %vm2717_vm13, %v7569_v26, %v2714_v30  ;;  %v2804_v59 = vrot.slane %v8927_v55, 6  ;;  %v10760_v55 = vld [vmem:[#allocation91_spill] sm:$0xff] }
 0x387   :  { %7572 = vrcp.f32 %v2754_v34  ;;  %v2723_v1 = vsel %vm2720_vm14, %v2722_v3, %v2718_v51  ;;  %v2767_v46 = vand.u32 2147483648, %v2754_v34  ;;  %v2765_v29 = vand.u32 2147483647, %v2754_v34 }
 0x388   :  { %v2788_v31 = vrot.slane %v2665_v14, 4  ;;  %vm2761_vm1 = vweird.f32 %v2754_v34 }
 0x389   :  { %v2768_v20 = vor.u32 1.1754944e-38, %v2767_v46  ;;  %vm2766_vm3 = vcmp.eq.f32.partialorder %v2765_v29, 8.507059e+37  ;;  %v10759_v46 = vld [vmem:[#allocation87_spill] sm:$0xff] }
 0x38a   :  { %v2792_v18 = vmul.f32 %v2788_v31, %v2723_v1  ;;  %v10758_v1 = vld [vmem:[#allocation83_spill] sm:$0xff] }
 0x38b   :  { %v2653_v45 = vpop.f32.mrf.mxu0  ;;  %v10767_v29 = vld [vmem:[#allocation119_spill] sm:$0xff] }
 0x38c   :  { %v2794_v9 = vadd.f32 %v2792_v18, %v8632_v25  ;;  %v10761_v18 = vld [vmem:[#allocation95_spill] sm:$0xff] }
 0x38d   :  { %v7573_v33 = vpop.eup %7572  ;;  %v10762_v45 = vld [vmem:[#allocation99_spill] sm:$0xff] }
 0x38e   :  { %v2757_v17 = vmul.f32 %v7573_v33, %v2754_v34  ;;  %vm2762_vm15 = vweird.f32 %v7573_v33  ;;  %7574 = vtanh.f32 %v2794_v9  ;;  %v10757_v34 = vld [vmem:[#allocation79_spill] sm:$0xff] }
 0x38f   :  { %vm2763_vm2 = vmor %vm2761_vm1, %vm2762_vm15  ;;  %v10765_v9 = vld [vmem:[#allocation111_spill] sm:$0xff] }
 0x390   :  { %v2758_v39 = vsub.f32 1.0, %v2757_v17  ;;  %v10764_v17 = vld [vmem:[#allocation107_spill] sm:$0xff] }
 0x392   :  { %v2759_v54 = vmul.f32 %v7573_v33, %v2758_v39  ;;  %v10756_v39 = vld [vmem:[#allocation75_spill] sm:$0xff] }
 0x394   :  { %v2760_v26 = vadd.f32 %v7573_v33, %v2759_v54  ;;  %v7575_v14 = vpop.eup %7574  ;;  %v10766_v54 = vld [vmem:[#allocation115_spill] sm:$0xff] }
 0x396   :  { %v2764_v12 = vsel %vm2763_vm2, %v7573_v33, %v2760_v26  ;;  %v10763_v33 = vld [vmem:[#allocation106_spill] sm:$0xff]  ;;  %v10768_v26 = vld [vmem:[#allocation123_spill] sm:$0xff] }
 0x397   :  { %v2769_v0 = vsel %vm2766_vm3, %v2768_v20, %v2764_v12  ;;  %v10769_v20 = vld [vmem:[#allocation127_spill] sm:$0xff]  ;;  %v10771_v12 = vld [vmem:[#allocation134_spill] sm:$0xff] }
 0x398   :  { %v2798_v30 = vsub.f32 1.0, %v2769_v0  ;;  %v2808_v19 = vmul.f32 %v2804_v59, %v2769_v0  ;;  %v10770_v59 = vld [vmem:[#allocation131_spill] sm:$0xff]  ;;  %v10772_v0 = vld [vmem:[#allocation41_spill] sm:$0xff] }
 0x39a   :  { %v2800_v51 = vmul.f32 %v7575_v14, %v2798_v30  ;;  %v10773_v30 = vld [vmem:[#allocation45_spill] sm:$0xff] }
 0x39b   :  { %v10774_v14 = vld [vmem:[#allocation49_spill] sm:$0xff] }
 0x39c   :  { %v9011_v3 = vadd.f32 %v2808_v19, %v2800_v51  ;;  %v10775_v51 = vld [vmem:[#allocation73_spill] sm:$0xff] }
 0x3b4   :  { %v2471_v31 = vpop.permute.xlu1 %2470 }
 0x3b5   :  { %6741 = vmatmul.msk.bf16.vlgmr.msrb.gmra.mxu3 %vm1995_vm0, %v2471_v31  ;;  %v10776_v31 = vld [vmem:[#allocation53_spill] sm:$0xff] }
 0x3b6   :  { %2629 = vmatpush.bf16.msrb.mxu3 %v10756_v39 }
 0x3ba   :  { %2630 = vmatpush.bf16.msrb.mxu3 %v10757_v34 }
 0x3be   :  { %2631 = vmatpush.bf16.msrb.mxu3 %v10758_v1 }
 0x3c2   :  { %2632 = vmatpush.bf16.msrb.mxu3 %v10759_v46 }
 0x3c5   :  { %2585 = vmatmul.bf16.vlgmr.msra.gmra.mxu3 %v8925_v27 }
 0x3c6   :  { %2633 = vmatpush.bf16.msrb.mxu3 %v10760_v55 }
 0x3ca   :  { %2634 = vmatpush.bf16.msrb.mxu3 %v10761_v18 }
 0x3ce   :  { %2635 = vmatpush.bf16.msrb.mxu3 %v10762_v45 }
 0x3d2   :  { %2636 = vmatpush.bf16.msrb.mxu3 %v10763_v33 }
 0x3d5   :  { %2637 = vmatmul.bf16.vlgmr.msrb.gmra.mxu3 %v8925_v27 }
 0x3d6   :  { %2681 = vmatpush.bf16.msra.mxu3 %v10764_v17 }
 0x3da   :  { %2682 = vmatpush.bf16.msra.mxu3 %v10765_v9 }
 0x3de   :  { %2683 = vmatpush.bf16.msra.mxu3 %v10766_v54 }
 0x3e2   :  { %2684 = vmatpush.bf16.msra.mxu3 %v10767_v29 }
 0x3e6   :  { %2685 = vmatpush.bf16.msra.mxu3 %v10768_v26  ;;  %v10803_v26 = vld [vmem:[#allocation133_spill] sm:$0xff] }
 0x3ea   :  { %2686 = vmatpush.bf16.msra.mxu3 %v10769_v20  ;;  %v10777_v20 = vld [vmem:[#allocation78_spill] sm:$0xff] }
 0x3ee   :  { %2687 = vmatpush.bf16.msra.mxu3 %v10770_v59  ;;  %v10778_v59 = vld [vmem:[#allocation57_spill] sm:$0xff] }
 0x3f2   :  { %2688 = vmatpush.bf16.msra.mxu3 %v10771_v12  ;;  %v10779_v12 = vld [vmem:[#allocation82_spill] sm:$0xff] }
 0x3f5   :  { %2689 = vmatmul.bf16.vlgmr.msra.gmra.mxu3 %v8925_v27  ;;  %v10781_v27 = vld [vmem:[#allocation86_spill] sm:$0xff] }
 0x3f6   :  { %2962 = vmatpush.bf16.msrb.mxu3 %v10772_v0  ;;  %v10780_v0 = vld [vmem:[#allocation61_spill] sm:$0xff] }
 0x3f7   :  { %v2406_v19 = vpop.permute.xlu0 %2405 }
 0x3f8   :  { %6739 = vmatmul.msk.bf16.vlgmr.msrb.gmra.mxu2 %vm1995_vm0, %v2406_v19  ;;  %v10783_v19 = vld [vmem:[#allocation90_spill] sm:$0xff] }
 0x3f9   :  { %2616 = vmatpush.bf16.msrb.mxu2 %v10775_v51  ;;  %v10785_v51 = vld [vmem:[#allocation94_spill] sm:$0xff] }
 0x3fa   :  { %2963 = vmatpush.bf16.msrb.mxu3 %v10773_v30  ;;  %v10782_v30 = vld [vmem:[#allocation65_spill] sm:$0xff] }
 0x3fd   :  { %2617 = vmatpush.bf16.msrb.mxu2 %v10777_v20  ;;  %v10787_v20 = vld [vmem:[#allocation98_spill] sm:$0xff] }
 0x3fe   :  { %2964 = vmatpush.bf16.msrb.mxu3 %v10774_v14  ;;  %v10784_v14 = vld [vmem:[#allocation69_spill] sm:$0xff] }
 0x401   :  { %2618 = vmatpush.bf16.msrb.mxu2 %v10779_v12  ;;  %v10789_v12 = vld [vmem:[#allocation103_spill] sm:$0xff] }
 0x402   :  { %2965 = vmatpush.bf16.msrb.mxu3 %v10776_v31  ;;  %v10786_v31 = vld [vmem:[#allocation72_spill] sm:$0xff] }
 0x405   :  { %2619 = vmatpush.bf16.msrb.mxu2 %v10781_v27  ;;  %v10791_v27 = vld [vmem:[#allocation105_spill] sm:$0xff] }
 0x406   :  { %2966 = vmatpush.bf16.msrb.mxu3 %v10778_v59  ;;  %v10788_v59 = vld [vmem:[#allocation77_spill] sm:$0xff] }
 0x408   :  { %2572 = vmatmul.bf16.vlgmr.msra.gmra.mxu2 %v8934_v15 }
 0x409   :  { %2620 = vmatpush.bf16.msrb.mxu2 %v10783_v19  ;;  %v10793_v19 = vld [vmem:[#allocation110_spill] sm:$0xff] }
 0x40a   :  { %2967 = vmatpush.bf16.msrb.mxu3 %v10780_v0  ;;  %v10790_v0 = vld [vmem:[#allocation81_spill] sm:$0xff] }
 0x40d   :  { %2621 = vmatpush.bf16.msrb.mxu2 %v10785_v51  ;;  %v10794_v51 = vld [vmem:[#allocation89_spill] sm:$0xff] }
 0x40e   :  { %2968 = vmatpush.bf16.msrb.mxu3 %v10782_v30  ;;  %v10792_v30 = vld [vmem:[#allocation85_spill] sm:$0xff] }
 0x411   :  { %2622 = vmatpush.bf16.msrb.mxu2 %v10787_v20  ;;  %v10796_v20 = vld [vmem:[#allocation93_spill] sm:$0xff] }
 0x412   :  { %2969 = vmatpush.bf16.msrb.mxu3 %v10784_v14  ;;  %v10801_v14 = vld [vmem:[#allocation126_spill] sm:$0xff] }
 0x415   :  { %2623 = vmatpush.bf16.msrb.mxu2 %v10789_v12  ;;  %v10798_v12 = vld [vmem:[#allocation97_spill] sm:$0xff] }
 0x416   :  { %3014 = vmatpush.bf16.msra.mxu3 %v10786_v31  ;;  %v10795_v31 = vld [vmem:[#allocation114_spill] sm:$0xff] }
 0x418   :  { %2624 = vmatmul.bf16.vlgmr.msrb.gmra.mxu2 %v8934_v15 }
 0x419   :  { %2668 = vmatpush.bf16.msra.mxu2 %v10791_v27  ;;  %v10800_v27 = vld [vmem:[#allocation101_spill] sm:$0xff] }
 0x41a   :  { %3015 = vmatpush.bf16.msra.mxu3 %v10788_v59  ;;  %v10797_v59 = vld [vmem:[#allocation118_spill] sm:$0xff] }
 0x41d   :  { %2669 = vmatpush.bf16.msra.mxu2 %v10793_v19  ;;  %v10804_v19 = vld [vmem:[#allocation40_spill] sm:$0xff] }
 0x41e   :  { %3016 = vmatpush.bf16.msra.mxu3 %v10790_v0  ;;  %v10799_v0 = vld [vmem:[#allocation122_spill] sm:$0xff] }
 0x421   :  { %2670 = vmatpush.bf16.msra.mxu2 %v10795_v31  ;;  %v10805_v31 = vld [vmem:[#allocation44_spill] sm:$0xff] }
 0x422   :  { %3017 = vmatpush.bf16.msra.mxu3 %v10792_v30  ;;  %v10802_v30 = vld [vmem:[#allocation130_spill] sm:$0xff] }
 0x425   :  { %2671 = vmatpush.bf16.msra.mxu2 %v10797_v59  ;;  %v9072_v59 = vld [vmem:[%s10674_s13] ss:$0 sm:$0xff] }
 0x426   :  { %3018 = vmatpush.bf16.msra.mxu3 %v10794_v51  ;;  %10806 = vst [vmem:[#allocation139_spill] sm:$0xff] %v9072_v59  ;;  %v10812_v51 = vld [vmem:[#allocation68_spill] sm:$0xff] }
 0x429   :  { %2672 = vmatpush.bf16.msra.mxu2 %v10799_v0  ;;  %v10807_v0 = vld [vmem:[#allocation48_spill] sm:$0xff] }
 0x42a   :  { %3019 = vmatpush.bf16.msra.mxu3 %v10796_v20 }
 0x42d   :  { %2673 = vmatpush.bf16.msra.mxu2 %v10801_v14  ;;  %v10808_v14 = vld [vmem:[#allocation52_spill] sm:$0xff] }
 0x42e   :  { %3020 = vmatpush.bf16.msra.mxu3 %v10798_v12 }
 0x431   :  { %2674 = vmatpush.bf16.msra.mxu2 %v10802_v30 }
 0x432   :  { %3021 = vmatpush.bf16.msra.mxu3 %v10800_v27  ;;  %v10809_v27 = vld [vmem:[#allocation56_spill] sm:$0xff] }
 0x435   :  { %2675 = vmatpush.bf16.msra.mxu2 %v10803_v26  ;;  %v10810_v26 = vld [vmem:[#allocation60_spill] sm:$0xff] }
 0x438   :  { %2676 = vmatmul.bf16.vlgmr.msra.gmra.mxu2 %v8934_v15  ;;  %v2484_v20 = vpop.f32.mrf.mxu3  ;;  %v10811_v15 = vld [vmem:[#allocation64_spill] sm:$0xff] }
 0x439   :  { %2949 = vmatpush.bf16.msrb.mxu2 %v10804_v19  ;;  %v2485_v12 = vadd.f32 %v9072_v59, %v2484_v20  ;;  %v10813_v59 = vld [vmem:[#allocation71_spill] sm:$0xff] }
 0x43b   :  { %2509 = vrot.lane.b32.xlu0 %v2485_v12, %s7947_s14 }
 0x43d   :  { %2950 = vmatpush.bf16.msrb.mxu2 %v10805_v31  ;;  %v2941_v31 = vpack.c.bf16 %v9011_v3, %v9011_v3 }
 0x43f   :  { %v9085_v29 = vrot.slane %v2941_v31, 2  ;;  %v10820_v31 = vld [vmem:[#allocation100_spill] sm:$0xff] }
 0x440   :  { %v2486_v30 = vpop.f32.mrf.mxu3 }
 0x441   :  { %2951 = vmatpush.bf16.msrb.mxu2 %v10807_v0  ;;  %v10814_v30 = vld [vmem:[#allocation76_spill] sm:$0xff] }
 0x442   :  { %v10817_v0 = vld [vmem:[#allocation88_spill] sm:$0xff] }
 0x445   :  { %2952 = vmatpush.bf16.msrb.mxu2 %v10808_v14 }
 0x448   :  { %v2586_v19 = vpop.f32.mrf.mxu3 }
 0x449   :  { %2953 = vmatpush.bf16.msrb.mxu2 %v10809_v27 }
 0x44d   :  { %2954 = vmatpush.bf16.msrb.mxu2 %v10810_v26  ;;  %v10815_v26 = vld [vmem:[#allocation80_spill] sm:$0xff] }
 0x450   :  { %v2588_v20 = vpop.f32.mrf.mxu3 }
 0x451   :  { %2955 = vmatpush.bf16.msrb.mxu2 %v10811_v15  ;;  %v10816_v15 = vld [vmem:[#allocation84_spill] sm:$0xff] }
 0x452   :  { %v10819_v20 = vld [vmem:[#allocation96_spill] sm:$0xff] }
 0x455   :  { %2956 = vmatpush.bf16.msrb.mxu2 %v10812_v51  ;;  %v10818_v51 = vld [vmem:[#allocation92_spill] sm:$0xff] }
 0x458   :  { %2957 = vmatmul.bf16.vlgmr.msrb.gmra.mxu2 %v9085_v29  ;;  %v9089_v27 = vpop.f32.mrf.mxu3 }
 0x459   :  { %3001 = vmatpush.bf16.msra.mxu2 %v10813_v59 }
 0x45d   :  { %3002 = vmatpush.bf16.msra.mxu2 %v10814_v30 }
 0x460   :  { %v2640_v14 = vpop.f32.mrf.mxu3 }
 0x461   :  { %3003 = vmatpush.bf16.msra.mxu2 %v10815_v26  ;;  %v2488_v14 = vadd.f32 %v2485_v12, %v8825_v40 }
 0x465   :  { %3004 = vmatpush.bf16.msra.mxu2 %v10816_v15  ;;  %v6742_v15 = vmul.f32 -1.442695, %v2488_v14  ;;  %v10822_v14 = vld [vmem:[#allocation156_spill] sm:$0xff] }
 0x467   :  { %7576 = vpow2.f32 %v6742_v15 }
 0x469   :  { %3005 = vmatpush.bf16.msra.mxu2 %v10817_v0 }
 0x46d   :  { %3006 = vmatpush.bf16.msra.mxu2 %v10818_v51  ;;  %v9106_v51 = vld [vmem:[%s10673_s9] ss:$0 sm:$0xff]  ;;  %v7577_v12 = vpop.eup %7576 }
 0x46e   :  { %10821 = vst [vmem:[#allocation129_spill] sm:$0xff] %v9106_v51 }
 0x471   :  { %3007 = vmatpush.bf16.msra.mxu2 %v10819_v20 }
 0x475   :  { %3008 = vmatpush.bf16.msra.mxu2 %v10820_v31 }
 0x478   :  { %3009 = vmatmul.bf16.vlgmr.msra.gmra.mxu2 %v9085_v29  ;;  %v9100_v30 = vpop.f32.mrf.mxu3 }
 0x479   :  { %3053 = vmatpush.bf16.msrb.mxu2 %v10677_v57 }
 0x47b   :  { %v2419_v0 = vpop.f32.mrf.mxu2 }
 0x47c   :  { %v2420_v20 = vadd.f32 %v9106_v51, %v2419_v0 }
 0x47d   :  { %3054 = vmatpush.bf16.msrb.mxu2 %v10679_v13 }
 0x47e   :  { %v2424_v57 = vrot.slane %v2420_v20, 6 }
 0x480   :  { %v2692_v31 = vpop.f32.mrf.mxu3  ;;  %v2426_v13 = vadd.f32 %v2424_v57, %v8868_v60  ;;  %2446 = vrot.lane.b32.xlu2 %v2424_v57, %s7947_s14  ;;  %v2492_v57 = vadd.f32 1.0, %v7577_v12 }
 0x481   :  { %3055 = vmatpush.bf16.msrb.mxu2 %v10683_v28 }
 0x482   :  { %v6740_v28 = vmul.f32 -1.442695, %v2426_v13  ;;  %vm2498_vm9 = vweird.f32 %v2492_v57 }
 0x484   :  { %7578 = vpow2.f32 %v6740_v28 }
 0x485   :  { %3056 = vmatpush.bf16.msrb.mxu2 %v10687_v16  ;;  %v2421_v16 = vpop.f32.mrf.mxu2 }
 0x486   :  { %v10823_v16 = vld [vmem:[#allocation142_spill] sm:$0xff] }
 0x489   :  { %3057 = vmatpush.bf16.msrb.mxu2 %v10693_v61 }
 0x48a   :  { %v7579_v0 = vpop.eup %7578 }
 0x48b   :  { %v2430_v20 = vadd.f32 1.0, %v7579_v0 }
 0x48d   :  { %3058 = vmatpush.bf16.msrb.mxu2 %v8481_v41  ;;  %v2573_v31 = vpop.f32.mrf.mxu2  ;;  %7580 = vrcp.f32 %v2430_v20  ;;  %v2442_v12 = vand.u32 2147483648, %v2430_v20  ;;  %vm2436_vm5 = vweird.f32 %v2430_v20 }
 0x48e   :  { %v2574_v61 = vadd.f32 %v2573_v31, %v10822_v14  ;;  %7582 = vrcp.f32 %v2492_v57 }
 0x490   :  { %v2587_v13 = vadd.f32 %v2586_v19, %v2574_v61 }
 0x491   :  { %3059 = vmatpush.bf16.msrb.mxu2 %v10748_v50 }
 0x492   :  { %v2697_v28 = vrot.slane %v2587_v13, 4 }
 0x494   :  { %v2701_v15 = vadd.f32 %v2697_v28, %v10823_v16  ;;  %v2443_v28 = vor.u32 1.1754944e-38, %v2442_v12 }
 0x495   :  { %3060 = vmatpush.bf16.msrb.mxu2 %v8505_v53  ;;  %v7581_v53 = vpop.eup %7580  ;;  %v2575_v50 = vpop.f32.mrf.mxu2 }
 0x496   :  { %v2432_v0 = vmul.f32 %v7581_v53, %v2430_v20  ;;  %v7583_v14 = vpop.eup %7582  ;;  %vm2437_vm4 = vweird.f32 %v7581_v53 }
 0x497   :  { %v2494_v19 = vmul.f32 %v7583_v14, %v2492_v57  ;;  %vm2438_vm6 = vmor %vm2436_vm5, %vm2437_vm4  ;;  %vm2499_vm8 = vweird.f32 %v7583_v14 }
 0x498   :  { %3061 = vmatmul.bf16.vlgmr.msrb.gmra.mxu2 %v9085_v29  ;;  %v2433_v31 = vsub.f32 1.0, %v2432_v0  ;;  %vm2500_vm10 = vmor %vm2498_vm9, %vm2499_vm8 }
 0x499   :  { %3237 = vmatpush.bf16.msra.mxu2 %v8966_v58  ;;  %v6744_v58 = vmul.f32 -1.442695, %v2701_v15  ;;  %v2463_v15 = vrot.slane %v9003_v8, 6  ;;  %v2495_v41 = vsub.f32 1.0, %v2494_v19 }
 0x49a   :  { %v2434_v61 = vmul.f32 %v7581_v53, %v2433_v31 }
 0x49b   :  { %7584 = vpow2.f32 %v6744_v58  ;;  %v10824_v58 = vld [vmem:[#allocation158_spill] sm:$0xff]  ;;  %v2496_v8 = vmul.f32 %v7583_v14, %v2495_v41 }
 0x49c   :  { %v2435_v13 = vadd.f32 %v7581_v53, %v2434_v61  ;;  %v10825_v61 = vld [vmem:[#allocation147_spill] sm:$0xff] }
 0x49d   :  { %3238 = vmatpush.bf16.msra.mxu2 %v8972_v32  ;;  %v2440_v32 = vand.u32 2147483647, %v2430_v20 }
 0x49f   :  { %vm2441_vm7 = vcmp.eq.f32.partialorder %v2440_v32, 8.507059e+37  ;;  %v2502_v32 = vand.u32 2147483647, %v2492_v57 }
 0x4a1   :  { %3387 = vmatpush.bf16.msrb.mxu2 %v8224_v36  ;;  %v2625_v36 = vpop.f32.mrf.mxu2  ;;  %v7585_v50 = vpop.eup %7584  ;;  %vm2503_vm11 = vcmp.eq.f32.partialorder %v2502_v32, 8.507059e+37  ;;  %v10826_v32 = vld [vmem:[#allocation160_spill] sm:$0xff] }
 0x4a2   :  { %v2626_v0 = vadd.f32 %v2625_v36, %v10824_v58  ;;  %v2709_v31 = vadd.f32 1.0, %v7585_v50 }
 0x4a4   :  { %7586 = vrcp.f32 %v2709_v31  ;;  %vm2730_vm13 = vweird.f32 %v2709_v31 }
 0x4a5   :  { %3388 = vmatpush.bf16.msrb.mxu2 %v8236_v48  ;;  %v2439_v48 = vsel %vm2438_vm6, %v7581_v53, %v2435_v13  ;;  %v2504_v53 = vand.u32 2147483648, %v2492_v57 }
 0x4a6   :  { %v9126_v16 = vsel %vm2441_vm7, %v2443_v28, %v2439_v48  ;;  %v2497_v48 = vadd.f32 %v7583_v14, %v2496_v8 }
 0x4a7   :  { %v9130_v20 = vmul.f32 %v2463_v15, %v9126_v16 }
 0x4a8   :  { %v2501_v19 = vsel %vm2500_vm10, %v7583_v14, %v2497_v48  ;;  %v2736_v48 = vand.u32 2147483648, %v2709_v31 }
 0x4a9   :  { %3389 = vmatpush.bf16.msrb.mxu2 %v8252_v62  ;;  %v2639_v62 = vadd.f32 %v9089_v27, %v2626_v0  ;;  %v2627_v51 = vpop.f32.mrf.mxu2 }
 0x4aa   :  { %v7587_v27 = vpop.eup %7586 }
 0x4ab   :  { %v2743_v12 = vrot.slane %v2639_v62, 4  ;;  %v2505_v62 = vor.u32 1.1754944e-38, %v2504_v53  ;;  %v2726_v13 = vmul.f32 %v7587_v27, %v2709_v31  ;;  %vm2731_vm12 = vweird.f32 %v7587_v27 }
 0x4ac   :  { %vm2732_vm15 = vmor %vm2730_vm13, %vm2731_vm12 }
 0x4ad   :  { %3390 = vmatpush.bf16.msrb.mxu2 %v8264_v10  ;;  %v2747_v10 = vadd.f32 %v2743_v12, %v10825_v61  ;;  %v9137_v28 = vsel %vm2503_vm11, %v2505_v62, %v2501_v19  ;;  %v2727_v15 = vsub.f32 1.0, %v2726_v13  ;;  %v2734_v19 = vand.u32 2147483647, %v2709_v31 }
 0x4af   :  { %v6746_v36 = vmul.f32 -1.442695, %v2747_v10  ;;  %v2510_v10 = vpop.permute.xlu0 %2509  ;;  %v2728_v0 = vmul.f32 %v7587_v27, %v2727_v15  ;;  %v2737_v15 = vor.u32 1.1754944e-38, %v2736_v48  ;;  %vm2735_vm3 = vcmp.eq.f32.partialorder %v2734_v19, 8.507059e+37  ;;  %v10829_v19 = vld [vmem:[#allocation74_spill] sm:$0xff] }
 0x4b0   :  { %v2512_v50 = vmul.f32 %v2510_v10, %v9137_v28 }
 0x4b1   :  { %3391 = vmatpush.bf16.msrb.mxu2 %v8276_v22  ;;  %7588 = vpow2.f32 %v6746_v36  ;;  %v2729_v14 = vadd.f32 %v7587_v27, %v2728_v0 }
 0x4b2   :  { %2514 = vrot.lane.b32.xlu2 %v2512_v50, %s7947_s14 }
 0x4b3   :  { %v2733_v50 = vsel %vm2732_vm15, %v7587_v27, %v2729_v14 }
 0x4b5   :  { %3392 = vmatpush.bf16.msrb.mxu2 %v8288_v38  ;;  %v2738_v38 = vsel %vm2735_vm3, %v2737_v15, %v2733_v50  ;;  %v10830_v15 = vld [vmem:[#allocation155_spill] sm:$0xff] }
 0x4b7   :  { %v7589_v41 = vpop.eup %7588 }
 0x4b8   :  { %v2755_v51 = vadd.f32 1.0, %v7589_v41 }
 0x4b9   :  { %3393 = vmatpush.bf16.msrb.mxu2 %v10716_v43  ;;  %v2805_v43 = vrot.slane %v8920_v6, 6 }
 0x4ba   :  { %7590 = vrcp.f32 %v2755_v51  ;;  %v2782_v53 = vand.u32 2147483648, %v2755_v51  ;;  %v2780_v10 = vand.u32 2147483647, %v2755_v51  ;;  %vm2776_vm1 = vweird.f32 %v2755_v51 }
 0x4bb   :  { %v2677_v36 = vpop.f32.mrf.mxu2 }
 0x4bc   :  { %v2678_v41 = vadd.f32 %v2677_v36, %v10826_v32  ;;  %v2783_v0 = vor.u32 1.1754944e-38, %v2782_v53  ;;  %vm2781_vm4 = vcmp.eq.f32.partialorder %v2780_v10, 8.507059e+37 }
 0x4bd   :  { %3394 = vmatpush.bf16.msrb.mxu2 %v10721_v5 }
 0x4be   :  { %v2691_v13 = vadd.f32 %v9100_v30, %v2678_v41  ;;  %v10828_v41 = vld [vmem:[#allocation67_spill] sm:$0xff] }
 0x4c0   :  { %v7591_v57 = vpop.eup %7590 }
 0x4c1   :  { %v2772_v12 = vmul.f32 %v7591_v57, %v2755_v51  ;;  %vm2777_vm14 = vweird.f32 %v7591_v57 }
 0x4c2   :  { %vm2778_vm2 = vmor %vm2776_vm1, %vm2777_vm14 }
 0x4c3   :  { %v2773_v8 = vsub.f32 1.0, %v2772_v12  ;;  %v2789_v12 = vrot.slane %v2691_v13, 4  ;;  %v2679_v22 = vpop.f32.mrf.mxu2 }
 0x4c5   :  { %v2774_v62 = vmul.f32 %v7591_v57, %v2773_v8  ;;  %v2793_v8 = vmul.f32 %v2789_v12, %v2738_v38 }
 0x4c7   :  { %v2775_v5 = vadd.f32 %v7591_v57, %v2774_v62  ;;  %v2795_v61 = vadd.f32 %v2793_v8, %v8643_v52  ;;  %v10831_v8 = vld [vmem:[#allocation138_spill] sm:$0xff] }
 0x4c9   :  { %v2779_v36 = vsel %vm2778_vm2, %v7591_v57, %v2775_v5  ;;  %7592 = vtanh.f32 %v2795_v61  ;;  %v10827_v57 = vld [vmem:[#allocation63_spill] sm:$0xff] }
 0x4ca   :  { %v2784_v31 = vsel %vm2781_vm4, %v2783_v0, %v2779_v36 }
 0x4cb   :  { %v2809_v32 = vmul.f32 %v2805_v43, %v2784_v31  ;;  %v2799_v30 = vsub.f32 1.0, %v2784_v31 }
 0x4cf   :  { %v7593_v27 = vpop.eup %7592 }
 0x4d0   :  { %v2801_v51 = vmul.f32 %v7593_v27, %v2799_v30 }
 0x4d2   :  { %v9145_v14 = vadd.f32 %v2809_v32, %v2801_v51 }
 0x4d4   :  { %v2942_v48 = vpack.c.bf16 %v9145_v14, %v9145_v14 }
 0x4d6   :  { %v9149_v53 = vrot.slane %v2942_v48, 2 }
 0x4d8   :  { %2970 = vmatmul.bf16.vlgmr.msrb.gmra.mxu3 %v9149_v53 }
 0x4d9   :  { %3066 = vmatpush.bf16.msrb.mxu3 %v10681_v42 }
 0x4da   :  { %v2447_v22 = vpop.permute.xlu2 %2446 }
 0x4db   :  { %v2958_v38 = vpop.f32.mrf.mxu2  ;;  %v2449_v5 = vmul.f32 %v2447_v22, %v9126_v16  ;;  %v10832_v22 = vld [vmem:[#allocation157_spill] sm:$0xff] }
 0x4dc   :  { %v2959_v0 = vadd.f32 %v2958_v38, %v10830_v15  ;;  %v10833_v38 = vld [vmem:[#allocation145_spill] sm:$0xff] }
 0x4dd   :  { %3067 = vmatpush.bf16.msrb.mxu3 %v10685_v56  ;;  %2451 = vrot.lane.b32.xlu1 %v2449_v5, %s7947_s14 }
 0x4e1   :  { %3068 = vmatpush.bf16.msrb.mxu3 %v10690_v21 }
 0x4e3   :  { %v2960_v43 = vpop.f32.mrf.mxu2 }
 0x4e5   :  { %3069 = vmatpush.bf16.msrb.mxu3 %v10694_v35 }
 0x4e8   :  { %3022 = vmatmul.bf16.vlgmr.msra.gmra.mxu3 %v9149_v53 }
 0x4e9   :  { %3070 = vmatpush.bf16.msrb.mxu3 %v10698_v47 }
 0x4ed   :  { %3071 = vmatpush.bf16.msrb.mxu3 %v10704_v24 }
 0x4f1   :  { %3072 = vmatpush.bf16.msrb.mxu3 %v10706_v4 }
 0x4f5   :  { %3073 = vmatpush.bf16.msrb.mxu3 %v8509_v2 }
 0x4f8   :  { %3074 = vmatmul.bf16.vlgmr.msrb.gmra.mxu3 %v9149_v53 }
 0x4f9   :  { %3302 = vmatpush.bf16.msra.mxu3 %v8953_v44 }
 0x4fb   :  { %v3010_v6 = vpop.f32.mrf.mxu2 }
 0x4fc   :  { %v3011_v5 = vadd.f32 %v3010_v6, %v10832_v22 }
 0x4fd   :  { %3303 = vmatpush.bf16.msra.mxu3 %v8959_v7 }
 0x501   :  { %3400 = vmatpush.bf16.msrb.mxu3 %v8226_v37 }
 0x503   :  { %v3012_v61 = vpop.f32.mrf.mxu2 }
 0x505   :  { %3401 = vmatpush.bf16.msrb.mxu3 %v8238_v49 }
 0x509   :  { %3402 = vmatpush.bf16.msrb.mxu3 %v8254_v63 }
 0x50c   :  { %v2515_v32 = vpop.permute.xlu2 %2514 }
 0x50d   :  { %3403 = vmatpush.bf16.msrb.mxu3 %v8266_v11  ;;  %v2517_v44 = vadd.f32 %v2515_v32, %v8825_v40 }
 0x50f   :  { %7594 = vtanh.f32 %v2517_v44 }
 0x511   :  { %3404 = vmatpush.bf16.msrb.mxu3 %v8278_v23 }
 0x515   :  { %3405 = vmatpush.bf16.msrb.mxu3 %v10827_v57  ;;  %v7595_v62 = vpop.eup %7594 }
 0x516   :  { %2521 = vrot.lane.b32.xlu1 %v7595_v62, %s7953_s12 }
 0x519   :  { %3406 = vmatpush.bf16.msrb.mxu3 %v10828_v41 }
 0x51b   :  { %v3062_v7 = vpop.f32.mrf.mxu2 }
 0x51d   :  { %3407 = vmatpush.bf16.msrb.mxu3 %v10829_v19 }
 0x523   :  { %v3064_v10 = vpop.f32.mrf.mxu2 }
 0x54f   :  { %v2452_v13 = vpop.permute.xlu1 %2451 }
 0x550   :  { %v2454_v50 = vadd.f32 %v2452_v13, %v8868_v60 }
 0x552   :  { %7596 = vtanh.f32 %v2454_v50 }
 0x558   :  { %v7597_v31 = vpop.eup %7596 }
 0x559   :  { %2458 = vrot.lane.b32.xlu0 %v7597_v31, %s7953_s12 }
 0x55b   :  { %v2971_v12 = vpop.f32.mrf.mxu3 }
 0x55c   :  { %v2972_v36 = vadd.f32 %v2971_v12, %v2959_v0 }
 0x55e   :  { %v3107_v40 = vrot.slane %v2972_v36, 2 }
 0x560   :  { %v3111_v30 = vadd.f32 %v3107_v40, %v10831_v8  ;;  %v10834_v8 = vld [vmem:[#allocation159_spill] sm:$0xff] }
 0x562   :  { %v6751_v27 = vmul.f32 -1.442695, %v3111_v30  ;;  %v3063_v30 = vadd.f32 %v3062_v7, %v10834_v8 }
 0x563   :  { %v2973_v51 = vpop.f32.mrf.mxu3 }
 0x564   :  { %7598 = vpow2.f32 %v6751_v27 }
 0x56a   :  { %v7599_v48 = vpop.eup %7598 }
 0x56b   :  { %v3119_v43 = vadd.f32 1.0, %v7599_v48  ;;  %v3023_v61 = vpop.f32.mrf.mxu3 }
 0x56c   :  { %v3024_v32 = vadd.f32 %v3023_v61, %v3011_v5 }
 0x56d   :  { %7600 = vrcp.f32 %v3119_v43  ;;  %v3132_v31 = vand.u32 2147483648, %v3119_v43  ;;  %vm3126_vm6 = vweird.f32 %v3119_v43  ;;  %v3130_v27 = vand.u32 2147483647, %v3119_v43 }
 0x56e   :  { %v3153_v44 = vrot.slane %v3024_v32, 2 }
 0x56f   :  { %v3133_v32 = vor.u32 1.1754944e-38, %v3132_v31  ;;  %vm3131_vm8 = vcmp.eq.f32.partialorder %v3130_v27, 8.507059e+37 }
 0x570   :  { %v3157_v62 = vadd.f32 %v3153_v44, %v10833_v38 }
 0x572   :  { %v6753_v10 = vmul.f32 -1.442695, %v3157_v62 }
 0x573   :  { %v7601_v13 = vpop.eup %7600  ;;  %v3025_v50 = vpop.f32.mrf.mxu3 }
 0x574   :  { %7602 = vpow2.f32 %v6753_v10  ;;  %v3122_v0 = vmul.f32 %v7601_v13, %v3119_v43  ;;  %vm3127_vm5 = vweird.f32 %v7601_v13 }
 0x575   :  { %vm3128_vm7 = vmor %vm3126_vm6, %vm3127_vm5 }
 0x576   :  { %v3123_v12 = vsub.f32 1.0, %v3122_v0 }
 0x578   :  { %v3124_v36 = vmul.f32 %v7601_v13, %v3123_v12 }
 0x57a   :  { %v7603_v40 = vpop.eup %7602  ;;  %v3125_v6 = vadd.f32 %v7601_v13, %v3124_v36 }
 0x57b   :  { %v3165_v51 = vadd.f32 1.0, %v7603_v40  ;;  %v3075_v48 = vpop.f32.mrf.mxu3 }
 0x57c   :  { %v3076_v5 = vadd.f32 %v3075_v48, %v3063_v30  ;;  %v3129_v61 = vsel %vm3128_vm7, %v7601_v13, %v3125_v6  ;;  %v10835_v13 = vld [vmem:[#allocation137_spill] sm:$0xff]  ;;  %v2519_v6 = vsub.f32 1.0, %v9137_v28  ;;  %v3215_v48 = vrot.slane %v9011_v3, 6 }
 0x57d   :  { %7604 = vrcp.f32 %v3165_v51  ;;  %v3134_v38 = vsel %vm3131_vm8, %v3133_v32, %v3129_v61  ;;  %v3178_v36 = vand.u32 2147483648, %v3165_v51  ;;  %v3176_v43 = vand.u32 2147483647, %v3165_v51 }
 0x57e   :  { %v3199_v44 = vrot.slane %v3076_v5, 2  ;;  %vm3172_vm10 = vweird.f32 %v3165_v51  ;;  %v2526_v30 = vrot.slane %v10835_v13, 2  ;;  %v2456_v3 = vsub.f32 1.0, %v9126_v16  ;;  %v10836_v16 = vld [vmem:[#allocation119_spill] sm:$0xff] }
 0x57f   :  { %v3179_v31 = vor.u32 1.1754944e-38, %v3178_v36  ;;  %vm3177_vm12 = vcmp.eq.f32.partialorder %v3176_v43, 8.507059e+37  ;;  %v10839_v13 = vld [vmem:[#allocation131_spill] sm:$0xff] }
 0x580   :  { %v3203_v62 = vmul.f32 %v3199_v44, %v3134_v38  ;;  %v2528_v61 = vmul.f32 %v2526_v30, %v9137_v28  ;;  %v10840_v30 = vld [vmem:[#allocation134_spill] sm:$0xff] }
 0x582   :  { %v3205_v12 = vadd.f32 %v3203_v62, %v8632_v25 }
 0x583   :  { %v7605_v10 = vpop.eup %7604  ;;  %v3077_v50 = vpop.f32.mrf.mxu3 }
 0x584   :  { %v3168_v0 = vmul.f32 %v7605_v10, %v3165_v51  ;;  %vm3173_vm9 = vweird.f32 %v7605_v10  ;;  %7606 = vtanh.f32 %v3205_v12 }
 0x585   :  { %vm3174_vm11 = vmor %vm3172_vm10, %vm3173_vm9 }
 0x586   :  { %v3169_v7 = vsub.f32 1.0, %v3168_v0 }
 0x588   :  { %v3170_v8 = vmul.f32 %v7605_v10, %v3169_v7  ;;  %v2522_v5 = vpop.permute.xlu1 %2521 }
 0x589   :  { %v2524_v32 = vmul.f32 %v2522_v5, %v2519_v6  ;;  %v10842_v6 = vld [vmem:[#allocation45_spill] sm:$0xff] }
 0x58a   :  { %v3171_v40 = vadd.f32 %v7605_v10, %v3170_v8  ;;  %v7607_v62 = vpop.eup %7606  ;;  %v10845_v5 = vld [vmem:[#allocation57_spill] sm:$0xff] }
 0x58b   :  { %v9188_v51 = vadd.f32 %v2528_v61, %v2524_v32  ;;  %v10847_v61 = vld [vmem:[#allocation65_spill] sm:$0xff] }
 0x58c   :  { %v3175_v27 = vsel %vm3174_vm11, %v7605_v10, %v3171_v40  ;;  %v10838_v40 = vld [vmem:[#allocation127_spill] sm:$0xff]  ;;  %v10848_v32 = vld [vmem:[#allocation69_spill] sm:$0xff] }
 0x58d   :  { %v3180_v25 = vsel %vm3177_vm12, %v3179_v31, %v3175_v27  ;;  %v2877_v50 = vpack.c.bf16 %v9188_v51, %v9188_v51  ;;  %v10841_v31 = vld [vmem:[#allocation41_spill] sm:$0xff] }
 0x58e   :  { %v3209_v44 = vsub.f32 1.0, %v3180_v25  ;;  %v3219_v38 = vmul.f32 %v3215_v48, %v3180_v25  ;;  %v10843_v27 = vld [vmem:[#allocation49_spill] sm:$0xff] }
 0x58f   :  { %2879 = vrot.lane.b32.xlu2 %v2877_v50, %s7953_s12  ;;  %v10844_v48 = vld [vmem:[#allocation53_spill] sm:$0xff]  ;;  %v10853_v50 = vld [vmem:[#allocation78_spill] sm:$0xff] }
 0x590   :  { %v3211_v8 = vmul.f32 %v7607_v62, %v3209_v44  ;;  %v10846_v25 = vld [vmem:[#allocation61_spill] sm:$0xff]  ;;  %v10849_v44 = vld [vmem:[#allocation72_spill] sm:$0xff] }
 0x592   :  { %v9192_v0 = vadd.f32 %v3219_v38, %v3211_v8  ;;  %v10850_v38 = vld [vmem:[#allocation77_spill] sm:$0xff] }
 0x593   :  { %v10852_v8 = vld [vmem:[#allocation81_spill] sm:$0xff] }
 0x5cb   :  { %v2459_v10 = vpop.permute.xlu0 %2458 }
 0x5cc   :  { %v2461_v12 = vmul.f32 %v2459_v10, %v2456_v3  ;;  %v10854_v3 = vld [vmem:[#allocation85_spill] sm:$0xff]  ;;  %v10855_v10 = vld [vmem:[#allocation82_spill] sm:$0xff] }
 0x5ce   :  { %v9197_v28 = vadd.f32 %v9130_v20, %v2461_v12  ;;  %v10837_v20 = vld [vmem:[#allocation123_spill] sm:$0xff]  ;;  %v10856_v12 = vld [vmem:[#allocation89_spill] sm:$0xff] }
 0x5d0   :  { %v2812_v7 = vpack.c.bf16 %v9197_v28, %v9197_v28 }
 0x5d2   :  { %v2814_v36 = vrot.slane %v2812_v7, 1  ;;  %v10857_v7 = vld [vmem:[#allocation86_spill] sm:$0xff] }
 0x5d4   :  { %2815 = vrot.lane.b32.xlu0 %v2814_v36, %s7953_s12  ;;  %v10858_v36 = vld [vmem:[#allocation93_spill] sm:$0xff] }
 0x5e9   :  { %v2880_v43 = vpop.permute.xlu2 %2879 }
 0x5ea   :  { %6749 = vmatmul.msk.bf16.vlgmr.msrb.gmra.mxu1 %vm1995_vm0, %v2880_v43  ;;  %v10859_v43 = vld [vmem:[#allocation90_spill] sm:$0xff] }
 0x5eb   :  { %3040 = vmatpush.bf16.msrb.mxu1 %v10756_v39 }
 0x5ef   :  { %3041 = vmatpush.bf16.msrb.mxu1 %v10757_v34 }
 0x5f3   :  { %3042 = vmatpush.bf16.msrb.mxu1 %v10758_v1 }
 0x5f7   :  { %3043 = vmatpush.bf16.msrb.mxu1 %v10759_v46 }
 0x5fa   :  { %2996 = vmatmul.bf16.vlgmr.msra.gmra.mxu1 %v9149_v53 }
 0x5fb   :  { %3044 = vmatpush.bf16.msrb.mxu1 %v10760_v55 }
 0x5ff   :  { %3045 = vmatpush.bf16.msrb.mxu1 %v10761_v18 }
 0x603   :  { %3046 = vmatpush.bf16.msrb.mxu1 %v10762_v45 }
 0x607   :  { %3047 = vmatpush.bf16.msrb.mxu1 %v10763_v33 }
 0x60a   :  { %3048 = vmatmul.bf16.vlgmr.msrb.gmra.mxu1 %v9149_v53 }
 0x60b   :  { %3092 = vmatpush.bf16.msra.mxu1 %v10764_v17 }
 0x60f   :  { %3093 = vmatpush.bf16.msra.mxu1 %v10765_v9 }
 0x613   :  { %3094 = vmatpush.bf16.msra.mxu1 %v10766_v54 }
 0x617   :  { %3095 = vmatpush.bf16.msra.mxu1 %v10836_v16 }
 0x61b   :  { %3096 = vmatpush.bf16.msra.mxu1 %v10837_v20 }
 0x61f   :  { %3097 = vmatpush.bf16.msra.mxu1 %v10838_v40 }
 0x623   :  { %3098 = vmatpush.bf16.msra.mxu1 %v10839_v13 }
 0x627   :  { %3099 = vmatpush.bf16.msra.mxu1 %v10840_v30 }
 0x62a   :  { %3100 = vmatmul.bf16.vlgmr.msra.gmra.mxu1 %v9149_v53  ;;  %v10851_v53 = vld [vmem:[#allocation73_spill] sm:$0xff] }
 0x62b   :  { %3374 = vmatpush.bf16.msrb.mxu1 %v10841_v31 }
 0x62f   :  { %3375 = vmatpush.bf16.msrb.mxu1 %v10842_v6 }
 0x633   :  { %3376 = vmatpush.bf16.msrb.mxu1 %v10843_v27 }
 0x637   :  { %3377 = vmatpush.bf16.msrb.mxu1 %v10844_v48  ;;  %v10900_v48 = vld [vmem:[#allocation124_spill] sm:$0xff] }
 0x63b   :  { %3378 = vmatpush.bf16.msrb.mxu1 %v10845_v5 }
 0x63f   :  { %3379 = vmatpush.bf16.msrb.mxu1 %v10846_v25  ;;  %v10877_v25 = vld [vmem:[#allocation52_spill] sm:$0xff] }
 0x643   :  { %3380 = vmatpush.bf16.msrb.mxu1 %v10847_v61 }
 0x646   :  { %v2816_v62 = vpop.permute.xlu0 %2815 }
 0x647   :  { %3381 = vmatpush.bf16.msrb.mxu1 %v10848_v32  ;;  %6747 = vmatmul.msk.bf16.vlgmr.msrb.gmra.mxu0 %vm1995_vm0, %v2816_v62  ;;  %v10860_v62 = vld [vmem:[#allocation97_spill] sm:$0xff] }
 0x648   :  { %3027 = vmatpush.bf16.msrb.mxu0 %v10851_v53 }
 0x64b   :  { %3426 = vmatpush.bf16.msra.mxu1 %v10849_v44  ;;  %v10863_v44 = vld [vmem:[#allocation98_spill] sm:$0xff] }
 0x64c   :  { %3028 = vmatpush.bf16.msrb.mxu0 %v10853_v50 }
 0x64f   :  { %3427 = vmatpush.bf16.msra.mxu1 %v10850_v38  ;;  %v10861_v38 = vld [vmem:[#allocation94_spill] sm:$0xff] }
 0x650   :  { %3029 = vmatpush.bf16.msrb.mxu0 %v10855_v10  ;;  %v10867_v10 = vld [vmem:[#allocation110_spill] sm:$0xff] }
 0x653   :  { %3428 = vmatpush.bf16.msra.mxu1 %v10852_v8  ;;  %v10862_v8 = vld [vmem:[#allocation101_spill] sm:$0xff] }
 0x654   :  { %3030 = vmatpush.bf16.msrb.mxu0 %v10857_v7  ;;  %v10866_v7 = vld [vmem:[#allocation139_spill] sm:$0xff] }
 0x657   :  { %3429 = vmatpush.bf16.msra.mxu1 %v10854_v3  ;;  %2983 = vmatmul.bf16.vlgmr.msra.gmra.mxu0 %v9085_v29  ;;  %v10864_v3 = vld [vmem:[#allocation103_spill] sm:$0xff] }
 0x658   :  { %3031 = vmatpush.bf16.msrb.mxu0 %v10859_v43  ;;  %v10871_v43 = vld [vmem:[#allocation126_spill] sm:$0xff] }
 0x65b   :  { %3430 = vmatpush.bf16.msra.mxu1 %v10856_v12  ;;  %v10865_v12 = vld [vmem:[#allocation105_spill] sm:$0xff] }
 0x65c   :  { %3032 = vmatpush.bf16.msrb.mxu0 %v10861_v38  ;;  %v10868_v38 = vld [vmem:[#allocation114_spill] sm:$0xff] }
 0x65f   :  { %3431 = vmatpush.bf16.msra.mxu1 %v10858_v36 }
 0x660   :  { %3033 = vmatpush.bf16.msrb.mxu0 %v10863_v44 }
 0x663   :  { %3432 = vmatpush.bf16.msra.mxu1 %v10860_v62 }
 0x664   :  { %3034 = vmatpush.bf16.msrb.mxu0 %v10864_v3  ;;  %v10870_v3 = vld [vmem:[#allocation122_spill] sm:$0xff] }
 0x667   :  { %3433 = vmatpush.bf16.msra.mxu1 %v10862_v8  ;;  %v2893_v32 = vpop.f32.mrf.mxu1  ;;  %3035 = vmatmul.bf16.vlgmr.msrb.gmra.mxu0 %v9085_v29  ;;  %v10869_v8 = vld [vmem:[#allocation118_spill] sm:$0xff] }
 0x668   :  { %3079 = vmatpush.bf16.msra.mxu0 %v10865_v12  ;;  %v2894_v61 = vadd.f32 %v10866_v7, %v2893_v32  ;;  %v10872_v32 = vld [vmem:[#allocation130_spill] sm:$0xff]  ;;  %v10873_v7 = vld [vmem:[#allocation133_spill] sm:$0xff] }
 0x66a   :  { %v2898_v36 = vrot.slane %v2894_v61, 2  ;;  %v10874_v61 = vld [vmem:[#allocation40_spill] sm:$0xff] }
 0x66c   :  { %3080 = vmatpush.bf16.msra.mxu0 %v10867_v10  ;;  %2920 = vrot.lane.b32.xlu1 %v2898_v36, %s7947_s14 }
 0x66f   :  { %v2895_v62 = vpop.f32.mrf.mxu1 }
 0x670   :  { %3081 = vmatpush.bf16.msra.mxu0 %v10868_v38  ;;  %v10875_v38 = vld [vmem:[#allocation44_spill] sm:$0xff] }
 0x674   :  { %3082 = vmatpush.bf16.msra.mxu0 %v10869_v8  ;;  %v10876_v8 = vld [vmem:[#allocation48_spill] sm:$0xff] }
 0x677   :  { %v9255_v44 = vpop.f32.mrf.mxu1 }
 0x678   :  { %3083 = vmatpush.bf16.msra.mxu0 %v10870_v3 }
 0x67c   :  { %3084 = vmatpush.bf16.msra.mxu0 %v10871_v43  ;;  %v10878_v43 = vld [vmem:[#allocation56_spill] sm:$0xff] }
 0x67f   :  { %v2999_v12 = vpop.f32.mrf.mxu1 }
 0x680   :  { %3085 = vmatpush.bf16.msra.mxu0 %v10872_v32  ;;  %v10879_v12 = vld [vmem:[#allocation60_spill] sm:$0xff] }
 0x681   :  { %v10880_v32 = vld [vmem:[#allocation64_spill] sm:$0xff] }
 0x684   :  { %3086 = vmatpush.bf16.msra.mxu0 %v10873_v7 }
 0x687   :  { %3087 = vmatmul.bf16.vlgmr.msra.gmra.mxu0 %v9085_v29  ;;  %v9263_v62 = vpop.f32.mrf.mxu1  ;;  %v10881_v29 = vld [vmem:[#allocation68_spill] sm:$0xff] }
 0x688   :  { %3361 = vmatpush.bf16.msrb.mxu0 %v10874_v61  ;;  %v3353_v61 = vpack.c.bf16 %v9192_v0, %v9192_v0 }
 0x68a   :  { %v9274_v7 = vrot.slane %v3353_v61, 3  ;;  %v7762_v61 = vld [vmem:[%s10703_s3] ss:$0 sm:$0xff]  ;;  %s7884_s3 = scalar_lea.hbm %s8173_s27, 1 }
 0x68c   :  { %3362 = vmatpush.bf16.msrb.mxu0 %v10875_v38  ;;  %10882 = vst [vmem:[#allocation135_spill] sm:$0xff] %v9274_v7 }
 0x68f   :  { %v3051_v10 = vpop.f32.mrf.mxu1 }
 0x690   :  { %3363 = vmatpush.bf16.msrb.mxu0 %v10876_v8  ;;  %v10883_v8 = vld [vmem:[#allocation125_spill] sm:$0xff] }
 0x691   :  { %v10884_v10 = vld [vmem:[#allocation109_spill] sm:$0xff] }
 0x692   :  { %v10885_v38 = vperm.slane %v10884_v10, 1 }
 0x694   :  { %3364 = vmatpush.bf16.msrb.mxu0 %v10877_v25  ;;  %v1099_v3 = vmul.f32 %v10885_v38, %v10883_v8  ;;  %v10886_v25 = vld [vmem:[#allocation104_spill] sm:$0xff] }
 0x695   :  { %v10889_v38 = vld [vmem:[#allocation84_spill] sm:$0xff] }
 0x698   :  { %3365 = vmatpush.bf16.msrb.mxu0 %v10878_v43  ;;  %v10887_v43 = vperm.slane %v10884_v10, 0  ;;  %v10890_v10 = vld [vmem:[#allocation88_spill] sm:$0xff] }
 0x69a   :  { %v1096_v50 = vmul.f32 %v10887_v43, %v10886_v25  ;;  %v10891_v25 = vld [vmem:[#allocation92_spill] sm:$0xff] }
 0x69b   :  { %v10892_v43 = vld [vmem:[#allocation96_spill] sm:$0xff] }
 0x69c   :  { %3366 = vmatpush.bf16.msrb.mxu0 %v10879_v12  ;;  %v10888_v12 = vld [vmem:[#allocation76_spill] sm:$0xff]  ;;  %v1101_v5 = vadd.f32 %v1099_v3, %v1096_v50 }
 0x69d   :  { %v10893_v50 = vld [vmem:[#allocation100_spill] sm:$0xff] }
 0x6a0   :  { %3367 = vmatpush.bf16.msrb.mxu0 %v10880_v32 }
 0x6a4   :  { %3368 = vmatpush.bf16.msrb.mxu0 %v10881_v29  ;;  %v9289_v29 = vadd.f32 %v7762_v61, %v1101_v5  ;;  %v10896_v5 = vld [vmem:[#allocation112_spill] sm:$0xff] }
 0x6a6   :  { %v2900_v53 = vadd.f32 %v2898_v36, %v9289_v29  ;;  %v10897_v36 = vld [vmem:[#allocation129_spill] sm:$0xff] }
 0x6a7   :  { %3369 = vmatmul.bf16.vlgmr.msrb.gmra.mxu0 %v9274_v7  ;;  %v9284_v32 = vpop.f32.mrf.mxu1 }
 0x6a8   :  { %3413 = vmatpush.bf16.msra.mxu0 %v10813_v59  ;;  %v6750_v8 = vmul.f32 -1.442695, %v2900_v53 }
 0x6aa   :  { %7608 = vpow2.f32 %v6750_v8 }
 0x6ac   :  { %3414 = vmatpush.bf16.msra.mxu0 %v10888_v12 }
 0x6af   :  { %v3103_v59 = vpop.f32.mrf.mxu1 }
 0x6b0   :  { %3415 = vmatpush.bf16.msra.mxu0 %v10815_v26  ;;  %v7609_v12 = vpop.eup %7608  ;;  %v10894_v26 = vld [vmem:[#allocation102_spill] sm:$0xff]  ;;  %v10895_v59 = vld [vmem:[#allocation108_spill] sm:$0xff] }
 0x6b1   :  { %v2904_v3 = vadd.f32 1.0, %v7609_v12 }
 0x6b3   :  { %7610 = vrcp.f32 %v2904_v3  ;;  %vm2910_vm14 = vweird.f32 %v2904_v3 }
 0x6b4   :  { %3416 = vmatpush.bf16.msra.mxu0 %v10889_v38 }
 0x6b8   :  { %3417 = vmatpush.bf16.msra.mxu0 %v10890_v10  ;;  %v10898_v10 = vld [vmem:[#allocation116_spill] sm:$0xff] }
 0x6b9   :  { %v7611_v8 = vpop.eup %7610 }
 0x6ba   :  { %v2906_v12 = vmul.f32 %v7611_v8, %v2904_v3  ;;  %vm2911_vm13 = vweird.f32 %v7611_v8 }
 0x6bb   :  { %vm2912_vm15 = vmor %vm2910_vm14, %vm2911_vm13 }
 0x6bc   :  { %3418 = vmatpush.bf16.msra.mxu0 %v10891_v25 }
 0x6c0   :  { %3419 = vmatpush.bf16.msra.mxu0 %v10892_v43 }
 0x6c4   :  { %3420 = vmatpush.bf16.msra.mxu0 %v10893_v50  ;;  %v2829_v53 = vpop.f32.mrf.mxu0  ;;  %v10899_v50 = vld [vmem:[#allocation120_spill] sm:$0xff] }
 0x6c5   :  { %v2830_v61 = vadd.f32 %v10897_v36, %v2829_v53  ;;  %v10901_v36 = vld [vmem:[#allocation128_spill] sm:$0xff] }
 0x6c7   :  { %3421 = vmatmul.bf16.vlgmr.msra.gmra.mxu0 %v9274_v7  ;;  %v2834_v25 = vrot.slane %v2830_v61, 4 }
 0x6c8   :  { %3465 = vmatpush.bf16.msrb.mxu0 %v10894_v26 }
 0x6c9   :  { %v2836_v43 = vadd.f32 %v2834_v25, %v8868_v60  ;;  %2856 = vrot.lane.b32.xlu2 %v2834_v25, %s7947_s14  ;;  %v2916_v25 = vand.u32 2147483648, %v2904_v3 }
 0x6cb   :  { %v6748_v26 = vmul.f32 -1.442695, %v2836_v43 }
 0x6cc   :  { %3466 = vmatpush.bf16.msrb.mxu0 %v10895_v59  ;;  %v2831_v38 = vpop.f32.mrf.mxu0  ;;  %v2907_v59 = vsub.f32 1.0, %v2906_v12 }
 0x6cd   :  { %7612 = vpow2.f32 %v6748_v26  ;;  %v2914_v26 = vand.u32 2147483647, %v2904_v3  ;;  %v10903_v38 = vld [vmem:[#allocation132_spill] sm:$0xff] }
 0x6cf   :  { %vm2915_vm1 = vcmp.eq.f32.partialorder %v2914_v26, 8.507059e+37 }
 0x6d0   :  { %3467 = vmatpush.bf16.msrb.mxu0 %v10896_v5  ;;  %v2908_v5 = vmul.f32 %v7611_v8, %v2907_v59 }
 0x6d2   :  { %v2909_v31 = vadd.f32 %v7611_v8, %v2908_v5 }
 0x6d3   :  { %v7613_v27 = vpop.eup %7612 }
 0x6d4   :  { %3468 = vmatpush.bf16.msrb.mxu0 %v10898_v10  ;;  %v2840_v53 = vadd.f32 1.0, %v7613_v27  ;;  %v2984_v61 = vpop.f32.mrf.mxu0  ;;  %v10902_v10 = vld [vmem:[#allocation156_spill] sm:$0xff]  ;;  %v2913_v12 = vsel %vm2912_vm15, %v7611_v8, %v2909_v31  ;;  %v9312_v27 = vld [vmem:[%s8048_s4 + $0x8] sm:$0xff] }
 0x6d5   :  { %v2985_v6 = vadd.f32 %v2984_v61, %v10902_v10  ;;  %10904 = vst [vmem:[#allocation138_spill] sm:$0xff] %v9312_v27  ;;  %v10905_v61 = vld [vmem:[#allocation142_spill] sm:$0xff]  ;;  %v9321_v31 = vld [vmem:[%s8048_s4] sm:$0xff]  ;;  %s11166_s4 = sld [smem:[#allocation16_spill]] }
 0x6d6   :  { %7614 = vrcp.f32 %v2840_v53  ;;  %10906 = vst [vmem:[#allocation145_spill] sm:$0xff] %v9321_v31  ;;  %v10907_v8 = vld [vmem:[#allocation42_spill] sm:$0xff]  ;;  %v2852_v26 = vand.u32 2147483648, %v2840_v53  ;;  %vm2846_vm3 = vweird.f32 %v2840_v53 }
 0x6d7   :  { %v2998_v43 = vadd.f32 %v9255_v44, %v2985_v6 }
 0x6d8   :  { %3469 = vmatpush.bf16.msrb.mxu0 %v10899_v50 }
 0x6d9   :  { %v3108_v59 = vrot.slane %v2998_v43, 2 }
 0x6db   :  { %v3112_v5 = vadd.f32 %v3108_v59, %v10905_v61 }
 0x6dc   :  { %3470 = vmatpush.bf16.msrb.mxu0 %v10900_v48  ;;  %v7615_v10 = vpop.eup %7614  ;;  %v2986_v3 = vpop.f32.mrf.mxu0 }
 0x6dd   :  { %v2842_v43 = vmul.f32 %v7615_v10, %v2840_v53  ;;  %vm2847_vm2 = vweird.f32 %v7615_v10 }
 0x6de   :  { %v2921_v6 = vpop.permute.xlu1 %2920  ;;  %vm2848_vm4 = vmor %vm2846_vm3, %vm2847_vm2 }
 0x6e0   :  { %3471 = vmatpush.bf16.msrb.mxu0 %v10901_v36  ;;  %v2917_v36 = vor.u32 1.1754944e-38, %v2916_v25  ;;  %v2843_v25 = vsub.f32 1.0, %v2842_v43  ;;  %v10909_v43 = vld [vmem:[#allocation50_spill] sm:$0xff] }
 0x6e2   :  { %v9317_v44 = vsel %vm2915_vm1, %v2917_v36, %v2913_v12  ;;  %v2844_v59 = vmul.f32 %v7615_v10, %v2843_v25  ;;  %v2850_v36 = vand.u32 2147483647, %v2840_v53  ;;  %v10908_v12 = vld [vmem:[#allocation46_spill] sm:$0xff] }
 0x6e3   :  { %v2923_v48 = vmul.f32 %v2921_v6, %v9317_v44  ;;  %v2853_v6 = vor.u32 1.1754944e-38, %v2852_v26  ;;  %v10911_v26 = vld [vmem:[#allocation147_spill] sm:$0xff] }
 0x6e4   :  { %3472 = vmatpush.bf16.msrb.mxu0 %v10903_v38  ;;  %v6752_v38 = vmul.f32 -1.442695, %v3112_v5  ;;  %v2845_v61 = vadd.f32 %v7615_v10, %v2844_v59  ;;  %v3036_v5 = vpop.f32.mrf.mxu0  ;;  %vm2851_vm5 = vcmp.eq.f32.partialorder %v2850_v36, 8.507059e+37 }
 0x6e5   :  { %2925 = vrot.lane.b32.xlu0 %v2923_v48, %s7947_s14 }
 0x6e6   :  { %7616 = vpow2.f32 %v6752_v38  ;;  %v2849_v38 = vsel %vm2848_vm4, %v7615_v10, %v2845_v61  ;;  %v10912_v10 = vld [vmem:[#allocation58_spill] sm:$0xff] }
 0x6e7   :  { %3473 = vmatmul.bf16.vlgmr.msrb.gmra.mxu0 %v9274_v7  ;;  %v9329_v48 = vsel %vm2851_vm5, %v2853_v6, %v2849_v38  ;;  %v10913_v61 = vld [vmem:[#allocation62_spill] sm:$0xff] }
 0x6e8   :  { %3631 = vmatpush.bf16.msra.mxu0 %v9312_v27 }
 0x6ec   :  { %3632 = vmatpush.bf16.msra.mxu0 %v9321_v31  ;;  %v7617_v3 = vpop.eup %7616  ;;  %v2873_v31 = vrot.slane %v9197_v28, 6  ;;  %v3038_v50 = vpop.f32.mrf.mxu0 }
 0x6ed   :  { %v3120_v25 = vadd.f32 1.0, %v7617_v3 }
 0x6ee   :  { %v9334_v59 = vmul.f32 %v2873_v31, %v9329_v48  ;;  %v10915_v31 = vld [vmem:[#allocation70_spill] sm:$0xff] }
 0x6ef   :  { %7618 = vrcp.f32 %v3120_v25  ;;  %vm3141_vm7 = vweird.f32 %v3120_v25 }
 0x6f0   :  { %3773 = vmatpush.bf16.msrb.mxu0 %v10907_v8  ;;  %v3037_v8 = vadd.f32 %v3036_v5, %v10824_v58 }
 0x6f2   :  { %v3050_v27 = vadd.f32 %v9263_v62, %v3037_v8  ;;  %v10914_v8 = vld [vmem:[#allocation66_spill] sm:$0xff] }
 0x6f4   :  { %3774 = vmatpush.bf16.msrb.mxu0 %v10908_v12  ;;  %v3154_v53 = vrot.slane %v3050_v27, 2  ;;  %v10910_v12 = vld [vmem:[#allocation54_spill] sm:$0xff] }
 0x6f5   :  { %v7619_v36 = vpop.eup %7618 }
 0x6f6   :  { %v3158_v28 = vadd.f32 %v3154_v53, %v10911_v26  ;;  %v3137_v6 = vmul.f32 %v7619_v36, %v3120_v25  ;;  %vm3142_vm6 = vweird.f32 %v7619_v36 }
 0x6f7   :  { %vm3143_vm8 = vmor %vm3141_vm7, %vm3142_vm6 }
 0x6f8   :  { %3775 = vmatpush.bf16.msrb.mxu0 %v10909_v43  ;;  %v6754_v5 = vmul.f32 -1.442695, %v3158_v28  ;;  %v3138_v27 = vsub.f32 1.0, %v3137_v6 }
 0x6fa   :  { %7620 = vpow2.f32 %v6754_v5  ;;  %v3139_v38 = vmul.f32 %v7619_v36, %v3138_v27  ;;  %v3147_v5 = vand.u32 2147483648, %v3120_v25 }
 0x6fc   :  { %3776 = vmatpush.bf16.msrb.mxu0 %v10910_v12  ;;  %v3140_v50 = vadd.f32 %v7619_v36, %v3139_v38  ;;  %v3148_v6 = vor.u32 1.1754944e-38, %v3147_v5  ;;  %v9370_v5 = vld [vmem:[%s8068_s29] sm:$0xff] }
 0x700   :  { %3777 = vmatpush.bf16.msrb.mxu0 %v10912_v10  ;;  %v7621_v3 = vpop.eup %7620  ;;  %v10916_v10 = vld [vmem:[#allocation160_spill] sm:$0xff] }
 0x701   :  { %v3166_v62 = vadd.f32 1.0, %v7621_v3 }
 0x703   :  { %7622 = vrcp.f32 %v3166_v62  ;;  %v3193_v38 = vand.u32 2147483648, %v3166_v62  ;;  %vm3187_vm11 = vweird.f32 %v3166_v62 }
 0x704   :  { %3778 = vmatpush.bf16.msrb.mxu0 %v10913_v61  ;;  %v3088_v28 = vpop.f32.mrf.mxu0  ;;  %v3145_v61 = vand.u32 2147483647, %v3120_v25 }
 0x705   :  { %v3089_v12 = vadd.f32 %v3088_v28, %v10916_v10 }
 0x706   :  { %vm3146_vm9 = vcmp.eq.f32.partialorder %v3145_v61, 8.507059e+37 }
 0x707   :  { %v3102_v3 = vadd.f32 %v9284_v32, %v3089_v12  ;;  %v3216_v12 = vrot.slane %v9145_v14, 6 }
 0x708   :  { %3779 = vmatpush.bf16.msrb.mxu0 %v10914_v8  ;;  %v3144_v8 = vsel %vm3143_vm8, %v7619_v36, %v3140_v50 }
 0x709   :  { %v7623_v58 = vpop.eup %7622  ;;  %v3149_v27 = vsel %vm3146_vm9, %v3148_v6, %v3144_v8 }
 0x70a   :  { %v3183_v53 = vmul.f32 %v7623_v58, %v3166_v62  ;;  %vm3188_vm10 = vweird.f32 %v7623_v58 }
 0x70b   :  { %vm3189_vm12 = vmor %vm3187_vm11, %vm3188_vm10 }
 0x70c   :  { %3780 = vmatpush.bf16.msrb.mxu0 %v10915_v31  ;;  %v3184_v26 = vsub.f32 1.0, %v3183_v53  ;;  %v3200_v31 = vrot.slane %v3102_v3, 2  ;;  %v3191_v53 = vand.u32 2147483647, %v3166_v62  ;;  %v3090_v13 = vpop.f32.mrf.mxu0 }
 0x70e   :  { %v3185_v43 = vmul.f32 %v7623_v58, %v3184_v26  ;;  %v3204_v30 = vmul.f32 %v3200_v31, %v3149_v27  ;;  %v3194_v26 = vor.u32 1.1754944e-38, %v3193_v38  ;;  %vm3192_vm13 = vcmp.eq.f32.partialorder %v3191_v53, 8.507059e+37 }
 0x710   :  { %v3186_v7 = vadd.f32 %v7623_v58, %v3185_v43  ;;  %v3206_v28 = vadd.f32 %v3204_v30, %v8643_v52 }
 0x712   :  { %v3190_v25 = vsel %vm3189_vm12, %v7623_v58, %v3186_v7  ;;  %7624 = vtanh.f32 %v3206_v28  ;;  %v9365_v7 = vld [vmem:[%s8068_s29 + $0x8] sm:$0xff]  ;;  %s11165_s29 = sld [smem:[#allocation18_spill]] }
 0x713   :  { %v3195_v32 = vsel %vm3192_vm13, %v3194_v26, %v3190_v25  ;;  %v10917_v25 = vld [vmem:[#allocation136_spill] sm:$0xff] }
 0x714   :  { %v3210_v36 = vsub.f32 1.0, %v3195_v32  ;;  %v3220_v8 = vmul.f32 %v3216_v12, %v3195_v32  ;;  %v10918_v26 = vperm.slane %v10917_v25, 0  ;;  %v10919_v32 = vld [vmem:[#allocation140_spill] sm:$0xff] }
 0x716   :  { %v902_v12 = vadd.f32 %v10919_v32, %v10918_v26 }
 0x718   :  { %v7625_v61 = vpop.eup %7624 }
 0x719   :  { %v3212_v50 = vmul.f32 %v7625_v61, %v3210_v36 }
 0x71b   :  { %v9346_v43 = vadd.f32 %v3220_v8, %v3212_v50  ;;  %v10920_v8 = vld [vmem:[#allocation141_spill] sm:$0xff] }
 0x71d   :  { %v3354_v62 = vpack.c.bf16 %v9346_v43, %v9346_v43 }
 0x71f   :  { %v9350_v13 = vrot.slane %v3354_v62, 3  ;;  %v9388_v62 = vadd.f32 %v10920_v8, %v902_v12 }
 0x721   :  { %3382 = vmatmul.bf16.vlgmr.msrb.gmra.mxu1 %v9350_v13  ;;  %10921 = vst [vmem:[#allocation137_spill] sm:$0xff] %v9388_v62 }
 0x722   :  { %3478 = vmatpush.bf16.msrb.mxu1 %v10681_v42 }
 0x723   :  { %v2857_v58 = vpop.permute.xlu2 %2856 }
 0x724   :  { %v3370_v52 = vpop.f32.mrf.mxu0  ;;  %v2859_v14 = vmul.f32 %v2857_v58, %v9329_v48 }
 0x725   :  { %v3371_v36 = vadd.f32 %v3370_v52, %v10830_v15  ;;  %v10922_v52 = vperm.slane %v10917_v25, 2  ;;  %v10927_v15 = vperm.slane %v10917_v25, 4 }
 0x726   :  { %3479 = vmatpush.bf16.msrb.mxu1 %v10685_v56  ;;  %2861 = vrot.lane.b32.xlu1 %v2859_v14, %s7947_s14 }
 0x72a   :  { %3480 = vmatpush.bf16.msrb.mxu1 %v10690_v21 }
 0x72c   :  { %v3372_v30 = vpop.f32.mrf.mxu0 }
 0x72e   :  { %3481 = vmatpush.bf16.msrb.mxu1 %v10694_v35 }
 0x731   :  { %3434 = vmatmul.bf16.vlgmr.msra.gmra.mxu1 %v9350_v13 }
 0x732   :  { %3482 = vmatpush.bf16.msrb.mxu1 %v10698_v47 }
 0x736   :  { %3483 = vmatpush.bf16.msrb.mxu1 %v10704_v24 }
 0x73a   :  { %3484 = vmatpush.bf16.msrb.mxu1 %v10706_v4 }
 0x73e   :  { %3485 = vmatpush.bf16.msrb.mxu1 %v8509_v2 }
 0x741   :  { %3486 = vmatmul.bf16.vlgmr.msrb.gmra.mxu1 %v9350_v13 }
 0x742   :  { %3694 = vmatpush.bf16.msra.mxu1 %v9365_v7 }
 0x744   :  { %v3422_v31 = vpop.f32.mrf.mxu0 }
 0x745   :  { %v3423_v12 = vadd.f32 %v3422_v31, %v10832_v22  ;;  %v2930_v31 = vsub.f32 1.0, %v9317_v44 }
 0x746   :  { %3695 = vmatpush.bf16.msra.mxu1 %v9370_v5 }
 0x74a   :  { %3786 = vmatpush.bf16.msrb.mxu1 %v8226_v37 }
 0x74c   :  { %v3424_v3 = vpop.f32.mrf.mxu0 }
 0x74e   :  { %3787 = vmatpush.bf16.msrb.mxu1 %v8238_v49 }
 0x752   :  { %3788 = vmatpush.bf16.msrb.mxu1 %v8254_v63 }
 0x756   :  { %3789 = vmatpush.bf16.msrb.mxu1 %v8266_v11 }
 0x757   :  { %v2926_v6 = vpop.permute.xlu0 %2925 }
 0x758   :  { %v2928_v27 = vadd.f32 %v2926_v6, %v9289_v29 }
 0x75a   :  { %3790 = vmatpush.bf16.msrb.mxu1 %v8278_v23  ;;  %7626 = vtanh.f32 %v2928_v27 }
 0x75e   :  { %3791 = vmatpush.bf16.msrb.mxu1 %v10827_v57 }
 0x760   :  { %v7627_v53 = vpop.eup %7626 }
 0x761   :  { %2932 = vrot.lane.b32.xlu2 %v7627_v53, %s7953_s12 }
 0x762   :  { %3792 = vmatpush.bf16.msrb.mxu1 %v10828_v41 }
 0x764   :  { %v3474_v38 = vpop.f32.mrf.mxu0 }
 0x766   :  { %3793 = vmatpush.bf16.msrb.mxu1 %v10829_v19 }
 0x76c   :  { %v3476_v28 = vpop.f32.mrf.mxu0 }
 0x76d   :  { %v10923_v28 = vld [vmem:[#allocation146_spill] sm:$0xff] }
 0x76e   :  { %v958_v26 = vadd.f32 %v10923_v28, %v10922_v52 }
 0x798   :  { %v2862_v50 = vpop.permute.xlu1 %2861 }
 0x799   :  { %v2864_v14 = vadd.f32 %v2862_v50, %v8868_v60 }
 0x79b   :  { %7628 = vtanh.f32 %v2864_v14 }
 0x79e   :  { %v3383_v61 = vpop.f32.mrf.mxu1 }
 0x79f   :  { %v3384_v58 = vadd.f32 %v3383_v61, %v3371_v36  ;;  %v10924_v61 = vld [vmem:[#allocation148_spill] sm:$0xff] }
 0x7a0   :  { %v9398_v50 = vadd.f32 %v10924_v61, %v958_v26 }
 0x7a1   :  { %v3517_v30 = vadd.f32 %v3384_v58, %v9388_v62  ;;  %v7629_v27 = vpop.eup %7628 }
 0x7a2   :  { %2868 = vrot.lane.b32.xlu0 %v7629_v27, %s7953_s12  ;;  %10925 = vst [vmem:[#allocation139_spill] sm:$0xff] %v9398_v50 }
 0x7a3   :  { %v6759_v3 = vmul.f32 -1.442695, %v3517_v30 }
 0x7a5   :  { %7630 = vpow2.f32 %v6759_v3 }
 0x7a6   :  { %v3385_v6 = vpop.f32.mrf.mxu1 }
 0x7ab   :  { %v7631_v53 = vpop.eup %7630 }
 0x7ac   :  { %v3525_v32 = vadd.f32 1.0, %v7631_v53  ;;  %v2937_v53 = vrot.slane %v9188_v51, 2 }
 0x7ae   :  { %7632 = vrcp.f32 %v3525_v32  ;;  %v3435_v36 = vpop.f32.mrf.mxu1  ;;  %v3538_v52 = vand.u32 2147483648, %v3525_v32  ;;  %vm3532_vm15 = vweird.f32 %v3525_v32  ;;  %v2939_v61 = vmul.f32 %v2937_v53, %v9317_v44 }
 0x7af   :  { %v3436_v8 = vadd.f32 %v3435_v36, %v3423_v12  ;;  %v3536_v12 = vand.u32 2147483647, %v3525_v32 }
 0x7b1   :  { %v3557_v58 = vadd.f32 %v3436_v8, %v9398_v50  ;;  %vm3537_vm2 = vcmp.eq.f32.partialorder %v3536_v12, 8.507059e+37 }
 0x7b3   :  { %v6761_v14 = vmul.f32 -1.442695, %v3557_v58  ;;  %v10926_v58 = vld [vmem:[#allocation159_spill] sm:$0xff] }
 0x7b4   :  { %v7633_v30 = vpop.eup %7632 }
 0x7b5   :  { %7634 = vpow2.f32 %v6761_v14  ;;  %v3528_v3 = vmul.f32 %v7633_v30, %v3525_v32  ;;  %vm3533_vm14 = vweird.f32 %v7633_v30  ;;  %v3475_v14 = vadd.f32 %v3474_v38, %v10926_v58  ;;  %v10929_v38 = vld [vmem:[#allocation152_spill] sm:$0xff] }
 0x7b6   :  { %v3437_v6 = vpop.f32.mrf.mxu1  ;;  %vm3534_vm1 = vmor %vm3532_vm15, %vm3533_vm14 }
 0x7b7   :  { %v3529_v27 = vsub.f32 1.0, %v3528_v3 }
 0x7b9   :  { %v3530_v62 = vmul.f32 %v7633_v30, %v3529_v27  ;;  %v3539_v27 = vor.u32 1.1754944e-38, %v3538_v52 }
 0x7bb   :  { %v7635_v28 = vpop.eup %7634  ;;  %v2933_v22 = vpop.permute.xlu2 %2932  ;;  %v3531_v26 = vadd.f32 %v7633_v30, %v3530_v62  ;;  %v10928_v62 = vld [vmem:[#allocation151_spill] sm:$0xff] }
 0x7bc   :  { %v3565_v36 = vadd.f32 1.0, %v7635_v28  ;;  %v2935_v8 = vmul.f32 %v2933_v22, %v2930_v31  ;;  %v1014_v19 = vadd.f32 %v10928_v62, %v10927_v15 }
 0x7bd   :  { %v3535_v3 = vsel %vm3534_vm1, %v7633_v30, %v3531_v26 }
 0x7be   :  { %7636 = vrcp.f32 %v3565_v36  ;;  %v9405_v6 = vadd.f32 %v2939_v61, %v2935_v8  ;;  %v3487_v51 = vpop.f32.mrf.mxu1  ;;  %v3540_v32 = vsel %vm3537_vm2, %v3539_v27, %v3535_v3  ;;  %v9413_v30 = vadd.f32 %v10929_v38, %v1014_v19 }
 0x7bf   :  { %v3488_v50 = vadd.f32 %v3487_v51, %v3475_v14  ;;  %v3578_v61 = vand.u32 2147483648, %v3565_v36  ;;  %v3576_v15 = vand.u32 2147483647, %v3565_v36  ;;  %vm3572_vm4 = vweird.f32 %v3565_v36 }
 0x7c0   :  { %v3288_v44 = vpack.c.bf16 %v9405_v6, %v9405_v6  ;;  %10930 = vst [vmem:[#allocation125_spill] sm:$0xff] %v9413_v30  ;;  %v3609_v3 = vrot.slane %v9192_v0, 6 }
 0x7c1   :  { %v3597_v22 = vmul.f32 %v3540_v32, %v3488_v50  ;;  %v3579_v50 = vor.u32 1.1754944e-38, %v3578_v61  ;;  %vm3577_vm6 = vcmp.eq.f32.partialorder %v3576_v15, 8.507059e+37  ;;  %v10935_v61 = vld [vmem:[#allocation49_spill] sm:$0xff] }
 0x7c2   :  { %v3290_v53 = vrot.slane %v3288_v44, 3  ;;  %v10936_v15 = vld [vmem:[#allocation53_spill] sm:$0xff] }
 0x7c3   :  { %v3599_v52 = vadd.f32 %v3597_v22, %v9413_v30 }
 0x7c4   :  { %v7637_v31 = vpop.eup %7636  ;;  %3291 = vrot.lane.b32.xlu1 %v3290_v53, %s7953_s12  ;;  %v2866_v53 = vsub.f32 1.0, %v9329_v48  ;;  %v10931_v48 = vld [vmem:[#allocation131_spill] sm:$0xff] }
 0x7c5   :  { %v3568_v28 = vmul.f32 %v7637_v31, %v3565_v36  ;;  %vm3573_vm3 = vweird.f32 %v7637_v31  ;;  %7638 = vtanh.f32 %v3599_v52 }
 0x7c6   :  { %v3489_v26 = vpop.f32.mrf.mxu1  ;;  %vm3574_vm5 = vmor %vm3572_vm4, %vm3573_vm3 }
 0x7c7   :  { %v3569_v12 = vsub.f32 1.0, %v3568_v28  ;;  %v10933_v26 = vld [vmem:[#allocation41_spill] sm:$0xff] }
 0x7c9   :  { %v3570_v8 = vmul.f32 %v7637_v31, %v3569_v12  ;;  %v10934_v12 = vld [vmem:[#allocation45_spill] sm:$0xff] }
 0x7cb   :  { %v3571_v14 = vadd.f32 %v7637_v31, %v3570_v8  ;;  %v7639_v32 = vpop.eup %7638 }
 0x7cd   :  { %v3575_v19 = vsel %vm3574_vm5, %v7637_v31, %v3571_v14  ;;  %v10937_v14 = vld [vmem:[#allocation73_spill] sm:$0xff] }
 0x7ce   :  { %v3580_v51 = vsel %vm3577_vm6, %v3579_v50, %v3575_v19  ;;  %v10938_v50 = vld [vmem:[#allocation57_spill] sm:$0xff] }
 0x7cf   :  { %v3603_v27 = vsub.f32 1.0, %v3580_v51  ;;  %v3613_v62 = vmul.f32 %v3609_v3, %v3580_v51  ;;  %v10939_v3 = vld [vmem:[#allocation78_spill] sm:$0xff]  ;;  %v10940_v19 = vld [vmem:[#allocation61_spill] sm:$0xff] }
 0x7d0   :  { %v10941_v51 = vld [vmem:[#allocation82_spill] sm:$0xff] }
 0x7d1   :  { %v3605_v44 = vmul.f32 %v7639_v32, %v3603_v27  ;;  %v10943_v27 = vld [vmem:[#allocation86_spill] sm:$0xff]  ;;  %v10945_v32 = vld [vmem:[#allocation69_spill] sm:$0xff] }
 0x7d3   :  { %v9418_v22 = vadd.f32 %v3613_v62, %v3605_v44  ;;  %v10944_v62 = vld [vmem:[#allocation135_spill] sm:$0xff]  ;;  %v10946_v44 = vld [vmem:[#allocation90_spill] sm:$0xff] }
 0x814   :  { %v2869_v38 = vpop.permute.xlu0 %2868 }
 0x815   :  { %v2871_v28 = vmul.f32 %v2869_v38, %v2866_v53  ;;  %v10947_v53 = vld [vmem:[#allocation72_spill] sm:$0xff]  ;;  %v10948_v38 = vld [vmem:[#allocation94_spill] sm:$0xff] }
 0x817   :  { %v9422_v36 = vadd.f32 %v9334_v59, %v2871_v28  ;;  %v10932_v59 = vld [vmem:[#allocation134_spill] sm:$0xff]  ;;  %v10949_v28 = vld [vmem:[#allocation77_spill] sm:$0xff] }
 0x819   :  { %v3223_v52 = vpack.c.bf16 %v9422_v36, %v9422_v36 }
 0x81b   :  { %v3225_v0 = vrot.slane %v3223_v52, 2  ;;  %v10950_v52 = vld [vmem:[#allocation98_spill] sm:$0xff] }
 0x81d   :  { %3226 = vrot.lane.b32.xlu2 %v3225_v0, %s7953_s12  ;;  %v10951_v0 = vld [vmem:[#allocation81_spill] sm:$0xff] }
 0x836   :  { %v3292_v31 = vpop.permute.xlu1 %3291 }
 0x837   :  { %6757 = vmatmul.msk.bf16.vlgmr.msra.gmra.mxu3 %vm1995_vm0, %v3292_v31  ;;  %v10952_v31 = vld [vmem:[#allocation103_spill] sm:$0xff] }
 0x838   :  { %3452 = vmatpush.bf16.msra.mxu3 %v10756_v39 }
 0x83c   :  { %3453 = vmatpush.bf16.msra.mxu3 %v10757_v34 }
 0x840   :  { %3454 = vmatpush.bf16.msra.mxu3 %v10758_v1 }
 0x844   :  { %3455 = vmatpush.bf16.msra.mxu3 %v10759_v46 }
 0x847   :  { %3408 = vmatmul.bf16.vlgmr.msrb.gmra.mxu3 %v9350_v13 }
 0x848   :  { %3456 = vmatpush.bf16.msra.mxu3 %v10760_v55 }
 0x84c   :  { %3457 = vmatpush.bf16.msra.mxu3 %v10761_v18 }
 0x850   :  { %3458 = vmatpush.bf16.msra.mxu3 %v10762_v45 }
 0x854   :  { %3459 = vmatpush.bf16.msra.mxu3 %v10763_v33 }
 0x857   :  { %3460 = vmatmul.bf16.vlgmr.msra.gmra.mxu3 %v9350_v13 }
 0x858   :  { %3504 = vmatpush.bf16.msrb.mxu3 %v10764_v17 }
 0x85c   :  { %3505 = vmatpush.bf16.msrb.mxu3 %v10765_v9 }
 0x860   :  { %3506 = vmatpush.bf16.msrb.mxu3 %v10766_v54 }
 0x864   :  { %3507 = vmatpush.bf16.msrb.mxu3 %v10836_v16 }
 0x868   :  { %3508 = vmatpush.bf16.msrb.mxu3 %v10837_v20 }
 0x86c   :  { %3509 = vmatpush.bf16.msrb.mxu3 %v10838_v40 }
 0x870   :  { %3510 = vmatpush.bf16.msrb.mxu3 %v10931_v48 }
 0x874   :  { %3511 = vmatpush.bf16.msrb.mxu3 %v10932_v59 }
 0x877   :  { %3512 = vmatmul.bf16.vlgmr.msrb.gmra.mxu3 %v9350_v13  ;;  %v3227_v8 = vpop.permute.xlu2 %3226  ;;  %v10942_v13 = vld [vmem:[#allocation65_spill] sm:$0xff] }
 0x878   :  { %3760 = vmatpush.bf16.msra.mxu3 %v10933_v26  ;;  %6755 = vmatmul.msk.bf16.vlgmr.msra.gmra.mxu2 %vm1995_vm0, %v3227_v8  ;;  %v10953_v8 = vld [vmem:[#allocation85_spill] sm:$0xff]  ;;  %v11006_v26 = vld [vmem:[#allocation158_spill] sm:$0xff] }
 0x879   :  { %3439 = vmatpush.bf16.msra.mxu2 %v10937_v14 }
 0x87c   :  { %3761 = vmatpush.bf16.msra.mxu3 %v10934_v12 }
 0x87d   :  { %3440 = vmatpush.bf16.msra.mxu2 %v10939_v3  ;;  %v9518_v3 = vld [vmem:[%s10673_s9] ss:$0 sm:$0xff] }
 0x87e   :  { %10988 = vst [vmem:[#allocation129_spill] sm:$0xff] %v9518_v3 }
 0x880   :  { %3762 = vmatpush.bf16.msra.mxu3 %v10935_v61  ;;  %v10996_v61 = vld [vmem:[#allocation156_spill] sm:$0xff] }
 0x881   :  { %3441 = vmatpush.bf16.msra.mxu2 %v10941_v51  ;;  %v10973_v51 = vld [vmem:[#allocation64_spill] sm:$0xff] }
 0x884   :  { %3763 = vmatpush.bf16.msra.mxu3 %v10936_v15 }
 0x885   :  { %3442 = vmatpush.bf16.msra.mxu2 %v10943_v27  ;;  %v10954_v27 = vld [vmem:[#allocation105_spill] sm:$0xff] }
 0x888   :  { %3764 = vmatpush.bf16.msra.mxu3 %v10938_v50  ;;  %3395 = vmatmul.bf16.vlgmr.msrb.gmra.mxu2 %v10944_v62 }
 0x889   :  { %3443 = vmatpush.bf16.msra.mxu2 %v10946_v44  ;;  %v10955_v44 = vld [vmem:[#allocation89_spill] sm:$0xff] }
 0x88c   :  { %3765 = vmatpush.bf16.msra.mxu3 %v10940_v19 }
 0x88d   :  { %3444 = vmatpush.bf16.msra.mxu2 %v10948_v38  ;;  %v10957_v38 = vld [vmem:[#allocation93_spill] sm:$0xff] }
 0x890   :  { %3766 = vmatpush.bf16.msra.mxu3 %v10942_v13  ;;  %v10965_v13 = vld [vmem:[#allocation133_spill] sm:$0xff] }
 0x891   :  { %3445 = vmatpush.bf16.msra.mxu2 %v10950_v52  ;;  %v10959_v52 = vld [vmem:[#allocation97_spill] sm:$0xff] }
 0x894   :  { %3767 = vmatpush.bf16.msra.mxu3 %v10945_v32  ;;  %v10963_v32 = vld [vmem:[#allocation126_spill] sm:$0xff] }
 0x895   :  { %3446 = vmatpush.bf16.msra.mxu2 %v10952_v31  ;;  %v10961_v31 = vld [vmem:[#allocation101_spill] sm:$0xff] }
 0x898   :  { %3812 = vmatpush.bf16.msrb.mxu3 %v10947_v53  ;;  %3447 = vmatmul.bf16.vlgmr.msra.gmra.mxu2 %v10944_v62  ;;  %v10956_v53 = vld [vmem:[#allocation110_spill] sm:$0xff] }
 0x899   :  { %3491 = vmatpush.bf16.msrb.mxu2 %v10954_v27  ;;  %v10964_v27 = vld [vmem:[#allocation130_spill] sm:$0xff] }
 0x89c   :  { %3813 = vmatpush.bf16.msrb.mxu3 %v10949_v28  ;;  %v10958_v28 = vld [vmem:[#allocation114_spill] sm:$0xff] }
 0x89d   :  { %3492 = vmatpush.bf16.msrb.mxu2 %v10956_v53 }
 0x8a0   :  { %3814 = vmatpush.bf16.msrb.mxu3 %v10951_v0  ;;  %v10960_v0 = vld [vmem:[#allocation118_spill] sm:$0xff] }
 0x8a1   :  { %3493 = vmatpush.bf16.msrb.mxu2 %v10958_v28 }
 0x8a4   :  { %3815 = vmatpush.bf16.msrb.mxu3 %v10953_v8  ;;  %v10962_v8 = vld [vmem:[#allocation122_spill] sm:$0xff] }
 0x8a5   :  { %3494 = vmatpush.bf16.msrb.mxu2 %v10960_v0 }
 0x8a8   :  { %3816 = vmatpush.bf16.msrb.mxu3 %v10955_v44  ;;  %v10966_v44 = vld [vmem:[#allocation40_spill] sm:$0xff] }
 0x8a9   :  { %3495 = vmatpush.bf16.msrb.mxu2 %v10962_v8  ;;  %v10969_v8 = vld [vmem:[#allocation48_spill] sm:$0xff] }
 0x8ac   :  { %3817 = vmatpush.bf16.msrb.mxu3 %v10957_v38  ;;  %v9484_v38 = vld [vmem:[%s10674_s13] ss:$0 sm:$0xff] }
 0x8ad   :  { %3496 = vmatpush.bf16.msrb.mxu2 %v10963_v32  ;;  %10967 = vst [vmem:[#allocation109_spill] sm:$0xff] %v9484_v38 }
 0x8b0   :  { %3818 = vmatpush.bf16.msrb.mxu3 %v10959_v52  ;;  %v10968_v52 = vld [vmem:[#allocation44_spill] sm:$0xff] }
 0x8b1   :  { %3497 = vmatpush.bf16.msrb.mxu2 %v10964_v27  ;;  %v10970_v27 = vld [vmem:[#allocation52_spill] sm:$0xff] }
 0x8b4   :  { %3819 = vmatpush.bf16.msrb.mxu3 %v10961_v31  ;;  %v10972_v31 = vld [vmem:[#allocation60_spill] sm:$0xff] }
 0x8b5   :  { %3498 = vmatpush.bf16.msrb.mxu2 %v10965_v13  ;;  %v10971_v13 = vld [vmem:[#allocation56_spill] sm:$0xff] }
 0x8b8   :  { %3499 = vmatmul.bf16.vlgmr.msrb.gmra.mxu2 %v10944_v62  ;;  %v9498_v62 = vpack.c.bf16 %v9418_v22, %v9418_v22 }
 0x8b9   :  { %3747 = vmatpush.bf16.msra.mxu2 %v10966_v44 }
 0x8ba   :  { %v3305_v53 = vpop.f32.mrf.mxu3  ;;  %10975 = vst [vmem:[#allocation104_spill] sm:$0xff] %v9498_v62 }
 0x8bb   :  { %v3306_v28 = vadd.f32 %v9484_v38, %v3305_v53  ;;  %v10974_v38 = vld [vmem:[#allocation68_spill] sm:$0xff] }
 0x8bd   :  { %v3310_v0 = vrot.slane %v3306_v28, 4  ;;  %3748 = vmatpush.bf16.msra.mxu2 %v10968_v52  ;;  %v10976_v28 = vld [vmem:[#allocation71_spill] sm:$0xff]  ;;  %v10983_v52 = vld [vmem:[#allocation100_spill] sm:$0xff] }
 0x8bf   :  { %3332 = vrot.lane.b32.xlu0 %v3310_v0, %s7947_s14 }
 0x8c1   :  { %3749 = vmatpush.bf16.msra.mxu2 %v10969_v8  ;;  %v10979_v8 = vld [vmem:[#allocation84_spill] sm:$0xff] }
 0x8c2   :  { %v3307_v32 = vpop.f32.mrf.mxu3 }
 0x8c5   :  { %3750 = vmatpush.bf16.msra.mxu2 %v10970_v27  ;;  %v10977_v27 = vld [vmem:[#allocation76_spill] sm:$0xff] }
 0x8c9   :  { %3751 = vmatpush.bf16.msra.mxu2 %v10971_v13  ;;  %v10978_v13 = vld [vmem:[#allocation80_spill] sm:$0xff] }
 0x8ca   :  { %v3409_v44 = vpop.f32.mrf.mxu3 }
 0x8cd   :  { %3752 = vmatpush.bf16.msra.mxu2 %v10972_v31 }
 0x8d1   :  { %3753 = vmatpush.bf16.msra.mxu2 %v10973_v51  ;;  %v10982_v51 = vld [vmem:[#allocation96_spill] sm:$0xff] }
 0x8d2   :  { %v3411_v53 = vpop.f32.mrf.mxu3 }
 0x8d3   :  { %v10980_v53 = vld [vmem:[#allocation88_spill] sm:$0xff] }
 0x8d5   :  { %3754 = vmatpush.bf16.msra.mxu2 %v10974_v38  ;;  %v10981_v38 = vld [vmem:[#allocation92_spill] sm:$0xff] }
 0x8d8   :  { %3755 = vmatmul.bf16.vlgmr.msra.gmra.mxu2 %v9498_v62 }
 0x8d9   :  { %3799 = vmatpush.bf16.msrb.mxu2 %v10976_v28  ;;  %v10984_v28 = vld [vmem:[#allocation102_spill] sm:$0xff] }
 0x8da   :  { %v3461_v32 = vpop.f32.mrf.mxu3 }
 0x8dd   :  { %3800 = vmatpush.bf16.msrb.mxu2 %v10977_v27  ;;  %v10985_v27 = vld [vmem:[#allocation108_spill] sm:$0xff] }
 0x8e1   :  { %3801 = vmatpush.bf16.msrb.mxu2 %v10978_v13  ;;  %v10986_v13 = vld [vmem:[#allocation112_spill] sm:$0xff] }
 0x8e2   :  { %v3463_v31 = vpop.f32.mrf.mxu3 }
 0x8e5   :  { %3802 = vmatpush.bf16.msrb.mxu2 %v10979_v8  ;;  %v10987_v8 = vld [vmem:[#allocation116_spill] sm:$0xff] }
 0x8e9   :  { %3803 = vmatpush.bf16.msrb.mxu2 %v10980_v53  ;;  %v3312_v53 = vadd.f32 %v3310_v0, %v9289_v29  ;;  %v10991_v0 = vld [vmem:[#allocation128_spill] sm:$0xff] }
 0x8ed   :  { %3804 = vmatpush.bf16.msrb.mxu2 %v10981_v38 }
 0x8f1   :  { %3805 = vmatpush.bf16.msrb.mxu2 %v10982_v51  ;;  %v6758_v51 = vmul.f32 -1.442695, %v3312_v53  ;;  %v10995_v53 = vld [vmem:[#allocation138_spill] sm:$0xff] }
 0x8f3   :  { %7640 = vpow2.f32 %v6758_v51 }
 0x8f5   :  { %3806 = vmatpush.bf16.msrb.mxu2 %v10983_v52 }
 0x8f8   :  { %3807 = vmatmul.bf16.vlgmr.msrb.gmra.mxu2 %v9498_v62 }
 0x8f9   :  { %3851 = vmatpush.bf16.msra.mxu2 %v10984_v28  ;;  %v10989_v28 = vld [vmem:[#allocation120_spill] sm:$0xff] }
 0x8fa   :  { %v9511_v19 = vpop.f32.mrf.mxu3 }
 0x8fb   :  { %v3240_v38 = vpop.f32.mrf.mxu2 }
 0x8fc   :  { %v9521_v52 = vadd.f32 %v9518_v3, %v3240_v38  ;;  %v10993_v38 = vperm.slane %v10917_v25, 1  ;;  %v10994_v3 = vld [vmem:[#allocation143_spill] sm:$0xff] }
 0x8fd   :  { %3852 = vmatpush.bf16.msra.mxu2 %v10985_v27  ;;  %v10992_v27 = vld [vmem:[#allocation132_spill] sm:$0xff] }
 0x8fe   :  { %v10464_v50 = vrot.slane %v9521_v52, 2 }
 0x900   :  { %3267 = vrot.lane.b32.xlu1 %v10464_v50, %s7947_s14  ;;  %v10997_v50 = vld [vmem:[#allocation144_spill] sm:$0xff] }
 0x901   :  { %3853 = vmatpush.bf16.msra.mxu2 %v10986_v13  ;;  %v7641_v13 = vpop.eup %7640 }
 0x902   :  { %v3515_v31 = vpop.f32.mrf.mxu3  ;;  %v3316_v14 = vadd.f32 1.0, %v7641_v13 }
 0x903   :  { %v10990_v31 = vld [vmem:[#allocation124_spill] sm:$0xff] }
 0x904   :  { %7642 = vrcp.f32 %v3316_v14  ;;  %vm3322_vm8 = vweird.f32 %v3316_v14 }
 0x905   :  { %3854 = vmatpush.bf16.msra.mxu2 %v10987_v8  ;;  %v3242_v8 = vpop.f32.mrf.mxu2 }
 0x909   :  { %3855 = vmatpush.bf16.msra.mxu2 %v10989_v28  ;;  %v930_v28 = vadd.f32 %v10994_v3, %v10993_v38 }
 0x90a   :  { %v7643_v13 = vpop.eup %7642 }
 0x90b   :  { %v9538_v51 = vadd.f32 %v10997_v50, %v930_v28  ;;  %v11003_v50 = vperm.slane %v10917_v25, 3  ;;  %vm3323_vm7 = vweird.f32 %v7643_v13 }
 0x90c   :  { %vm3324_vm9 = vmor %vm3322_vm8, %vm3323_vm7 }
 0x90d   :  { %3856 = vmatpush.bf16.msra.mxu2 %v10990_v31  ;;  %v3396_v15 = vpop.f32.mrf.mxu2  ;;  %10998 = vst [vmem:[#allocation142_spill] sm:$0xff] %v9538_v51 }
 0x90e   :  { %v3397_v12 = vadd.f32 %v3396_v15, %v10996_v61  ;;  %v11002_v15 = vld [vmem:[#allocation50_spill] sm:$0xff]  ;;  %v3318_v61 = vmul.f32 %v7643_v13, %v3316_v14 }
 0x910   :  { %v3410_v8 = vadd.f32 %v3409_v44, %v3397_v12  ;;  %v11004_v12 = vld [vmem:[#allocation149_spill] sm:$0xff] }
 0x911   :  { %3857 = vmatpush.bf16.msra.mxu2 %v10991_v0  ;;  %v10999_v0 = vld [vmem:[#allocation145_spill] sm:$0xff]  ;;  %v986_v44 = vadd.f32 %v11004_v12, %v11003_v50  ;;  %v11010_v50 = vld [vmem:[#allocation62_spill] sm:$0xff] }
 0x912   :  { %v3518_v31 = vadd.f32 %v3410_v8, %v9538_v51 }
 0x914   :  { %v6760_v3 = vmul.f32 -1.442695, %v3518_v31  ;;  %v3319_v31 = vsub.f32 1.0, %v3318_v61  ;;  %v3326_v61 = vand.u32 2147483647, %v3316_v14 }
 0x915   :  { %3858 = vmatpush.bf16.msra.mxu2 %v10992_v27  ;;  %v11000_v27 = vld [vmem:[#allocation42_spill] sm:$0xff]  ;;  %v3398_v38 = vpop.f32.mrf.mxu2 }
 0x916   :  { %7644 = vpow2.f32 %v6760_v3  ;;  %v11007_v38 = vld [vmem:[#allocation150_spill] sm:$0xff]  ;;  %v3320_v59 = vmul.f32 %v7643_v13, %v3319_v31  ;;  %vm3327_vm10 = vcmp.eq.f32.partialorder %v3326_v61, 8.507059e+37 }
 0x917   :  { %v9551_v51 = vadd.f32 %v11007_v38, %v986_v44  ;;  %v11011_v44 = vld [vmem:[#allocation66_spill] sm:$0xff] }
 0x918   :  { %3859 = vmatmul.bf16.vlgmr.msra.gmra.mxu2 %v9498_v62  ;;  %v3321_v12 = vadd.f32 %v7643_v13, %v3320_v59 }
 0x919   :  { %4034 = vmatpush.bf16.msrb.mxu2 %v10995_v53  ;;  %v11001_v53 = vld [vmem:[#allocation46_spill] sm:$0xff]  ;;  %11008 = vst [vmem:[#allocation147_spill] sm:$0xff] %v9551_v51 }
 0x91c   :  { %v7645_v62 = vpop.eup %7644 }
 0x91d   :  { %4035 = vmatpush.bf16.msrb.mxu2 %v10999_v0  ;;  %v3448_v28 = vpop.f32.mrf.mxu2  ;;  %v11005_v0 = vld [vmem:[#allocation54_spill] sm:$0xff] }
 0x91e   :  { %v3449_v8 = vadd.f32 %v3448_v28, %v11006_v26 }
 0x920   :  { %v3462_v3 = vadd.f32 %v3461_v32, %v3449_v8  ;;  %v3325_v32 = vsel %vm3324_vm9, %v7643_v13, %v3321_v12 }
 0x921   :  { %4182 = vmatpush.bf16.msra.mxu2 %v11000_v27  ;;  %v3526_v27 = vadd.f32 1.0, %v7645_v62  ;;  %v3328_v62 = vand.u32 2147483648, %v3316_v14 }
 0x923   :  { %7646 = vrcp.f32 %v3526_v27  ;;  %v3329_v8 = vor.u32 1.1754944e-38, %v3328_v62  ;;  %v3553_v62 = vand.u32 2147483648, %v3526_v27  ;;  %vm3547_vm12 = vweird.f32 %v3526_v27 }
 0x925   :  { %4183 = vmatpush.bf16.msra.mxu2 %v11001_v53  ;;  %v11009_v53 = vld [vmem:[#allocation58_spill] sm:$0xff]  ;;  %v3450_v40 = vpop.f32.mrf.mxu2 }
 0x929   :  { %4184 = vmatpush.bf16.msra.mxu2 %v11002_v15  ;;  %v3558_v15 = vadd.f32 %v3462_v3, %v9551_v51  ;;  %v7647_v28 = vpop.eup %7646  ;;  %v11012_v3 = vld [vmem:[#allocation70_spill] sm:$0xff] }
 0x92a   :  { %v3543_v38 = vmul.f32 %v7647_v28, %v3526_v27  ;;  %vm3548_vm11 = vweird.f32 %v7647_v28  ;;  %v11015_v51 = vld [vmem:[#allocation154_spill] sm:$0xff] }
 0x92b   :  { %v6762_v48 = vmul.f32 -1.442695, %v3558_v15  ;;  %v9557_v15 = vsel %vm3327_vm10, %v3329_v8, %v3325_v32  ;;  %vm3549_vm13 = vmor %vm3547_vm12, %vm3548_vm11  ;;  %v11013_v8 = vperm.slane %v10917_v25, 5 }
 0x92c   :  { %v3544_v59 = vsub.f32 1.0, %v3543_v38 }
 0x92d   :  { %4185 = vmatpush.bf16.msra.mxu2 %v11005_v0  ;;  %7648 = vpow2.f32 %v6762_v48 }
 0x92e   :  { %v3545_v14 = vmul.f32 %v7647_v28, %v3544_v59 }
 0x930   :  { %v3546_v13 = vadd.f32 %v7647_v28, %v3545_v14 }
 0x931   :  { %4186 = vmatpush.bf16.msra.mxu2 %v11009_v53  ;;  %v3333_v40 = vpop.permute.xlu0 %3332 }
 0x932   :  { %v3335_v48 = vmul.f32 %v3333_v40, %v9557_v15  ;;  %v3550_v0 = vsel %vm3549_vm13, %v7647_v28, %v3546_v13  ;;  %v11016_v28 = vrot.slane %v9521_v52, 2 }
 0x933   :  { %v7649_v53 = vpop.eup %7648 }
 0x934   :  { %v3566_v31 = vadd.f32 1.0, %v7649_v53  ;;  %3337 = vrot.lane.b32.xlu2 %v3335_v48, %s7947_s14  ;;  %v3551_v53 = vand.u32 2147483647, %v3526_v27  ;;  %v3554_v48 = vor.u32 1.1754944e-38, %v3553_v62 }
 0x935   :  { %4187 = vmatpush.bf16.msra.mxu2 %v11010_v50 }
 0x936   :  { %7650 = vrcp.f32 %v3566_v31  ;;  %vm3552_vm14 = vcmp.eq.f32.partialorder %v3551_v53, 8.507059e+37  ;;  %v3593_v27 = vand.u32 2147483648, %v3566_v31  ;;  %vm3587_vm1 = vweird.f32 %v3566_v31 }
 0x937   :  { %v3555_v14 = vsel %vm3552_vm14, %v3554_v48, %v3550_v0  ;;  %v3591_v20 = vand.u32 2147483647, %v3566_v31 }
 0x938   :  { %v3594_v13 = vor.u32 1.1754944e-38, %v3593_v27 }
 0x939   :  { %4188 = vmatpush.bf16.msra.mxu2 %v11011_v44  ;;  %vm3592_vm3 = vcmp.eq.f32.partialorder %v3591_v20, 8.507059e+37 }
 0x93b   :  { %v3500_v32 = vpop.f32.mrf.mxu2 }
 0x93c   :  { %v7651_v50 = vpop.eup %7650  ;;  %v3501_v38 = vadd.f32 %v3500_v32, %v10916_v10 }
 0x93d   :  { %4189 = vmatpush.bf16.msra.mxu2 %v11012_v3  ;;  %v3583_v44 = vmul.f32 %v7651_v50, %v3566_v31  ;;  %v11014_v3 = vld [vmem:[#allocation153_spill] sm:$0xff]  ;;  %vm3588_vm15 = vweird.f32 %v7651_v50 }
 0x93e   :  { %v1042_v40 = vadd.f32 %v11014_v3, %v11013_v8  ;;  %v3514_v59 = vadd.f32 %v9511_v19, %v3501_v38  ;;  %vm3589_vm2 = vmor %vm3587_vm1, %vm3588_vm15  ;;  %v3247_v19 = vadd.f32 %v11016_v28, %v8868_v60 }
 0x93f   :  { %v3584_v12 = vsub.f32 1.0, %v3583_v44 }
 0x940   :  { %v9568_v26 = vadd.f32 %v11015_v51, %v1042_v40  ;;  %v6756_v62 = vmul.f32 -1.442695, %v3247_v19  ;;  %v3610_v51 = vrot.slane %v9346_v43, 6 }
 0x941   :  { %v3585_v61 = vmul.f32 %v7651_v50, %v3584_v12  ;;  %v3598_v12 = vmul.f32 %v3555_v14, %v3514_v59 }
 0x943   :  { %v3586_v44 = vadd.f32 %v7651_v50, %v3585_v61  ;;  %v3600_v25 = vadd.f32 %v3598_v12, %v9568_v26  ;;  %v3502_v32 = vpop.f32.mrf.mxu2 }
 0x945   :  { %v3590_v3 = vsel %vm3589_vm2, %v7651_v50, %v3586_v44  ;;  %7652 = vtanh.f32 %v3600_v25 }
 0x946   :  { %v3595_v0 = vsel %vm3592_vm3, %v3594_v13, %v3590_v3  ;;  %7654 = vpow2.f32 %v6756_v62 }
 0x947   :  { %v3604_v53 = vsub.f32 1.0, %v3595_v0  ;;  %v3614_v31 = vmul.f32 %v3610_v51, %v3595_v0  ;;  %v11017_v51 = vld [vmem:[#allocation74_spill] sm:$0xff] }
 0x94b   :  { %v7653_v61 = vpop.eup %7652 }
 0x94c   :  { %v3606_v8 = vmul.f32 %v7653_v61, %v3604_v53  ;;  %v7655_v52 = vpop.eup %7654 }
 0x94d   :  { %v3251_v20 = vadd.f32 1.0, %v7655_v52 }
 0x94e   :  { %v9575_v40 = vadd.f32 %v3614_v31, %v3606_v8  ;;  %v11018_v31 = vld [vmem:[#allocation155_spill] sm:$0xff] }
 0x94f   :  { %7656 = vrcp.f32 %v3251_v20  ;;  %v3263_v12 = vand.u32 2147483648, %v3251_v20  ;;  %vm3257_vm5 = vweird.f32 %v3251_v20  ;;  %v3261_v25 = vand.u32 2147483647, %v3251_v20 }
 0x950   :  { %v9579_v50 = vpack.c.bf16 %v9575_v40, %v9575_v40 }
 0x951   :  { %v3264_v32 = vor.u32 1.1754944e-38, %v3263_v12  ;;  %vm3262_vm7 = vcmp.eq.f32.partialorder %v3261_v25, 8.507059e+37  ;;  %v11020_v25 = vld [vmem:[#allocation157_spill] sm:$0xff] }
 0x952   :  { %3768 = vmatmul.bf16.vlgmr.msra.gmra.mxu3 %v9579_v50 }
 0x953   :  { %3864 = vmatpush.bf16.msra.mxu3 %v10681_v42 }
 0x955   :  { %v7657_v38 = vpop.eup %7656 }
 0x956   :  { %v3253_v59 = vmul.f32 %v7657_v38, %v3251_v20  ;;  %vm3258_vm4 = vweird.f32 %v7657_v38 }
 0x957   :  { %3865 = vmatpush.bf16.msra.mxu3 %v10685_v56  ;;  %vm3259_vm6 = vmor %vm3257_vm5, %vm3258_vm4 }
 0x958   :  { %v3254_v14 = vsub.f32 1.0, %v3253_v59  ;;  %v11019_v59 = vld [vmem:[#allocation137_spill] sm:$0xff] }
 0x95a   :  { %v3255_v44 = vmul.f32 %v7657_v38, %v3254_v14 }
 0x95b   :  { %v3756_v43 = vpop.f32.mrf.mxu2  ;;  %3866 = vmatpush.bf16.msra.mxu3 %v10690_v21 }
 0x95c   :  { %v3256_v27 = vadd.f32 %v7657_v38, %v3255_v44  ;;  %v3757_v52 = vadd.f32 %v3756_v43, %v11018_v31 }
 0x95e   :  { %v3260_v3 = vsel %vm3259_vm6, %v7657_v38, %v3256_v27 }
 0x95f   :  { %3867 = vmatpush.bf16.msra.mxu3 %v10694_v35  ;;  %v9595_v13 = vsel %vm3262_vm7, %v3264_v32, %v3260_v3 }
 0x962   :  { %3820 = vmatmul.bf16.vlgmr.msrb.gmra.mxu3 %v9579_v50 }
 0x963   :  { %v3758_v48 = vpop.f32.mrf.mxu2  ;;  %3868 = vmatpush.bf16.msra.mxu3 %v10698_v47 }
 0x967   :  { %3869 = vmatpush.bf16.msra.mxu3 %v10704_v24 }
 0x96b   :  { %3870 = vmatpush.bf16.msra.mxu3 %v10706_v4 }
 0x96f   :  { %3871 = vmatpush.bf16.msra.mxu3 %v8509_v2 }
 0x972   :  { %3872 = vmatmul.bf16.vlgmr.msra.gmra.mxu3 %v9579_v50  ;;  %v3268_v19 = vpop.permute.xlu1 %3267 }
 0x973   :  { %4099 = vmatpush.bf16.msrb.mxu3 %v9365_v7  ;;  %v3270_v0 = vmul.f32 %v3268_v19, %v9595_v13 }
 0x975   :  { %3272 = vrot.lane.b32.xlu0 %v3270_v0, %s7947_s14 }
 0x977   :  { %4100 = vmatpush.bf16.msrb.mxu3 %v9370_v5 }
 0x97b   :  { %4195 = vmatpush.bf16.msra.mxu3 %v8226_v37  ;;  %v3808_v28 = vpop.f32.mrf.mxu2  ;;  %v11057_v37 = vld [vmem:[#allocation122_spill] sm:$0xff] }
 0x97c   :  { %v3809_v3 = vadd.f32 %v3808_v28, %v11020_v25 }
 0x97f   :  { %4196 = vmatpush.bf16.msra.mxu3 %v8238_v49  ;;  %v11053_v49 = vld [vmem:[#allocation114_spill] sm:$0xff] }
 0x983   :  { %4197 = vmatpush.bf16.msra.mxu3 %v8254_v63  ;;  %v3810_v7 = vpop.f32.mrf.mxu2  ;;  %v11052_v63 = vld [vmem:[#allocation93_spill] sm:$0xff] }
 0x987   :  { %4198 = vmatpush.bf16.msra.mxu3 %v8266_v11  ;;  %v11051_v11 = vld [vmem:[#allocation110_spill] sm:$0xff] }
 0x98b   :  { %4199 = vmatpush.bf16.msra.mxu3 %v8278_v23  ;;  %v11050_v23 = vld [vmem:[#allocation89_spill] sm:$0xff] }
 0x98e   :  { %v3338_v5 = vpop.permute.xlu2 %3337 }
 0x98f   :  { %4200 = vmatpush.bf16.msra.mxu3 %v10827_v57  ;;  %v3340_v62 = vadd.f32 %v3338_v5, %v9289_v29  ;;  %v11021_v5 = vld [vmem:[#allocation139_spill] sm:$0xff]  ;;  %v11049_v57 = vld [vmem:[#allocation105_spill] sm:$0xff] }
 0x991   :  { %7658 = vtanh.f32 %v3340_v62 }
 0x993   :  { %4201 = vmatpush.bf16.msra.mxu3 %v10828_v41 }
 0x997   :  { %4202 = vmatpush.bf16.msra.mxu3 %v11017_v51  ;;  %v7659_v61 = vpop.eup %7658 }
 0x998   :  { %3344 = vrot.lane.b32.xlu1 %v7659_v61, %s7953_s12 }
 0x99b   :  { %v3860_v53 = vpop.f32.mrf.mxu2 }
 0x9a3   :  { %v3862_v8 = vpop.f32.mrf.mxu2 }
 0x9d5   :  { %v3769_v20 = vpop.f32.mrf.mxu3 }
 0x9d6   :  { %v3770_v38 = vadd.f32 %v3769_v20, %v3757_v52 }
 0x9d8   :  { %v3905_v48 = vrot.slane %v3770_v38, 6 }
 0x9da   :  { %v3909_v14 = vadd.f32 %v3905_v48, %v11019_v59  ;;  %v11086_v59 = vld [vmem:[#allocation112_spill] sm:$0xff] }
 0x9dc   :  { %v6767_v44 = vmul.f32 -1.442695, %v3909_v14 }
 0x9dd   :  { %v3771_v27 = vpop.f32.mrf.mxu3 }
 0x9de   :  { %7660 = vpow2.f32 %v6767_v44  ;;  %v3861_v27 = vadd.f32 %v3860_v53, %v10926_v58 }
 0x9e4   :  { %v7661_v12 = vpop.eup %7660 }
 0x9e5   :  { %v3917_v32 = vadd.f32 1.0, %v7661_v12  ;;  %v3821_v19 = vpop.f32.mrf.mxu3 }
 0x9e6   :  { %v3822_v0 = vadd.f32 %v3821_v19, %v3809_v3 }
 0x9e7   :  { %7662 = vrcp.f32 %v3917_v32  ;;  %v3273_v61 = vpop.permute.xlu0 %3272  ;;  %v3930_v28 = vand.u32 2147483648, %v3917_v32  ;;  %vm3924_vm9 = vweird.f32 %v3917_v32  ;;  %v3928_v3 = vand.u32 2147483647, %v3917_v32 }
 0x9e8   :  { %v3951_v7 = vrot.slane %v3822_v0, 6  ;;  %v3275_v8 = vadd.f32 %v3273_v61, %v8868_v60 }
 0x9e9   :  { %v3931_v61 = vor.u32 1.1754944e-38, %v3930_v28  ;;  %vm3929_vm11 = vcmp.eq.f32.partialorder %v3928_v3, 8.507059e+37  ;;  %v4013_v28 = vrot.slane %v9418_v22, 6  ;;  %v3349_v3 = vrot.slane %v9405_v6, 2 }
 0x9ea   :  { %v3955_v62 = vadd.f32 %v3951_v7, %v11021_v5  ;;  %v3284_v6 = vrot.slane %v9422_v36, 6  ;;  %v11024_v36 = vld [vmem:[#allocation123_spill] sm:$0xff] }
 0x9ec   :  { %v6769_v43 = vmul.f32 -1.442695, %v3955_v62 }
 0x9ed   :  { %v7663_v52 = vpop.eup %7662  ;;  %v3823_v20 = vpop.f32.mrf.mxu3 }
 0x9ee   :  { %7664 = vpow2.f32 %v6769_v43  ;;  %v3920_v38 = vmul.f32 %v7663_v52, %v3917_v32  ;;  %vm3925_vm8 = vweird.f32 %v7663_v52 }
 0x9ef   :  { %7666 = vtanh.f32 %v3275_v8  ;;  %vm3926_vm10 = vmor %vm3924_vm9, %vm3925_vm8 }
 0x9f0   :  { %v3921_v48 = vsub.f32 1.0, %v3920_v38 }
 0x9f2   :  { %v3922_v14 = vmul.f32 %v7663_v52, %v3921_v48 }
 0x9f4   :  { %v7665_v44 = vpop.eup %7664  ;;  %v3923_v12 = vadd.f32 %v7663_v52, %v3922_v14 }
 0x9f5   :  { %v7667_v19 = vpop.eup %7666  ;;  %v3963_v0 = vadd.f32 1.0, %v7665_v44  ;;  %v3873_v7 = vpop.f32.mrf.mxu3 }
 0x9f6   :  { %v3874_v60 = vadd.f32 %v3873_v7, %v3861_v27  ;;  %v3927_v62 = vsel %vm3926_vm10, %v7663_v52, %v3923_v12  ;;  %3279 = vrot.lane.b32.xlu2 %v7667_v19, %s7953_s12  ;;  %v3342_v7 = vsub.f32 1.0, %v9557_v15 }
 0x9f7   :  { %7668 = vrcp.f32 %v3963_v0  ;;  %v3932_v8 = vsel %vm3929_vm11, %v3931_v61, %v3927_v62  ;;  %v3976_v51 = vand.u32 2147483648, %v3963_v0  ;;  %v3974_v41 = vand.u32 2147483647, %v3963_v0 }
 0x9f8   :  { %v3997_v43 = vrot.slane %v3874_v60, 6  ;;  %vm3970_vm13 = vweird.f32 %v3963_v0 }
 0x9f9   :  { %v3977_v27 = vor.u32 1.1754944e-38, %v3976_v51  ;;  %vm3975_vm15 = vcmp.eq.f32.partialorder %v3974_v41, 8.507059e+37 }
 0x9fa   :  { %v4001_v20 = vmul.f32 %v3997_v43, %v3932_v8  ;;  %v3351_v8 = vmul.f32 %v3349_v3, %v9557_v15  ;;  %v11028_v3 = vld [vmem:[#allocation41_spill] sm:$0xff] }
 0x9fc   :  { %v4003_v14 = vadd.f32 %v4001_v20, %v9413_v30  ;;  %v11085_v30 = vld [vmem:[#allocation108_spill] sm:$0xff] }
 0x9fd   :  { %v7669_v38 = vpop.eup %7668  ;;  %v3875_v48 = vpop.f32.mrf.mxu3 }
 0x9fe   :  { %v3966_v53 = vmul.f32 %v7669_v38, %v3963_v0  ;;  %vm3971_vm12 = vweird.f32 %v7669_v38  ;;  %7670 = vtanh.f32 %v4003_v14  ;;  %v3286_v14 = vmul.f32 %v3284_v6, %v9595_v13  ;;  %v11040_v6 = vld [vmem:[#allocation104_spill] sm:$0xff] }
 0x9ff   :  { %vm3972_vm14 = vmor %vm3970_vm13, %vm3971_vm12 }
 0xa00   :  { %v3967_v32 = vsub.f32 1.0, %v3966_v53 }
 0xa02   :  { %v3968_v44 = vmul.f32 %v7669_v38, %v3967_v32 }
 0xa04   :  { %v3969_v52 = vadd.f32 %v7669_v38, %v3968_v44  ;;  %v7671_v43 = vpop.eup %7670 }
 0xa06   :  { %v3973_v12 = vsel %vm3972_vm14, %v7669_v38, %v3969_v52  ;;  %v3277_v38 = vsub.f32 1.0, %v9595_v13  ;;  %v11025_v13 = vld [vmem:[#allocation127_spill] sm:$0xff] }
 0xa07   :  { %v3978_v19 = vsel %vm3975_vm15, %v3977_v27, %v3973_v12  ;;  %v11027_v12 = vld [vmem:[#allocation134_spill] sm:$0xff] }
 0xa08   :  { %v4007_v60 = vsub.f32 1.0, %v3978_v19  ;;  %v4017_v62 = vmul.f32 %v4013_v28, %v3978_v19  ;;  %v11026_v28 = vld [vmem:[#allocation131_spill] sm:$0xff]  ;;  %v11029_v19 = vld [vmem:[#allocation45_spill] sm:$0xff] }
 0xa0a   :  { %v3345_v61 = vpop.permute.xlu1 %3344  ;;  %v4009_v0 = vmul.f32 %v7671_v43, %v4007_v60  ;;  %v11033_v43 = vld [vmem:[#allocation57_spill] sm:$0xff] }
 0xa0b   :  { %v3347_v20 = vmul.f32 %v3345_v61, %v3342_v7  ;;  %v11030_v7 = vld [vmem:[#allocation49_spill] sm:$0xff] }
 0xa0c   :  { %v9622_v51 = vadd.f32 %v4017_v62, %v4009_v0  ;;  %v11031_v62 = vld [vmem:[#allocation53_spill] sm:$0xff]  ;;  %v11036_v0 = vld [vmem:[#allocation82_spill] sm:$0xff] }
 0xa0d   :  { %v9620_v48 = vadd.f32 %v3351_v8, %v3347_v20  ;;  %v11032_v61 = vld [vmem:[#allocation73_spill] sm:$0xff]  ;;  %v11034_v8 = vld [vmem:[#allocation78_spill] sm:$0xff] }
 0xa0e   :  { %11023 = vst [vmem:[#allocation136_spill] sm:$0xff] %v9622_v51  ;;  %v11035_v20 = vld [vmem:[#allocation61_spill] sm:$0xff] }
 0xa0f   :  { %11022 = vst [vmem:[#allocation160_spill] sm:$0xff] %v9620_v48  ;;  %v3680_v41 = vpack.c.bf16 %v9620_v48, %v9620_v48 }
 0xa11   :  { %v3682_v22 = vrot.slane %v3680_v41, 2  ;;  %v11038_v41 = vld [vmem:[#allocation86_spill] sm:$0xff] }
 0xa13   :  { %3683 = vrot.lane.b32.xlu0 %v3682_v22, %s7953_s12  ;;  %v11039_v22 = vld [vmem:[#allocation69_spill] sm:$0xff] }
 0xa50   :  { %v3280_v53 = vpop.permute.xlu2 %3279 }
 0xa51   :  { %v3282_v15 = vmul.f32 %v3280_v53, %v3277_v38  ;;  %v11041_v38 = vld [vmem:[#allocation72_spill] sm:$0xff]  ;;  %v11042_v53 = vld [vmem:[#allocation90_spill] sm:$0xff] }
 0xa53   :  { %v9630_v32 = vadd.f32 %v3286_v14, %v3282_v15  ;;  %v11043_v14 = vld [vmem:[#allocation77_spill] sm:$0xff]  ;;  %v11044_v15 = vld [vmem:[#allocation94_spill] sm:$0xff] }
 0xa55   :  { %v3617_v44 = vpack.c.bf16 %v9630_v32, %v9630_v32 }
 0xa57   :  { %v3619_v52 = vrot.slane %v3617_v44, 3  ;;  %v11045_v44 = vld [vmem:[#allocation81_spill] sm:$0xff] }
 0xa59   :  { %3620 = vrot.lane.b32.xlu1 %v3619_v52, %s7953_s12  ;;  %v11046_v52 = vld [vmem:[#allocation98_spill] sm:$0xff] }
 0xa85   :  { %v3684_v27 = vpop.permute.xlu0 %3683 }
 0xa86   :  { %6765 = vmatmul.msk.bf16.vlgmr.msra.gmra.mxu1 %vm1995_vm0, %v3684_v27  ;;  %v11047_v27 = vld [vmem:[#allocation85_spill] sm:$0xff] }
 0xa87   :  { %3838 = vmatpush.bf16.msra.mxu1 %v10756_v39  ;;  %v11083_v39 = vld [vmem:[#allocation117_spill] sm:$0xff] }
 0xa8b   :  { %3839 = vmatpush.bf16.msra.mxu1 %v10757_v34 }
 0xa8f   :  { %3840 = vmatpush.bf16.msra.mxu1 %v10758_v1  ;;  %v11081_v1 = vld [vmem:[#allocation121_spill] sm:$0xff] }
 0xa90   :  { %v11084_v48 = vperm.slane %v11081_v1, 1 }
 0xa93   :  { %3841 = vmatpush.bf16.msra.mxu1 %v10759_v46  ;;  %v11080_v46 = vld [vmem:[#allocation113_spill] sm:$0xff] }
 0xa96   :  { %3794 = vmatmul.bf16.vlgmr.msrb.gmra.mxu1 %v9579_v50 }
 0xa97   :  { %3842 = vmatpush.bf16.msra.mxu1 %v10760_v55  ;;  %v11079_v55 = vld [vmem:[#allocation102_spill] sm:$0xff] }
 0xa9b   :  { %3843 = vmatpush.bf16.msra.mxu1 %v10761_v18  ;;  %v11078_v18 = vld [vmem:[#allocation100_spill] sm:$0xff] }
 0xa9f   :  { %3844 = vmatpush.bf16.msra.mxu1 %v10762_v45  ;;  %v11077_v45 = vld [vmem:[#allocation96_spill] sm:$0xff] }
 0xaa3   :  { %3845 = vmatpush.bf16.msra.mxu1 %v10763_v33  ;;  %v11076_v33 = vld [vmem:[#allocation92_spill] sm:$0xff] }
 0xaa6   :  { %3846 = vmatmul.bf16.vlgmr.msra.gmra.mxu1 %v9579_v50 }
 0xaa7   :  { %3890 = vmatpush.bf16.msrb.mxu1 %v10764_v17  ;;  %v11075_v17 = vld [vmem:[#allocation88_spill] sm:$0xff] }
 0xaab   :  { %3891 = vmatpush.bf16.msrb.mxu1 %v10765_v9  ;;  %v11074_v9 = vld [vmem:[#allocation84_spill] sm:$0xff] }
 0xaaf   :  { %3892 = vmatpush.bf16.msrb.mxu1 %v10766_v54  ;;  %v11073_v54 = vld [vmem:[#allocation80_spill] sm:$0xff] }
 0xab3   :  { %3893 = vmatpush.bf16.msrb.mxu1 %v10836_v16  ;;  %v11072_v16 = vld [vmem:[#allocation76_spill] sm:$0xff] }
 0xab7   :  { %3894 = vmatpush.bf16.msrb.mxu1 %v11024_v36 }
 0xabb   :  { %3895 = vmatpush.bf16.msrb.mxu1 %v11025_v13  ;;  %v11063_v13 = vld [vmem:[#allocation44_spill] sm:$0xff] }
 0xabf   :  { %3896 = vmatpush.bf16.msrb.mxu1 %v11026_v28  ;;  %v11060_v28 = vld [vmem:[#allocation130_spill] sm:$0xff] }
 0xac3   :  { %3897 = vmatpush.bf16.msrb.mxu1 %v11027_v12  ;;  %v11059_v12 = vld [vmem:[#allocation109_spill] sm:$0xff] }
 0xac6   :  { %3898 = vmatmul.bf16.vlgmr.msrb.gmra.mxu1 %v9579_v50  ;;  %v11037_v50 = vld [vmem:[#allocation65_spill] sm:$0xff] }
 0xac7   :  { %4169 = vmatpush.bf16.msra.mxu1 %v11028_v3 }
 0xacb   :  { %4170 = vmatpush.bf16.msra.mxu1 %v11029_v19  ;;  %v3621_v60 = vpop.permute.xlu1 %3620 }
 0xacc   :  { %6763 = vmatmul.msk.bf16.vlgmr.msra.gmra.mxu0 %vm1995_vm0, %v3621_v60  ;;  %v11048_v60 = vld [vmem:[#allocation103_spill] sm:$0xff] }
 0xacd   :  { %3825 = vmatpush.bf16.msra.mxu0 %v11032_v61  ;;  %v11071_v61 = vld [vmem:[#allocation71_spill] sm:$0xff] }
 0xacf   :  { %4171 = vmatpush.bf16.msra.mxu1 %v11030_v7 }
 0xad1   :  { %3826 = vmatpush.bf16.msra.mxu0 %v11034_v8  ;;  %v11065_v8 = vld [vmem:[#allocation52_spill] sm:$0xff] }
 0xad3   :  { %4172 = vmatpush.bf16.msra.mxu1 %v11031_v62 }
 0xad5   :  { %3827 = vmatpush.bf16.msra.mxu0 %v11036_v0  ;;  %v11061_v0 = vld [vmem:[#allocation133_spill] sm:$0xff] }
 0xad7   :  { %4173 = vmatpush.bf16.msra.mxu1 %v11033_v43 }
 0xad9   :  { %3828 = vmatpush.bf16.msra.mxu0 %v11038_v41 }
 0xadb   :  { %4174 = vmatpush.bf16.msra.mxu1 %v11035_v20 }
 0xadc   :  { %3781 = vmatmul.bf16.vlgmr.msrb.gmra.mxu0 %v11040_v6 }
 0xadd   :  { %3829 = vmatpush.bf16.msra.mxu0 %v11042_v53  ;;  %v11055_v53 = vld [vmem:[#allocation118_spill] sm:$0xff] }
 0xadf   :  { %4175 = vmatpush.bf16.msra.mxu1 %v11037_v50 }
 0xae1   :  { %3830 = vmatpush.bf16.msra.mxu0 %v11044_v15  ;;  %v11054_v15 = vld [vmem:[#allocation97_spill] sm:$0xff] }
 0xae3   :  { %4176 = vmatpush.bf16.msra.mxu1 %v11039_v22 }
 0xae5   :  { %3831 = vmatpush.bf16.msra.mxu0 %v11046_v52  ;;  %v11056_v52 = vld [vmem:[#allocation101_spill] sm:$0xff] }
 0xae7   :  { %4221 = vmatpush.bf16.msrb.mxu1 %v11041_v38 }
 0xae9   :  { %3832 = vmatpush.bf16.msra.mxu0 %v11048_v60  ;;  %v11058_v60 = vld [vmem:[#allocation126_spill] sm:$0xff] }
 0xaeb   :  { %4222 = vmatpush.bf16.msrb.mxu1 %v11043_v14 }
 0xaec   :  { %3833 = vmatmul.bf16.vlgmr.msra.gmra.mxu0 %v11040_v6 }
 0xaed   :  { %3877 = vmatpush.bf16.msrb.mxu0 %v11049_v57 }
 0xaef   :  { %4223 = vmatpush.bf16.msrb.mxu1 %v11045_v44 }
 0xaf1   :  { %3878 = vmatpush.bf16.msrb.mxu0 %v11051_v11 }
 0xaf3   :  { %4224 = vmatpush.bf16.msrb.mxu1 %v11047_v27 }
 0xaf5   :  { %3879 = vmatpush.bf16.msrb.mxu0 %v11053_v49  ;;  %v11062_v49 = vld [vmem:[#allocation40_spill] sm:$0xff] }
 0xaf7   :  { %4225 = vmatpush.bf16.msrb.mxu1 %v11050_v23 }
 0xaf9   :  { %3880 = vmatpush.bf16.msrb.mxu0 %v11055_v53 }
 0xafb   :  { %4226 = vmatpush.bf16.msrb.mxu1 %v11052_v63 }
 0xafd   :  { %3881 = vmatpush.bf16.msrb.mxu0 %v11057_v37  ;;  %v11064_v37 = vld [vmem:[#allocation48_spill] sm:$0xff] }
 0xaff   :  { %4227 = vmatpush.bf16.msrb.mxu1 %v11054_v15  ;;  %v11087_v15 = vld [vmem:[#allocation129_spill] sm:$0xff] }
 0xb01   :  { %3882 = vmatpush.bf16.msrb.mxu0 %v11058_v60 }
 0xb03   :  { %4228 = vmatpush.bf16.msrb.mxu1 %v11056_v52  ;;  %v3697_v57 = vpop.f32.mrf.mxu1 }
 0xb04   :  { %v3698_v41 = vadd.f32 %v11059_v12, %v3697_v57  ;;  %v11066_v57 = vld [vmem:[#allocation56_spill] sm:$0xff] }
 0xb05   :  { %3883 = vmatpush.bf16.msrb.mxu0 %v11060_v28  ;;  %v4148_v28 = vpack.c.bf16 %v9622_v51, %v9622_v51  ;;  %v1085_v51 = vmul.f32 %v11084_v48, %v11083_v39  ;;  %v11088_v39 = vld [vmem:[#allocation116_spill] sm:$0xff] }
 0xb06   :  { %v3702_v11 = vrot.slane %v3698_v41, 6  ;;  %v11067_v41 = vld [vmem:[#allocation60_spill] sm:$0xff] }
 0xb08   :  { %3724 = vrot.lane.b32.xlu0 %v3702_v11, %s7947_s14  ;;  %v3704_v25 = vadd.f32 %v3702_v11, %v9289_v29 }
 0xb09   :  { %3884 = vmatpush.bf16.msrb.mxu0 %v11061_v0  ;;  %v11068_v0 = vld [vmem:[#allocation64_spill] sm:$0xff] }
 0xb0b   :  { %v3699_v53 = vpop.f32.mrf.mxu1 }
 0xb0c   :  { %3885 = vmatmul.bf16.vlgmr.msrb.gmra.mxu0 %v11040_v6  ;;  %v11069_v6 = vld [vmem:[#allocation68_spill] sm:$0xff]  ;;  %v9705_v53 = vrot.slane %v4148_v28, 1 }
 0xb0d   :  { %4156 = vmatpush.bf16.msra.mxu0 %v11062_v49 }
 0xb0e   :  { %11070 = vst [vmem:[#allocation140_spill] sm:$0xff] %v9705_v53 }
 0xb11   :  { %4157 = vmatpush.bf16.msra.mxu0 %v11063_v13 }
 0xb13   :  { %v3795_v60 = vpop.f32.mrf.mxu1 }
 0xb15   :  { %4158 = vmatpush.bf16.msra.mxu0 %v11064_v37 }
 0xb19   :  { %4159 = vmatpush.bf16.msra.mxu0 %v11065_v8 }
 0xb1b   :  { %v3797_v12 = vpop.f32.mrf.mxu1 }
 0xb1d   :  { %4160 = vmatpush.bf16.msra.mxu0 %v11066_v57 }
 0xb21   :  { %4161 = vmatpush.bf16.msra.mxu0 %v11067_v41 }
 0xb23   :  { %v9702_v36 = vpop.f32.mrf.mxu1 }
 0xb25   :  { %4162 = vmatpush.bf16.msra.mxu0 %v11068_v0 }
 0xb29   :  { %4163 = vmatpush.bf16.msra.mxu0 %v11069_v6 }
 0xb2b   :  { %v3849_v12 = vpop.f32.mrf.mxu1 }
 0xb2c   :  { %4164 = vmatmul.bf16.vlgmr.msra.gmra.mxu0 %v9705_v53  ;;  %v11082_v12 = vperm.slane %v11081_v1, 0 }
 0xb2d   :  { %4208 = vmatpush.bf16.msrb.mxu0 %v11071_v61 }
 0xb2e   :  { %v1074_v34 = vmul.f32 %v11082_v12, %v11080_v46  ;;  %v6766_v12 = vmul.f32 -1.442695, %v3704_v25 }
 0xb30   :  { %v1087_v58 = vadd.f32 %v1085_v51, %v1074_v34  ;;  %7672 = vpow2.f32 %v6766_v12  ;;  %v11089_v34 = vld [vmem:[#allocation120_spill] sm:$0xff] }
 0xb31   :  { %4209 = vmatpush.bf16.msrb.mxu0 %v11072_v16  ;;  %v11090_v51 = vld [vmem:[#allocation124_spill] sm:$0xff] }
 0xb35   :  { %4210 = vmatpush.bf16.msrb.mxu0 %v11073_v54 }
 0xb39   :  { %4211 = vmatpush.bf16.msrb.mxu0 %v11074_v9 }
 0xb3d   :  { %4212 = vmatpush.bf16.msrb.mxu0 %v11075_v17 }
 0xb41   :  { %4213 = vmatpush.bf16.msrb.mxu0 %v11076_v33 }
 0xb43   :  { %v9715_v28 = vpop.f32.mrf.mxu1 }
 0xb45   :  { %4214 = vmatpush.bf16.msrb.mxu0 %v11077_v45 }
 0xb49   :  { %4215 = vmatpush.bf16.msrb.mxu0 %v11078_v18  ;;  %v3634_v31 = vpop.f32.mrf.mxu0 }
 0xb4a   :  { %v3635_v46 = vadd.f32 %v11087_v15, %v3634_v31  ;;  %v11091_v31 = vld [vmem:[#allocation128_spill] sm:$0xff] }
 0xb4b   :  { %v3901_v5 = vpop.f32.mrf.mxu1  ;;  %v11092_v15 = vld [vmem:[#allocation156_spill] sm:$0xff] }
 0xb4c   :  { %4216 = vmatmul.bf16.vlgmr.msrb.gmra.mxu0 %v9705_v53  ;;  %3659 = vrot.lane.b32.xlu2 %v3635_v46, %s7947_s14  ;;  %v7673_v5 = vpop.eup %7672 }
 0xb4d   :  { %4260 = vmatpush.bf16.msra.mxu0 %v11079_v55  ;;  %v7769_v55 = vld [vmem:[%s10713_s19] ss:$0 sm:$0xff] }
 0xb4e   :  { %v9730_v52 = vadd.f32 %v7769_v55, %v1087_v58 }
 0xb50   :  { %v3638_v1 = vadd.f32 %v3635_v46, %v9730_v52 }
 0xb51   :  { %4261 = vmatpush.bf16.msra.mxu0 %v11085_v30  ;;  %v3636_v11 = vpop.f32.mrf.mxu0 }
 0xb52   :  { %v6764_v48 = vmul.f32 -1.442695, %v3638_v1  ;;  %v11093_v1 = vld [vmem:[#allocation132_spill] sm:$0xff]  ;;  %v11094_v11 = vld [vmem:[#allocation142_spill] sm:$0xff] }
 0xb54   :  { %7674 = vpow2.f32 %v6764_v48 }
 0xb55   :  { %4262 = vmatpush.bf16.msra.mxu0 %v11086_v59  ;;  %v3708_v59 = vadd.f32 1.0, %v7673_v5 }
 0xb57   :  { %vm3714_vm6 = vweird.f32 %v3708_v59 }
 0xb59   :  { %4263 = vmatpush.bf16.msra.mxu0 %v11088_v39  ;;  %v3782_v25 = vpop.f32.mrf.mxu0 }
 0xb5a   :  { %v7675_v55 = vpop.eup %7674  ;;  %v3783_v46 = vadd.f32 %v3782_v25, %v11092_v15 }
 0xb5b   :  { %v3642_v58 = vadd.f32 1.0, %v7675_v55 }
 0xb5c   :  { %v3796_v39 = vadd.f32 %v3795_v60, %v3783_v46 }
 0xb5d   :  { %4264 = vmatpush.bf16.msra.mxu0 %v11089_v34  ;;  %7676 = vrcp.f32 %v3642_v58  ;;  %v3654_v25 = vand.u32 2147483648, %v3642_v58  ;;  %v3652_v46 = vand.u32 2147483647, %v3642_v58  ;;  %vm3648_vm2 = vweird.f32 %v3642_v58 }
 0xb5e   :  { %7678 = vrcp.f32 %v3708_v59  ;;  %v3906_v12 = vrot.slane %v3796_v39, 6 }
 0xb5f   :  { %vm3653_vm4 = vcmp.eq.f32.partialorder %v3652_v46, 8.507059e+37 }
 0xb60   :  { %v3910_v34 = vadd.f32 %v3906_v12, %v11094_v11  ;;  %v3676_v12 = vrot.slane %v9630_v32, 6  ;;  %v11096_v32 = vld [vmem:[#allocation147_spill] sm:$0xff] }
 0xb61   :  { %4265 = vmatpush.bf16.msra.mxu0 %v11090_v51  ;;  %v3784_v5 = vpop.f32.mrf.mxu0 }
 0xb62   :  { %v6768_v30 = vmul.f32 -1.442695, %v3910_v34 }
 0xb63   :  { %v7677_v48 = vpop.eup %7676 }
 0xb64   :  { %v3644_v55 = vmul.f32 %v7677_v48, %v3642_v58  ;;  %v7679_v51 = vpop.eup %7678  ;;  %7680 = vpow2.f32 %v6768_v30  ;;  %vm3649_vm1 = vweird.f32 %v7677_v48  ;;  %v11095_v30 = vld [vmem:[#allocation158_spill] sm:$0xff] }
 0xb65   :  { %4266 = vmatpush.bf16.msra.mxu0 %v11091_v31  ;;  %v3710_v39 = vmul.f32 %v7679_v51, %v3708_v59  ;;  %vm3650_vm3 = vmor %vm3648_vm2, %vm3649_vm1  ;;  %vm3715_vm5 = vweird.f32 %v7679_v51 }
 0xb66   :  { %v3645_v31 = vsub.f32 1.0, %v3644_v55  ;;  %vm3716_vm7 = vmor %vm3714_vm6, %vm3715_vm5 }
 0xb67   :  { %v3711_v55 = vsub.f32 1.0, %v3710_v39 }
 0xb68   :  { %v3646_v60 = vmul.f32 %v7677_v48, %v3645_v31 }
 0xb69   :  { %4267 = vmatpush.bf16.msra.mxu0 %v11093_v1  ;;  %v3834_v34 = vpop.f32.mrf.mxu0 }
 0xb6a   :  { %v3647_v15 = vadd.f32 %v7677_v48, %v3646_v60  ;;  %v3835_v31 = vadd.f32 %v3834_v34, %v11095_v30 }
 0xb6c   :  { %4268 = vmatmul.bf16.vlgmr.msra.gmra.mxu0 %v9705_v53  ;;  %v3651_v5 = vsel %vm3650_vm3, %v7677_v48, %v3647_v15 }
 0xb6d   :  { %4438 = vmatpush.bf16.msrb.mxu0 %v11062_v49  ;;  %v3655_v49 = vor.u32 1.1754944e-38, %v3654_v25  ;;  %v3712_v25 = vmul.f32 %v7679_v51, %v3711_v55 }
 0xb6f   :  { %v9747_v11 = vsel %vm3653_vm4, %v3655_v49, %v3651_v5  ;;  %v3713_v46 = vadd.f32 %v7679_v51, %v3712_v25  ;;  %v3720_v49 = vand.u32 2147483648, %v3708_v59 }
 0xb70   :  { %v9752_v60 = vmul.f32 %v3676_v12, %v9747_v11 }
 0xb71   :  { %4439 = vmatpush.bf16.msrb.mxu0 %v11063_v13  ;;  %v7681_v13 = vpop.eup %7680  ;;  %v3836_v48 = vpop.f32.mrf.mxu0  ;;  %v3717_v12 = vsel %vm3716_vm7, %v7679_v51, %v3713_v46  ;;  %v3721_v5 = vor.u32 1.1754944e-38, %v3720_v49 }
 0xb72   :  { %v3918_v58 = vadd.f32 1.0, %v7681_v13 }
 0xb74   :  { %7682 = vrcp.f32 %v3918_v58  ;;  %v3945_v48 = vand.u32 2147483648, %v3918_v58  ;;  %vm3939_vm10 = vweird.f32 %v3918_v58  ;;  %v3943_v46 = vand.u32 2147483647, %v3918_v58 }
 0xb75   :  { %4440 = vmatpush.bf16.msrb.mxu0 %v11064_v37  ;;  %v3848_v37 = vadd.f32 %v9702_v36, %v3835_v31 }
 0xb76   :  { %v3946_v49 = vor.u32 1.1754944e-38, %v3945_v48  ;;  %vm3944_vm12 = vcmp.eq.f32.partialorder %v3943_v46, 8.507059e+37 }
 0xb77   :  { %v3952_v53 = vrot.slane %v3848_v37, 6 }
 0xb79   :  { %4441 = vmatpush.bf16.msrb.mxu0 %v11065_v8  ;;  %v3956_v15 = vadd.f32 %v3952_v53, %v11096_v32  ;;  %v3718_v8 = vand.u32 2147483647, %v3708_v59 }
 0xb7a   :  { %v7683_v36 = vpop.eup %7682 }
 0xb7b   :  { %v6770_v39 = vmul.f32 -1.442695, %v3956_v15  ;;  %vm3719_vm8 = vcmp.eq.f32.partialorder %v3718_v8, 8.507059e+37  ;;  %v3935_v55 = vmul.f32 %v7683_v36, %v3918_v58  ;;  %vm3940_vm9 = vweird.f32 %v7683_v36 }
 0xb7c   :  { %v9759_v34 = vsel %vm3719_vm8, %v3721_v5, %v3717_v12  ;;  %vm3941_vm11 = vmor %vm3939_vm10, %vm3940_vm9 }
 0xb7d   :  { %4442 = vmatpush.bf16.msrb.mxu0 %v11066_v57  ;;  %7684 = vpow2.f32 %v6770_v39  ;;  %v3725_v57 = vpop.permute.xlu0 %3724  ;;  %v3936_v59 = vsub.f32 1.0, %v3935_v55 }
 0xb7e   :  { %v3727_v53 = vmul.f32 %v3725_v57, %v9759_v34 }
 0xb80   :  { %3729 = vrot.lane.b32.xlu2 %v3727_v53, %s7947_s14 }
 0xb81   :  { %4443 = vmatpush.bf16.msrb.mxu0 %v11067_v41 }
 0xb83   :  { %v7685_v13 = vpop.eup %7684 }
 0xb84   :  { %v3964_v41 = vadd.f32 1.0, %v7685_v13 }
 0xb85   :  { %4444 = vmatpush.bf16.msrb.mxu0 %v11068_v0  ;;  %v3937_v0 = vmul.f32 %v7683_v36, %v3936_v59 }
 0xb86   :  { %7686 = vrcp.f32 %v3964_v41  ;;  %v3991_v5 = vand.u32 2147483648, %v3964_v41  ;;  %vm3985_vm14 = vweird.f32 %v3964_v41  ;;  %v3989_v53 = vand.u32 2147483647, %v3964_v41 }
 0xb87   :  { %v3938_v37 = vadd.f32 %v7683_v36, %v3937_v0 }
 0xb88   :  { %vm3990_vm1 = vcmp.eq.f32.partialorder %v3989_v53, 8.507059e+37  ;;  %v11102_v53 = vld [vmem:[#allocation139_spill] sm:$0xff] }
 0xb89   :  { %4445 = vmatpush.bf16.msrb.mxu0 %v11069_v6  ;;  %v3886_v15 = vpop.f32.mrf.mxu0  ;;  %v3942_v39 = vsel %vm3941_vm11, %v7683_v36, %v3938_v37  ;;  %v3992_v36 = vor.u32 1.1754944e-38, %v3991_v5 }
 0xb8a   :  { %v3887_v6 = vadd.f32 %v3886_v15, %v10916_v10  ;;  %v3947_v8 = vsel %vm3944_vm12, %v3946_v49, %v3942_v39  ;;  %v11101_v49 = vld [vmem:[#allocation157_spill] sm:$0xff] }
 0xb8c   :  { %v7687_v51 = vpop.eup %7686 }
 0xb8d   :  { %4490 = vmatpush.bf16.msra.mxu0 %v11071_v61  ;;  %v3981_v31 = vmul.f32 %v7687_v51, %v3964_v41  ;;  %vm3986_vm13 = vweird.f32 %v7687_v51 }
 0xb8e   :  { %vm3987_vm15 = vmor %vm3985_vm14, %vm3986_vm13 }
 0xb8f   :  { %v3982_v25 = vsub.f32 1.0, %v3981_v31 }
 0xb91   :  { %4491 = vmatpush.bf16.msra.mxu0 %v11072_v16  ;;  %v3983_v61 = vmul.f32 %v7687_v51, %v3982_v25  ;;  %v3900_v16 = vadd.f32 %v9715_v28, %v3887_v6  ;;  %v3888_v58 = vpop.f32.mrf.mxu0 }
 0xb93   :  { %v3984_v12 = vadd.f32 %v7687_v51, %v3983_v61  ;;  %v11100_v61 = vld [vmem:[#allocation137_spill] sm:$0xff] }
 0xb95   :  { %4492 = vmatpush.bf16.msra.mxu0 %v11073_v54  ;;  %v3998_v54 = vrot.slane %v3900_v16, 6  ;;  %v3988_v28 = vsel %vm3987_vm15, %v7687_v51, %v3984_v12 }
 0xb96   :  { %v3993_v55 = vsel %vm3990_vm1, %v3992_v36, %v3988_v28 }
 0xb97   :  { %v4002_v57 = vmul.f32 %v3998_v54, %v3947_v8  ;;  %v4008_v13 = vsub.f32 1.0, %v3993_v55 }
 0xb99   :  { %4493 = vmatpush.bf16.msra.mxu0 %v11074_v9  ;;  %v4004_v9 = vadd.f32 %v4002_v57, %v9568_v26 }
 0xb9b   :  { %7688 = vtanh.f32 %v4004_v9 }
 0xb9d   :  { %4494 = vmatpush.bf16.msra.mxu0 %v11075_v17  ;;  %v4014_v17 = vrot.slane %v9575_v40, 6 }
 0xb9f   :  { %v4018_v0 = vmul.f32 %v4014_v17, %v3993_v55 }
 0xba1   :  { %4495 = vmatpush.bf16.msra.mxu0 %v11076_v33  ;;  %v7689_v59 = vpop.eup %7688 }
 0xba2   :  { %v4010_v41 = vmul.f32 %v7689_v59, %v4008_v13 }
 0xba4   :  { %v9776_v31 = vadd.f32 %v4018_v0, %v4010_v41  ;;  %v11103_v0 = vld [vmem:[#allocation159_spill] sm:$0xff] }
 0xba5   :  { %4496 = vmatpush.bf16.msra.mxu0 %v11077_v45 }
 0xba6   :  { %v4149_v33 = vpack.c.bf16 %v9776_v31, %v9776_v31  ;;  %v3660_v40 = vpop.permute.xlu2 %3659 }
 0xba7   :  { %v3662_v37 = vmul.f32 %v3660_v40, %v9747_v11 }
 0xba8   :  { %v9780_v51 = vrot.slane %v4149_v33, 1 }
 0xba9   :  { %4497 = vmatpush.bf16.msra.mxu0 %v11078_v18  ;;  %v4165_v45 = vpop.f32.mrf.mxu0  ;;  %3664 = vrot.lane.b32.xlu1 %v3662_v37, %s7947_s14 }
 0xbaa   :  { %4177 = vmatmul.bf16.vlgmr.msra.gmra.mxu1 %v9780_v51 }
 0xbab   :  { %4273 = vmatpush.bf16.msra.mxu1 %v10681_v42 }
 0xbaf   :  { %4274 = vmatpush.bf16.msra.mxu1 %v10685_v56 }
 0xbb1   :  { %v4167_v18 = vpop.f32.mrf.mxu0 }
 0xbb3   :  { %4275 = vmatpush.bf16.msra.mxu1 %v10690_v21 }
 0xbb7   :  { %4276 = vmatpush.bf16.msra.mxu1 %v10694_v35 }
 0xbba   :  { %4229 = vmatmul.bf16.vlgmr.msrb.gmra.mxu1 %v9780_v51 }
 0xbbb   :  { %4277 = vmatpush.bf16.msra.mxu1 %v10698_v47 }
 0xbbf   :  { %4278 = vmatpush.bf16.msra.mxu1 %v10704_v24 }
 0xbc3   :  { %4279 = vmatpush.bf16.msra.mxu1 %v10706_v4 }
 0xbc7   :  { %4280 = vmatpush.bf16.msra.mxu1 %v8509_v2 }
 0xbc9   :  { %v4217_v25 = vpop.f32.mrf.mxu0 }
 0xbca   :  { %4281 = vmatmul.bf16.vlgmr.msra.gmra.mxu1 %v9780_v51  ;;  %v4218_v54 = vadd.f32 %v4217_v25, %v11101_v49 }
 0xbcb   :  { %4451 = vmatpush.bf16.msrb.mxu1 %v11028_v3 }
 0xbcf   :  { %4452 = vmatpush.bf16.msrb.mxu1 %v11029_v19 }
 0xbd1   :  { %v4219_v15 = vpop.f32.mrf.mxu0 }
 0xbd3   :  { %4453 = vmatpush.bf16.msrb.mxu1 %v11030_v7 }
 0xbd7   :  { %4454 = vmatpush.bf16.msrb.mxu1 %v11031_v62  ;;  %v11097_v62 = vld [vmem:[#allocation97_spill] sm:$0xff] }
 0xbda   :  { %v3730_v48 = vpop.permute.xlu2 %3729 }
 0xbdb   :  { %4455 = vmatpush.bf16.msrb.mxu1 %v11033_v43  ;;  %v3732_v6 = vadd.f32 %v3730_v48, %v9289_v29  ;;  %v11098_v43 = vld [vmem:[#allocation101_spill] sm:$0xff] }
 0xbdd   :  { %7690 = vtanh.f32 %v3732_v6 }
 0xbdf   :  { %4456 = vmatpush.bf16.msrb.mxu1 %v11035_v20 }
 0xbe3   :  { %4457 = vmatpush.bf16.msrb.mxu1 %v11037_v50  ;;  %v7691_v19 = vpop.eup %7690  ;;  %v11099_v50 = vld [vmem:[#allocation155_spill] sm:$0xff] }
 0xbe4   :  { %3736 = vrot.lane.b32.xlu1 %v7691_v19, %s7953_s12 }
 0xbe7   :  { %4458 = vmatpush.bf16.msrb.mxu1 %v11039_v22  ;;  %v4166_v22 = vadd.f32 %v4165_v45, %v11099_v50 }
 0xbe9   :  { %v4269_v3 = vpop.f32.mrf.mxu0 }
 0xbea   :  { %v4270_v33 = vadd.f32 %v4269_v3, %v11103_v0 }
 0xbeb   :  { %4503 = vmatpush.bf16.msra.mxu1 %v11041_v38 }
 0xbef   :  { %4504 = vmatpush.bf16.msra.mxu1 %v11043_v14 }
 0xbf1   :  { %v4271_v7 = vpop.f32.mrf.mxu0 }
 0xbf3   :  { %4505 = vmatpush.bf16.msra.mxu1 %v11045_v44 }
 0xbf7   :  { %4506 = vmatpush.bf16.msra.mxu1 %v11047_v27 }
 0xbfb   :  { %4507 = vmatpush.bf16.msra.mxu1 %v11050_v23 }
 0xbff   :  { %4508 = vmatpush.bf16.msra.mxu1 %v11052_v63 }
 0xc03   :  { %4509 = vmatpush.bf16.msra.mxu1 %v11097_v62 }
 0xc07   :  { %4510 = vmatpush.bf16.msra.mxu1 %v11098_v43 }
 0xc1b   :  { %v3665_v20 = vpop.permute.xlu1 %3664 }
 0xc1c   :  { %v3667_v38 = vadd.f32 %v3665_v20, %v9730_v52 }
 0xc1e   :  { %7692 = vtanh.f32 %v3667_v38 }
 0xc24   :  { %v7693_v27 = vpop.eup %7692 }
 0xc25   :  { %3671 = vrot.lane.b32.xlu0 %v7693_v27, %s7953_s12 }
 0xc27   :  { %v4178_v46 = vpop.f32.mrf.mxu1 }
 0xc28   :  { %v4179_v14 = vadd.f32 %v4178_v46, %v4166_v22  ;;  %v11104_v22 = vld [vmem:[#allocation125_spill] sm:$0xff] }
 0xc2a   :  { %v4314_v44 = vrot.slane %v4179_v14, 4 }
 0xc2c   :  { %v4318_v16 = vadd.f32 %v4314_v44, %v11100_v61 }
 0xc2e   :  { %v6775_v39 = vmul.f32 -1.442695, %v4318_v16 }
 0xc2f   :  { %v4180_v23 = vpop.f32.mrf.mxu1 }
 0xc30   :  { %7694 = vpow2.f32 %v6775_v39  ;;  %v11105_v39 = vld [vmem:[#allocation136_spill] sm:$0xff] }
 0xc31   :  { %v4422_v23 = vrot.slane %v11105_v39, 6 }
 0xc36   :  { %v7695_v63 = vpop.eup %7694 }
 0xc37   :  { %v4326_v8 = vadd.f32 1.0, %v7695_v63  ;;  %v4230_v12 = vpop.f32.mrf.mxu1 }
 0xc38   :  { %v4231_v5 = vadd.f32 %v4230_v12, %v4218_v54 }
 0xc39   :  { %7696 = vrcp.f32 %v4326_v8  ;;  %v4339_v59 = vand.u32 2147483648, %v4326_v8  ;;  %vm4333_vm3 = vweird.f32 %v4326_v8  ;;  %v4337_v40 = vand.u32 2147483647, %v4326_v8 }
 0xc3a   :  { %v4360_v57 = vrot.slane %v4231_v5, 4 }
 0xc3b   :  { %v4340_v48 = vor.u32 1.1754944e-38, %v4339_v59  ;;  %vm4338_vm5 = vcmp.eq.f32.partialorder %v4337_v40, 8.507059e+37 }
 0xc3c   :  { %v4364_v58 = vadd.f32 %v4360_v57, %v11102_v53 }
 0xc3e   :  { %v6777_v9 = vmul.f32 -1.442695, %v4364_v58  ;;  %v3734_v58 = vsub.f32 1.0, %v9759_v34 }
 0xc3f   :  { %v7697_v28 = vpop.eup %7696  ;;  %v4232_v36 = vpop.f32.mrf.mxu1 }
 0xc40   :  { %7698 = vpow2.f32 %v6777_v9  ;;  %v4329_v55 = vmul.f32 %v7697_v28, %v4326_v8  ;;  %vm4334_vm2 = vweird.f32 %v7697_v28  ;;  %v11106_v8 = vld [vmem:[#allocation160_spill] sm:$0xff] }
 0xc41   :  { %vm4335_vm4 = vmor %vm4333_vm3, %vm4334_vm2  ;;  %v3741_v12 = vrot.slane %v11106_v8, 2 }
 0xc42   :  { %v4330_v17 = vsub.f32 1.0, %v4329_v55 }
 0xc43   :  { %v3743_v55 = vmul.f32 %v3741_v12, %v9759_v34  ;;  %v11108_v34 = vld [vmem:[#allocation108_spill] sm:$0xff]  ;;  %v11124_v12 = vld [vmem:[#allocation115_spill] sm:$0xff] }
 0xc44   :  { %v4331_v13 = vmul.f32 %v7697_v28, %v4330_v17 }
 0xc46   :  { %v7699_v41 = vpop.eup %7698  ;;  %v4332_v45 = vadd.f32 %v7697_v28, %v4331_v13 }
 0xc47   :  { %v4372_v37 = vadd.f32 1.0, %v7699_v41  ;;  %v4282_v18 = vpop.f32.mrf.mxu1 }
 0xc48   :  { %v4283_v25 = vadd.f32 %v4282_v18, %v4270_v33  ;;  %v4336_v15 = vsel %vm4335_vm4, %v7697_v28, %v4332_v45  ;;  %v11109_v18 = vld [vmem:[#allocation112_spill] sm:$0xff] }
 0xc49   :  { %7700 = vrcp.f32 %v4372_v37  ;;  %v4341_v19 = vsel %vm4338_vm5, %v4340_v48, %v4336_v15  ;;  %v4385_v46 = vand.u32 2147483648, %v4372_v37  ;;  %v4383_v44 = vand.u32 2147483647, %v4372_v37  ;;  %v11111_v15 = vld [vmem:[#allocation120_spill] sm:$0xff] }
 0xc4a   :  { %v4406_v6 = vrot.slane %v4283_v25, 4  ;;  %vm4379_vm7 = vweird.f32 %v4372_v37  ;;  %v11110_v25 = vld [vmem:[#allocation116_spill] sm:$0xff] }
 0xc4b   :  { %v4386_v27 = vor.u32 1.1754944e-38, %v4385_v46  ;;  %vm4384_vm9 = vcmp.eq.f32.partialorder %v4383_v44, 8.507059e+37  ;;  %v11112_v48 = vld [vmem:[#allocation124_spill] sm:$0xff]  ;;  %v11116_v46 = vld [vmem:[#allocation83_spill] sm:$0xff] }
 0xc4c   :  { %v4410_v7 = vmul.f32 %v4406_v6, %v4341_v19  ;;  %v11113_v6 = vld [vmem:[#allocation128_spill] sm:$0xff]  ;;  %v3669_v19 = vsub.f32 1.0, %v9747_v11 }
 0xc4e   :  { %v4412_v38 = vadd.f32 %v4410_v7, %v11104_v22 }
 0xc4f   :  { %v7701_v62 = vpop.eup %7700  ;;  %v4284_v43 = vpop.f32.mrf.mxu1 }
 0xc50   :  { %v4375_v20 = vmul.f32 %v7701_v62, %v4372_v37  ;;  %vm4380_vm6 = vweird.f32 %v7701_v62  ;;  %7702 = vtanh.f32 %v4412_v38  ;;  %v11107_v37 = vld [vmem:[#allocation102_spill] sm:$0xff] }
 0xc51   :  { %vm4381_vm8 = vmor %vm4379_vm7, %vm4380_vm6 }
 0xc52   :  { %v4376_v3 = vsub.f32 1.0, %v4375_v20 }
 0xc54   :  { %v4377_v14 = vmul.f32 %v7701_v62, %v4376_v3  ;;  %v11114_v3 = vld [vmem:[#allocation75_spill] sm:$0xff] }
 0xc56   :  { %v4378_v16 = vadd.f32 %v7701_v62, %v4377_v14  ;;  %v7703_v9 = vpop.eup %7702  ;;  %v3737_v28 = vpop.permute.xlu1 %3736  ;;  %v11117_v14 = vld [vmem:[#allocation87_spill] sm:$0xff] }
 0xc57   :  { %v3739_v17 = vmul.f32 %v3737_v28, %v3734_v58  ;;  %v11127_v28 = vld [vmem:[#allocation123_spill] sm:$0xff] }
 0xc58   :  { %v4382_v63 = vsel %vm4381_vm8, %v7701_v62, %v4378_v16  ;;  %v11119_v16 = vld [vmem:[#allocation95_spill] sm:$0xff] }
 0xc59   :  { %v4387_v54 = vsel %vm4384_vm9, %v4386_v27, %v4382_v63  ;;  %v9827_v59 = vadd.f32 %v3743_v55, %v3739_v17  ;;  %v11120_v27 = vld [vmem:[#allocation99_spill] sm:$0xff] }
 0xc5a   :  { %v4416_v5 = vsub.f32 1.0, %v4387_v54  ;;  %v4426_v57 = vmul.f32 %v4422_v23, %v4387_v54  ;;  %v11121_v23 = vld [vmem:[#allocation106_spill] sm:$0xff]  ;;  %v11122_v63 = vld [vmem:[#allocation107_spill] sm:$0xff] }
 0xc5b   :  { %v4085_v33 = vpack.c.bf16 %v9827_v59, %v9827_v59  ;;  %v11123_v54 = vld [vmem:[#allocation111_spill] sm:$0xff] }
 0xc5c   :  { %v4418_v36 = vmul.f32 %v7703_v9, %v4416_v5  ;;  %v11125_v5 = vld [vmem:[#allocation119_spill] sm:$0xff]  ;;  %v11126_v9 = vld [vmem:[#allocation73_spill] sm:$0xff] }
 0xc5d   :  { %v4087_v40 = vrot.slane %v4085_v33, 1  ;;  %v11129_v55 = vld [vmem:[#allocation127_spill] sm:$0xff] }
 0xc5e   :  { %v9825_v13 = vadd.f32 %v4426_v57, %v4418_v36  ;;  %v11128_v36 = vld [vmem:[#allocation78_spill] sm:$0xff]  ;;  %v11131_v33 = vld [vmem:[#allocation131_spill] sm:$0xff] }
 0xc5f   :  { %4088 = vrot.lane.b32.xlu0 %v4087_v40, %s7953_s12  ;;  %v11132_v40 = vld [vmem:[#allocation86_spill] sm:$0xff] }
 0xc60   :  { %v4430_v41 = vpack.c.bf16 %v9825_v13, %v9825_v13 }
 0xc62   :  { %v9833_v45 = vrot.slane %v4430_v41, 2  ;;  %v11130_v41 = vld [vmem:[#allocation82_spill] sm:$0xff] }
 0xc64   :  { %4446 = vmatmul.bf16.vlgmr.msrb.gmra.mxu0 %v9833_v45 }
 0xc65   :  { %4542 = vmatpush.bf16.msrb.mxu0 %v11107_v37  ;;  %v11133_v37 = vld [vmem:[#allocation134_spill] sm:$0xff] }
 0xc69   :  { %4543 = vmatpush.bf16.msrb.mxu0 %v11108_v34  ;;  %v11134_v34 = vld [vmem:[#allocation43_spill] sm:$0xff] }
 0xc6d   :  { %4544 = vmatpush.bf16.msrb.mxu0 %v11109_v18  ;;  %v11135_v18 = vld [vmem:[#allocation140_spill] sm:$0xff] }
 0xc71   :  { %4545 = vmatpush.bf16.msrb.mxu0 %v11110_v25  ;;  %v11136_v25 = vld [vmem:[#allocation90_spill] sm:$0xff] }
 0xc74   :  { %4498 = vmatmul.bf16.vlgmr.msra.gmra.mxu0 %v9833_v45 }
 0xc75   :  { %4546 = vmatpush.bf16.msrb.mxu0 %v11111_v15  ;;  %v11137_v15 = vld [vmem:[#allocation47_spill] sm:$0xff] }
 0xc79   :  { %4547 = vmatpush.bf16.msrb.mxu0 %v11112_v48  ;;  %v11138_v48 = vld [vmem:[#allocation94_spill] sm:$0xff] }
 0xc7d   :  { %4548 = vmatpush.bf16.msrb.mxu0 %v11113_v6  ;;  %v11139_v6 = vld [vmem:[#allocation51_spill] sm:$0xff] }
 0xc81   :  { %4549 = vmatpush.bf16.msrb.mxu0 %v11093_v1  ;;  %v11115_v1 = vld [vmem:[#allocation79_spill] sm:$0xff] }
 0xc84   :  { %4550 = vmatmul.bf16.vlgmr.msrb.gmra.mxu0 %v9833_v45 }
 0xc97   :  { %v3672_v7 = vpop.permute.xlu0 %3671 }
 0xc98   :  { %v3674_v62 = vmul.f32 %v3672_v7, %v3669_v19  ;;  %v11140_v19 = vld [vmem:[#allocation98_spill] sm:$0xff]  ;;  %v11141_v7 = vld [vmem:[#allocation55_spill] sm:$0xff] }
 0xc9a   :  { %v9849_v43 = vadd.f32 %v9752_v60, %v3674_v62  ;;  %v11118_v60 = vld [vmem:[#allocation91_spill] sm:$0xff] }
 0xc9b   :  { %v11142_v62 = vld [vmem:[#allocation103_spill] sm:$0xff] }
 0xc9c   :  { %v4021_v20 = vpack.c.bf16 %v9849_v43, %v9849_v43 }
 0xc9e   :  { %4023 = vrot.lane.b32.xlu2 %v4021_v20, %s7953_s12  ;;  %v11143_v20 = vld [vmem:[#allocation105_spill] sm:$0xff] }
 0xcd1   :  { %v4089_v38 = vpop.permute.xlu0 %4088 }
 0xcd2   :  { %6773 = vmatmul.msk.bf16.vlgmr.msrb.gmra.mxu3 %vm1995_vm0, %v4089_v38  ;;  %v11144_v38 = vld [vmem:[#allocation59_spill] sm:$0xff] }
 0xcd3   :  { %4247 = vmatpush.bf16.msrb.mxu3 %v11114_v3 }
 0xcd7   :  { %4248 = vmatpush.bf16.msrb.mxu3 %v11115_v1 }
 0xcdb   :  { %4249 = vmatpush.bf16.msrb.mxu3 %v11116_v46 }
 0xcdf   :  { %4250 = vmatpush.bf16.msrb.mxu3 %v11117_v14 }
 0xce1   :  { %v9858_v11 = vpop.f32.mrf.mxu0 }
 0xce2   :  { %4203 = vmatmul.bf16.vlgmr.msra.gmra.mxu3 %v9780_v51 }
 0xce3   :  { %4251 = vmatpush.bf16.msrb.mxu3 %v11118_v60 }
 0xce7   :  { %4252 = vmatpush.bf16.msrb.mxu3 %v11119_v16 }
 0xce9   :  { %v4449_v44 = vpop.f32.mrf.mxu0 }
 0xcea   :  { %v11145_v44 = vld [vmem:[#allocation110_spill] sm:$0xff] }
 0xceb   :  { %4253 = vmatpush.bf16.msrb.mxu3 %v11120_v27 }
 0xcef   :  { %4254 = vmatpush.bf16.msrb.mxu3 %v11121_v23 }
 0xcf1   :  { %v9865_v39 = vpop.f32.mrf.mxu0 }
 0xcf2   :  { %4255 = vmatmul.bf16.vlgmr.msrb.gmra.mxu3 %v9780_v51 }
 0xcf3   :  { %4299 = vmatpush.bf16.msra.mxu3 %v11122_v63 }
 0xcf7   :  { %4300 = vmatpush.bf16.msra.mxu3 %v11123_v54 }
 0xcf8   :  { %v4024_v58 = vpop.permute.xlu2 %4023 }
 0xcf9   :  { %v4501_v8 = vpop.f32.mrf.mxu0  ;;  %6771 = vmatmul.msk.bf16.vlgmr.msrb.gmra.mxu2 %vm1995_vm0, %v4024_v58  ;;  %v11148_v58 = vld [vmem:[#allocation67_spill] sm:$0xff] }
 0xcfa   :  { %4234 = vmatpush.bf16.msrb.mxu2 %v11126_v9  ;;  %v11147_v8 = vld [vmem:[#allocation114_spill] sm:$0xff] }
 0xcfb   :  { %4301 = vmatpush.bf16.msra.mxu3 %v11124_v12 }
 0xcfe   :  { %4235 = vmatpush.bf16.msrb.mxu2 %v11128_v36 }
 0xcff   :  { %4302 = vmatpush.bf16.msra.mxu3 %v11125_v5 }
 0xd01   :  { %v9873_v57 = vpop.f32.mrf.mxu0 }
 0xd02   :  { %4236 = vmatpush.bf16.msrb.mxu2 %v11130_v41 }
 0xd03   :  { %4303 = vmatpush.bf16.msra.mxu3 %v11127_v28 }
 0xd06   :  { %4237 = vmatpush.bf16.msrb.mxu2 %v11132_v40 }
 0xd07   :  { %4304 = vmatpush.bf16.msra.mxu3 %v11129_v55 }
 0xd09   :  { %v4553_v17 = vpop.f32.mrf.mxu0  ;;  %4190 = vmatmul.bf16.vlgmr.msra.gmra.mxu2 %v11135_v18 }
 0xd0a   :  { %4238 = vmatpush.bf16.msrb.mxu2 %v11136_v25  ;;  %v11149_v17 = vld [vmem:[#allocation118_spill] sm:$0xff] }
 0xd0b   :  { %4305 = vmatpush.bf16.msra.mxu3 %v11131_v33 }
 0xd0e   :  { %4239 = vmatpush.bf16.msrb.mxu2 %v11138_v48 }
 0xd0f   :  { %4306 = vmatpush.bf16.msra.mxu3 %v11133_v37 }
 0xd12   :  { %4307 = vmatmul.bf16.vlgmr.msra.gmra.mxu3 %v9780_v51  ;;  %4240 = vmatpush.bf16.msrb.mxu2 %v11140_v19  ;;  %v11146_v51 = vld [vmem:[#allocation63_spill] sm:$0xff] }
 0xd13   :  { %4477 = vmatpush.bf16.msrb.mxu3 %v11134_v34  ;;  %v11150_v34 = vld [vmem:[#allocation74_spill] sm:$0xff] }
 0xd16   :  { %4241 = vmatpush.bf16.msrb.mxu2 %v11142_v62 }
 0xd17   :  { %4478 = vmatpush.bf16.msrb.mxu3 %v11137_v15  ;;  %v11151_v15 = vld [vmem:[#allocation122_spill] sm:$0xff] }
 0xd19   :  { %4242 = vmatmul.bf16.vlgmr.msrb.gmra.mxu2 %v11135_v18 }
 0xd1a   :  { %4286 = vmatpush.bf16.msra.mxu2 %v11143_v20 }
 0xd1b   :  { %4479 = vmatpush.bf16.msrb.mxu3 %v11139_v6  ;;  %v11152_v6 = vld [vmem:[#allocation126_spill] sm:$0xff] }
 0xd1e   :  { %4287 = vmatpush.bf16.msra.mxu2 %v11145_v44 }
 0xd1f   :  { %4480 = vmatpush.bf16.msrb.mxu3 %v11141_v7  ;;  %v11153_v7 = vld [vmem:[#allocation130_spill] sm:$0xff] }
 0xd22   :  { %4288 = vmatpush.bf16.msra.mxu2 %v11147_v8 }
 0xd23   :  { %4481 = vmatpush.bf16.msrb.mxu3 %v11144_v38  ;;  %v11154_v38 = vld [vmem:[#allocation133_spill] sm:$0xff] }
 0xd26   :  { %4289 = vmatpush.bf16.msra.mxu2 %v11149_v17 }
 0xd27   :  { %4482 = vmatpush.bf16.msrb.mxu3 %v11146_v51  ;;  %v11155_v51 = vld [vmem:[#allocation42_spill] sm:$0xff] }
 0xd2a   :  { %4290 = vmatpush.bf16.msra.mxu2 %v11151_v15 }
 0xd2b   :  { %4483 = vmatpush.bf16.msrb.mxu3 %v11148_v58  ;;  %v11160_v58 = vld [vmem:[#allocation62_spill] sm:$0xff] }
 0xd2e   :  { %4291 = vmatpush.bf16.msra.mxu2 %v11152_v6 }
 0xd2f   :  { %4484 = vmatpush.bf16.msrb.mxu3 %v11150_v34  ;;  %v11161_v34 = vld [vmem:[#allocation66_spill] sm:$0xff] }
 0xd32   :  { %4292 = vmatpush.bf16.msra.mxu2 %v11153_v7 }
 0xd33   :  { %4529 = vmatpush.bf16.msra.mxu3 %v11114_v3  ;;  %v11156_v3 = vld [vmem:[#allocation46_spill] sm:$0xff] }
 0xd36   :  { %4293 = vmatpush.bf16.msra.mxu2 %v11154_v38 }
 0xd37   :  { %4530 = vmatpush.bf16.msra.mxu3 %v11115_v1  ;;  %v11157_v1 = vld [vmem:[#allocation50_spill] sm:$0xff] }
 0xd39   :  { %4294 = vmatmul.bf16.vlgmr.msra.gmra.mxu2 %v11135_v18 }
 0xd3a   :  { %4464 = vmatpush.bf16.msrb.mxu2 %v11155_v51  ;;  %v7770_v51 = vld [vmem:[%s10674_s13] ss:$0 sm:$0xff]  ;;  %s5888_s13 = sshll.u32 %s8173_s27, 4  ;;  %s5889_s13 = int_to_ptr.hbm [resolvable:$true] %s5888_s13 }
 0xd3b   :  { %4531 = vmatpush.bf16.msra.mxu3 %v11116_v46  ;;  %v11158_v46 = vld [vmem:[#allocation54_spill] sm:$0xff]  ;;  %s7880_s25 = sshra.s32 %s5889_s13, 4  ;;  %s7881_s25 = int_to_ptr.hbm [resolvable:$true] %s7880_s25 }
 0xd3c   :  { %p7885_p7 = scmp.lt.s32.totalorder %s7881_s25, %s8173_s27 }
 0xd3e   :  { %4465 = vmatpush.bf16.msrb.mxu2 %v11156_v3 }
 0xd3f   :  { %4532 = vmatpush.bf16.msra.mxu3 %v11117_v14  ;;  %v11159_v14 = vld [vmem:[#allocation58_spill] sm:$0xff] }
 0xd42   :  { %4466 = vmatpush.bf16.msrb.mxu2 %v11157_v1 }
 0xd43   :  { %4533 = vmatpush.bf16.msra.mxu3 %v11118_v60  ;;  %v11162_v60 = vld [vmem:[#allocation70_spill] sm:$0xff] }
 0xd46   :  { %4467 = vmatpush.bf16.msrb.mxu2 %v11158_v46 }
 0xd47   :  { %4534 = vmatpush.bf16.msra.mxu3 %v11119_v16 }
 0xd4a   :  { %4468 = vmatpush.bf16.msrb.mxu2 %v11159_v14 }
 0xd4b   :  { %4535 = vmatpush.bf16.msra.mxu3 %v11120_v27 }
 0xd4e   :  { %4469 = vmatpush.bf16.msrb.mxu2 %v11160_v58 }
 0xd4f   :  { %4536 = vmatpush.bf16.msra.mxu3 %v11121_v23 }
 0xd52   :  { %4470 = vmatpush.bf16.msrb.mxu2 %v11161_v34 }
 0xd55   :  { %v4102_v18 = vpop.f32.mrf.mxu3 }
 0xd56   :  { %4471 = vmatpush.bf16.msrb.mxu2 %v11162_v60  ;;  %v4103_v3 = vadd.f32 %v7770_v51, %v4102_v18 }
 0xd58   :  { %v4106_v16 = vadd.f32 %v4103_v3, %v9289_v29  ;;  %4127 = vrot.lane.b32.xlu2 %v4103_v3, %s7947_s14 }
 0xd59   :  { %4472 = vmatmul.bf16.vlgmr.msrb.gmra.mxu2 %v9833_v45 }
 0xd5a   :  { %4516 = vmatpush.bf16.msra.mxu2 %v11126_v9  ;;  %v6774_v27 = vmul.f32 -1.442695, %v4106_v16 }
 0xd5c   :  { %7704 = vpow2.f32 %v6774_v27  ;;  %v7771_v27 = vld [vmem:[%s10673_s9] ss:$0 sm:$0xff]  ;;  %s5886_s9 = sshll.u32 %s7954_s5, 4  ;;  %s5887_s9 = int_to_ptr.vmem [resolvable:$true] %s5886_s9 }
 0xd5d   :  { %v4104_v23 = vpop.f32.mrf.mxu3 }
 0xd5e   :  { %4517 = vmatpush.bf16.msra.mxu2 %v11128_v36 }
 0xd62   :  { %4518 = vmatpush.bf16.msra.mxu2 %v11130_v41  ;;  %v7705_v1 = vpop.eup %7704 }
 0xd63   :  { %v4110_v46 = vadd.f32 1.0, %v7705_v1 }
 0xd65   :  { %7706 = vrcp.f32 %v4110_v46  ;;  %v4204_v14 = vpop.f32.mrf.mxu3  ;;  %v4122_v60 = vand.u32 2147483648, %v4110_v46  ;;  %v4120_v41 = vand.u32 2147483647, %v4110_v46  ;;  %vm4116_vm11 = vweird.f32 %v4110_v46 }
 0xd66   :  { %4519 = vmatpush.bf16.msra.mxu2 %v11132_v40 }
 0xd67   :  { %vm4121_vm13 = vcmp.eq.f32.partialorder %v4120_v41, 8.507059e+37 }
 0xd6a   :  { %4520 = vmatpush.bf16.msra.mxu2 %v11136_v25  ;;  %v4123_v25 = vor.u32 1.1754944e-38, %v4122_v60 }
 0xd6b   :  { %v7707_v9 = vpop.eup %7706 }
 0xd6c   :  { %v4112_v58 = vmul.f32 %v7707_v9, %v4110_v46  ;;  %vm4117_vm10 = vweird.f32 %v7707_v9 }
 0xd6d   :  { %v4206_v34 = vpop.f32.mrf.mxu3  ;;  %vm4118_vm12 = vmor %vm4116_vm11, %vm4117_vm10 }
 0xd6e   :  { %4521 = vmatpush.bf16.msra.mxu2 %v11138_v48  ;;  %v4113_v36 = vsub.f32 1.0, %v4112_v58  ;;  %v4144_v48 = vrot.slane %v9827_v59, 2  ;;  %v11164_v58 = vld [vmem:[#allocation142_spill] sm:$0xff] }
 0xd70   :  { %v4114_v18 = vmul.f32 %v7707_v9, %v4113_v36 }
 0xd72   :  { %4522 = vmatpush.bf16.msra.mxu2 %v11140_v19  ;;  %v4115_v40 = vadd.f32 %v7707_v9, %v4114_v18 }
 0xd74   :  { %v4119_v51 = vsel %vm4118_vm12, %v7707_v9, %v4115_v40 }
 0xd75   :  { %v4256_v19 = vpop.f32.mrf.mxu3  ;;  %v9939_v3 = vsel %vm4121_vm13, %v4123_v25, %v4119_v51 }
 0xd76   :  { %4523 = vmatpush.bf16.msra.mxu2 %v11142_v62  ;;  %v9942_v16 = vmul.f32 %v4144_v48, %v9939_v3 }
 0xd79   :  { %4524 = vmatmul.bf16.vlgmr.msra.gmra.mxu2 %v9833_v45 }
 0xd7a   :  { %4568 = vmatpush.bf16.msrb.mxu2 %v11143_v20 }
 0xd7c   :  { %v4037_v20 = vpop.f32.mrf.mxu2 }
 0xd7d   :  { %v4258_v62 = vpop.f32.mrf.mxu3  ;;  %v9948_v59 = vadd.f32 %v7771_v27, %v4037_v20 }
 0xd7e   :  { %4569 = vmatpush.bf16.msrb.mxu2 %v11145_v44 }
 0xd7f   :  { %v4042_v23 = vrot.slane %v9948_v59, 6 }
 0xd81   :  { %4064 = vrot.lane.b32.xlu1 %v4042_v23, %s7947_s14 }
 0xd82   :  { %4570 = vmatpush.bf16.msrb.mxu2 %v11147_v8 }
 0xd84   :  { %v4039_v44 = vpop.f32.mrf.mxu2 }
 0xd86   :  { %4571 = vmatpush.bf16.msrb.mxu2 %v11149_v17  ;;  %v11163_v17 = vld [vmem:[#allocation156_spill] sm:$0xff] }
 0xd8a   :  { %4572 = vmatpush.bf16.msrb.mxu2 %v11151_v15 }
 0xd8c   :  { %v4191_v8 = vpop.f32.mrf.mxu2 }
 0xd8d   :  { %v4192_v1 = vadd.f32 %v4191_v8, %v11163_v17 }
 0xd8e   :  { %4573 = vmatpush.bf16.msrb.mxu2 %v11152_v6 }
 0xd8f   :  { %v4205_v15 = vadd.f32 %v4204_v14, %v4192_v1 }
 0xd91   :  { %v4315_v9 = vrot.slane %v4205_v15, 4 }
 0xd92   :  { %4574 = vmatpush.bf16.msrb.mxu2 %v11153_v7 }
 0xd93   :  { %v4319_v34 = vadd.f32 %v4315_v9, %v11164_v58 }
 0xd94   :  { %v4193_v36 = vpop.f32.mrf.mxu2 }
 0xd95   :  { %v4308_v46 = vpop.f32.mrf.mxu3  ;;  %v6776_v60 = vmul.f32 -1.442695, %v4319_v34 }
 0xd96   :  { %4575 = vmatpush.bf16.msrb.mxu2 %v11154_v38 }
 0xd97   :  { %7708 = vpow2.f32 %v6776_v60 }
 0xd99   :  { %4576 = vmatmul.bf16.vlgmr.msrb.gmra.mxu2 %v9833_v45 }
 0xd9c   :  { %v4243_v6 = vpop.f32.mrf.mxu2 }
 0xd9d   :  { %v4310_v18 = vpop.f32.mrf.mxu3  ;;  %v7709_v41 = vpop.eup %7708  ;;  %v4244_v7 = vadd.f32 %v4243_v6, %v11095_v30 }
 0xd9e   :  { %v4327_v40 = vadd.f32 1.0, %v7709_v41 }
 0xd9f   :  { %v4257_v38 = vadd.f32 %v4256_v19, %v4244_v7 }
 0xda0   :  { %7710 = vrcp.f32 %v4327_v40  ;;  %v4354_v18 = vand.u32 2147483648, %v4327_v40  ;;  %vm4348_vm15 = vweird.f32 %v4327_v40  ;;  %v4352_v41 = vand.u32 2147483647, %v4327_v40 }
 0xda1   :  { %v4361_v25 = vrot.slane %v4257_v38, 4 }
 0xda2   :  { %vm4353_vm2 = vcmp.eq.f32.partialorder %v4352_v41, 8.507059e+37 }
 0xda3   :  { %v4365_v48 = vadd.f32 %v4361_v25, %v11096_v32 }
 0xda4   :  { %v4245_v51 = vpop.f32.mrf.mxu2 }
 0xda5   :  { %v6778_v45 = vmul.f32 -1.442695, %v4365_v48  ;;  %v4355_v48 = vor.u32 1.1754944e-38, %v4354_v18 }
 0xda6   :  { %v7711_v14 = vpop.eup %7710 }
 0xda7   :  { %7712 = vpow2.f32 %v6778_v45  ;;  %v4344_v62 = vmul.f32 %v7711_v14, %v4327_v40  ;;  %vm4349_vm14 = vweird.f32 %v7711_v14 }
 0xda8   :  { %vm4350_vm1 = vmor %vm4348_vm15, %vm4349_vm14 }
 0xda9   :  { %v4345_v1 = vsub.f32 1.0, %v4344_v62 }
 0xdab   :  { %v4346_v15 = vmul.f32 %v7711_v14, %v4345_v1 }
 0xdad   :  { %v7713_v20 = vpop.eup %7712  ;;  %v4347_v34 = vadd.f32 %v7711_v14, %v4346_v15  ;;  %v4044_v15 = vadd.f32 %v4042_v23, %v9730_v52 }
 0xdae   :  { %v4373_v44 = vadd.f32 1.0, %v7713_v20 }
 0xdaf   :  { %v4351_v25 = vsel %vm4350_vm1, %v7711_v14, %v4347_v34 }
 0xdb0   :  { %7714 = vrcp.f32 %v4373_v44  ;;  %v4356_v45 = vsel %vm4353_vm2, %v4355_v48, %v4351_v25  ;;  %v4400_v20 = vand.u32 2147483648, %v4373_v44  ;;  %vm4394_vm4 = vweird.f32 %v4373_v44 }
 0xdb2   :  { %v4128_v27 = vpop.permute.xlu2 %4127  ;;  %v4401_v14 = vor.u32 1.1754944e-38, %v4400_v20  ;;  %v11167_v20 = vmov 1  }
 0xdb3   :  { %v4130_v8 = vmul.f32 %v4128_v27, %v9939_v3 }
 0xdb5   :  { %4132 = vrot.lane.b32.xlu1 %v4130_v8, %s7947_s14  ;;  %v4398_v8 = vand.u32 2147483647, %v4373_v44 }
 0xdb6   :  { %v7715_v19 = vpop.eup %7714 }
 0xdb7   :  { %v4390_v9 = vmul.f32 %v7715_v19, %v4373_v44  ;;  %vm4395_vm3 = vweird.f32 %v7715_v19  ;;  %vm4399_vm6 = vcmp.eq.f32.partialorder %v4398_v8, 8.507059e+37 }
 0xdb8   :  { %vm4396_vm5 = vmor %vm4394_vm4, %vm4395_vm3 }
 0xdb9   :  { %v4391_v36 = vsub.f32 1.0, %v4390_v9  ;;  %v6772_v9 = vmul.f32 -1.442695, %v4044_v15  ;;  %v7360_v15 = vld [vmem:[#allocation7 + $0x68] sm:$0xff] }
 0xdbb   :  { %v4392_v7 = vmul.f32 %v7715_v19, %v4391_v36  ;;  %v4423_v36 = vrot.slane %v9776_v31, 6 }
 0xdbc   :  { %v4295_v60 = vpop.f32.mrf.mxu2 }
 0xdbd   :  { %v4296_v6 = vadd.f32 %v4295_v60, %v10916_v10  ;;  %v4393_v62 = vadd.f32 %v7715_v19, %v4392_v7 }
 0xdbf   :  { %v4309_v38 = vadd.f32 %v4308_v46, %v4296_v6  ;;  %v4397_v46 = vsel %vm4396_vm5, %v7715_v19, %v4393_v62  ;;  %v7362_v62 = vld [vmem:[#allocation7 + $0x78] sm:$0xff] }
 0xdc0   :  { %v4402_v34 = vsel %vm4399_vm6, %v4401_v14, %v4397_v46  ;;  %v7359_v46 = vld [vmem:[#allocation7 + $0x60] sm:$0xff]  ;;  %v7352_v14 = vld [vmem:[#allocation7 + $0x28] sm:$0xff] }
 0xdc1   :  { %v4407_v51 = vrot.slane %v4309_v38, 4  ;;  %v4417_v60 = vsub.f32 1.0, %v4402_v34  ;;  %v4427_v6 = vmul.f32 %v4423_v36, %v4402_v34  ;;  %v7351_v34 = vld [vmem:[#allocation7 + $0x20] sm:$0xff]  ;;  %v4448_v36 = vadd.f32 %v9858_v11, %v11099_v50 }
 0xdc3   :  { %v4411_v27 = vmul.f32 %v4407_v51, %v4356_v45  ;;  %v10004_v45 = vld [vmem:[%s11165_s29] sm:$0xff] }
 0xdc4   :  { %v4297_v1 = vpop.f32.mrf.mxu2 }
 0xdc5   :  { %v4413_v40 = vadd.f32 %v4411_v27, %v9568_v26  ;;  %v10009_v27 = vld [vmem:[%s11166_s4] sm:$0x3]  ;;  %v7361_v1 = vld [vmem:[#allocation7 + $0x70] sm:$0xff] }
 0xdc6   :  { %v5028_v8 = vrot.slane %v10009_v27, 6 }
 0xdc7   :  { %7716 = vtanh.f32 %v4413_v40  ;;  %v7353_v40 = vld [vmem:[#allocation7 + $0x30] sm:$0xff] }
 0xdc8   :  { %7718 = vpow2.f32 %v6772_v9  ;;  %v7358_v9 = vld [vmem:[#allocation7 + $0x58] sm:$0xff] }
 0xdcd   :  { %v7717_v18 = vpop.eup %7716 }
 0xdce   :  { %v4419_v44 = vmul.f32 %v7717_v18, %v4417_v60  ;;  %v7719_v23 = vpop.eup %7718  ;;  %v7357_v60 = vld [vmem:[#allocation7 + $0x50] sm:$0xff] }
 0xdcf   :  { %v4048_v19 = vadd.f32 1.0, %v7719_v23  ;;  %v7356_v23 = vld [vmem:[#allocation7 + $0x48] sm:$0xff] }
 0xdd0   :  { %v9971_v41 = vadd.f32 %v4427_v6, %v4419_v44  ;;  %v7350_v6 = vld [vmem:[#allocation7 + $0x18] sm:$0xff] }
 0xdd1   :  { %7720 = vrcp.f32 %v4048_v19  ;;  %vm4054_vm8 = vweird.f32 %v4048_v19 }
 0xdd2   :  { %v4431_v59 = vpack.c.bf16 %v9971_v41, %v9971_v41 }
 0xdd4   :  { %v4435_v7 = vrot.slane %v4431_v59, 2 }
 0xdd6   :  { %4459 = vmatmul.bf16.vlgmr.msrb.gmra.mxu1 %v4435_v7  ;;  %4485 = vmatmul.bf16.vlgmr.msrb.gmra.mxu3 %v4435_v7 }
 0xdd7   :  { %4555 = vmatpush.bf16.msrb.mxu1 %v10681_v42  ;;  %4581 = vmatpush.bf16.msrb.mxu3 %v11122_v63  ;;  %v7721_v38 = vpop.eup %7720  ;;  %v4060_v63 = vand.u32 2147483648, %v4048_v19 }
 0xdd8   :  { %v4050_v42 = vmul.f32 %v7721_v38, %v4048_v19  ;;  %vm4055_vm7 = vweird.f32 %v7721_v38 }
 0xdd9   :  { %vm4056_vm9 = vmor %vm4054_vm8, %vm4055_vm7 }
 0xddb   :  { %4556 = vmatpush.bf16.msrb.mxu1 %v10685_v56  ;;  %4582 = vmatpush.bf16.msrb.mxu3 %v11123_v54  ;;  %v4051_v56 = vsub.f32 1.0, %v4050_v42  ;;  %v4058_v54 = vand.u32 2147483647, %v4048_v19  ;;  %v7355_v42 = vld [vmem:[#allocation7 + $0x40] sm:$0xff] }
 0xddc   :  { %v9977_v31 = vpop.f32.mrf.mxu2 }
 0xddd   :  { %vm4059_vm10 = vcmp.eq.f32.partialorder %v4058_v54, 8.507059e+37 }
 0xddf   :  { %4557 = vmatpush.bf16.msrb.mxu1 %v10690_v21  ;;  %4583 = vmatpush.bf16.msrb.mxu3 %v11124_v12  ;;  %v4052_v21 = vmul.f32 %v7721_v38, %v4051_v56  ;;  %v4061_v12 = vor.u32 1.1754944e-38, %v4060_v63  ;;  %v7348_v63 = vld [vmem:[#allocation7 + $0x8] sm:$0xff] }
 0xde3   :  { %4558 = vmatpush.bf16.msrb.mxu1 %v10694_v35  ;;  %4584 = vmatpush.bf16.msrb.mxu3 %v11125_v5  ;;  %v4053_v35 = vadd.f32 %v7721_v38, %v4052_v21  ;;  %v7390_v21 = vld [vmem:[%s11168_s10 + $0x78] sm:$0xff] }
 0xde4   :  { %v4475_v25 = vpop.f32.mrf.mxu2 }
 0xde5   :  { %v7349_v25 = vld [vmem:[#allocation7 + $0x10] sm:$0xff] }
 0xde6   :  { %4511 = vmatmul.bf16.vlgmr.msra.gmra.mxu1 %v4435_v7  ;;  %4537 = vmatmul.bf16.vlgmr.msra.gmra.mxu3 %v4435_v7 }
 0xde7   :  { %4559 = vmatpush.bf16.msrb.mxu1 %v10698_v47  ;;  %4585 = vmatpush.bf16.msrb.mxu3 %v11127_v28  ;;  %v4057_v47 = vsel %vm4056_vm9, %v7721_v38, %v4053_v35 }
 0xde8   :  { %v9995_v5 = vsel %vm4059_vm10, %v4061_v12, %v4057_v47  ;;  %v7347_v47 = vld [vmem:[#allocation7] sm:$0xff] }
 0xdeb   :  { %4560 = vmatpush.bf16.msrb.mxu1 %v10704_v24  ;;  %4586 = vmatpush.bf16.msrb.mxu3 %v11129_v55 }
 0xdef   :  { %4561 = vmatpush.bf16.msrb.mxu1 %v10706_v4  ;;  %4587 = vmatpush.bf16.msrb.mxu3 %v11131_v33 }
 0xdf3   :  { %4562 = vmatpush.bf16.msrb.mxu1 %v8509_v2  ;;  %4588 = vmatpush.bf16.msrb.mxu3 %v11133_v37  ;;  %v4065_v4 = vpop.permute.xlu1 %4064 }
 0xdf4   :  { %v4067_v28 = vmul.f32 %v4065_v4, %v9995_v5  ;;  %v4500_v4 = vadd.f32 %v9865_v39, %v11101_v49 }
 0xdf6   :  { %4563 = vmatmul.bf16.vlgmr.msrb.gmra.mxu1 %v4435_v7  ;;  %4589 = vmatmul.bf16.vlgmr.msrb.gmra.mxu3 %v4435_v7  ;;  %v4474_v7 = vadd.f32 %v9977_v31, %v11163_v17 }
 0xdf7   :  { %4069 = vrot.lane.b32.xlu0 %v4067_v28, %s7947_s14  ;;  %4901 = vmatpush.bf16.msra.mxu1 %v7362_v62  ;;  %v7382_v28 = vld [vmem:[%s11168_s10 + $0x38] sm:$0xff]  ;;  %v7381_v62 = vld [vmem:[%s11168_s10 + $0x30] sm:$0xff]  ;;  %s11177_s14 = sld [smem:[#allocation35_spill]] }
 0xdfb   :  { %4902 = vmatpush.bf16.msra.mxu1 %v7361_v1 }
 0xdfc   :  { %v9993_v24 = vpop.f32.mrf.mxu2 }
 0xdfd   :  { %v4526_v39 = vadd.f32 %v9993_v24, %v11095_v30 }
 0xdff   :  { %5029 = vrot.lane.b32.xlu0 %v5028_v8, %s7952_s6  ;;  %4903 = vmatpush.bf16.msra.mxu1 %v7360_v15 }
 0xe03   :  { %4904 = vmatpush.bf16.msra.mxu1 %v7359_v46  ;;  %v7380_v46 = vld [vmem:[%s11168_s10 + $0x28] sm:$0xff] }
 0xe04   :  { %v4527_v55 = vpop.f32.mrf.mxu2 }
 0xe07   :  { %4905 = vmatpush.bf16.msra.mxu1 %v7358_v9 }
 0xe0b   :  { %4906 = vmatpush.bf16.msra.mxu1 %v7357_v60 }
 0xe0f   :  { %4907 = vmatpush.bf16.msra.mxu1 %v7356_v23 }
 0xe13   :  { %4908 = vmatpush.bf16.msra.mxu1 %v7355_v42  ;;  %v7378_v42 = vld [vmem:[%s11168_s10 + $0x18] sm:$0xff] }
 0xe17   :  { %5212 = vmatpush.bf16.msrb.mxu1 %v7390_v21 }
 0xe1c   :  { %v9999_v2 = vpop.f32.mrf.mxu2 }
 0xe24   :  { %v4579_v33 = vpop.f32.mrf.mxu2 }
 0xe27   :  { %v4133_v37 = vpop.permute.xlu1 %4132 }
 0xe28   :  { %v4135_v48 = vadd.f32 %v4133_v37, %v9289_v29  ;;  %v7354_v29 = vld [vmem:[#allocation7 + $0x38] sm:$0xff] }
 0xe29   :  { %4888 = vmatpush.bf16.msra.mxu0 %v7354_v29 }
 0xe2a   :  { %7722 = vtanh.f32 %v4135_v48  ;;  %v4712_v48 = vld [vmem:[%s11169_s24] sm:$0xf] }
 0xe2b   :  { %4715 = vst [vmem:[#allocation1 + $0x3] ss:$4 sm:$0xff] %v4712_v48 }
 0xe2d   :  { %4889 = vmatpush.bf16.msra.mxu0 %v7353_v40 }
 0xe30   :  { %v7723_v51 = vpop.eup %7722 }
 0xe31   :  { %4139 = vrot.lane.b32.xlu1 %v7723_v51, %s7953_s12  ;;  %4890 = vmatpush.bf16.msra.mxu0 %v7352_v14 }
 0xe35   :  { %4891 = vmatpush.bf16.msra.mxu0 %v7351_v34 }
 0xe39   :  { %5699 = vperm.xlu1 %7496, %v10004_v45   ;;  %4892 = vmatpush.bf16.msra.mxu0 %v7350_v6  ;;  %v7385_v6 = vld [vmem:[%s11168_s10 + $0x50] sm:$0xff] }
 0xe3d   :  { %4893 = vmatpush.bf16.msra.mxu0 %v7349_v25 }
 0xe41   :  { %7499 = vset.pattern.permute.xlu1 %v11167_v20  ;;  %4894 = vmatpush.bf16.msra.mxu0 %v7348_v63  ;;  %v7387_v20 = vld [vmem:[%s11168_s10 + $0x60] sm:$0xff] }
 0xe45   :  { %4895 = vmatpush.bf16.msra.mxu0 %v7347_v47 }
 0xe49   :  { %5199 = vmatpush.bf16.msrb.mxu0 %v7382_v28 }
 0xe4d   :  { %5200 = vmatpush.bf16.msrb.mxu0 %v7381_v62 }
 0xe51   :  { %5201 = vmatpush.bf16.msrb.mxu0 %v7380_v46  ;;  %v7375_v46 = vld [vmem:[%s11168_s10] sm:$0xff] }
 0xe53   :  { %v4460_v18 = vpop.f32.mrf.mxu1 }
 0xe54   :  { %v4461_v44 = vadd.f32 %v4460_v18, %v4448_v36  ;;  %v7386_v36 = vld [vmem:[%s11168_s10 + $0x58] sm:$0xff] }
 0xe56   :  { %v4596_v59 = vrot.slane %v4461_v44, 2  ;;  %v7379_v44 = vld [vmem:[%s11168_s10 + $0x20] sm:$0xff] }
 0xe57   :  { %5202 = vmatpush.bf16.msrb.mxu0 %v7379_v44 }
 0xe58   :  { %v4600_v19 = vadd.f32 %v4596_v59, %v11100_v61  ;;  %v7389_v61 = vld [vmem:[%s11168_s10 + $0x70] sm:$0xff] }
 0xe59   :  { %v4486_v38 = vpop.f32.mrf.mxu3  ;;  %5213 = vmatpush.bf16.msrb.mxu1 %v7389_v61  ;;  %v7377_v61 = vld [vmem:[%s11168_s10 + $0x10] sm:$0xff] }
 0xe5a   :  { %v6779_v50 = vmul.f32 -1.442695, %v4600_v19  ;;  %v4487_v11 = vadd.f32 %v4486_v38, %v4474_v7 }
 0xe5b   :  { %v4462_v56 = vpop.f32.mrf.mxu1  ;;  %5203 = vmatpush.bf16.msrb.mxu0 %v7378_v42 }
 0xe5c   :  { %7724 = vpow2.f32 %v6779_v50  ;;  %v4597_v35 = vrot.slane %v4487_v11, 2  ;;  %v7384_v56 = vld [vmem:[%s11168_s10 + $0x48] sm:$0xff] }
 0xe5e   :  { %v4601_v17 = vadd.f32 %v4597_v35, %v11164_v58  ;;  %v7388_v58 = vld [vmem:[%s11168_s10 + $0x68] sm:$0xff] }
 0xe5f   :  { %5214 = vmatpush.bf16.msrb.mxu1 %v7388_v58  ;;  %5204 = vmatpush.bf16.msrb.mxu0 %v7377_v61 }
 0xe60   :  { %v6780_v31 = vmul.f32 -1.442695, %v4601_v17 }
 0xe61   :  { %v4488_v54 = vpop.f32.mrf.mxu3 }
 0xe62   :  { %v7725_v12 = vpop.eup %7724  ;;  %7726 = vpow2.f32 %v6780_v31 }
 0xe63   :  { %v10024_v55 = vadd.f32 1.0, %v7725_v12  ;;  %v4512_v33 = vpop.f32.mrf.mxu1  ;;  %5215 = vmatpush.bf16.msrb.mxu1 %v7387_v20  ;;  %v7376_v20 = vld [vmem:[%s11168_s10 + $0x8] sm:$0xff] }
 0xe64   :  { %v4513_v37 = vadd.f32 %v4512_v33, %v4500_v4  ;;  %v7383_v4 = vld [vmem:[%s11168_s10 + $0x40] sm:$0xff]  ;;  %5205 = vmatpush.bf16.msrb.mxu0 %v7376_v20 }
 0xe65   :  { %7728 = vrcp.f32 %v10024_v55  ;;  %vm4615_vm12 = vweird.f32 %v10024_v55  ;;  %v4621_v38 = vand.u32 2147483648, %v10024_v55  ;;  %v4619_v50 = vand.u32 2147483647, %v10024_v55 }
 0xe66   :  { %v4642_v51 = vrot.slane %v4513_v37, 2 }
 0xe67   :  { %5216 = vmatpush.bf16.msrb.mxu1 %v7386_v36  ;;  %v4622_v31 = vor.u32 1.1754944e-38, %v4621_v38  ;;  %vm4620_vm14 = vcmp.eq.f32.partialorder %v4619_v50, 8.507059e+37 }
 0xe68   :  { %v7727_v49 = vpop.eup %7726  ;;  %v4646_v8 = vadd.f32 %v4642_v51, %v11102_v53  ;;  %5206 = vmatpush.bf16.msrb.mxu0 %v7375_v46  ;;  %v7366_v46 = vld [vmem:[%s11170_s16 + $0x18] sm:$0xff] }
 0xe69   :  { %v10034_v1 = vadd.f32 1.0, %v7727_v49  ;;  %v4538_v29 = vpop.f32.mrf.mxu3  ;;  %v4070_v34 = vpop.permute.xlu0 %4069 }
 0xe6a   :  { %v6781_v15 = vmul.f32 -1.442695, %v4646_v8  ;;  %v4539_v40 = vadd.f32 %v4538_v29, %v4526_v39  ;;  %v4072_v53 = vadd.f32 %v4070_v34, %v9730_v52  ;;  %v4552_v52 = vadd.f32 %v9873_v57, %v11103_v0 }
 0xe6b   :  { %v7729_v14 = vpop.eup %7728  ;;  %7730 = vrcp.f32 %v10034_v1  ;;  %v4514_v9 = vpop.f32.mrf.mxu1  ;;  %5217 = vmatpush.bf16.msrb.mxu1 %v7385_v6  ;;  %v4636_v37 = vand.u32 2147483648, %v10034_v1  ;;  %vm4630_vm1 = vweird.f32 %v10034_v1  ;;  %v4634_v62 = vand.u32 2147483647, %v10034_v1 }
 0xe6c   :  { %7732 = vpow2.f32 %v6781_v15  ;;  %v4643_v30 = vrot.slane %v4539_v40, 2  ;;  %v4611_v24 = vmul.f32 %v7729_v14, %v10024_v55  ;;  %vm4616_vm11 = vweird.f32 %v7729_v14 }
 0xe6d   :  { %7734 = vtanh.f32 %v4072_v53  ;;  %vm4617_vm13 = vmor %vm4615_vm12, %vm4616_vm11  ;;  %v4578_v55 = vadd.f32 %v9999_v2, %v10916_v10  ;;  %v4637_v29 = vor.u32 1.1754944e-38, %v4636_v37  ;;  %vm4635_vm3 = vcmp.eq.f32.partialorder %v4634_v62, 8.507059e+37  ;;  %v7424_v37 = vld [vmem:[#allocation8 + $0x28] sm:$0xff]  ;;  %v7423_v62 = vld [vmem:[#allocation8 + $0x20] sm:$0xff] }
 0xe6e   :  { %v4647_v60 = vadd.f32 %v4643_v30, %v11096_v32  ;;  %v4612_v18 = vsub.f32 1.0, %v4611_v24  ;;  %v4704_v6 = vrot.slane %v9825_v13, 6  ;;  %vm5009_vm12 = vcmask 523264  }
 0xe6f   :  { %5218 = vmatpush.bf16.msrb.mxu1 %v7384_v56 }
 0xe70   :  { %v6782_v59 = vmul.f32 -1.442695, %v4647_v60  ;;  %v4613_v23 = vmul.f32 %v7729_v14, %v4612_v18 }
 0xe71   :  { %v7731_v7 = vpop.eup %7730  ;;  %v4540_v19 = vpop.f32.mrf.mxu3 }
 0xe72   :  { %v7733_v32 = vpop.eup %7732  ;;  %7736 = vpow2.f32 %v6782_v59  ;;  %v4614_v25 = vadd.f32 %v7729_v14, %v4613_v23  ;;  %v4626_v11 = vmul.f32 %v7731_v7, %v10034_v1  ;;  %vm4631_vm15 = vweird.f32 %v7731_v7 }
 0xe73   :  { %v10052_v21 = vadd.f32 1.0, %v7733_v32  ;;  %v4564_v35 = vpop.f32.mrf.mxu1  ;;  %v7735_v0 = vpop.eup %7734  ;;  %5219 = vmatpush.bf16.msrb.mxu1 %v7383_v4  ;;  %vm4632_vm2 = vmor %vm4630_vm1, %vm4631_vm15 }
 0xe74   :  { %v4565_v57 = vadd.f32 %v4564_v35, %v4552_v52  ;;  %v4618_v63 = vsel %vm4617_vm13, %v7729_v14, %v4614_v25  ;;  %v4627_v17 = vsub.f32 1.0, %v4626_v11  ;;  %4076 = vrot.lane.b32.xlu2 %v7735_v0, %s7953_s12  ;;  %v4705_v35 = vrot.slane %v9971_v41, 6  ;;  %v7425_v41 = vld [vmem:[#allocation8 + $0x30] sm:$0xff] }
 0xe75   :  { %7738 = vrcp.f32 %v10052_v21  ;;  %v4623_v12 = vsel %vm4620_vm14, %v4622_v31, %v4618_v63  ;;  %v4667_v9 = vand.u32 2147483648, %v10052_v21  ;;  %v4665_v30 = vand.u32 2147483647, %v10052_v21 }
 0xe76   :  { %v4688_v54 = vrot.slane %v4565_v57, 2  ;;  %v4628_v47 = vmul.f32 %v7731_v7, %v4627_v17  ;;  %vm4661_vm5 = vweird.f32 %v10052_v21 }
 0xe77   :  { %v4668_v18 = vor.u32 1.1754944e-38, %v4667_v9  ;;  %vm4666_vm7 = vcmp.eq.f32.partialorder %v4665_v30, 8.507059e+37 }
 0xe78   :  { %v7737_v28 = vpop.eup %7736  ;;  %v4692_v33 = vmul.f32 %v4688_v54, %v4623_v12  ;;  %v4629_v58 = vadd.f32 %v7731_v7, %v4628_v47  ;;  %v4717_v47 = vld.sshfl [vmem:[#allocation1 + $0x8] sm:$0xff pattern:$0x73625140] }
 0xe79   :  { %v4655_v48 = vadd.f32 1.0, %v7737_v28  ;;  %v4590_v51 = vpop.f32.mrf.mxu3 }
 0xe7a   :  { %v4591_v49 = vadd.f32 %v4590_v51, %v4578_v55  ;;  %v4633_v10 = vsel %vm4632_vm2, %v7731_v7, %v4629_v58  ;;  %v4694_v15 = vadd.f32 %v4692_v33, %v11104_v22  ;;  %v7426_v33 = vld [vmem:[#allocation8 + $0x38] sm:$0xff] }
 0xe7b   :  { %v7739_v39 = vpop.eup %7738  ;;  %7740 = vrcp.f32 %v4655_v48  ;;  %v4566_v2 = vpop.f32.mrf.mxu1  ;;  %v4638_v1 = vsel %vm4635_vm3, %v4637_v29, %v4633_v10  ;;  %v4682_v7 = vand.u32 2147483648, %v4655_v48  ;;  %v4680_v19 = vand.u32 2147483647, %v4655_v48  ;;  %v7370_v29 = vld [vmem:[%s11170_s16 + $0x38] sm:$0xff] }
 0xe7c   :  { %v4657_v8 = vmul.f32 %v7739_v39, %v10052_v21  ;;  %v4689_v40 = vrot.slane %v4591_v49, 2  ;;  %vm4662_vm4 = vweird.f32 %v7739_v39  ;;  %7742 = vtanh.f32 %v4694_v15  ;;  %4967 = vmatpush.bf16.msra.mxu2 %v7370_v29  ;;  %v7368_v15 = vld [vmem:[%s11170_s16 + $0x28] sm:$0xff] }
 0xe7d   :  { %vm4663_vm6 = vmor %vm4661_vm5, %vm4662_vm4  ;;  %vm4676_vm9 = vweird.f32 %v4655_v48  ;;  %v4683_v56 = vor.u32 1.1754944e-38, %v4682_v7  ;;  %vm4681_vm11 = vcmp.eq.f32.partialorder %v4680_v19, 8.507059e+37 }
 0xe7e   :  { %v4658_v14 = vsub.f32 1.0, %v4657_v8  ;;  %v4693_v34 = vmul.f32 %v4689_v40, %v4638_v1  ;;  %v7420_v8 = vld [vmem:[#allocation8 + $0x8] sm:$0xff]  ;;  %v7367_v40 = vld [vmem:[%s11170_s16 + $0x20] sm:$0xff]  ;;  %v4074_v1 = vsub.f32 1.0, %v9995_v5 }
 0xe80   :  { %v4659_v36 = vmul.f32 %v7739_v39, %v4658_v14  ;;  %v4695_v44 = vadd.f32 %v4693_v34, %v9568_v26  ;;  %v4716_v26 = vld.sshfl [vmem:[#allocation1] sm:$0xff pattern:$0x73625140]  ;;  %v4081_v14 = vrot.slane %v9849_v43, 6 }
 0xe81   :  { %v7741_v53 = vpop.eup %7740  ;;  %v4592_v24 = vpop.f32.mrf.mxu3  ;;  %v7363_v43 = vld [vmem:[%s11170_s16] sm:$0xff] }
 0xe82   :  { %v4672_v60 = vmul.f32 %v7741_v53, %v4655_v48  ;;  %v4660_v22 = vadd.f32 %v7739_v39, %v4659_v36  ;;  %vm4677_vm8 = vweird.f32 %v7741_v53  ;;  %v7743_v50 = vpop.eup %7742  ;;  %7744 = vtanh.f32 %v4695_v44  ;;  %v5030_v36 = vpop.permute.xlu0 %5029  ;;  %v7394_v44 = vld [vmem:[%s11168_s10 + $0x98] sm:$0xff] }
 0xe83   :  { %vm4678_vm10 = vmor %vm4676_vm9, %vm4677_vm8  ;;  %v4137_v48 = vsub.f32 1.0, %v9939_v3  ;;  %v7421_v3 = vld [vmem:[#allocation8 + $0x10] sm:$0xff]  ;;  %v4083_v34 = vmul.f32 %v4081_v14, %v9995_v5 }
 0xe84   :  { %v4673_v59 = vsub.f32 1.0, %v4672_v60  ;;  %v4664_v23 = vsel %vm4663_vm6, %v7739_v39, %v4660_v22  ;;  %v7422_v39 = vld [vmem:[#allocation8 + $0x18] sm:$0xff]  ;;  %v7365_v22 = vld [vmem:[%s11170_s16 + $0x10] sm:$0xff]  ;;  %vm5456_vm6 = vcmask 254976  }
 0xe85   :  { %v4669_v52 = vsel %vm4666_vm7, %v4668_v18, %v4664_v23  ;;  %v7364_v18 = vld [vmem:[%s11170_s16 + $0x8] sm:$0xff]  ;;  %vm5470_vm7 = vcmask 0  }
 0xe86   :  { %v4674_v38 = vmul.f32 %v7741_v53, %v4673_v59  ;;  %v4698_v32 = vsub.f32 1.0, %v4669_v52  ;;  %v4708_v25 = vmul.f32 %v4704_v6, %v4669_v52  ;;  %v7393_v6 = vld [vmem:[%s11168_s10 + $0x90] sm:$0xff]  ;;  %v7505_v59 = vld [vmem:[%s11171_s15] ss:$0 sm:$0xff] }
 0xe88   :  { %v4700_v11 = vmul.f32 %v7743_v50, %v4698_v32  ;;  %v4675_v42 = vadd.f32 %v7741_v53, %v4674_v38  ;;  %v7745_v61 = vpop.eup %7744  ;;  %v7374_v50 = vld [vmem:[%s11172_s18 + $0x18] sm:$0xff] }
 0xe89   :  { %5017 = vmatpush.bf16.msra.mxu3 %v7374_v50 }
 0xe8a   :  { %v4710_v21 = vadd.f32 %v4708_v25, %v4700_v11  ;;  %v4679_v13 = vsel %vm4678_vm10, %v7741_v53, %v4675_v42  ;;  %v7373_v42 = vld [vmem:[%s11172_s18 + $0x10] sm:$0xff] }
 0xe8b   :  { %v4684_v0 = vsel %vm4681_vm11, %v4683_v56, %v4679_v13  ;;  %v7372_v56 = vld [vmem:[%s11172_s18 + $0x8] sm:$0xff] }
 0xe8c   :  { %v4699_v57 = vsub.f32 1.0, %v4684_v0  ;;  %v4709_v63 = vmul.f32 %v4705_v35, %v4684_v0  ;;  %v4720_v17 = vmul.f32 %v4716_v26, %v4710_v21 }
 0xe8d   :  { %5018 = vmatpush.bf16.msra.mxu3 %v7373_v42  ;;  %v7435_v42 = vld [vmem:[#allocation8 + $0x80] sm:$0xff] }
 0xe8e   :  { %v4701_v31 = vmul.f32 %v7745_v61, %v4699_v57  ;;  %v4781_v54 = vpack.c.bf16 %v4720_v17, %v4720_v17  ;;  %v7392_v17 = vld [vmem:[%s11168_s10 + $0x88] sm:$0xff]  ;;  %v7391_v61 = vld [vmem:[%s11168_s10 + $0x80] sm:$0xff] }
 0xe90   :  { %v4711_v12 = vadd.f32 %v4709_v63, %v4701_v31  ;;  %v4788_v4 = vrot.slane %v4781_v54, 3  ;;  %v7371_v63 = vld [vmem:[%s11172_s18] sm:$0xff] }
 0xe91   :  { %5019 = vmatpush.bf16.msra.mxu3 %v7372_v56  ;;  %v7506_v31 = vld [vmem:[%s11173_s23] ss:$0 sm:$0xff] }
 0xe92   :  { %4896 = vmatmul.bf16.vlgmr.msra.gmra.mxu0 %v4788_v4  ;;  %v4721_v28 = vmul.f32 %v4717_v47, %v4711_v12 }
 0xe94   :  { %v4782_v55 = vpack.c.bf16 %v4721_v28, %v4721_v28 }
 0xe95   :  { %5020 = vmatpush.bf16.msra.mxu3 %v7371_v63  ;;  %v7510_v63 = vld [vmem:[%s11179_s28] ss:$0 sm:$0xff] }
 0xe96   :  { %v10075_v58 = vrot.slane %v4782_v55, 3 }
 0xe98   :  { %4909 = vmatmul.bf16.vlgmr.msra.gmra.mxu1 %v10075_v58 }
 0xe99   :  { %5667 = vmatpush.bf16.msra.mxu1 %v7426_v33  ;;  %5096 = vmatpush.bf16.msrb.mxu3 %v7392_v17 }
 0xe9d   :  { %5668 = vmatpush.bf16.msra.mxu1 %v7425_v41  ;;  %5097 = vmatpush.bf16.msrb.mxu3 %v7391_v61 }
 0xea1   :  { %5669 = vmatpush.bf16.msra.mxu1 %v7424_v37 }
 0xea2   :  { %5207 = vmatmul.bf16.vlgmr.msrb.gmra.mxu0 %v4788_v4 }
 0xea3   :  { %v4140_v51 = vpop.permute.xlu1 %4139 }
 0xea4   :  { %v4142_v20 = vmul.f32 %v4140_v51, %v4137_v48  ;;  %v7401_v48 = vld [vmem:[%s11174_s26 + $0x30] sm:$0xff]  ;;  %v5475_v51 = vld [vmem:[%s11165_s29 + $0x8] sm:$0xff] }
 0xea5   :  { %5670 = vmatpush.bf16.msra.mxu1 %v7423_v62  ;;  %5715 = vperm.xlu1 %7499, %v5475_v51   ;;  %v7400_v62 = vld [vmem:[%s11174_s26 + $0x28] sm:$0xff] }
 0xea6   :  { %v4147_v49 = vadd.f32 %v9942_v16, %v4142_v20  ;;  %v7419_v16 = vld [vmem:[#allocation8] sm:$0xff]  ;;  %v7399_v20 = vld [vmem:[%s11174_s26 + $0x20] sm:$0xff] }
 0xea8   :  { %v5033_v10 = vmul.f32 %v10009_v27, %v4147_v49  ;;  %5220 = vmatmul.bf16.vlgmr.msrb.gmra.mxu1 %v10075_v58  ;;  %v7369_v27 = vld [vmem:[%s11170_s16 + $0x30] sm:$0xff]  ;;  %v7398_v49 = vld [vmem:[%s11174_s26 + $0x18] sm:$0xff] }
 0xea9   :  { %5671 = vmatpush.bf16.msra.mxu1 %v7422_v39  ;;  %4968 = vmatpush.bf16.msra.mxu2 %v7369_v27  ;;  %v7397_v39 = vld [vmem:[%s11174_s26 + $0x10] sm:$0xff] }
 0xeaa   :  { %v5229_v2 = vpack.c.bf16 %v5033_v10, %v5033_v10  ;;  %v7396_v10 = vld [vmem:[%s11174_s26 + $0x8] sm:$0xff] }
 0xeab   :  { %v10136_v56 = vpop.permute.xlu1 %5699 }
 0xeac   :  { %5231 = vrot.lane.b32.xlu0 %v5229_v2, %s7953_s12  ;;  %v7395_v2 = vld [vmem:[%s11174_s26] sm:$0xff] }
 0xead   :  { %5672 = vmatpush.bf16.msra.mxu1 %v7421_v3  ;;  %4969 = vmatpush.bf16.msra.mxu2 %v7368_v15  ;;  %v7507_v3 = vld [vmem:[%s11175_s0] ss:$0 sm:$0xff] }
 0xeb1   :  { %5673 = vmatpush.bf16.msra.mxu1 %v7420_v8  ;;  %4970 = vmatpush.bf16.msra.mxu2 %v7367_v40 }
 0xeb4   :  { %5711 = vperm.xlu0 %7497, %v10004_v45  }
 0xeb5   :  { %5674 = vmatpush.bf16.msra.mxu1 %v7419_v16  ;;  %4971 = vmatpush.bf16.msra.mxu2 %v7366_v46 }
 0xeb8   :  { %5675 = vmatmul.bf16.vlgmr.msra.gmra.mxu1 %v4788_v4  ;;  %v7402_v4 = vld [vmem:[%s11174_s26 + $0x38] sm:$0xff] }
 0xeb9   :  { %4972 = vmatpush.bf16.msra.mxu2 %v7365_v22  ;;  %v7403_v22 = vld [vmem:[%s11177_s14] sm:$0xff] }
 0xebd   :  { %4973 = vmatpush.bf16.msra.mxu2 %v7364_v18  ;;  %v7434_v18 = vld [vmem:[#allocation8 + $0x78] sm:$0xff] }
 0xec1   :  { %4974 = vmatpush.bf16.msra.mxu2 %v7363_v43  ;;  %v7433_v43 = vld [vmem:[#allocation8 + $0x70] sm:$0xff] }
 0xec5   :  { %5254 = vmatpush.bf16.msrb.mxu2 %v7394_v44  ;;  %v7432_v44 = vld [vmem:[#allocation8 + $0x68] sm:$0xff] }
 0xec9   :  { %5255 = vmatpush.bf16.msrb.mxu2 %v7393_v6  ;;  %v7431_v6 = vld [vmem:[#allocation8 + $0x60] sm:$0xff] }
 0xece   :  { %v4077_v45 = vpop.permute.xlu2 %4076 }
 0xecf   :  { %v4079_v9 = vmul.f32 %v4077_v45, %v4074_v1  ;;  %v7508_v1 = vld [vmem:[%s11176_s2] ss:$0 sm:$0xff] }
 0xed1   :  { %v4084_v30 = vadd.f32 %v4083_v34, %v4079_v9 }
 0xed3   :  { %v5032_v53 = vmul.f32 %v5030_v36, %v4084_v30 }
 0xed5   :  { %v5070_v24 = vpack.c.bf16 %v5032_v53, %v5032_v53  ;;  %v7406_v53 = vld [vmem:[%s11177_s14 + $0x18] sm:$0xff] }
 0xed7   :  { %v5072_v60 = vrot.slane %v5070_v24, 1  ;;  %v7405_v24 = vld [vmem:[%s11177_s14 + $0x10] sm:$0xff] }
 0xed9   :  { %5073 = vrot.lane.b32.xlu2 %v5072_v60, %s7953_s12  ;;  %v7404_v60 = vld [vmem:[%s11177_s14 + $0x8] sm:$0xff] }
 0xee1   :  { %5704 = vperm.xlu2 %7498, %v5475_v51  }
 0xf0f   :  { %v4897_v5 = vpop.f32.mrf.mxu0 }
 0xf10   :  { %v4898_v23 = vadd.f32 %v7505_v59, %v4897_v5  ;;  %v7430_v5 = vld [vmem:[#allocation8 + $0x58] sm:$0xff]  ;;  %v7429_v59 = vld [vmem:[#allocation8 + $0x50] sm:$0xff] }
 0xf15   :  { %v4910_v7 = vpop.f32.mrf.mxu1 }
 0xf16   :  { %v4911_v52 = vadd.f32 %v4910_v7, %v4898_v23  ;;  %v7428_v23 = vld [vmem:[#allocation8 + $0x48] sm:$0xff]  ;;  %v7427_v7 = vld [vmem:[#allocation8 + $0x40] sm:$0xff] }
 0xf17   :  { %v4899_v19 = vpop.f32.mrf.mxu0 }
 0xf18   :  { %v4914_v38 = vmax.f32 %v4911_v52, 0.0  ;;  %v7436_v52 = vld [vmem:[#allocation8 + $0x88] sm:$0xff]  ;;  %v7509_v19 = vld [vmem:[%s11178_s22] ss:$0 sm:$0xff] }
 0xf19   :  { %5564 = vmatpush.bf16.msra.mxu0 %v7436_v52 }
 0xf1a   :  { %v4915_v32 = vpack.c.bf16 %v4914_v38, %v4914_v38 }
 0xf1c   :  { %4975 = vmatmul.bf16.vlgmr.msra.gmra.mxu2 %v4915_v32 }
 0xf1d   :  { %v4912_v25 = vpop.f32.mrf.mxu1  ;;  %5395 = vmatpush.bf16.msra.mxu2 %v7406_v53  ;;  %5565 = vmatpush.bf16.msra.mxu0 %v7435_v42 }
 0xf1e   :  { %v5232_v13 = vpop.permute.xlu0 %5231 }
 0xf1f   :  { %v5208_v11 = vpop.f32.mrf.mxu0 }
 0xf21   :  { %5396 = vmatpush.bf16.msra.mxu2 %v7405_v24 }
 0xf25   :  { %v5221_v26 = vpop.f32.mrf.mxu1  ;;  %5397 = vmatpush.bf16.msra.mxu2 %v7404_v60 }
 0xf27   :  { %v5210_v21 = vpop.f32.mrf.mxu0 }
 0xf29   :  { %5398 = vmatpush.bf16.msra.mxu2 %v7403_v22 }
 0xf2c   :  { %6977 = vmatmul.msk.bf16.vlgmr.msrb.gmra.mxu2 %vm1995_vm0, %v5232_v13 }
 0xf2d   :  { %v5223_v35 = vpop.f32.mrf.mxu1  ;;  %5680 = vmatpush.bf16.msrb.mxu2 %v7434_v18 }
 0xf31   :  { %5681 = vmatpush.bf16.msrb.mxu2 %v7433_v43 }
 0xf33   :  { %v5074_v41 = vpop.permute.xlu2 %5073 }
 0xf35   :  { %v10103_v0 = vpop.f32.mrf.mxu1  ;;  %5682 = vmatpush.bf16.msrb.mxu2 %v7432_v44 }
 0xf39   :  { %5683 = vmatpush.bf16.msrb.mxu2 %v7431_v6 }
 0xf3d   :  { %v5678_v57 = vpop.f32.mrf.mxu1  ;;  %5684 = vmatpush.bf16.msrb.mxu2 %v7430_v5 }
 0xf41   :  { %5685 = vmatpush.bf16.msrb.mxu2 %v7429_v59 }
 0xf45   :  { %5686 = vmatpush.bf16.msrb.mxu2 %v7428_v23 }
 0xf49   :  { %5687 = vmatpush.bf16.msrb.mxu2 %v7427_v7 }
 0xf9f   :  { %v4976_v54 = vpop.f32.mrf.mxu2 }
 0xfa0   :  { %v4977_v47 = vadd.f32 %v7506_v31, %v4976_v54 }
 0xfa2   :  { %v4980_v12 = vmax.f32 %v4977_v47, 0.0 }
 0xfa4   :  { %v4981_v28 = vpack.c.bf16 %v4980_v12, %v4980_v12 }
 0xfa6   :  { %6895 = vmatmul.msk.bf16.vlgmr.msra.gmra.mxu3 %vm5009_vm12, %v4981_v28 }
 0xfa7   :  { %v4978_v55 = vpop.f32.mrf.mxu2  ;;  %5337 = vmatpush.bf16.msra.mxu3 %v7402_v4 }
 0xfab   :  { %5338 = vmatpush.bf16.msra.mxu3 %v7401_v48 }
 0xfaf   :  { %v5257_v33 = vpop.f32.mrf.mxu2  ;;  %5339 = vmatpush.bf16.msra.mxu3 %v7400_v62 }
 0xfb3   :  { %5340 = vmatpush.bf16.msra.mxu3 %v7399_v20 }
 0xfb6   :  { %6904 = vmatmul.msk.bf16.vlgmr.msrb.gmra.mxu3 %vm1995_vm0, %v5074_v41 }
 0xfb7   :  { %v5259_v37 = vpop.f32.mrf.mxu2  ;;  %5341 = vmatpush.bf16.msra.mxu3 %v7398_v49 }
 0xfbb   :  { %5342 = vmatpush.bf16.msra.mxu3 %v7397_v39 }
 0xfbf   :  { %5343 = vmatpush.bf16.msra.mxu3 %v7396_v10 }
 0xfc3   :  { %5344 = vmatpush.bf16.msra.mxu3 %v7395_v2  ;;  %v10147_v2 = vpop.permute.xlu2 %5704 }
 0xfc7   :  { %5751 = vmatpush.bf16.msrb.mxu3 %v7436_v52 }
 0xfcb   :  { %5752 = vmatpush.bf16.msrb.mxu3 %v7435_v42 }
0x1029   :  { %v5022_v8 = vpop.f32.mrf.mxu3 }
0x102a   :  { %v10121_v16 = vadd.f32 %v7507_v3, %v5022_v8 }
0x102c   :  { %v5406_v29 = vmul.f32 1.442695, %v10121_v16 }
0x102e   :  { %7746 = vpow2.f32 %v5406_v29 }
0x1031   :  { %v5024_v27 = vpop.f32.mrf.mxu3 }
0x1032   :  { %v10149_v27 = vpop.permute.xlu0 %5711 }
0x1034   :  { %v10124_v15 = vpop.eup %7746 }
0x1035   :  { %5426 = vrot.lane.b32.xlu1 %v10124_v15, %s7953_s12  ;;  %7748 = vrcp.f32 %v10124_v15  ;;  %v5419_v55 = vand.u32 2147483648, %v10124_v15  ;;  %vm5413_vm14 = vweird.f32 %v10124_v15  ;;  %v5417_v41 = vand.u32 2147483647, %v10124_v15 }
0x1037   :  { %v5420_v51 = vor.u32 1.1754944e-38, %v5419_v55  ;;  %vm5418_vm1 = vcmp.eq.f32.partialorder %v5417_v41, 8.507059e+37 }
0x1039   :  { %v5099_v40 = vpop.f32.mrf.mxu3 }
0x103a   :  { %v5209_v46 = vadd.f32 %v5208_v11, %v5099_v40 }
0x103b   :  { %v7749_v21 = vpop.eup %7748 }
0x103c   :  { %v5222_v14 = vadd.f32 %v5221_v26, %v5209_v46  ;;  %v10139_v26 = vpop.permute.xlu1 %5715  ;;  %v5409_v13 = vmul.f32 %v7749_v21, %v10124_v15  ;;  %vm5414_vm13 = vweird.f32 %v7749_v21 }
0x103d   :  { %vm5415_vm15 = vmor %vm5413_vm14, %vm5414_vm13 }
0x103e   :  { %v5261_v45 = vadd.f32 %v5257_v33, %v5222_v14  ;;  %v5410_v57 = vsub.f32 1.0, %v5409_v13  ;;  %v7413_v13 = vld [vmem:[%s11181_s7 + $0x30] sm:$0xff] }
0x1040   :  { %v5266_v9 = vadd.f32 %v7508_v1, %v5261_v45  ;;  %v5411_v61 = vmul.f32 %v7749_v21, %v5410_v57  ;;  %v7411_v57 = vld [vmem:[%s11181_s7 + $0x20] sm:$0xff] }
0x1041   :  { %v5101_v34 = vpop.f32.mrf.mxu3 }
0x1042   :  { %v5267_v36 = vmax.f32 %v5266_v9, 0.0  ;;  %v5412_v4 = vadd.f32 %v7749_v21, %v5411_v61  ;;  %v7409_v61 = vld [vmem:[%s11181_s7 + $0x10] sm:$0xff] }
0x1044   :  { %v5284_v30 = vpack.c.bf16 %v5267_v36, %v5267_v36  ;;  %v5416_v48 = vsel %vm5415_vm15, %v7749_v21, %v5412_v4  ;;  %v7414_v21 = vld [vmem:[%s11181_s7 + $0x38] sm:$0xff]  ;;  %v7511_v4 = vld [vmem:[%s11182_s11] ss:$0 sm:$0xff] }
0x1045   :  { %v5421_v49 = vsel %vm5418_vm1, %v5420_v51, %v5416_v48  ;;  %5815 = vmatpush.bf16.msrb.mxu0 %v7414_v21 }
0x1046   :  { %5345 = vmatmul.bf16.vlgmr.msra.gmra.mxu3 %v5284_v30 }
0x1049   :  { %5816 = vmatpush.bf16.msrb.mxu0 %v7413_v13 }
0x10a7   :  { %v5427_v35 = vpop.permute.xlu1 %5426 }
0x10a8   :  { %7750 = vrcp.f32 %v5427_v35  ;;  %v5440_v30 = vand.u32 2147483648, %v5427_v35  ;;  %vm5434_vm3 = vweird.f32 %v5427_v35  ;;  %v5438_v53 = vand.u32 2147483647, %v5427_v35 }
0x10aa   :  { %v5441_v22 = vor.u32 1.1754944e-38, %v5440_v30  ;;  %vm5439_vm5 = vcmp.eq.f32.partialorder %v5438_v53, 8.507059e+37  ;;  %v7415_v30 = vld [vmem:[%s8158_s30] sm:$0xff] }
0x10c9   :  { %v5346_v38 = vpop.f32.mrf.mxu3 }
0x10ca   :  { %v5347_v32 = vadd.f32 %v7509_v19, %v5346_v38  ;;  %v5472_v19 = vld [vmem:[%s11180_s1] sm:$0xff]  ;;  %v5473_v38 = vld [vmem:[%s11180_s1 + $0x8] sm:$0xff] }
0x10cc   :  { %v5350_v25 = vmax.f32 %v5347_v32, 0.0 }
0x10ce   :  { %v5359_v50 = vpack.c.bf16 %v5350_v25, %v5350_v25 }
0x10d0   :  { %7026 = vmatmul.msk.bf16.vlgmr.msra.gmra.mxu2 %vm5009_vm12, %v5359_v50 }
0x10d1   :  { %v5348_v11 = vpop.f32.mrf.mxu3 }
0x10e0   :  { %5688 = vmatmul.bf16.vlgmr.msrb.gmra.mxu2 %v10075_v58  ;;  %v7751_v58 = vpop.eup %7750 }
0x10e1   :  { %v5430_v33 = vmul.f32 %v7751_v58, %v5427_v35  ;;  %vm5435_vm2 = vweird.f32 %v7751_v58  ;;  %v7412_v35 = vld [vmem:[%s11181_s7 + $0x28] sm:$0xff] }
0x10e2   :  { %vm5436_vm4 = vmor %vm5434_vm3, %vm5435_vm2  ;;  %5817 = vmatpush.bf16.msrb.mxu0 %v7412_v35 }
0x10e3   :  { %v5431_v62 = vsub.f32 1.0, %v5430_v33 }
0x10e5   :  { %v5432_v3 = vmul.f32 %v7751_v58, %v5431_v62 }
0x10e6   :  { %5818 = vmatpush.bf16.msrb.mxu0 %v7411_v57 }
0x10e7   :  { %v5433_v36 = vadd.f32 %v7751_v58, %v5432_v3 }
0x10e9   :  { %v5437_v60 = vsel %vm5436_vm4, %v7751_v58, %v5433_v36  ;;  %v7408_v58 = vld [vmem:[%s11181_s7 + $0x8] sm:$0xff] }
0x10ea   :  { %v5442_v43 = vsel %vm5439_vm5, %v5441_v22, %v5437_v60  ;;  %v7416_v36 = vld [vmem:[%s8158_s30 + $0x8] sm:$0xff] }
0x1153   :  { %v5400_v17 = vpop.f32.mrf.mxu2 }
0x1154   :  { %v5401_v31 = vadd.f32 %v7510_v63, %v5400_v17  ;;  %v7410_v63 = vld [vmem:[%s11181_s7 + $0x18] sm:$0xff] }
0x1155   :  { %5819 = vmatpush.bf16.msrb.mxu0 %v7410_v63 }
0x1156   :  { %v5404_v54 = vmul.f32 1.442695, %v5401_v31  ;;  %v5539_v47 = vmul.f32 0.5, %v5401_v31  ;;  %v5542_v12 = vpack.c.bf16 %v5401_v31, %v5401_v31  ;;  %v5423_v34 = vsub.f32 %v10121_v16, %v5401_v31 }
0x1158   :  { %7752 = vpow2.f32 %v5404_v54  ;;  %v5540_v28 = vmul.f32 1.442695, %v5539_v47  ;;  %7036 = vmatmul.msk.bf16.vlgmr.msra.gmra.mxu0 %vm1995_vm0, %v5542_v12  ;;  %v5424_v24 = vmul.f32 %v5423_v34, %v5423_v34  ;;  %v7407_v54 = vld [vmem:[%s11181_s7] sm:$0xff] }
0x1159   :  { %5820 = vmatpush.bf16.msrb.mxu0 %v7409_v61 }
0x115a   :  { %7754 = vpow2.f32 %v5540_v28  ;;  %v5443_v44 = vmul.f32 %v5442_v43, %v5424_v24  ;;  %v7512_v24 = vld [vmem:[%s11183_s20] ss:$0 sm:$0xff] }
0x115b   :  { %v5402_v37 = vpop.f32.mrf.mxu2 }
0x115d   :  { %5821 = vmatpush.bf16.msrb.mxu0 %v7408_v58 }
0x115e   :  { %v7753_v20 = vpop.eup %7752 }
0x115f   :  { %v5422_v39 = vmul.f32 %v7753_v20, %v5421_v49 }
0x1160   :  { %v7755_v10 = vpop.eup %7754 }
0x1161   :  { %v5723_v8 = vperm.slane %v7755_v10, 0  ;;  %v5726_v29 = vperm.slane %v7755_v10, 1  ;;  %5822 = vmatpush.bf16.msrb.mxu0 %v7407_v54 }
0x1163   :  { %v5724_v15 = vmul.f32 %v5723_v8, %v10136_v56  ;;  %v5728_v40 = vmul.f32 %v5726_v29, %v10139_v26  ;;  %v5725_v46 = vmul.f32 %v5723_v8, %v10147_v2  ;;  %v5689_v14 = vpop.f32.mrf.mxu2  ;;  %v5727_v1 = vmul.f32 %v5726_v29, %v10149_v27 }
0x1165   :  { %v5730_v45 = vadd.f32 %v5728_v40, %v5725_v46  ;;  %v5729_v9 = vadd.f32 %v5727_v1, %v5724_v15  ;;  %v7418_v15 = vld [vmem:[%s8158_s30 + $0x18] sm:$0xff] }
0x1166   :  { %5866 = vmatpush.bf16.msra.mxu3 %v7418_v15 }
0x1167   :  { %5733 = vrot.lane.b32.xlu2 %v5729_v9, %s7953_s12  ;;  %5735 = vrot.lane.b32.xlu0 %v5730_v45, %s7953_s12 }
0x116b   :  { %v5691_v18 = vpop.f32.mrf.mxu2 }
0x116f   :  { %5445 = vrot.lane.b32.xlu2 %v5443_v44, %s7952_s6 }
0x11c1   :  { %v5734_v16 = vpop.permute.xlu2 %5733 }
0x11c2   :  { %v5739_v25 = vmul.f32 %v5734_v16, %v5472_v19 }
0x11c9   :  { %v5446_v6 = vpop.permute.xlu2 %5445 }
0x11ca   :  { %v5448_v5 = vadd.f32 %v5446_v6, %v5422_v39 }
0x11cc   :  { %v7027_v59 = vadd.f32 -1.0, %v5448_v5 }
0x11ce   :  { %v5450_v23 = vadd.f32 %v7027_v59, %v5423_v34  ;;  %v7417_v34 = vld [vmem:[%s8158_s30 + $0x10] sm:$0xff]  ;;  %s7882_s30 = scalar_lea.hbm %s7881_s25, 1 }
0x11cf   :  { %5867 = vmatpush.bf16.msra.mxu3 %v7417_v34  ;;  %p7883_p6 = scmp.ne.s32.totalorder %s7881_s25, %s7882_s30  ;;  %p7886_p8 = scmp.lt.s32.totalorder %s7884_s3, %s7882_s30 }
0x11d0   :  { %v5451_v7 = vmul.f32 0.5, %v5450_v23 }
0x11d1   :  { %p7887_p9 = por %p7886_p8, %p7885_p7 }
0x11d2   :  { %5453 = vrot.lane.b32.xlu0 %v5451_v7, %s7953_s12 }
0x11d3   :  { %5868 = vmatpush.bf16.msra.mxu3 %v7416_v36  ;;  %p7888_p10 = pnand %p7887_p9, %p7883_p6 }
0x11d5   :  { %v5567_v52 = vpop.f32.mrf.mxu0 }
0x11d6   :  { %v5677_v47 = vadd.f32 %v10103_v0, %v5567_v52 }
0x11d7   :  { %5869 = vmatpush.bf16.msra.mxu3 %v7415_v30 }
0x11d8   :  { %v5690_v12 = vadd.f32 %v5689_v14, %v5677_v47 }
0x11d9   :  { %v5736_v32 = vpop.permute.xlu0 %5735 }
0x11da   :  { %v5740_v50 = vmul.f32 %v5736_v32, %v5473_v38  ;;  %v5696_v28 = vadd.f32 %v7511_v4, %v5690_v12 }
0x11dc   :  { %v5741_v11 = vpack.c.bf16 %v5740_v50, %v5739_v25  ;;  %v5707_v55 = vperm.slane %v5696_v28, 0  ;;  %v5718_v33 = vperm.slane %v5696_v28, 1 }
0x11dd   :  { %v5569_v42 = vpop.f32.mrf.mxu0 }
0x11de   :  { %7101 = vmatmul.msk.bf16.vlgmr.msrb.gmra.mxu3 %vm1995_vm0, %v5741_v11  ;;  %v5708_v37 = vmul.f32 %v5707_v55, %v10136_v56  ;;  %v5719_v48 = vmul.f32 %v5718_v33, %v10149_v27  ;;  %v5709_v51 = vmul.f32 %v5707_v55, %v10147_v2  ;;  %v5720_v62 = vmul.f32 %v5718_v33, %v10139_v26 }
0x11df   :  { %vm5460_vm0 = vcmask 1041408  }
0x11e0   :  { %v5721_v20 = vadd.f32 %v5719_v48, %v5708_v37  ;;  %v5722_v39 = vadd.f32 %v5720_v62, %v5709_v51 }
0x1244   :  { %v5454_v17 = vpop.permute.xlu0 %5453 }
0x1245   :  { %v5457_v31 = vsel %vm5456_vm6, %v5454_v17, 0.0 }
0x1246   :  { %5458 = vadd.xlane.f32.xlu1 %v5457_v31 }
0x1261   :  { %v5754_v41 = vpop.f32.mrf.mxu3 }
0x1262   :  { %v5759_v49 = vadd.f32 %v5754_v41, %v5721_v20 }
0x1264   :  { %v5761_v3 = vmax.f32 %v5759_v49, 0.0 }
0x1269   :  { %v5756_v10 = vpop.f32.mrf.mxu3 }
0x126a   :  { %v5760_v0 = vadd.f32 %v5756_v10, %v5722_v39 }
0x126c   :  { %v5762_v8 = vmax.f32 %v5760_v0, 0.0 }
0x126e   :  { %v5763_v29 = vpack.c.bf16 %v5762_v8, %v5761_v3 }
0x1270   :  { %5823 = vmatmul.bf16.vlgmr.msrb.gmra.mxu0 %v5763_v29 }
0x12b9   :  { %v5459_v56 = vpop.xlane.xlu1 %5458 }
0x12ba   :  { %v5461_v27 = vsel %vm5460_vm0, %v5459_v56, 0.0 }
0x12bb   :  { %v5462_v2 = vrot.slane %v5461_v27, 4 }
0x12bd   :  { %v5463_v40 = vadd.f32 %v5462_v2, %v5461_v27 }
0x12bf   :  { %v5464_v26 = vrot.slane %v5463_v40, 2 }
0x12c1   :  { %v5465_v46 = vadd.f32 %v5464_v26, %v5463_v40 }
0x12c3   :  { %v5466_v14 = vrot.slane %v5465_v46, 1 }
0x12c5   :  { %v5467_v1 = vadd.f32 %v5466_v14, %v5465_v46 }
0x12c7   :  { %v5468_v45 = vmul.f32 0.5, %v5467_v1 }
0x12c9   :  { %v5469_v9 = vmax.f32 %v5468_v45, 0.001 }
0x12cb   :  { %5471 = vst.msk [vmem:[#allocation10] sm:$0x1] %vm5470_vm7, %v5469_v9 }
0x12ed   :  { %v5824_v53 = vpop.f32.mrf.mxu0 }
0x12ee   :  { %v5825_v60 = vadd.f32 %v7512_v24, %v5824_v53 }
0x12f0   :  { %v5829_v43 = vmax.f32 %v5825_v60, 0.0 }
0x12f5   :  { %v5826_v22 = vpop.f32.mrf.mxu0 }
0x12f6   :  { %v5827_v18 = vadd.f32 %v7512_v24, %v5826_v22 }
0x12f8   :  { %v5830_v44 = vmax.f32 %v5827_v18, 0.0 }
0x12fa   :  { %v5831_v16 = vpack.c.bf16 %v5830_v44, %v5829_v43 }
0x12fc   :  { %7150 = vmatmul.msk.bf16.vlgmr.msra.gmra.mxu3 %vm5009_vm12, %v5831_v16 }
0x12fd   :  { %7891 = shalt.err (!%p7888_p10)
}
0x12fe   :  { %5891 = dma.vmem_to_hbm [thread:$0]  %s5887_s9, 16, %s5889_s13, [#allocation4]   ;;  %v7513_v6 = vld [vmem:[%s8163_s21] ss:$0 sm:$0xff]  ;;  %vm5876_vm8 = vcmask 15360  }
0x137f   :  { %v5871_v5 = vpop.f32.mrf.mxu3 }
0x1380   :  { %v5872_v59 = vadd.f32 %v7513_v6, %v5871_v5 }
0x1382   :  { %5877 = vst.msk [vmem:[%s8168_s17] sm:$0xff] %vm5876_vm8, %v5872_v59 }
0x1387   :  { %v5873_v23 = vpop.f32.mrf.mxu3 }
0x1388   :  { %v5874_v7 = vadd.f32 %v7513_v6, %v5873_v23 }
0x138a   :  { %5878 = vst.msk [vmem:[%s8168_s17 + $0x8] sm:$0xff] %vm5876_vm8, %v5874_v7 }
0x138b   :  { %7898 = dma.done.wait [#allocation4], 16  }
0x138c   :  { %7899 = vsyncadd [#allocation4], 4294967280 }
0x138d   :  { %5898 = vsyncpa [#allocation3], 1 }
0x138e   :  { %5899 = vsyncpa [#allocation6], 1 }
0x138f   :  { %5900 = vsyncpa [#allocation9], 1 }
0x1390   :  { %5901 = vsyncpa [#allocation4], 1 }

</bundles_post_ra>
